<compile_context>
chip_gen: v5e
topology: v5e:2x2
jax: 0.10.0
libtpu: 0.0.40
codegen_flags: <defaults>
</compile_context>

<pallas_src>
import functools
import numpy as np
import jax
import jax.numpy as jnp
from jax.experimental import pallas as pl
from jax.experimental.pallas import tpu as pltpu

INPUT_SIZE = 768
HIDDEN = 200
LATENT = 10          # module is used with latent_dim = 10
HP = 256             # HIDDEN padded to a lane-aligned width
GATES = 4 * HP       # 1024 (i | f | g | o), each gate slot HP lanes wide
LP = 128             # LATENT padded for a lane-dense output store
BSUB = 16            # batch padded to a full bf16 sublane tile


def _sigmoid_via_tanh(x):
    # sigmoid(x) == 0.5 * tanh(0.5 * x) + 0.5  (exact; single EUP pass)
    return 0.5 * jnp.tanh(0.5 * x) + 0.5


# ---------------------------------------------------------------------------
# Fused kernel: per time-block input projection + LSTM recurrence + final fc
# ---------------------------------------------------------------------------
def _encoder_kernel(x_ref, wx_ref, b_ref, wh_ref, wfc_ref, bfc_ref, out_ref,
                    gx_sc, h_sc, c_sc, *, steps, bpad):
    s = pl.program_id(0)

    @pl.when(s == 0)
    def _():
        h_sc[...] = jnp.zeros_like(h_sc)
        c_sc[...] = jnp.zeros_like(c_sc)

    # Hoisted input projection for this block of `steps` time steps:
    # one (steps*bpad, 768) x (768, 1024) bf16 matmul (f32 accumulate) with
    # the fused (b_ih + b_hh) bias.  Lives entirely in VMEM scratch.
    gx_sc[...] = (jnp.dot(x_ref[...], wx_ref[...],
                          preferred_element_type=jnp.float32) + b_ref[...])

    wh = wh_ref[...]                       # (HP, GATES) bf16, grid-invariant

    def step(t, carry):
        h, c = carry                       # (bpad, HP) f32 each
        row0 = pl.multiple_of(t * bpad, bpad)
        gates = gx_sc[pl.ds(row0, bpad), :] + jnp.dot(
            h.astype(jnp.bfloat16), wh, preferred_element_type=jnp.float32)
        i_g = _sigmoid_via_tanh(gates[:, 0 * HP:1 * HP])
        f_g = _sigmoid_via_tanh(gates[:, 1 * HP:2 * HP])
        g_g = jnp.tanh(gates[:, 2 * HP:3 * HP])
        o_g = _sigmoid_via_tanh(gates[:, 3 * HP:4 * HP])
        c = f_g * c + i_g * g_g            # padded lanes stay exactly 0
        h = o_g * jnp.tanh(c)
        return h, c

    h, c = jax.lax.fori_loop(0, steps, step, (h_sc[...], c_sc[...]),
                             unroll=True)
    h_sc[...] = h
    c_sc[...] = c

    @pl.when(s == pl.num_programs(0) - 1)
    def _():
        out_ref[...] = (jnp.dot(h, wfc_ref[...],
                                preferred_element_type=jnp.float32)
                        + bfc_ref[...])


# ---------------------------------------------------------------------------
# Wrapper
# ---------------------------------------------------------------------------
def _pick_tt(t, candidates=(8, 4, 2, 1)):
    """Timesteps per grid step: small divisor of T (never a giant block)."""
    for c in candidates:
        if c <= t and t % c == 0:
            return c
    return 1


def encoder_forward(x, kparams):
    """x: (B, C, H, W) with C*H*W divisible by 768."""
    wx_cat, b_cat, wh_cat, wfc_p, bfc_p = kparams

    B = x.shape[0]
    x_seq = x.reshape(B, -1, INPUT_SIZE)            # (B, T, 768)
    T = x_seq.shape[1]

    B_pad = ((B + BSUB - 1) // BSUB) * BSUB
    # Cast to bf16 BEFORE the layout change so the transpose moves half the
    # bytes; padded batch rows are zero.
    x_tbd = jnp.transpose(x_seq.astype(jnp.bfloat16), (1, 0, 2))  # (T, B, 768)
    if B_pad != B:
        x_tbd = jnp.pad(x_tbd, ((0, 0), (0, B_pad - B), (0, 0)))
    x_rows = x_tbd.reshape(T * B_pad, INPUT_SIZE)   # time-major rows

    TT = _pick_tt(T)                                # timesteps per grid step
    TM = TT * B_pad                                 # rows per block

    out = pl.pallas_call(
        functools.partial(_encoder_kernel, steps=TT, bpad=B_pad),
        out_shape=jax.ShapeDtypeStruct((B_pad, LP), jnp.float32),
        grid_spec=pltpu.PrefetchScalarGridSpec(
            num_scalar_prefetch=0,
            grid=(T // TT,),
            in_specs=[pl.BlockSpec((TM, INPUT_SIZE), lambda s: (s, 0)),
                      pl.BlockSpec((INPUT_SIZE, GATES), lambda s: (0, 0)),
                      pl.BlockSpec((1, GATES), lambda s: (0, 0)),
                      pl.BlockSpec((HP, GATES), lambda s: (0, 0)),
                      pl.BlockSpec((HP, LP), lambda s: (0, 0)),
                      pl.BlockSpec((1, LP), lambda s: (0, 0))],
            out_specs=pl.BlockSpec((B_pad, LP), lambda s: (0, 0)),
            scratch_shapes=[pltpu.VMEM((TM, GATES), jnp.float32),
                            pltpu.VMEM((B_pad, HP), jnp.float32),
                            pltpu.VMEM((B_pad, HP), jnp.float32)]),
        compiler_params=pltpu.CompilerParams(
            dimension_semantics=("arbitrary",)),     # true recurrence
    )(x_rows, wx_cat, b_cat, wh_cat, wfc_p, bfc_p)

    return out[:B, :LATENT]


# ---------------------------------------------------------------------------
# Deterministic parameter init (PyTorch-style U(-1/sqrt(H), 1/sqrt(H)))
# ---------------------------------------------------------------------------
def init_params(key):
    k = 1.0 / np.sqrt(HIDDEN)
    keys = jax.random.split(key, 6)
    w_ih = jax.random.uniform(keys[0], (4 * HIDDEN, INPUT_SIZE), jnp.float32, -k, k)
    w_hh = jax.random.uniform(keys[1], (4 * HIDDEN, HIDDEN), jnp.float32, -k, k)
    b_ih = jax.random.uniform(keys[2], (4 * HIDDEN,), jnp.float32, -k, k)
    b_hh = jax.random.uniform(keys[3], (4 * HIDDEN,), jnp.float32, -k, k)
    w_fc = jax.random.uniform(keys[4], (LATENT, HIDDEN), jnp.float32, -k, k)
    b_fc = jax.random.uniform(keys[5], (LATENT,), jnp.float32, -k, k)
    return (w_ih, w_hh, b_ih, b_hh, w_fc, b_fc)


def to_kernel_params(raw):
    """Concatenate the 4 gates (PyTorch order i,f,g,o) into single padded
    tensors, fuse b_ih + b_hh, and pad HIDDEN->HP / LATENT->LP with zeros so
    results are unchanged.  Matmul weights are cast to bf16 (f32 accumulate);
    biases and fc weights stay f32."""
    w_ih, w_hh, b_ih, b_hh, w_fc, b_fc = raw

    wx_cat = jnp.zeros((INPUT_SIZE, GATES), jnp.float32)
    wh_cat = jnp.zeros((HP, GATES), jnp.float32)
    b_cat = jnp.zeros((1, GATES), jnp.float32)
    for g in range(4):
        wx_g = w_ih[g * HIDDEN:(g + 1) * HIDDEN].T               # (768, 200)
        wh_g = w_hh[g * HIDDEN:(g + 1) * HIDDEN].T               # (200, 200)
        b_g = (b_ih[g * HIDDEN:(g + 1) * HIDDEN]
               + b_hh[g * HIDDEN:(g + 1) * HIDDEN])
        wx_cat = wx_cat.at[:, g * HP:g * HP + HIDDEN].set(wx_g)
        wh_cat = wh_cat.at[:HIDDEN, g * HP:g * HP + HIDDEN].set(wh_g)
        b_cat = b_cat.at[0, g * HP:g * HP + HIDDEN].set(b_g)

    wfc_p = jnp.zeros((HP, LP), jnp.float32).at[:HIDDEN, :LATENT].set(w_fc.T)
    bfc_p = jnp.zeros((1, LP), jnp.float32).at[0, :LATENT].set(b_fc)

    return (wx_cat.astype(jnp.bfloat16), b_cat,
            wh_cat.astype(jnp.bfloat16), wfc_p, bfc_p)


# ---------------------------------------------------------------------------
# Pure-JAX reference (matches torch nn.LSTM + nn.Linear semantics)
# ---------------------------------------------------------------------------
def reference(x, raw):
    w_ih, w_hh, b_ih, b_hh, w_fc, b_fc = raw
    B = x.shape[0]
    xs = x.reshape(B, -1, INPUT_SIZE)
    h = jnp.zeros((B, HIDDEN), jnp.float32)
    c = jnp.zeros((B, HIDDEN), jnp.float32)
    hp = jax.lax.Precision.HIGHEST
    for t in range(xs.shape[1]):
        gates = (jnp.dot(xs[:, t], w_ih.T, precision=hp) + b_ih
                 + jnp.dot(h, w_hh.T, precision=hp) + b_hh)
        i, f, g, o = jnp.split(gates, 4, axis=1)
        i = jax.nn.sigmoid(i)
        f = jax.nn.sigmoid(f)
        g = jnp.tanh(g)
        o = jax.nn.sigmoid(o)
        c = f * c + i * g
        h = o * jnp.tanh(c)
    return jnp.dot(h, w_fc.T, precision=hp) + b_fc


if __name__ == "__main__":
    key = jax.random.PRNGKey(0)
    k_x, k_p = jax.random.split(key)

    # (B, C, H, W) with C*H*W = 3072 = 4 * 768  ->  seq_len T = 4
    x = jax.random.normal(k_x, (2, 12, 16, 16), dtype=jnp.float32)

    raw_params = init_params(k_p)
    kparams = to_kernel_params(raw_params)

    out = jax.block_until_ready(encoder_forward(x, kparams))
    ref = jax.block_until_ready(reference(x, raw_params))

    assert out.shape == (2, LATENT)
    # bf16 MXU operands (f32 accumulation) vs f32 HIGHEST-precision reference.
    np.testing.assert_allclose(np.asarray(out), np.asarray(ref),
                               rtol=2e-2, atol=2e-2)

    print("KERNEL_OK")
</pallas_src>

<mosaic_0001>
module attributes {stable_mosaic.version = 11 : i64} {
  func.func @_encoder_kernel(%arg0: i32, %arg1: memref<64x768xbf16, #tpu.memory_space<vmem>>, %arg2: memref<768x1024xbf16, #tpu.memory_space<vmem>>, %arg3: memref<1x1024xf32, #tpu.memory_space<vmem>>, %arg4: memref<256x1024xbf16, #tpu.memory_space<vmem>>, %arg5: memref<256x128xf32, #tpu.memory_space<vmem>>, %arg6: memref<1x128xf32, #tpu.memory_space<vmem>>, %arg7: memref<16x128xf32, #tpu.memory_space<vmem>>, %arg8: memref<64x1024xf32, #tpu.memory_space<vmem>>, %arg9: memref<16x256xf32, #tpu.memory_space<vmem>>, %arg10: memref<16x256xf32, #tpu.memory_space<vmem>>) attributes {dimension_semantics = [#tpu.dimension_semantics<arbitrary>], iteration_bounds = array<i64: 1>, scalar_prefetch = 0 : i64, scratch_operands = 3 : i64, tpu.core_type = #tpu.core_type<tc>, window_params = [{transform_indices = @transform_0, window_bounds = array<i64: 64, 768>}, {pipeline_mode = #tpu.pipeline_mode<synchronous>, transform_indices = @transform_1, window_bounds = array<i64: 768, 1024>}, {pipeline_mode = #tpu.pipeline_mode<synchronous>, transform_indices = @transform_2, window_bounds = array<i64: 1, 1024>}, {pipeline_mode = #tpu.pipeline_mode<synchronous>, transform_indices = @transform_3, window_bounds = array<i64: 256, 1024>}, {pipeline_mode = #tpu.pipeline_mode<synchronous>, transform_indices = @transform_4, window_bounds = array<i64: 256, 128>}, {pipeline_mode = #tpu.pipeline_mode<synchronous>, transform_indices = @transform_5, window_bounds = array<i64: 1, 128>}, {pipeline_mode = #tpu.pipeline_mode<synchronous>, transform_indices = @transform_6, window_bounds = array<i64: 16, 128>}]} {
    %c0_i32 = arith.constant 0 : i32
    %0 = arith.cmpi eq, %arg0, %c0_i32 : i32
    %1 = arith.extui %0 : i1 to i32
    %c0_i32_0 = arith.constant 0 : i32
    %2 = arith.cmpi ne, %1, %c0_i32_0 : i32
    scf.if %2 {
      %cst_68 = arith.constant 0.000000e+00 : f32
      %170 = vector.broadcast %cst_68 : f32 to vector<16x256xf32>
      %c0_69 = arith.constant 0 : index
      %c0_70 = arith.constant 0 : index
      %171 = vector.load %arg9[%c0_69, %c0_70] : memref<16x256xf32, #tpu.memory_space<vmem>>, vector<16x256xf32>
      tpu.vector_store %arg9[%c0_69, %c0_70], %170 {strides = array<i32>} : memref<16x256xf32, #tpu.memory_space<vmem>>, vector<16x256xf32>,
      %cst_71 = arith.constant 0.000000e+00 : f32
      %172 = vector.broadcast %cst_71 : f32 to vector<16x256xf32>
      %c0_72 = arith.constant 0 : index
      %c0_73 = arith.constant 0 : index
      %173 = vector.load %arg10[%c0_72, %c0_73] : memref<16x256xf32, #tpu.memory_space<vmem>>, vector<16x256xf32>
      tpu.vector_store %arg10[%c0_72, %c0_73], %172 {strides = array<i32>} : memref<16x256xf32, #tpu.memory_space<vmem>>, vector<16x256xf32>,
    } else {
    }
    %c0 = arith.constant 0 : index
    %c0_1 = arith.constant 0 : index
    %3 = vector.load %arg1[%c0, %c0_1] : memref<64x768xbf16, #tpu.memory_space<vmem>>, vector<64x768xbf16>
    %c0_2 = arith.constant 0 : index
    %c0_3 = arith.constant 0 : index
    %4 = vector.load %arg2[%c0_2, %c0_3] : memref<768x1024xbf16, #tpu.memory_space<vmem>>, vector<768x1024xbf16>
    %cst = arith.constant dense<0.000000e+00> : vector<64x1024xf32>
    %5 = tpu.matmul %3, %4, %cst {dimension_numbers = #tpu.dot_dimension_numbers<[1], [0], [0], [1], [0, 0, 1, 1], [], []>} : vector<64x768xbf16>, vector<768x1024xbf16>, vector<64x1024xf32> -> vector<64x1024xf32>
    %c0_4 = arith.constant 0 : index
    %c0_5 = arith.constant 0 : index
    %6 = vector.load %arg3[%c0_4, %c0_5] : memref<1x1024xf32, #tpu.memory_space<vmem>>, vector<1x1024xf32>
    %7 = vector.broadcast %6 : vector<1x1024xf32> to vector<64x1024xf32>
    %8 = arith.addf %5, %7 : vector<64x1024xf32>
    %c0_6 = arith.constant 0 : index
    %c0_7 = arith.constant 0 : index
    %9 = vector.load %arg8[%c0_6, %c0_7] : memref<64x1024xf32, #tpu.memory_space<vmem>>, vector<64x1024xf32>
    tpu.vector_store %arg8[%c0_6, %c0_7], %8 {strides = array<i32>} : memref<64x1024xf32, #tpu.memory_space<vmem>>, vector<64x1024xf32>,
    %c0_8 = arith.constant 0 : index
    %c0_9 = arith.constant 0 : index
    %10 = vector.load %arg4[%c0_8, %c0_9] : memref<256x1024xbf16, #tpu.memory_space<vmem>>, vector<256x1024xbf16>
    %c0_10 = arith.constant 0 : index
    %c0_11 = arith.constant 0 : index
    %11 = vector.load %arg9[%c0_10, %c0_11] : memref<16x256xf32, #tpu.memory_space<vmem>>, vector<16x256xf32>
    %c0_12 = arith.constant 0 : index
    %c0_13 = arith.constant 0 : index
    %12 = vector.load %arg10[%c0_12, %c0_13] : memref<16x256xf32, #tpu.memory_space<vmem>>, vector<16x256xf32>
    %c0_i32_14 = arith.constant 0 : i32
    %c16_i32 = arith.constant 16 : i32
    %13 = arith.muli %c0_i32_14, %c16_i32 : i32
    %14 = tpu.assume_multiple %13, 16 : i32
    %15 = arith.index_cast %14 : i32 to index
    %c0_15 = arith.constant 0 : index
    %16 = vector.load %arg8[%15, %c0_15] : memref<64x1024xf32, #tpu.memory_space<vmem>>, vector<16x1024xf32>
    %17 = arith.truncf %11 : vector<16x256xf32> to vector<16x256xbf16>
    %cst_16 = arith.constant dense<0.000000e+00> : vector<16x1024xf32>
    %18 = tpu.matmul %17, %10, %cst_16 {dimension_numbers = #tpu.dot_dimension_numbers<[1], [0], [0], [1], [0, 0, 1, 1], [], []>} : vector<16x256xbf16>, vector<256x1024xbf16>, vector<16x1024xf32> -> vector<16x1024xf32>
    %19 = arith.addf %16, %18 : vector<16x1024xf32>
    %20 = vector.extract_strided_slice %19 {offsets = [0, 0], sizes = [16, 256], strides = [1, 1]} : vector<16x1024xf32> to vector<16x256xf32>
    %cst_17 = arith.constant 5.000000e-01 : f32
    %21 = vector.broadcast %cst_17 : f32 to vector<16x256xf32>
    %22 = arith.mulf %21, %20 : vector<16x256xf32>
    %23 = math.tanh %22 : vector<16x256xf32>
    %cst_18 = arith.constant 5.000000e-01 : f32
    %24 = vector.broadcast %cst_18 : f32 to vector<16x256xf32>
    %25 = arith.mulf %24, %23 : vector<16x256xf32>
    %cst_19 = arith.constant 5.000000e-01 : f32
    %26 = vector.broadcast %cst_19 : f32 to vector<16x256xf32>
    %27 = arith.addf %25, %26 : vector<16x256xf32>
    %28 = vector.extract_strided_slice %19 {offsets = [0, 256], sizes = [16, 256], strides = [1, 1]} : vector<16x1024xf32> to vector<16x256xf32>
    %cst_20 = arith.constant 5.000000e-01 : f32
    %29 = vector.broadcast %cst_20 : f32 to vector<16x256xf32>
    %30 = arith.mulf %29, %28 : vector<16x256xf32>
    %31 = math.tanh %30 : vector<16x256xf32>
    %cst_21 = arith.constant 5.000000e-01 : f32
    %32 = vector.broadcast %cst_21 : f32 to vector<16x256xf32>
    %33 = arith.mulf %32, %31 : vector<16x256xf32>
    %cst_22 = arith.constant 5.000000e-01 : f32
    %34 = vector.broadcast %cst_22 : f32 to vector<16x256xf32>
    %35 = arith.addf %33, %34 : vector<16x256xf32>
    %36 = vector.extract_strided_slice %19 {offsets = [0, 512], sizes = [16, 256], strides = [1, 1]} : vector<16x1024xf32> to vector<16x256xf32>
    %37 = math.tanh %36 : vector<16x256xf32>
    %38 = vector.extract_strided_slice %19 {offsets = [0, 768], sizes = [16, 256], strides = [1, 1]} : vector<16x1024xf32> to vector<16x256xf32>
    %cst_23 = arith.constant 5.000000e-01 : f32
    %39 = vector.broadcast %cst_23 : f32 to vector<16x256xf32>
    %40 = arith.mulf %39, %38 : vector<16x256xf32>
    %41 = math.tanh %40 : vector<16x256xf32>
    %cst_24 = arith.constant 5.000000e-01 : f32
    %42 = vector.broadcast %cst_24 : f32 to vector<16x256xf32>
    %43 = arith.mulf %42, %41 : vector<16x256xf32>
    %cst_25 = arith.constant 5.000000e-01 : f32
    %44 = vector.broadcast %cst_25 : f32 to vector<16x256xf32>
    %45 = arith.addf %43, %44 : vector<16x256xf32>
    %46 = arith.mulf %35, %12 : vector<16x256xf32>
    %47 = arith.mulf %27, %37 : vector<16x256xf32>
    %48 = arith.addf %46, %47 : vector<16x256xf32>
    %49 = math.tanh %48 : vector<16x256xf32>
    %50 = arith.mulf %45, %49 : vector<16x256xf32>
    %c1_i32 = arith.constant 1 : i32
    %c16_i32_26 = arith.constant 16 : i32
    %51 = arith.muli %c1_i32, %c16_i32_26 : i32
    %52 = tpu.assume_multiple %51, 16 : i32
    %53 = arith.index_cast %52 : i32 to index
    %c0_27 = arith.constant 0 : index
    %54 = vector.load %arg8[%53, %c0_27] : memref<64x1024xf32, #tpu.memory_space<vmem>>, vector<16x1024xf32>
    %55 = arith.truncf %50 : vector<16x256xf32> to vector<16x256xbf16>
    %cst_28 = arith.constant dense<0.000000e+00> : vector<16x1024xf32>
    %56 = tpu.matmul %55, %10, %cst_28 {dimension_numbers = #tpu.dot_dimension_numbers<[1], [0], [0], [1], [0, 0, 1, 1], [], []>} : vector<16x256xbf16>, vector<256x1024xbf16>, vector<16x1024xf32> -> vector<16x1024xf32>
    %57 = arith.addf %54, %56 : vector<16x1024xf32>
    %58 = vector.extract_strided_slice %57 {offsets = [0, 0], sizes = [16, 256], strides = [1, 1]} : vector<16x1024xf32> to vector<16x256xf32>
    %cst_29 = arith.constant 5.000000e-01 : f32
    %59 = vector.broadcast %cst_29 : f32 to vector<16x256xf32>
    %60 = arith.mulf %59, %58 : vector<16x256xf32>
    %61 = math.tanh %60 : vector<16x256xf32>
    %cst_30 = arith.constant 5.000000e-01 : f32
    %62 = vector.broadcast %cst_30 : f32 to vector<16x256xf32>
    %63 = arith.mulf %62, %61 : vector<16x256xf32>
    %cst_31 = arith.constant 5.000000e-01 : f32
    %64 = vector.broadcast %cst_31 : f32 to vector<16x256xf32>
    %65 = arith.addf %63, %64 : vector<16x256xf32>
    %66 = vector.extract_strided_slice %57 {offsets = [0, 256], sizes = [16, 256], strides = [1, 1]} : vector<16x1024xf32> to vector<16x256xf32>
    %cst_32 = arith.constant 5.000000e-01 : f32
    %67 = vector.broadcast %cst_32 : f32 to vector<16x256xf32>
    %68 = arith.mulf %67, %66 : vector<16x256xf32>
    %69 = math.tanh %68 : vector<16x256xf32>
    %cst_33 = arith.constant 5.000000e-01 : f32
    %70 = vector.broadcast %cst_33 : f32 to vector<16x256xf32>
    %71 = arith.mulf %70, %69 : vector<16x256xf32>
    %cst_34 = arith.constant 5.000000e-01 : f32
    %72 = vector.broadcast %cst_34 : f32 to vector<16x256xf32>
    %73 = arith.addf %71, %72 : vector<16x256xf32>
    %74 = vector.extract_strided_slice %57 {offsets = [0, 512], sizes = [16, 256], strides = [1, 1]} : vector<16x1024xf32> to vector<16x256xf32>
    %75 = math.tanh %74 : vector<16x256xf32>
    %76 = vector.extract_strided_slice %57 {offsets = [0, 768], sizes = [16, 256], strides = [1, 1]} : vector<16x1024xf32> to vector<16x256xf32>
    %cst_35 = arith.constant 5.000000e-01 : f32
    %77 = vector.broadcast %cst_35 : f32 to vector<16x256xf32>
    %78 = arith.mulf %77, %76 : vector<16x256xf32>
    %79 = math.tanh %78 : vector<16x256xf32>
    %cst_36 = arith.constant 5.000000e-01 : f32
    %80 = vector.broadcast %cst_36 : f32 to vector<16x256xf32>
    %81 = arith.mulf %80, %79 : vector<16x256xf32>
    %cst_37 = arith.constant 5.000000e-01 : f32
    %82 = vector.broadcast %cst_37 : f32 to vector<16x256xf32>
    %83 = arith.addf %81, %82 : vector<16x256xf32>
    %84 = arith.mulf %73, %48 : vector<16x256xf32>
    %85 = arith.mulf %65, %75 : vector<16x256xf32>
    %86 = arith.addf %84, %85 : vector<16x256xf32>
    %87 = math.tanh %86 : vector<16x256xf32>
    %88 = arith.mulf %83, %87 : vector<16x256xf32>
    %c2_i32 = arith.constant 2 : i32
    %c16_i32_38 = arith.constant 16 : i32
    %89 = arith.muli %c2_i32, %c16_i32_38 : i32
    %90 = tpu.assume_multiple %89, 16 : i32
    %91 = arith.index_cast %90 : i32 to index
    %c0_39 = arith.constant 0 : index
    %92 = vector.load %arg8[%91, %c0_39] : memref<64x1024xf32, #tpu.memory_space<vmem>>, vector<16x1024xf32>
    %93 = arith.truncf %88 : vector<16x256xf32> to vector<16x256xbf16>
    %cst_40 = arith.constant dense<0.000000e+00> : vector<16x1024xf32>
    %94 = tpu.matmul %93, %10, %cst_40 {dimension_numbers = #tpu.dot_dimension_numbers<[1], [0], [0], [1], [0, 0, 1, 1], [], []>} : vector<16x256xbf16>, vector<256x1024xbf16>, vector<16x1024xf32> -> vector<16x1024xf32>
    %95 = arith.addf %92, %94 : vector<16x1024xf32>
    %96 = vector.extract_strided_slice %95 {offsets = [0, 0], sizes = [16, 256], strides = [1, 1]} : vector<16x1024xf32> to vector<16x256xf32>
    %cst_41 = arith.constant 5.000000e-01 : f32
    %97 = vector.broadcast %cst_41 : f32 to vector<16x256xf32>
    %98 = arith.mulf %97, %96 : vector<16x256xf32>
    %99 = math.tanh %98 : vector<16x256xf32>
    %cst_42 = arith.constant 5.000000e-01 : f32
    %100 = vector.broadcast %cst_42 : f32 to vector<16x256xf32>
    %101 = arith.mulf %100, %99 : vector<16x256xf32>
    %cst_43 = arith.constant 5.000000e-01 : f32
    %102 = vector.broadcast %cst_43 : f32 to vector<16x256xf32>
    %103 = arith.addf %101, %102 : vector<16x256xf32>
    %104 = vector.extract_strided_slice %95 {offsets = [0, 256], sizes = [16, 256], strides = [1, 1]} : vector<16x1024xf32> to vector<16x256xf32>
    %cst_44 = arith.constant 5.000000e-01 : f32
    %105 = vector.broadcast %cst_44 : f32 to vector<16x256xf32>
    %106 = arith.mulf %105, %104 : vector<16x256xf32>
    %107 = math.tanh %106 : vector<16x256xf32>
    %cst_45 = arith.constant 5.000000e-01 : f32
    %108 = vector.broadcast %cst_45 : f32 to vector<16x256xf32>
    %109 = arith.mulf %108, %107 : vector<16x256xf32>
    %cst_46 = arith.constant 5.000000e-01 : f32
    %110 = vector.broadcast %cst_46 : f32 to vector<16x256xf32>
    %111 = arith.addf %109, %110 : vector<16x256xf32>
    %112 = vector.extract_strided_slice %95 {offsets = [0, 512], sizes = [16, 256], strides = [1, 1]} : vector<16x1024xf32> to vector<16x256xf32>
    %113 = math.tanh %112 : vector<16x256xf32>
    %114 = vector.extract_strided_slice %95 {offsets = [0, 768], sizes = [16, 256], strides = [1, 1]} : vector<16x1024xf32> to vector<16x256xf32>
    %cst_47 = arith.constant 5.000000e-01 : f32
    %115 = vector.broadcast %cst_47 : f32 to vector<16x256xf32>
    %116 = arith.mulf %115, %114 : vector<16x256xf32>
    %117 = math.tanh %116 : vector<16x256xf32>
    %cst_48 = arith.constant 5.000000e-01 : f32
    %118 = vector.broadcast %cst_48 : f32 to vector<16x256xf32>
    %119 = arith.mulf %118, %117 : vector<16x256xf32>
    %cst_49 = arith.constant 5.000000e-01 : f32
    %120 = vector.broadcast %cst_49 : f32 to vector<16x256xf32>
    %121 = arith.addf %119, %120 : vector<16x256xf32>
    %122 = arith.mulf %111, %86 : vector<16x256xf32>
    %123 = arith.mulf %103, %113 : vector<16x256xf32>
    %124 = arith.addf %122, %123 : vector<16x256xf32>
    %125 = math.tanh %124 : vector<16x256xf32>
    %126 = arith.mulf %121, %125 : vector<16x256xf32>
    %c3_i32 = arith.constant 3 : i32
    %c16_i32_50 = arith.constant 16 : i32
    %127 = arith.muli %c3_i32, %c16_i32_50 : i32
    %128 = tpu.assume_multiple %127, 16 : i32
    %129 = arith.index_cast %128 : i32 to index
    %c0_51 = arith.constant 0 : index
    %130 = vector.load %arg8[%129, %c0_51] : memref<64x1024xf32, #tpu.memory_space<vmem>>, vector<16x1024xf32>
    %131 = arith.truncf %126 : vector<16x256xf32> to vector<16x256xbf16>
    %cst_52 = arith.constant dense<0.000000e+00> : vector<16x1024xf32>
    %132 = tpu.matmul %131, %10, %cst_52 {dimension_numbers = #tpu.dot_dimension_numbers<[1], [0], [0], [1], [0, 0, 1, 1], [], []>} : vector<16x256xbf16>, vector<256x1024xbf16>, vector<16x1024xf32> -> vector<16x1024xf32>
    %133 = arith.addf %130, %132 : vector<16x1024xf32>
    %134 = vector.extract_strided_slice %133 {offsets = [0, 0], sizes = [16, 256], strides = [1, 1]} : vector<16x1024xf32> to vector<16x256xf32>
    %cst_53 = arith.constant 5.000000e-01 : f32
    %135 = vector.broadcast %cst_53 : f32 to vector<16x256xf32>
    %136 = arith.mulf %135, %134 : vector<16x256xf32>
    %137 = math.tanh %136 : vector<16x256xf32>
    %cst_54 = arith.constant 5.000000e-01 : f32
    %138 = vector.broadcast %cst_54 : f32 to vector<16x256xf32>
    %139 = arith.mulf %138, %137 : vector<16x256xf32>
    %cst_55 = arith.constant 5.000000e-01 : f32
    %140 = vector.broadcast %cst_55 : f32 to vector<16x256xf32>
    %141 = arith.addf %139, %140 : vector<16x256xf32>
    %142 = vector.extract_strided_slice %133 {offsets = [0, 256], sizes = [16, 256], strides = [1, 1]} : vector<16x1024xf32> to vector<16x256xf32>
    %cst_56 = arith.constant 5.000000e-01 : f32
    %143 = vector.broadcast %cst_56 : f32 to vector<16x256xf32>
    %144 = arith.mulf %143, %142 : vector<16x256xf32>
    %145 = math.tanh %144 : vector<16x256xf32>
    %cst_57 = arith.constant 5.000000e-01 : f32
    %146 = vector.broadcast %cst_57 : f32 to vector<16x256xf32>
    %147 = arith.mulf %146, %145 : vector<16x256xf32>
    %cst_58 = arith.constant 5.000000e-01 : f32
    %148 = vector.broadcast %cst_58 : f32 to vector<16x256xf32>
    %149 = arith.addf %147, %148 : vector<16x256xf32>
    %150 = vector.extract_strided_slice %133 {offsets = [0, 512], sizes = [16, 256], strides = [1, 1]} : vector<16x1024xf32> to vector<16x256xf32>
    %151 = math.tanh %150 : vector<16x256xf32>
    %152 = vector.extract_strided_slice %133 {offsets = [0, 768], sizes = [16, 256], strides = [1, 1]} : vector<16x1024xf32> to vector<16x256xf32>
    %cst_59 = arith.constant 5.000000e-01 : f32
    %153 = vector.broadcast %cst_59 : f32 to vector<16x256xf32>
    %154 = arith.mulf %153, %152 : vector<16x256xf32>
    %155 = math.tanh %154 : vector<16x256xf32>
    %cst_60 = arith.constant 5.000000e-01 : f32
    %156 = vector.broadcast %cst_60 : f32 to vector<16x256xf32>
    %157 = arith.mulf %156, %155 : vector<16x256xf32>
    %cst_61 = arith.constant 5.000000e-01 : f32
    %158 = vector.broadcast %cst_61 : f32 to vector<16x256xf32>
    %159 = arith.addf %157, %158 : vector<16x256xf32>
    %160 = arith.mulf %149, %124 : vector<16x256xf32>
    %161 = arith.mulf %141, %151 : vector<16x256xf32>
    %162 = arith.addf %160, %161 : vector<16x256xf32>
    %163 = math.tanh %162 : vector<16x256xf32>
    %164 = arith.mulf %159, %163 : vector<16x256xf32>
    %c4_i32 = arith.constant 4 : i32
    %c0_62 = arith.constant 0 : index
    %c0_63 = arith.constant 0 : index
    %165 = vector.load %arg9[%c0_62, %c0_63] : memref<16x256xf32, #tpu.memory_space<vmem>>, vector<16x256xf32>
    tpu.vector_store %arg9[%c0_62, %c0_63], %164 {strides = array<i32>} : memref<16x256xf32, #tpu.memory_space<vmem>>, vector<16x256xf32>,
    %c0_64 = arith.constant 0 : index
    %c0_65 = arith.constant 0 : index
    %166 = vector.load %arg10[%c0_64, %c0_65] : memref<16x256xf32, #tpu.memory_space<vmem>>, vector<16x256xf32>
    tpu.vector_store %arg10[%c0_64, %c0_65], %162 {strides = array<i32>} : memref<16x256xf32, #tpu.memory_space<vmem>>, vector<16x256xf32>,
    %c0_i32_66 = arith.constant 0 : i32
    %167 = arith.cmpi eq, %arg0, %c0_i32_66 : i32
    %168 = arith.extui %167 : i1 to i32
    %c0_i32_67 = arith.constant 0 : i32
    %169 = arith.cmpi ne, %168, %c0_i32_67 : i32
    scf.if %169 {
      %c0_68 = arith.constant 0 : index
      %c0_69 = arith.constant 0 : index
      %170 = vector.load %arg5[%c0_68, %c0_69] : memref<256x128xf32, #tpu.memory_space<vmem>>, vector<256x128xf32>
      %cst_70 = arith.constant dense<0.000000e+00> : vector<16x128xf32>
      %171 = tpu.matmul %164, %170, %cst_70 {dimension_numbers = #tpu.dot_dimension_numbers<[1], [0], [0], [1], [0, 0, 1, 1], [], []>} : vector<16x256xf32>, vector<256x128xf32>, vector<16x128xf32> -> vector<16x128xf32>
      %c0_71 = arith.constant 0 : index
      %c0_72 = arith.constant 0 : index
      %172 = vector.load %arg6[%c0_71, %c0_72] : memref<1x128xf32, #tpu.memory_space<vmem>>, vector<1x128xf32>
      %173 = vector.broadcast %172 : vector<1x128xf32> to vector<16x128xf32>
      %174 = arith.addf %171, %173 : vector<16x128xf32>
      %c0_73 = arith.constant 0 : index
      %c0_74 = arith.constant 0 : index
      %175 = vector.load %arg7[%c0_73, %c0_74] : memref<16x128xf32, #tpu.memory_space<vmem>>, vector<16x128xf32>
      tpu.vector_store %arg7[%c0_73, %c0_74], %174 {strides = array<i32>} : memref<16x128xf32, #tpu.memory_space<vmem>>, vector<16x128xf32>,
    } else {
    }
    return
  }
  func.func @transform_0(%arg0: i32) -> (i32, i32) {
    %c0_i32 = arith.constant 0 : i32
    %c0_i32_0 = arith.constant 0 : i32
    return %arg0, %c0_i32 : i32, i32
  }
  func.func @transform_1(%arg0: i32) -> (i32, i32) {
    %c0_i32 = arith.constant 0 : i32
    %c0_i32_0 = arith.constant 0 : i32
    %c0_i32_1 = arith.constant 0 : i32
    return %c0_i32, %c0_i32_0 : i32, i32
  }
  func.func @transform_2(%arg0: i32) -> (i32, i32) {
    %c0_i32 = arith.constant 0 : i32
    %c0_i32_0 = arith.constant 0 : i32
    %c0_i32_1 = arith.constant 0 : i32
    return %c0_i32, %c0_i32_0 : i32, i32
  }
  func.func @transform_3(%arg0: i32) -> (i32, i32) {
    %c0_i32 = arith.constant 0 : i32
    %c0_i32_0 = arith.constant 0 : i32
    %c0_i32_1 = arith.constant 0 : i32
    return %c0_i32, %c0_i32_0 : i32, i32
  }
  func.func @transform_4(%arg0: i32) -> (i32, i32) {
    %c0_i32 = arith.constant 0 : i32
    %c0_i32_0 = arith.constant 0 : i32
    %c0_i32_1 = arith.constant 0 : i32
    return %c0_i32, %c0_i32_0 : i32, i32
  }
  func.func @transform_5(%arg0: i32) -> (i32, i32) {
    %c0_i32 = arith.constant 0 : i32
    %c0_i32_0 = arith.constant 0 : i32
    %c0_i32_1 = arith.constant 0 : i32
    return %c0_i32, %c0_i32_0 : i32, i32
  }
  func.func @transform_6(%arg0: i32) -> (i32, i32) {
    %c0_i32 = arith.constant 0 : i32
    %c0_i32_0 = arith.constant 0 : i32
    %c0_i32_1 = arith.constant 0 : i32
    return %c0_i32, %c0_i32_0 : i32, i32
  }
}

</mosaic_0001>

<bundles_post_ra>
// kernel: tpu_custom_call.1
= control target key start
LH: loop header
LB: loop body
LE: loop exit
PB: predicated region body
PF: predicated region fallthrough
CT: control target
= control target key end

     0   :  { %11 = vsyncpa [#allocation6], 0  ;;  %s11104_s0 = inlined_call_operand.hbm [shape: bf16[64,768], index: 0, kind: input, shape index: {}]   ;;  %s11105_s1 = inlined_call_operand.hbm [shape: bf16[768,1024], index: 1, kind: input, shape index: {}]   ;;  %s11106_s2 = inlined_call_operand.hbm [shape: f32[1,1024], index: 2, kind: input, shape index: {}]   ;;  %s11107_s3 = inlined_call_operand.hbm [shape: bf16[256,1024], index: 3, kind: input, shape index: {}]   ;;  %s11108_s4 = inlined_call_operand.hbm [shape: f32[256,128], index: 4, kind: input, shape index: {}]   ;;  %s11109_s5 = inlined_call_operand.hbm [shape: f32[1,128], index: 5, kind: input, shape index: {}]   ;;  %s11110_s6 = inlined_call_operand.hbm [shape: f32[16,128], index: 6, kind: output, shape index: {}]  }
   0x1   :  { %12 = vsyncpa [#allocation9], 0 }
   0x2   :  { %13 = vsyncpa [#allocation12], 0 }
   0x3   :  { %14 = vsyncpa [#allocation15], 0  ;;  %s33_s23 = sshll.u32 %s11105_s1, 4  ;;  %s34_s23 = int_to_ptr.hbm [resolvable:$true] %s33_s23 }
   0x4   :  { %15 = vsyncpa [#allocation7], 0  ;;  %s9344_s24 = smov [#allocation8]   ;;  %s57_s28 = sshll.u32 %s11107_s3, 4  ;;  %s58_s28 = int_to_ptr.hbm [resolvable:$true] %s57_s28 }
   0x5   :  { %s35_s25 = sshll.u32 %s9344_s24, 4  ;;  %s9345_s29 = smov 512   ;;  %s36_s25 = int_to_ptr.vmem [resolvable:$true] %s35_s25 }
   0x6   :  { %s9346_s30 = smov 32   ;;  %s9347_s7 = smov [#allocation11]  }
   0x7   :  { %41 = dma.hbm_to_vmem [thread:$0]  %s34_s23, 49152, %s36_s25, [#allocation9], %s9345_s29, %s9345_s29, %s9346_s30  }
   0x8   :  { %s59_s8 = sshll.u32 %s9347_s7, 4  ;;  %s20_s11 = sshll.u32 %s11104_s0, 4  ;;  %s60_s8 = int_to_ptr.vmem [resolvable:$true] %s59_s8  ;;  %s21_s11 = int_to_ptr.hbm [resolvable:$true] %s20_s11 }
   0x9   :  { %65 = dma.hbm_to_vmem [thread:$0]  %s58_s28, 16384, %s60_s8, [#allocation12], %s9345_s29, %s9345_s29, %s9346_s30  }
   0xa   :  { %s9348_s1 = smov [#allocation5]   ;;  %s47_s3 = sshll.u32 %s11106_s2, 4  ;;  %s48_s3 = int_to_ptr.hbm [resolvable:$true] %s47_s3 }
   0xb   :  { %s22_s12 = sshll.u32 %s9348_s1, 4  ;;  %s9349_s15 = smov 384   ;;  %s23_s12 = int_to_ptr.vmem [resolvable:$true] %s22_s12 }
   0xc   :  { %s9350_s16 = smov 24   ;;  %s9351_s17 = smov [#allocation10]  }
   0xd   :  { %28 = dma.hbm_to_vmem [thread:$0]  %s21_s11, 3072, %s23_s12, [#allocation6], %s9349_s15, %s9349_s15, %s9350_s16  }
   0xe   :  { %s49_s18 = sshll.u32 %s9351_s17, 4  ;;  %s70_s0 = sshll.u32 %s11108_s4, 4  ;;  %s50_s18 = int_to_ptr.vmem [resolvable:$true] %s49_s18  ;;  %s71_s0 = int_to_ptr.hbm [resolvable:$true] %s70_s0 }
   0xf   :  { %52 = dma.hbm_to_vmem [thread:$0]  %s48_s3, 128, %s50_s18, [#allocation9]  }
  0x10   :  { %s9352_s21 = smov [#allocation13]   ;;  %s84_s2 = sshll.u32 %s11109_s5, 4  ;;  %s85_s2 = int_to_ptr.hbm [resolvable:$true] %s84_s2 }
  0x11   :  { %s72_s22 = sshll.u32 %s9352_s21, 4  ;;  %s9353_s25 = smov 128   ;;  %s73_s22 = int_to_ptr.vmem [resolvable:$true] %s72_s22 }
  0x12   :  { %s9354_s26 = smov 8   ;;  %s9355_s27 = smov [#allocation14]  }
  0x13   :  { %78 = dma.hbm_to_vmem [thread:$0]  %s71_s0, 4096, %s73_s22, [#allocation12], %s9353_s25, %s9353_s25, %s9354_s26  }
  0x14   :  { %s86_s28 = sshll.u32 %s9355_s27, 4  ;;  %s87_s28 = int_to_ptr.vmem [resolvable:$true] %s86_s28 }
  0x15   :  { %89 = dma.hbm_to_vmem [thread:$0]  %s85_s2, 16, %s87_s28, [#allocation15]  }
  0x16   :  { %9334 = dma.done.wait [#allocation6], 3072  }
  0x17   :  { %9335 = vsyncadd [#allocation6], 4294964224 }
  0x18   :  { %9336 = dma.done.wait [#allocation9], 49280  }
  0x19   :  { %9337 = vsyncadd [#allocation9], 4294918016 }
  0x1a   :  { %9338 = dma.done.wait [#allocation12], 20480  }
  0x1b   :  { %9339 = vsyncadd [#allocation12], 4294946816 }
  0x1c   :  { %9340 = dma.done.wait [#allocation15], 16  }
  0x1d   :  { %9341 = vsyncadd [#allocation15], 4294967280  ;;  %v6598_v0 = vld [vmem:[#allocation8 + $0x1c0] sm:$0xf]  ;;  %s9357_s4 = smov [#allocation16]   ;;  %s6257_s7 = sshll.u32 %s11110_s6, 4  ;;  %s6258_s7 = int_to_ptr.hbm [resolvable:$true] %s6257_s7 }
  0x1e   :  { %v8504_v1 = vld [vmem:[#allocation8 + $0x1dc] sm:$0xf0]  ;;  %s6255_s5 = sshll.u32 %s9357_s4, 4  ;;  %s6256_s5 = int_to_ptr.vmem [resolvable:$true] %s6255_s5 }
  0x1f   :  { %v6854_v2 = vld [vmem:[#allocation8 + $0x3c0] sm:$0xf]  ;;  %v6599_v3 = vor.u32 %v8504_v1, %v6598_v0 }
  0x20   :  { %v8568_v4 = vld [vmem:[#allocation8 + $0x3dc] sm:$0xf0] }
  0x21   :  { %v7110_v5 = vld [vmem:[#allocation8 + $0x5c0] sm:$0xf]  ;;  %v6855_v7 = vor.u32 %v8568_v4, %v6854_v2  ;;  %2592 = vmatpush.bf16.msra.mxu0 %v6599_v3 }
  0x22   :  { %v8632_v6 = vld [vmem:[#allocation8 + $0x5dc] sm:$0xf0] }
  0x23   :  { %v7111_v8 = vor.u32 %v8632_v6, %v7110_v5  ;;  %v7366_v9 = vld [vmem:[#allocation8 + $0x7c0] sm:$0xf]  ;;  %2621 = vmatpush.bf16.msra.mxu1 %v6855_v7 }
  0x24   :  { %v8696_v10 = vld [vmem:[#allocation8 + $0x7dc] sm:$0xf0] }
  0x25   :  { %v6566_v11 = vld [vmem:[#allocation8 + $0x180] sm:$0xf]  ;;  %v7367_v12 = vor.u32 %v8696_v10, %v7366_v9  ;;  %2650 = vmatpush.bf16.msra.mxu2 %v7111_v8 }
  0x26   :  { %v8496_v13 = vld [vmem:[#allocation8 + $0x19c] sm:$0xf0] }
  0x27   :  { %v6822_v14 = vld [vmem:[#allocation8 + $0x380] sm:$0xf]  ;;  %v6567_v16 = vor.u32 %v8496_v13, %v6566_v11  ;;  %2679 = vmatpush.bf16.msra.mxu3 %v7367_v12 }
  0x28   :  { %v8560_v15 = vld [vmem:[#allocation8 + $0x39c] sm:$0xf0] }
  0x29   :  { %v6823_v17 = vor.u32 %v8560_v15, %v6822_v14  ;;  %v7078_v18 = vld [vmem:[#allocation8 + $0x580] sm:$0xf]  ;;  %2593 = vmatpush.bf16.msra.mxu0 %v6567_v16 }
  0x2a   :  { %v8624_v19 = vld [vmem:[#allocation8 + $0x59c] sm:$0xf0] }
  0x2b   :  { %v7334_v20 = vld [vmem:[#allocation8 + $0x780] sm:$0xf]  ;;  %v7079_v21 = vor.u32 %v8624_v19, %v7078_v18  ;;  %2622 = vmatpush.bf16.msra.mxu1 %v6823_v17 }
  0x2c   :  { %v8688_v22 = vld [vmem:[#allocation8 + $0x79c] sm:$0xf0] }
  0x2d   :  { %v6534_v23 = vld [vmem:[#allocation8 + $0x140] sm:$0xf]  ;;  %v7335_v25 = vor.u32 %v8688_v22, %v7334_v20  ;;  %2651 = vmatpush.bf16.msra.mxu2 %v7079_v21 }
  0x2e   :  { %v8488_v24 = vld [vmem:[#allocation8 + $0x15c] sm:$0xf0] }
  0x2f   :  { %v6790_v26 = vld [vmem:[#allocation8 + $0x340] sm:$0xf]  ;;  %v6535_v29 = vor.u32 %v8488_v24, %v6534_v23  ;;  %2680 = vmatpush.bf16.msra.mxu3 %v7335_v25 }
  0x30   :  { %v8552_v27 = vld [vmem:[#allocation8 + $0x35c] sm:$0xf0] }
  0x31   :  { %v7046_v28 = vld [vmem:[#allocation8 + $0x540] sm:$0xf]  ;;  %v6791_v33 = vor.u32 %v8552_v27, %v6790_v26  ;;  %2594 = vmatpush.bf16.msra.mxu0 %v6535_v29 }
  0x32   :  { %v8616_v30 = vld [vmem:[#allocation8 + $0x55c] sm:$0xf0] }
  0x33   :  { %v7302_v31 = vld [vmem:[#allocation8 + $0x740] sm:$0xf]  ;;  %v7047_v34 = vor.u32 %v8616_v30, %v7046_v28  ;;  %2623 = vmatpush.bf16.msra.mxu1 %v6791_v33  ;;  %v8423_v30 = vld [vmem:[#allocation5 + $0x14] sm:$0xf0] }
  0x34   :  { %v8680_v32 = vld [vmem:[#allocation8 + $0x75c] sm:$0xf0] }
  0x35   :  { %v6502_v35 = vld [vmem:[#allocation8 + $0x100] sm:$0xf]  ;;  %v7303_v38 = vor.u32 %v8680_v32, %v7302_v31  ;;  %2652 = vmatpush.bf16.msra.mxu2 %v7047_v34  ;;  %v8420_v31 = vld [vmem:[#allocation5 + $0x4] sm:$0xf]  ;;  %v6280_v34 = vld [vmem:[#allocation5 + $0x18] sm:$0xf0] }
  0x36   :  { %v8480_v36 = vld [vmem:[#allocation8 + $0x11c] sm:$0xf0] }
  0x37   :  { %v6758_v37 = vld [vmem:[#allocation8 + $0x300] sm:$0xf]  ;;  %v6503_v44 = vor.u32 %v8480_v36, %v6502_v35  ;;  %2681 = vmatpush.bf16.msra.mxu3 %v7303_v38  ;;  %v6286_v35 = vld [vmem:[#allocation5 + $0x8] sm:$0xf]  ;;  %v8421_v38 = vld [vmem:[#allocation5 + $0xc] sm:$0xf] }
  0x38   :  { %v8544_v39 = vld [vmem:[#allocation8 + $0x31c] sm:$0xf0] }
  0x39   :  { %v7014_v40 = vld [vmem:[#allocation8 + $0x500] sm:$0xf]  ;;  %v6759_v45 = vor.u32 %v8544_v39, %v6758_v37  ;;  %2595 = vmatpush.bf16.msra.mxu0 %v6503_v44  ;;  %v6288_v39 = vld [vmem:[#allocation5 + $0x20] sm:$0xf0] }
  0x3a   :  { %v8608_v41 = vld [vmem:[#allocation8 + $0x51c] sm:$0xf0] }
  0x3b   :  { %v7270_v42 = vld [vmem:[#allocation8 + $0x700] sm:$0xf]  ;;  %v7015_v46 = vor.u32 %v8608_v41, %v7014_v40  ;;  %2624 = vmatpush.bf16.msra.mxu1 %v6759_v45  ;;  %v9416_v41 = vor.u32 %v8420_v31, %v6280_v34  ;;  %v6760_v34 = vld [vmem:[#allocation8 + $0x320] sm:$0xf0] }
  0x3c   :  { %v8672_v43 = vld [vmem:[#allocation8 + $0x71c] sm:$0xf0] }
  0x3d   :  { %v6470_v47 = vld [vmem:[#allocation8 + $0xc0] sm:$0xf]  ;;  %v7271_v50 = vor.u32 %v8672_v43, %v7270_v42  ;;  %2653 = vmatpush.bf16.msra.mxu2 %v7015_v46  ;;  %v9420_v43 = vor.u32 %v8421_v38, %v6288_v39 }
  0x3e   :  { %v8472_v48 = vld [vmem:[#allocation8 + $0xdc] sm:$0xf0] }
  0x3f   :  { %v6726_v49 = vld [vmem:[#allocation8 + $0x2c0] sm:$0xf]  ;;  %v6471_v56 = vor.u32 %v8472_v48, %v6470_v47  ;;  %2682 = vmatpush.bf16.msra.mxu3 %v7271_v50  ;;  %v6600_v50 = vld [vmem:[#allocation8 + $0x1e0] sm:$0xf0] }
  0x40   :  { %v8536_v51 = vld [vmem:[#allocation8 + $0x2dc] sm:$0xf0] }
  0x41   :  { %v6982_v52 = vld [vmem:[#allocation8 + $0x4c0] sm:$0xf]  ;;  %v6727_v57 = vor.u32 %v8536_v51, %v6726_v49  ;;  %2596 = vmatpush.bf16.msra.mxu0 %v6471_v56  ;;  %v8500_v49 = vld [vmem:[#allocation8 + $0x1c4] sm:$0xf] }
  0x42   :  { %v8600_v53 = vld [vmem:[#allocation8 + $0x4dc] sm:$0xf0] }
  0x43   :  { %v7238_v54 = vld [vmem:[#allocation8 + $0x6c0] sm:$0xf]  ;;  %v6983_v58 = vor.u32 %v8600_v53, %v6982_v52  ;;  %2625 = vmatpush.bf16.msra.mxu1 %v6727_v57  ;;  %v6603_v52 = vor.u32 %v8500_v49, %v6600_v50  ;;  %v8564_v53 = vld [vmem:[#allocation8 + $0x3c4] sm:$0xf] }
  0x44   :  { %v8664_v55 = vld [vmem:[#allocation8 + $0x6dc] sm:$0xf0]  ;;  %v8468_v49 = vld [vmem:[#allocation8 + $0xc4] sm:$0xf] }
  0x45   :  { %v6438_v59 = vld [vmem:[#allocation8 + $0x80] sm:$0xf]  ;;  %v7239_v62 = vor.u32 %v8664_v55, %v7238_v54  ;;  %2654 = vmatpush.bf16.msra.mxu2 %v6983_v58  ;;  %v6856_v54 = vld [vmem:[#allocation8 + $0x3e0] sm:$0xf0] }
  0x46   :  { %v8464_v60 = vld [vmem:[#allocation8 + $0x9c] sm:$0xf0]  ;;  %v6859_v56 = vor.u32 %v8564_v53, %v6856_v54  ;;  %v6472_v50 = vld [vmem:[#allocation8 + $0xe0] sm:$0xf0] }
  0x47   :  { %v6694_v61 = vld [vmem:[#allocation8 + $0x280] sm:$0xf]  ;;  %v6439_v4 = vor.u32 %v8464_v60, %v6438_v59  ;;  %2683 = vmatpush.bf16.msra.mxu3 %v7239_v62  ;;  %v8492_v62 = vld [vmem:[#allocation8 + $0x184] sm:$0xf] }
  0x48   :  { %v8528_v63 = vld [vmem:[#allocation8 + $0x29c] sm:$0xf0]  ;;  %v8532_v53 = vld [vmem:[#allocation8 + $0x2c4] sm:$0xf] }
  0x49   :  { %v6950_v0 = vld [vmem:[#allocation8 + $0x480] sm:$0xf]  ;;  %v6695_v5 = vor.u32 %v8528_v63, %v6694_v61  ;;  %2597 = vmatpush.bf16.msra.mxu0 %v6439_v4  ;;  %v6568_v63 = vld [vmem:[#allocation8 + $0x1a0] sm:$0xf0] }
  0x4a   :  { %v8592_v1 = vld [vmem:[#allocation8 + $0x49c] sm:$0xf0]  ;;  %v6728_v54 = vld [vmem:[#allocation8 + $0x2e0] sm:$0xf0] }
  0x4b   :  { %v7206_v2 = vld [vmem:[#allocation8 + $0x680] sm:$0xf]  ;;  %v6951_v6 = vor.u32 %v8592_v1, %v6950_v0  ;;  %2626 = vmatpush.bf16.msra.mxu1 %v6695_v5  ;;  %v8556_v0 = vld [vmem:[#allocation8 + $0x384] sm:$0xf]  ;;  %v6571_v1 = vor.u32 %v8492_v62, %v6568_v63  ;;  %v6302_v5 = vld [vmem:[#allocation5 + $0x30] sm:$0xf] }
  0x4c   :  { %v8656_v3 = vld [vmem:[#allocation8 + $0x69c] sm:$0xf0]  ;;  %v8524_v62 = vld [vmem:[#allocation8 + $0x284] sm:$0xf] }
  0x4d   :  { %v6406_v7 = vld [vmem:[#allocation8 + $0x40] sm:$0xf]  ;;  %v7207_v10 = vor.u32 %v8656_v3, %v7206_v2  ;;  %2655 = vmatpush.bf16.msra.mxu2 %v6951_v6  ;;  %v6824_v2 = vld [vmem:[#allocation8 + $0x3a0] sm:$0xf0]  ;;  %v8429_v6 = vld [vmem:[#allocation5 + $0x44] sm:$0xf0] }
  0x4e   :  { %v8456_v8 = vld [vmem:[#allocation8 + $0x5c] sm:$0xf0] }
  0x4f   :  { %v6662_v9 = vld [vmem:[#allocation8 + $0x240] sm:$0xf]  ;;  %v6407_v16 = vor.u32 %v8456_v8, %v6406_v7  ;;  %2684 = vmatpush.bf16.msra.mxu3 %v7207_v10  ;;  %v6827_v7 = vor.u32 %v8556_v0, %v6824_v2  ;;  %v8484_v10 = vld [vmem:[#allocation8 + $0x144] sm:$0xf]  ;;  %v8435_v2 = vld [vmem:[#allocation5 + $0x74] sm:$0xf0] }
  0x50   :  { %v8520_v11 = vld [vmem:[#allocation8 + $0x25c] sm:$0xf0]  ;;  %v6696_v0 = vld [vmem:[#allocation8 + $0x2a0] sm:$0xf0] }
  0x51   :  { %v6918_v12 = vld [vmem:[#allocation8 + $0x440] sm:$0xf]  ;;  %v6663_v17 = vor.u32 %v8520_v11, %v6662_v9  ;;  %2598 = vmatpush.bf16.msra.mxu0 %v6407_v16  ;;  %v6304_v16 = vld [vmem:[#allocation5 + $0x48] sm:$0xf0] }
  0x52   :  { %v8584_v13 = vld [vmem:[#allocation8 + $0x45c] sm:$0xf0] }
  0x53   :  { %v7174_v14 = vld [vmem:[#allocation8 + $0x640] sm:$0xf]  ;;  %v6919_v18 = vor.u32 %v8584_v13, %v6918_v12  ;;  %2627 = vmatpush.bf16.msra.mxu1 %v6663_v17  ;;  %v6536_v12 = vld [vmem:[#allocation8 + $0x160] sm:$0xf0]  ;;  %v6310_v17 = vld [vmem:[#allocation5 + $0x38] sm:$0xf] }
  0x54   :  { %v8648_v15 = vld [vmem:[#allocation8 + $0x65c] sm:$0xf0]  ;;  %v8548_v13 = vld [vmem:[#allocation8 + $0x344] sm:$0xf] }
  0x55   :  { %v6374_v19 = vld [vmem:[#allocation8] sm:$0xf]  ;;  %v7175_v22 = vor.u32 %v8648_v15, %v7174_v14  ;;  %2656 = vmatpush.bf16.msra.mxu2 %v6919_v18  ;;  %v6792_v14 = vld [vmem:[#allocation8 + $0x360] sm:$0xf0]  ;;  %v8426_v15 = vld [vmem:[#allocation5 + $0x34] sm:$0xf] }
  0x56   :  { %v8448_v20 = vld [vmem:[#allocation8 + $0x1c] sm:$0xf0]  ;;  %v9428_v31 = vor.u32 %v8426_v15, %v6304_v16  ;;  %v8516_v15 = vld [vmem:[#allocation8 + $0x244] sm:$0xf] }
  0x57   :  { %v6630_v21 = vld [vmem:[#allocation8 + $0x200] sm:$0xf]  ;;  %v6375_v29 = vor.u32 %v8448_v20, %v6374_v19  ;;  %2685 = vmatpush.bf16.msra.mxu3 %v7175_v22  ;;  %v6539_v19 = vor.u32 %v8484_v10, %v6536_v12  ;;  %v8430_v20 = vld [vmem:[#allocation5 + $0x4c] sm:$0xf0]  ;;  %v6312_v22 = vld [vmem:[#allocation5 + $0x50] sm:$0xf0]  ;;  %v6699_v10 = vor.u32 %v8524_v62, %v6696_v0 }
  0x58   :  { %v8512_v23 = vld [vmem:[#allocation8 + $0x21c] sm:$0xf0]  ;;  %v8452_v12 = vld [vmem:[#allocation8 + $0x44] sm:$0xf]  ;;  %v8422_v62 = vld [vmem:[#allocation5 + $0x14] sm:$0xf] }
  0x59   :  { %v6886_v24 = vld [vmem:[#allocation8 + $0x400] sm:$0xf]  ;;  %v6631_v32 = vor.u32 %v8512_v23, %v6630_v21  ;;  %2599 = vmatpush.bf16.msra.mxu0 %v6375_v29  ;;  %v8427_v21 = vld [vmem:[#allocation5 + $0x3c] sm:$0xf]  ;;  %v6795_v23 = vor.u32 %v8548_v13, %v6792_v14  ;;  %v8476_v29 = vld [vmem:[#allocation8 + $0x104] sm:$0xf] }
  0x5a   :  { %v8576_v25 = vld [vmem:[#allocation8 + $0x41c] sm:$0xf0]  ;;  %v6408_v13 = vld [vmem:[#allocation8 + $0x60] sm:$0xf0]  ;;  %v6334_v14 = vld [vmem:[#allocation5 + $0x68] sm:$0xf] }
  0x5b   :  { %v7142_v26 = vld [vmem:[#allocation8 + $0x600] sm:$0xf]  ;;  %v6887_v33 = vor.u32 %v8576_v25, %v6886_v24  ;;  %2628 = vmatpush.bf16.msra.mxu1 %v6631_v32  ;;  %v9430_v32 = vor.u32 %v8430_v20, %v6310_v17  ;;  %v6664_v16 = vld [vmem:[#allocation8 + $0x260] sm:$0xf0] }
  0x5c   :  { %v8640_v27 = vld [vmem:[#allocation8 + $0x61c] sm:$0xf0] }
  0x5d   :  { %v6278_v28 = vld [vmem:[#allocation5] sm:$0xf]  ;;  %v7143_v37 = vor.u32 %v8640_v27, %v7142_v26  ;;  %2657 = vmatpush.bf16.msra.mxu2 %v6887_v33  ;;  %v9426_v27 = vor.u32 %v8429_v6, %v6302_v5  ;;  %v8540_v33 = vld [vmem:[#allocation8 + $0x304] sm:$0xf] }
  0x5e   :  { %v8424_v36 = vld [vmem:[#allocation5 + $0x1c] sm:$0xf0]  ;;  %v9414_v40 = vor.u32 %v8423_v30, %v6278_v28  ;;  %2629 = vmatmul.bf16.vlgmr.msra.gmra.mxu1 %v9416_v41  ;;  %v6504_v30 = vld [vmem:[#allocation8 + $0x120] sm:$0xf0]  ;;  %v6763_v39 = vor.u32 %v8540_v33, %v6760_v34 }
  0x5f   :  { %v9418_v42 = vor.u32 %v8424_v36, %v6286_v35  ;;  %2686 = vmatpush.bf16.msra.mxu3 %v7143_v37  ;;  %v7622_v44 = vld [vmem:[#allocation8 + $0x9c0] sm:$0xf]  ;;  %v9432_v35 = vor.u32 %v8427_v21, %v6312_v22  ;;  %v6507_v38 = vor.u32 %v8476_v29, %v6504_v30  ;;  %v6411_v22 = vor.u32 %v8452_v12, %v6408_v13  ;;  %v8444_v30 = vld [vmem:[#allocation8 + $0x4] sm:$0xf] }
  0x60   :  { %2600 = vmatmul.bf16.vlgmr.msra.gmra.mxu0 %v9414_v40  ;;  %v8760_v45 = vld [vmem:[#allocation8 + $0x9dc] sm:$0xf0]  ;;  %v6376_v33 = vld [vmem:[#allocation8 + $0x20] sm:$0xf0] }
  0x61   :  { %2658 = vmatmul.bf16.vlgmr.msra.gmra.mxu2 %v9418_v42  ;;  %v7878_v46 = vld [vmem:[#allocation8 + $0xbc0] sm:$0xf]  ;;  %v7623_v47 = vor.u32 %v8760_v45, %v7622_v44  ;;  %v7880_v12 = vld [vmem:[#allocation8 + $0xbe0] sm:$0xf0] }
  0x62   :  { %2687 = vmatmul.bf16.vlgmr.msra.gmra.mxu3 %v9420_v43  ;;  %v8824_v48 = vld [vmem:[#allocation8 + $0xbdc] sm:$0xf0]  ;;  %2766 = vmatpush.bf16.msrb.mxu2 %v6603_v52  ;;  %v6475_v52 = vor.u32 %v8468_v49, %v6472_v50  ;;  %v8441_v49 = vld [vmem:[#allocation5 + $0xa4] sm:$0xf0]  ;;  %v8438_v50 = vld [vmem:[#allocation5 + $0x94] sm:$0xf] }
  0x63   :  { %v7879_v51 = vor.u32 %v8824_v48, %v7878_v46  ;;  %v7590_v55 = vld [vmem:[#allocation8 + $0x980] sm:$0xf]  ;;  %2708 = vmatpush.bf16.msrb.mxu0 %v7623_v47  ;;  %2795 = vmatpush.bf16.msrb.mxu3 %v6859_v56  ;;  %v6731_v56 = vor.u32 %v8532_v53, %v6728_v54  ;;  %v8442_v53 = vld [vmem:[#allocation5 + $0xac] sm:$0xf0]  ;;  %v8439_v54 = vld [vmem:[#allocation5 + $0x9c] sm:$0xf] }
  0x64   :  { %v8752_v57 = vld [vmem:[#allocation8 + $0x99c] sm:$0xf0]  ;;  %v8620_v13 = vld [vmem:[#allocation8 + $0x584] sm:$0xf] }
  0x65   :  { %v7846_v58 = vld [vmem:[#allocation8 + $0xb80] sm:$0xf]  ;;  %2737 = vmatpush.bf16.msrb.mxu1 %v7879_v51  ;;  %v7591_v60 = vor.u32 %v8752_v57, %v7590_v55 }
  0x66   :  { %v8816_v59 = vld [vmem:[#allocation8 + $0xb9c] sm:$0xf0]  ;;  %2767 = vmatpush.bf16.msrb.mxu2 %v6571_v1 }
  0x67   :  { %v7847_v61 = vor.u32 %v8816_v59, %v7846_v58  ;;  %v7558_v3 = vld [vmem:[#allocation8 + $0x940] sm:$0xf]  ;;  %2709 = vmatpush.bf16.msrb.mxu0 %v7591_v60  ;;  %2796 = vmatpush.bf16.msrb.mxu3 %v6827_v7  ;;  %v8460_v60 = vld [vmem:[#allocation8 + $0x84] sm:$0xf] }
  0x68   :  { %v8744_v4 = vld [vmem:[#allocation8 + $0x95c] sm:$0xf0] }
  0x69   :  { %v7814_v8 = vld [vmem:[#allocation8 + $0xb40] sm:$0xf]  ;;  %v7559_v11 = vor.u32 %v8744_v4, %v7558_v3  ;;  %2738 = vmatpush.bf16.msrb.mxu1 %v7847_v61  ;;  %v6440_v61 = vld [vmem:[#allocation8 + $0xa0] sm:$0xf0] }
  0x6a   :  { %v8808_v9 = vld [vmem:[#allocation8 + $0xb5c] sm:$0xf0]  ;;  %2768 = vmatpush.bf16.msrb.mxu2 %v6539_v19  ;;  %v6443_v4 = vor.u32 %v8460_v60, %v6440_v61  ;;  %v6336_v19 = vld [vmem:[#allocation5 + $0x80] sm:$0xf0]  ;;  %v6294_v60 = vld [vmem:[#allocation5 + $0x10] sm:$0xf] }
  0x6b   :  { %v7815_v18 = vor.u32 %v8808_v9, %v7814_v8  ;;  %v7526_v24 = vld [vmem:[#allocation8 + $0x900] sm:$0xf]  ;;  %2710 = vmatpush.bf16.msrb.mxu0 %v7559_v11  ;;  %2797 = vmatpush.bf16.msrb.mxu3 %v6795_v23  ;;  %v8432_v8 = vld [vmem:[#allocation5 + $0x64] sm:$0xf]  ;;  %v6328_v9 = vld [vmem:[#allocation5 + $0x78] sm:$0xf0] }
  0x6c   :  { %v8736_v25 = vld [vmem:[#allocation8 + $0x91c] sm:$0xf0]  ;;  %v9440_v34 = vor.u32 %v8432_v8, %v6328_v9  ;;  %v8425_v61 = vld [vmem:[#allocation5 + $0x24] sm:$0xf0]  ;;  %v7624_v8 = vld [vmem:[#allocation8 + $0x9e0] sm:$0xf0] }
  0x6d   :  { %v7782_v26 = vld [vmem:[#allocation8 + $0xb00] sm:$0xf]  ;;  %2739 = vmatpush.bf16.msrb.mxu1 %v7815_v18  ;;  %v7527_v36 = vor.u32 %v8736_v25, %v7526_v24  ;;  %v8433_v18 = vld [vmem:[#allocation5 + $0x6c] sm:$0xf]  ;;  %v9462_v0 = vor.u32 %v8425_v61, %v6294_v60  ;;  %v8428_v60 = vld [vmem:[#allocation5 + $0x44] sm:$0xf] }
  0x6e   :  { %v8800_v28 = vld [vmem:[#allocation8 + $0xb1c] sm:$0xf0]  ;;  %2634 = vmatmul.bf16.gmra.mxu1 %v9428_v31  ;;  %2769 = vmatpush.bf16.msrb.mxu2 %v6507_v38  ;;  %v6632_v38 = vld [vmem:[#allocation8 + $0x220] sm:$0xf0]  ;;  %v6320_v61 = vld [vmem:[#allocation5 + $0x58] sm:$0xf0] }
  0x6f   :  { %v7783_v37 = vor.u32 %v8800_v28, %v7782_v26  ;;  %v7494_v44 = vld [vmem:[#allocation8 + $0x8c0] sm:$0xf]  ;;  %2711 = vmatpush.bf16.msrb.mxu0 %v7527_v36  ;;  %2798 = vmatpush.bf16.msrb.mxu3 %v6763_v39  ;;  %v6667_v28 = vor.u32 %v8516_v15, %v6664_v16  ;;  %v9444_v39 = vor.u32 %v8433_v18, %v6336_v19  ;;  %v7080_v15 = vld [vmem:[#allocation8 + $0x5a0] sm:$0xf0] }
  0x70   :  { %2605 = vmatmul.bf16.gmra.mxu0 %v9426_v27  ;;  %v8728_v45 = vld [vmem:[#allocation8 + $0x8dc] sm:$0xf0]  ;;  %v8684_v16 = vld [vmem:[#allocation8 + $0x784] sm:$0xf]  ;;  %v7083_v18 = vor.u32 %v8620_v13, %v7080_v15 }
  0x71   :  { %2663 = vmatmul.bf16.gmra.mxu2 %v9430_v32  ;;  %v7750_v46 = vld [vmem:[#allocation8 + $0xac0] sm:$0xf]  ;;  %v7495_v47 = vor.u32 %v8728_v45, %v7494_v44  ;;  %2740 = vmatpush.bf16.msrb.mxu1 %v7783_v37  ;;  %v8508_v37 = vld [vmem:[#allocation8 + $0x204] sm:$0xf] }
  0x72   :  { %2692 = vmatmul.bf16.gmra.mxu3 %v9432_v35  ;;  %v8792_v48 = vld [vmem:[#allocation8 + $0xadc] sm:$0xf0]  ;;  %2770 = vmatpush.bf16.msrb.mxu2 %v6475_v52  ;;  %v6358_v52 = vld [vmem:[#allocation5 + $0x98] sm:$0xf]  ;;  %v8724_v15 = vld [vmem:[#allocation8 + $0x8c4] sm:$0xf] }
  0x73   :  { %v7751_v51 = vor.u32 %v8792_v48, %v7750_v46  ;;  %v7462_v55 = vld [vmem:[#allocation8 + $0x880] sm:$0xf]  ;;  %2712 = vmatpush.bf16.msrb.mxu0 %v7495_v47  ;;  %2799 = vmatpush.bf16.msrb.mxu3 %v6731_v56  ;;  %v6379_v46 = vor.u32 %v8444_v30, %v6376_v33  ;;  %v6635_v47 = vor.u32 %v8508_v37, %v6632_v38  ;;  %v6350_v48 = vld [vmem:[#allocation5 + $0x90] sm:$0xf]  ;;  %v8676_v30 = vld [vmem:[#allocation8 + $0x744] sm:$0xf] }
  0x74   :  { %v8720_v57 = vld [vmem:[#allocation8 + $0x89c] sm:$0xf0]  ;;  %v9450_v56 = vor.u32 %v8441_v49, %v6350_v48  ;;  %v7304_v33 = vld [vmem:[#allocation8 + $0x760] sm:$0xf0] }
  0x75   :  { %v7718_v58 = vld [vmem:[#allocation8 + $0xa80] sm:$0xf]  ;;  %v7463_v63 = vor.u32 %v8720_v57, %v7462_v55  ;;  %2741 = vmatpush.bf16.msrb.mxu1 %v7751_v51  ;;  %v6352_v51 = vld [vmem:[#allocation5 + $0xa8] sm:$0xf0]  ;;  %v6360_v55 = vld [vmem:[#allocation5 + $0xb0] sm:$0xf0]  ;;  %v7307_v48 = vor.u32 %v8676_v30, %v7304_v33 }
  0x76   :  { %v8784_v59 = vld [vmem:[#allocation8 + $0xa9c] sm:$0xf0]  ;;  %2771 = vmatpush.bf16.msrb.mxu2 %v6443_v4  ;;  %v9452_v57 = vor.u32 %v8438_v50, %v6352_v51  ;;  %v8692_v4 = vld [vmem:[#allocation8 + $0x7c4] sm:$0xf] }
  0x77   :  { %v6326_v1 = vld [vmem:[#allocation5 + $0x60] sm:$0xf]  ;;  %v7719_v3 = vor.u32 %v8784_v59, %v7718_v58  ;;  %2713 = vmatpush.bf16.msrb.mxu0 %v7463_v63  ;;  %2800 = vmatpush.bf16.msrb.mxu3 %v6699_v10  ;;  %v9454_v58 = vor.u32 %v8442_v53, %v6358_v52  ;;  %v9456_v59 = vor.u32 %v8439_v54, %v6360_v55  ;;  %v6296_v63 = vld [vmem:[#allocation5 + $0x28] sm:$0xf0]  ;;  %v8740_v37 = vld [vmem:[#allocation8 + $0x944] sm:$0xf] }
  0x78   :  { %v7430_v5 = vld [vmem:[#allocation8 + $0x840] sm:$0xf]  ;;  %v9438_v26 = vor.u32 %v8435_v2, %v6326_v1  ;;  %v9464_v1 = vor.u32 %v8422_v62, %v6296_v63  ;;  %v8628_v2 = vld [vmem:[#allocation8 + $0x5c4] sm:$0xf]  ;;  %v8431_v52 = vld [vmem:[#allocation5 + $0x54] sm:$0xf0] }
  0x79   :  { %v8712_v6 = vld [vmem:[#allocation8 + $0x85c] sm:$0xf0]  ;;  %2742 = vmatpush.bf16.msrb.mxu1 %v7719_v3  ;;  %v7112_v3 = vld [vmem:[#allocation8 + $0x5e0] sm:$0xf0] }
  0x7a   :  { %v7686_v7 = vld [vmem:[#allocation8 + $0xa40] sm:$0xf]  ;;  %v7431_v20 = vor.u32 %v8712_v6, %v7430_v5  ;;  %2772 = vmatpush.bf16.msrb.mxu2 %v6411_v22  ;;  %v7115_v5 = vor.u32 %v8628_v2, %v7112_v3  ;;  %v7368_v6 = vld [vmem:[#allocation8 + $0x7e0] sm:$0xf0] }
  0x7b   :  { %v8776_v11 = vld [vmem:[#allocation8 + $0xa5c] sm:$0xf0]  ;;  %2801 = vmatpush.bf16.msrb.mxu3 %v6667_v28  ;;  %v7371_v9 = vor.u32 %v8692_v4, %v7368_v6  ;;  %v8812_v22 = vld [vmem:[#allocation8 + $0xb84] sm:$0xf] }
  0x7c   :  { %v8436_v17 = vld [vmem:[#allocation5 + $0x7c] sm:$0xf0]  ;;  %v7687_v21 = vor.u32 %v8776_v11, %v7686_v7  ;;  %2714 = vmatpush.bf16.msrb.mxu0 %v7431_v20  ;;  %v8756_v7 = vld [vmem:[#allocation8 + $0x9c4] sm:$0xf] }
  0x7d   :  { %v7398_v23 = vld [vmem:[#allocation8 + $0x800] sm:$0xf]  ;;  %v9442_v36 = vor.u32 %v8436_v17, %v6334_v14  ;;  %v7627_v10 = vor.u32 %v8756_v7, %v7624_v8  ;;  %v8820_v11 = vld [vmem:[#allocation8 + $0xbc4] sm:$0xf]  ;;  %v9472_v7 = vor.u32 %v8428_v60, %v6320_v61  ;;  %v6342_v60 = vld [vmem:[#allocation5 + $0x70] sm:$0xf] }
  0x7e   :  { %v8704_v24 = vld [vmem:[#allocation8 + $0x81c] sm:$0xf0]  ;;  %2743 = vmatpush.bf16.msrb.mxu1 %v7687_v21  ;;  %2773 = vmatpush.bf16.msrb.mxu2 %v6379_v46  ;;  %v7883_v14 = vor.u32 %v8820_v11, %v7880_v12  ;;  %v7336_v17 = vld [vmem:[#allocation8 + $0x7a0] sm:$0xf0]  ;;  %v8437_v61 = vld [vmem:[#allocation5 + $0x84] sm:$0xf0] }
  0x7f   :  { %v7654_v25 = vld [vmem:[#allocation8 + $0xa00] sm:$0xf]  ;;  %v7399_v44 = vor.u32 %v8704_v24, %v7398_v23  ;;  %2639 = vmatmul.bf16.gmra.mxu1 %v9440_v34  ;;  %2802 = vmatpush.bf16.msrb.mxu3 %v6635_v47  ;;  %v7339_v19 = vor.u32 %v8684_v16, %v7336_v17  ;;  %v8748_v20 = vld [vmem:[#allocation8 + $0x984] sm:$0xf] }
  0x80   :  { %v8768_v29 = vld [vmem:[#allocation8 + $0xa1c] sm:$0xf0]  ;;  %2610 = vmatmul.bf16.gmra.mxu0 %v9438_v26  ;;  %v7592_v21 = vld [vmem:[#allocation8 + $0x9a0] sm:$0xf0] }
  0x81   :  { %v7655_v45 = vor.u32 %v8768_v29, %v7654_v25  ;;  %2668 = vmatmul.bf16.gmra.mxu2 %v9442_v36  ;;  %2715 = vmatpush.bf16.msrb.mxu0 %v7399_v44  ;;  %v7595_v23 = vor.u32 %v8748_v20, %v7592_v21  ;;  %v7848_v24 = vld [vmem:[#allocation8 + $0xba0] sm:$0xf0]  ;;  %v6318_v47 = vld [vmem:[#allocation5 + $0x40] sm:$0xf] }
  0x82   :  { %2697 = vmatmul.bf16.gmra.mxu3 %v9444_v39  ;;  %2882 = vmatpush.bf16.msra.mxu2 %v7627_v10  ;;  %v8612_v25 = vld [vmem:[#allocation8 + $0x544] sm:$0xf]  ;;  %v7851_v29 = vor.u32 %v8812_v22, %v7848_v24  ;;  %v9470_v3 = vor.u32 %v8431_v52, %v6318_v47 }
  0x83   :  { %2744 = vmatpush.bf16.msrb.mxu1 %v7655_v45  ;;  %2911 = vmatpush.bf16.msra.mxu3 %v7883_v14  ;;  %v7048_v28 = vld [vmem:[#allocation8 + $0x560] sm:$0xf0] }
  0x84   :  { %v7051_v38 = vor.u32 %v8612_v25, %v7048_v28  ;;  %v7560_v44 = vld [vmem:[#allocation8 + $0x960] sm:$0xf0] }
  0x85   :  { %2824 = vmatpush.bf16.msra.mxu0 %v7115_v5  ;;  %v8804_v45 = vld [vmem:[#allocation8 + $0xb44] sm:$0xf]  ;;  %v7563_v49 = vor.u32 %v8740_v37, %v7560_v44 }
  0x86   :  { %v7816_v46 = vld [vmem:[#allocation8 + $0xb60] sm:$0xf0]  ;;  %2883 = vmatpush.bf16.msra.mxu2 %v7595_v23 }
  0x87   :  { %2853 = vmatpush.bf16.msra.mxu1 %v7371_v9  ;;  %v8604_v50 = vld [vmem:[#allocation8 + $0x504] sm:$0xf]  ;;  %2912 = vmatpush.bf16.msra.mxu3 %v7851_v29  ;;  %v7819_v53 = vor.u32 %v8804_v45, %v7816_v46 }
  0x88   :  { %v7016_v51 = vld [vmem:[#allocation8 + $0x520] sm:$0xf0] }
  0x89   :  { %2825 = vmatpush.bf16.msra.mxu0 %v7083_v18  ;;  %v8668_v54 = vld [vmem:[#allocation8 + $0x704] sm:$0xf]  ;;  %v7019_v62 = vor.u32 %v8604_v50, %v7016_v51 }
  0x8a   :  { %v7272_v55 = vld [vmem:[#allocation8 + $0x720] sm:$0xf0]  ;;  %2884 = vmatpush.bf16.msra.mxu2 %v7563_v49 }
  0x8b   :  { %2854 = vmatpush.bf16.msra.mxu1 %v7339_v19  ;;  %v8732_v63 = vld [vmem:[#allocation8 + $0x904] sm:$0xf]  ;;  %v7275_v4 = vor.u32 %v8668_v54, %v7272_v55  ;;  %2913 = vmatpush.bf16.msra.mxu3 %v7819_v53 }
  0x8c   :  { %v7528_v2 = vld [vmem:[#allocation8 + $0x920] sm:$0xf0] }
  0x8d   :  { %2826 = vmatpush.bf16.msra.mxu0 %v7051_v38  ;;  %v8796_v5 = vld [vmem:[#allocation8 + $0xb04] sm:$0xf]  ;;  %v7531_v8 = vor.u32 %v8732_v63, %v7528_v2  ;;  %v6344_v63 = vld [vmem:[#allocation5 + $0x88] sm:$0xf0] }
  0x8e   :  { %v7784_v6 = vld [vmem:[#allocation8 + $0xb20] sm:$0xf0] }
  0x8f   :  { %2644 = vmatmul.bf16.gmra.mxu1 %v9452_v57  ;;  %v7787_v9 = vor.u32 %v8796_v5, %v7784_v6  ;;  %v8596_v10 = vld [vmem:[#allocation8 + $0x4c4] sm:$0xf]  ;;  %2885 = vmatpush.bf16.msra.mxu2 %v7531_v8  ;;  %v9478_v5 = vor.u32 %v8437_v61, %v6342_v60  ;;  %v6574_v61 = vld [vmem:[#allocation8 + $0x188] sm:$0xf] }
  0x90   :  { %2615 = vmatmul.bf16.gmra.mxu0 %v9450_v56  ;;  %2855 = vmatpush.bf16.msra.mxu1 %v7307_v48  ;;  %v6984_v11 = vld [vmem:[#allocation8 + $0x4e0] sm:$0xf0] }
  0x91   :  { %2673 = vmatmul.bf16.gmra.mxu2 %v9454_v58  ;;  %2827 = vmatpush.bf16.msra.mxu0 %v7019_v62  ;;  %v8660_v12 = vld [vmem:[#allocation8 + $0x6c4] sm:$0xf]  ;;  %v6987_v13 = vor.u32 %v8596_v10, %v6984_v11  ;;  %v8434_v62 = vld [vmem:[#allocation5 + $0x74] sm:$0xf] }
  0x92   :  { %2702 = vmatmul.bf16.gmra.mxu3 %v9456_v59  ;;  %v7240_v14 = vld [vmem:[#allocation8 + $0x6e0] sm:$0xf0]  ;;  %v9480_v10 = vor.u32 %v8434_v62, %v6344_v63  ;;  %v8497_v62 = vld [vmem:[#allocation8 + $0x1a4] sm:$0xf0] }
  0x93   :  { %v7496_v16 = vld [vmem:[#allocation8 + $0x8e0] sm:$0xf0]  ;;  %v7243_v17 = vor.u32 %v8660_v12, %v7240_v14  ;;  %2914 = vmatpush.bf16.msra.mxu3 %v7787_v9  ;;  %v6830_v63 = vld [vmem:[#allocation8 + $0x388] sm:$0xf] }
  0x94   :  { %2856 = vmatpush.bf16.msra.mxu1 %v7275_v4  ;;  %v7499_v18 = vor.u32 %v8724_v15, %v7496_v16  ;;  %v8788_v19 = vld [vmem:[#allocation8 + $0xac4] sm:$0xf] }
  0x95   :  { %v7752_v20 = vld [vmem:[#allocation8 + $0xae0] sm:$0xf0]  ;;  %2828 = vmatpush.bf16.msra.mxu0 %v6987_v13 }
  0x96   :  { %v8588_v21 = vld [vmem:[#allocation8 + $0x484] sm:$0xf]  ;;  %v7755_v22 = vor.u32 %v8788_v19, %v7752_v20  ;;  %2886 = vmatpush.bf16.msra.mxu2 %v7499_v18  ;;  %v6366_v20 = vld [vmem:[#allocation5 + $0xa0] sm:$0xf] }
  0x97   :  { %v6952_v23 = vld [vmem:[#allocation8 + $0x4a0] sm:$0xf0] }
  0x98   :  { %v8652_v24 = vld [vmem:[#allocation8 + $0x684] sm:$0xf]  ;;  %2857 = vmatpush.bf16.msra.mxu1 %v7243_v17  ;;  %v6955_v28 = vor.u32 %v8588_v21, %v6952_v23  ;;  %2915 = vmatpush.bf16.msra.mxu3 %v7755_v22  ;;  %v8443_v21 = vld [vmem:[#allocation5 + $0xb4] sm:$0xf0]  ;;  %v6368_v23 = vld [vmem:[#allocation5 + $0xb8] sm:$0xf0] }
  0x99   :  { %v7208_v25 = vld [vmem:[#allocation8 + $0x6a0] sm:$0xf0] }
  0x9a   :  { %v7211_v29 = vor.u32 %v8652_v24, %v7208_v25  ;;  %v8716_v30 = vld [vmem:[#allocation8 + $0x884] sm:$0xf]  ;;  %2829 = vmatpush.bf16.msra.mxu0 %v6955_v28  ;;  %v9486_v24 = vor.u32 %v8443_v21, %v6366_v20 }
  0x9b   :  { %v7464_v33 = vld [vmem:[#allocation8 + $0x8a0] sm:$0xf0] }
  0x9c   :  { %v8780_v37 = vld [vmem:[#allocation8 + $0xa84] sm:$0xf]  ;;  %v7467_v46 = vor.u32 %v8716_v30, %v7464_v33  ;;  %2858 = vmatpush.bf16.msra.mxu1 %v7211_v29 }
  0x9d   :  { %v7720_v38 = vld [vmem:[#allocation8 + $0xaa0] sm:$0xf0] }
  0x9e   :  { %v8580_v44 = vld [vmem:[#allocation8 + $0x444] sm:$0xf]  ;;  %v7723_v49 = vor.u32 %v8780_v37, %v7720_v38  ;;  %2887 = vmatpush.bf16.msra.mxu2 %v7467_v46  ;;  %v6862_v46 = vld [vmem:[#allocation8 + $0x3c8] sm:$0xf] }
  0x9f   :  { %2745 = vmatmul.bf16.vlgmr.msrb.gmra.mxu1 %v9464_v1  ;;  %v6920_v45 = vld [vmem:[#allocation8 + $0x460] sm:$0xf0] }
  0xa0   :  { %2716 = vmatmul.bf16.vlgmr.msrb.gmra.mxu0 %v9462_v0  ;;  %v8644_v47 = vld [vmem:[#allocation8 + $0x644] sm:$0xf]  ;;  %v6923_v50 = vor.u32 %v8580_v44, %v6920_v45  ;;  %2916 = vmatpush.bf16.msra.mxu3 %v7723_v49  ;;  %v6606_v44 = vld [vmem:[#allocation8 + $0x1c8] sm:$0xf] }
  0xa1   :  { %2774 = vmatmul.bf16.vlgmr.msrb.gmra.mxu2 %v9414_v40  ;;  %v7176_v48 = vld [vmem:[#allocation8 + $0x660] sm:$0xf0]  ;;  %v8505_v45 = vld [vmem:[#allocation8 + $0x1e4] sm:$0xf0] }
  0xa2   :  { %2803 = vmatmul.bf16.vlgmr.msrb.gmra.mxu3 %v9416_v41  ;;  %v8708_v51 = vld [vmem:[#allocation8 + $0x844] sm:$0xf]  ;;  %v7179_v53 = vor.u32 %v8644_v47, %v7176_v48  ;;  %2830 = vmatpush.bf16.msra.mxu0 %v6923_v50  ;;  %v6607_v47 = vor.u32 %v8505_v45, %v6606_v44  ;;  %v8569_v48 = vld [vmem:[#allocation8 + $0x3e4] sm:$0xf0] }
  0xa3   :  { %v7432_v52 = vld [vmem:[#allocation8 + $0x860] sm:$0xf0]  ;;  %v7118_v49 = vld [vmem:[#allocation8 + $0x5c8] sm:$0xf] }
  0xa4   :  { %v8772_v54 = vld [vmem:[#allocation8 + $0xa44] sm:$0xf]  ;;  %v7435_v2 = vor.u32 %v8708_v51, %v7432_v52  ;;  %2859 = vmatpush.bf16.msra.mxu1 %v7179_v53  ;;  %v8633_v50 = vld [vmem:[#allocation8 + $0x5e4] sm:$0xf0]  ;;  %v6863_v51 = vor.u32 %v8569_v48, %v6862_v46 }
  0xa5   :  { %v7688_v55 = vld [vmem:[#allocation8 + $0xa60] sm:$0xf0]  ;;  %v7119_v52 = vor.u32 %v8633_v50, %v7118_v49  ;;  %v7374_v53 = vld [vmem:[#allocation8 + $0x7c8] sm:$0xf] }
  0xa6   :  { %v7691_v4 = vor.u32 %v8772_v54, %v7688_v55  ;;  %v8572_v6 = vld [vmem:[#allocation8 + $0x404] sm:$0xf]  ;;  %2888 = vmatpush.bf16.msra.mxu2 %v7435_v2  ;;  %v8697_v54 = vld [vmem:[#allocation8 + $0x7e4] sm:$0xf0] }
  0xa7   :  { %v6888_v8 = vld [vmem:[#allocation8 + $0x420] sm:$0xf0]  ;;  %v7375_v55 = vor.u32 %v8697_v54, %v7374_v53  ;;  %v8617_v44 = vld [vmem:[#allocation8 + $0x564] sm:$0xf0] }
  0xa8   :  { %v8636_v9 = vld [vmem:[#allocation8 + $0x604] sm:$0xf]  ;;  %v6891_v11 = vor.u32 %v8572_v6, %v6888_v8  ;;  %2917 = vmatpush.bf16.msra.mxu3 %v7691_v4  ;;  %v6575_v8 = vor.u32 %v8497_v62, %v6574_v61  ;;  %v8681_v48 = vld [vmem:[#allocation8 + $0x764] sm:$0xf0] }
  0xa9   :  { %v7144_v12 = vld [vmem:[#allocation8 + $0x620] sm:$0xf0]  ;;  %v6766_v53 = vld [vmem:[#allocation8 + $0x308] sm:$0xf] }
  0xaa   :  { %v8700_v13 = vld [vmem:[#allocation8 + $0x804] sm:$0xf]  ;;  %v7147_v15 = vor.u32 %v8636_v9, %v7144_v12  ;;  %2831 = vmatpush.bf16.msra.mxu0 %v6891_v11  ;;  %v8561_v9 = vld [vmem:[#allocation8 + $0x3a4] sm:$0xf0] }
  0xab   :  { %v7400_v14 = vld [vmem:[#allocation8 + $0x820] sm:$0xf0]  ;;  %v7086_v11 = vld [vmem:[#allocation8 + $0x588] sm:$0xf] }
  0xac   :  { %v7403_v16 = vor.u32 %v8700_v13, %v7400_v14  ;;  %v8764_v17 = vld [vmem:[#allocation8 + $0xa04] sm:$0xf]  ;;  %2860 = vmatpush.bf16.msra.mxu1 %v7147_v15  ;;  %v8625_v12 = vld [vmem:[#allocation8 + $0x5a4] sm:$0xf0]  ;;  %v6831_v15 = vor.u32 %v8561_v9, %v6830_v63 }
  0xad   :  { %v7656_v18 = vld [vmem:[#allocation8 + $0xa20] sm:$0xf0]  ;;  %v8545_v62 = vld [vmem:[#allocation8 + $0x324] sm:$0xf0] }
  0xae   :  { %v7659_v19 = vor.u32 %v8764_v17, %v7656_v18  ;;  %2889 = vmatpush.bf16.msra.mxu2 %v7403_v16  ;;  %v8440_v22 = vld [vmem:[#allocation5 + $0xa4] sm:$0xf]  ;;  %2940 = vmatpush.bf16.msrb.mxu0 %v6607_v47  ;;  %v7087_v16 = vor.u32 %v8625_v12, %v7086_v11  ;;  %v7342_v17 = vld [vmem:[#allocation8 + $0x788] sm:$0xf] }
  0xaf   :  { %2750 = vmatmul.bf16.gmra.mxu1 %v9472_v7  ;;  %v9488_v25 = vor.u32 %v8440_v22, %v6368_v23  ;;  %v9494_v28 = vld [vmem:[#allocation10] sm:$0xff]  ;;  %v8689_v18 = vld [vmem:[#allocation8 + $0x7a4] sm:$0xf0] }
  0xb0   :  { %2721 = vmatmul.bf16.gmra.mxu0 %v9470_v3  ;;  %2918 = vmatpush.bf16.msra.mxu3 %v7659_v19  ;;  %v9497_v29 = vperm.slane %v9494_v28, 0  ;;  %v7343_v20 = vor.u32 %v8689_v18, %v7342_v17  ;;  %v6542_v22 = vld [vmem:[#allocation8 + $0x148] sm:$0xf] }
  0xb1   :  { %2779 = vmatmul.bf16.gmra.mxu2 %v9426_v27  ;;  %2969 = vmatpush.bf16.msrb.mxu1 %v6863_v51  ;;  %v8489_v23 = vld [vmem:[#allocation8 + $0x164] sm:$0xf0] }
  0xb2   :  { %2808 = vmatmul.bf16.gmra.mxu3 %v9428_v31  ;;  %2998 = vmatpush.bf16.msrb.mxu2 %v7119_v52  ;;  %v7310_v47 = vld [vmem:[#allocation8 + $0x748] sm:$0xf] }
  0xb3   :  { %2941 = vmatpush.bf16.msrb.mxu0 %v6575_v8  ;;  %v7311_v49 = vor.u32 %v8681_v48, %v7310_v47  ;;  %v6510_v51 = vld [vmem:[#allocation8 + $0x108] sm:$0xf]  ;;  %v6767_v8 = vor.u32 %v8545_v62, %v6766_v53 }
  0xb4   :  { %3027 = vmatpush.bf16.msrb.mxu3 %v7375_v55  ;;  %v8481_v52 = vld [vmem:[#allocation8 + $0x124] sm:$0xf0] }
  0xb5   :  { %2970 = vmatpush.bf16.msrb.mxu1 %v6831_v15  ;;  %v6511_v61 = vor.u32 %v8481_v52, %v6510_v51  ;;  %v7022_v63 = vld [vmem:[#allocation8 + $0x508] sm:$0xf] }
  0xb6   :  { %2999 = vmatpush.bf16.msrb.mxu2 %v7087_v16  ;;  %v7278_v11 = vld [vmem:[#allocation8 + $0x708] sm:$0xf] }
  0xb7   :  { %v8673_v12 = vld [vmem:[#allocation8 + $0x724] sm:$0xf0] }
  0xb8   :  { %3028 = vmatpush.bf16.msrb.mxu3 %v7343_v20  ;;  %v6478_v16 = vld [vmem:[#allocation8 + $0xc8] sm:$0xf] }
  0xb9   :  { %v8473_v17 = vld [vmem:[#allocation8 + $0xe4] sm:$0xf0] }
  0xba   :  { %v6734_v18 = vld [vmem:[#allocation8 + $0x2c8] sm:$0xf]  ;;  %v6479_v20 = vor.u32 %v8473_v17, %v6478_v16 }
  0xbb   :  { %v8465_v47 = vld [vmem:[#allocation8 + $0xa4] sm:$0xf0] }
  0xbc   :  { %3029 = vmatpush.bf16.msrb.mxu3 %v7311_v49  ;;  %v6702_v48 = vld [vmem:[#allocation8 + $0x288] sm:$0xf] }
  0xbd   :  { %v8529_v53 = vld [vmem:[#allocation8 + $0x2a4] sm:$0xf0] }
  0xbe   :  { %v6703_v62 = vor.u32 %v8529_v53, %v6702_v48  ;;  %v8521_v16 = vld [vmem:[#allocation8 + $0x264] sm:$0xf0] }
  0xbf   :  { %2755 = vmatmul.bf16.gmra.mxu1 %v9480_v10  ;;  %v6926_v17 = vld [vmem:[#allocation8 + $0x448] sm:$0xf] }
  0xc0   :  { %2726 = vmatmul.bf16.gmra.mxu0 %v9478_v5 }
  0xc1   :  { %2784 = vmatmul.bf16.gmra.mxu2 %v9438_v26 }
  0xc2   :  { %2813 = vmatmul.bf16.gmra.mxu3 %v9440_v34 }
  0xcf   :  { %2760 = vmatmul.bf16.gmra.mxu1 %v9488_v25 }
  0xd0   :  { %2731 = vmatmul.bf16.gmra.mxu0 %v9486_v24 }
  0xd1   :  { %2789 = vmatmul.bf16.gmra.mxu2 %v9450_v56 }
  0xd2   :  { %2818 = vmatmul.bf16.gmra.mxu3 %v9452_v57 }
  0xdb   :  { %v2630_v37 = vpop.f32.mrf.mxu1 }
  0xdd   :  { %v2601_v30 = vpop.f32.mrf.mxu0 }
  0xde   :  { %v2602_v33 = vadd.f32 %v2601_v30, %v9497_v29  ;;  %v6798_v30 = vld [vmem:[#allocation8 + $0x348] sm:$0xf] }
  0xdf   :  { %2861 = vmatmul.bf16.vlgmr.msra.gmra.mxu1 %v9420_v43 }
  0xe0   :  { %v2631_v38 = vadd.f32 %v2630_v37, %v2602_v33  ;;  %2832 = vmatmul.bf16.vlgmr.msra.gmra.mxu0 %v9418_v42  ;;  %v6543_v33 = vor.u32 %v8489_v23, %v6542_v22  ;;  %v8553_v37 = vld [vmem:[#allocation8 + $0x364] sm:$0xf0] }
  0xe1   :  { %2890 = vmatmul.bf16.vlgmr.msra.gmra.mxu2 %v9462_v0  ;;  %v6799_v45 = vor.u32 %v8553_v37, %v6798_v30  ;;  %v6990_v22 = vld [vmem:[#allocation8 + $0x4c8] sm:$0xf] }
  0xe2   :  { %2919 = vmatmul.bf16.vlgmr.msra.gmra.mxu3 %v9464_v1  ;;  %2942 = vmatpush.bf16.msrb.mxu0 %v6543_v33  ;;  %v8601_v23 = vld [vmem:[#allocation8 + $0x4e4] sm:$0xf0] }
  0xe3   :  { %v2632_v14 = vpop.f32.mrf.mxu1  ;;  %2971 = vmatpush.bf16.msrb.mxu1 %v6799_v45  ;;  %v6991_v33 = vor.u32 %v8601_v23, %v6990_v22  ;;  %v7246_v37 = vld [vmem:[#allocation8 + $0x6c8] sm:$0xf] }
  0xe4   :  { %v2659_v60 = vpop.f32.mrf.mxu2  ;;  %v7182_v22 = vld [vmem:[#allocation8 + $0x648] sm:$0xf] }
  0xe5   :  { %v2660_v2 = vadd.f32 %v2659_v60, %v2631_v38  ;;  %v2688_v4 = vpop.f32.mrf.mxu3  ;;  %v2603_v6 = vpop.f32.mrf.mxu0  ;;  %v7054_v38 = vld [vmem:[#allocation8 + $0x548] sm:$0xf] }
  0xe6   :  { %v2604_v13 = vadd.f32 %v2603_v6, %v9497_v29  ;;  %v7055_v46 = vor.u32 %v8617_v44, %v7054_v38  ;;  %2943 = vmatpush.bf16.msrb.mxu0 %v6511_v61  ;;  %v8665_v38 = vld [vmem:[#allocation8 + $0x6e4] sm:$0xf0] }
  0xe7   :  { %v9505_v19 = vadd.f32 %v2688_v4, %v2660_v2  ;;  %v8609_v2 = vld [vmem:[#allocation8 + $0x524] sm:$0xf0]  ;;  %2972 = vmatpush.bf16.msrb.mxu1 %v6767_v8  ;;  %v7247_v44 = vor.u32 %v8665_v38, %v7246_v37 }
  0xe8   :  { %v2633_v21 = vadd.f32 %v2632_v14, %v2604_v13  ;;  %3000 = vmatpush.bf16.msrb.mxu2 %v7055_v46  ;;  %v7023_v9 = vor.u32 %v8609_v2, %v7022_v63  ;;  %v7279_v14 = vor.u32 %v8673_v12, %v7278_v11  ;;  %v6446_v46 = vld [vmem:[#allocation8 + $0x88] sm:$0xf] }
  0xe9   :  { %v6447_v52 = vor.u32 %v8465_v47, %v6446_v46  ;;  %v7214_v2 = vld [vmem:[#allocation8 + $0x688] sm:$0xf] }
  0xea   :  { %3030 = vmatpush.bf16.msrb.mxu3 %v7279_v14  ;;  %2944 = vmatpush.bf16.msrb.mxu0 %v6479_v20  ;;  %v6414_v11 = vld [vmem:[#allocation8 + $0x48] sm:$0xf] }
  0xeb   :  { %v2635_v6 = vpop.f32.mrf.mxu1  ;;  %v8457_v12 = vld [vmem:[#allocation8 + $0x64] sm:$0xf0] }
  0xec   :  { %v2661_v50 = vpop.f32.mrf.mxu2  ;;  %3001 = vmatpush.bf16.msrb.mxu2 %v7023_v9  ;;  %v6670_v14 = vld [vmem:[#allocation8 + $0x248] sm:$0xf] }
  0xed   :  { %v2662_v54 = vadd.f32 %v2661_v50, %v2633_v21  ;;  %v2690_v55 = vpop.f32.mrf.mxu3  ;;  %v2606_v60 = vpop.f32.mrf.mxu0  ;;  %v8537_v21 = vld [vmem:[#allocation8 + $0x2e4] sm:$0xf0]  ;;  %v6671_v20 = vor.u32 %v8521_v16, %v6670_v14 }
  0xee   :  { %v2607_v4 = vadd.f32 %v2606_v60, %v9497_v29  ;;  %v6735_v30 = vor.u32 %v8537_v21, %v6734_v18  ;;  %3031 = vmatpush.bf16.msrb.mxu3 %v7247_v44  ;;  %2945 = vmatpush.bf16.msrb.mxu0 %v6447_v52  ;;  %v8585_v18 = vld [vmem:[#allocation8 + $0x464] sm:$0xf0] }
  0xef   :  { %v9508_v13 = vadd.f32 %v2690_v55, %v2662_v54  ;;  %2866 = vmatmul.bf16.gmra.mxu1 %v9432_v35  ;;  %v6958_v54 = vld [vmem:[#allocation8 + $0x488] sm:$0xf]  ;;  %v6927_v21 = vor.u32 %v8585_v18, %v6926_v17 }
  0xf0   :  { %v2636_v15 = vadd.f32 %v2635_v6, %v2607_v4  ;;  %2837 = vmatmul.bf16.gmra.mxu0 %v9430_v32  ;;  %2973 = vmatpush.bf16.msrb.mxu1 %v6735_v30  ;;  %v8593_v55 = vld [vmem:[#allocation8 + $0x4a4] sm:$0xf0] }
  0xf1   :  { %2895 = vmatmul.bf16.gmra.mxu2 %v9470_v3  ;;  %v6959_v63 = vor.u32 %v8593_v55, %v6958_v54  ;;  %v8657_v4 = vld [vmem:[#allocation8 + $0x6a4] sm:$0xf0] }
  0xf2   :  { %2924 = vmatmul.bf16.gmra.mxu3 %v9472_v7  ;;  %3002 = vmatpush.bf16.msrb.mxu2 %v6991_v33  ;;  %v7215_v8 = vor.u32 %v8657_v4, %v7214_v2  ;;  %v8649_v23 = vld [vmem:[#allocation8 + $0x664] sm:$0xf0] }
  0xf3   :  { %v2637_v61 = vpop.f32.mrf.mxu1  ;;  %v7183_v30 = vor.u32 %v8649_v23, %v7182_v22  ;;  %v6382_v37 = vld [vmem:[#allocation8 + $0x8] sm:$0xf] }
  0xf4   :  { %v2664_v45 = vpop.f32.mrf.mxu2  ;;  %2974 = vmatpush.bf16.msrb.mxu1 %v6703_v62  ;;  %3032 = vmatpush.bf16.msrb.mxu3 %v7215_v8  ;;  %v8449_v38 = vld [vmem:[#allocation8 + $0x24] sm:$0xf0] }
  0xf5   :  { %v2665_v49 = vadd.f32 %v2664_v45, %v2636_v15  ;;  %v2693_v50 = vpop.f32.mrf.mxu3  ;;  %v2608_v51 = vpop.f32.mrf.mxu0  ;;  %v6415_v15 = vor.u32 %v8457_v12, %v6414_v11  ;;  %v6638_v44 = vld [vmem:[#allocation8 + $0x208] sm:$0xf]  ;;  %v6383_v48 = vor.u32 %v8449_v38, %v6382_v37 }
  0xf6   :  { %v2609_v60 = vadd.f32 %v2608_v51, %v9497_v29  ;;  %3003 = vmatpush.bf16.msrb.mxu2 %v6959_v63  ;;  %v8577_v51 = vld [vmem:[#allocation8 + $0x424] sm:$0xf0] }
  0xf7   :  { %v9515_v6 = vadd.f32 %v2693_v50, %v2665_v49  ;;  %2946 = vmatpush.bf16.msrb.mxu0 %v6415_v15  ;;  %v8513_v49 = vld [vmem:[#allocation8 + $0x224] sm:$0xf0] }
  0xf8   :  { %v2638_v9 = vadd.f32 %v2637_v61, %v2609_v60  ;;  %2975 = vmatpush.bf16.msrb.mxu1 %v6671_v20  ;;  %v6894_v50 = vld [vmem:[#allocation8 + $0x408] sm:$0xf]  ;;  %v6639_v54 = vor.u32 %v8513_v49, %v6638_v44  ;;  %3033 = vmatpush.bf16.msrb.mxu3 %v7183_v30 }
  0xf9   :  { %v6895_v55 = vor.u32 %v8577_v51, %v6894_v50  ;;  %v7150_v60 = vld [vmem:[#allocation8 + $0x608] sm:$0xf] }
  0xfa   :  { %3004 = vmatpush.bf16.msrb.mxu2 %v6927_v21  ;;  %v8641_v61 = vld [vmem:[#allocation8 + $0x624] sm:$0xf0] }
  0xfb   :  { %2947 = vmatpush.bf16.msrb.mxu0 %v6383_v48  ;;  %v7151_v63 = vor.u32 %v8641_v61, %v7150_v60  ;;  %v9541_v61 = vperm.slane %v9494_v28, 1 }
  0xfc   :  { %v2666_v33 = vpop.f32.mrf.mxu2  ;;  %v2640_v53 = vpop.f32.mrf.mxu1  ;;  %2976 = vmatpush.bf16.msrb.mxu1 %v6639_v54 }
  0xfd   :  { %v2667_v45 = vadd.f32 %v2666_v33, %v2638_v9  ;;  %v2695_v46 = vpop.f32.mrf.mxu3  ;;  %v2611_v47 = vpop.f32.mrf.mxu0  ;;  %3034 = vmatpush.bf16.msrb.mxu3 %v7151_v63 }
  0xfe   :  { %v2612_v52 = vadd.f32 %v2611_v47, %v9497_v29  ;;  %3005 = vmatpush.bf16.msrb.mxu2 %v6895_v55 }
  0xff   :  { %v9518_v62 = vadd.f32 %v2695_v46, %v2667_v45  ;;  %2871 = vmatmul.bf16.gmra.mxu1 %v9444_v39 }
 0x100   :  { %v2641_v2 = vadd.f32 %v2640_v53, %v2612_v52  ;;  %2842 = vmatmul.bf16.gmra.mxu0 %v9442_v36 }
 0x101   :  { %2900 = vmatmul.bf16.gmra.mxu2 %v9478_v5 }
 0x102   :  { %2929 = vmatmul.bf16.gmra.mxu3 %v9480_v10 }
 0x104   :  { %v2669_v4 = vpop.f32.mrf.mxu2  ;;  %v2642_v14 = vpop.f32.mrf.mxu1 }
 0x105   :  { %v2670_v8 = vadd.f32 %v2669_v4, %v2641_v2  ;;  %v2698_v9 = vpop.f32.mrf.mxu3  ;;  %v2613_v11 = vpop.f32.mrf.mxu0  ;;  %v8761_v2 = vld [vmem:[#allocation8 + $0x9e4] sm:$0xf0] }
 0x106   :  { %v2614_v12 = vadd.f32 %v2613_v11, %v9497_v29  ;;  %v7886_v4 = vld [vmem:[#allocation8 + $0xbc8] sm:$0xf]  ;;  %v6608_v11 = vld [vmem:[#allocation8 + $0x1e8] sm:$0xf0] }
 0x107   :  { %v9525_v15 = vadd.f32 %v2698_v9, %v2670_v8  ;;  %v8825_v9 = vld [vmem:[#allocation8 + $0xbe4] sm:$0xf0] }
 0x108   :  { %v2643_v16 = vadd.f32 %v2642_v14, %v2614_v12  ;;  %v7887_v12 = vor.u32 %v8825_v9, %v7886_v4  ;;  %v8565_v14 = vld [vmem:[#allocation8 + $0x3cc] sm:$0xf]  ;;  %v8745_v4 = vld [vmem:[#allocation8 + $0x964] sm:$0xf0] }
 0x10a   :  { %3085 = vmatpush.bf16.msra.mxu1 %v7887_v12 }
 0x10c   :  { %v2671_v17 = vpop.f32.mrf.mxu2  ;;  %v2645_v23 = vpop.f32.mrf.mxu1 }
 0x10d   :  { %v2672_v18 = vadd.f32 %v2671_v17, %v2643_v16  ;;  %v2700_v20 = vpop.f32.mrf.mxu3  ;;  %v2616_v21 = vpop.f32.mrf.mxu0  ;;  %v6864_v16 = vld [vmem:[#allocation8 + $0x3e8] sm:$0xf0] }
 0x10e   :  { %v2617_v22 = vadd.f32 %v2616_v21, %v9497_v29  ;;  %v6867_v17 = vor.u32 %v8565_v14, %v6864_v16  ;;  %v8753_v21 = vld [vmem:[#allocation8 + $0x9a4] sm:$0xf0]  ;;  %v8549_v14 = vld [vmem:[#allocation8 + $0x34c] sm:$0xf] }
 0x10f   :  { %v9528_v30 = vadd.f32 %v2700_v20, %v2672_v18  ;;  %2876 = vmatmul.bf16.gmra.mxu1 %v9456_v59  ;;  %v7598_v20 = vld [vmem:[#allocation8 + $0x988] sm:$0xf]  ;;  %v6800_v16 = vld [vmem:[#allocation8 + $0x368] sm:$0xf0] }
 0x110   :  { %v2646_v33 = vadd.f32 %v2645_v23, %v2617_v22  ;;  %2847 = vmatmul.bf16.gmra.mxu0 %v9454_v58  ;;  %v7854_v22 = vld [vmem:[#allocation8 + $0xb88] sm:$0xf]  ;;  %3143 = vmatpush.bf16.msra.mxu3 %v6867_v17  ;;  %v6803_v17 = vor.u32 %v8549_v14, %v6800_v16  ;;  %v8533_v16 = vld [vmem:[#allocation8 + $0x2cc] sm:$0xf] }
 0x111   :  { %2905 = vmatmul.bf16.gmra.mxu2 %v9486_v24 }
 0x112   :  { %2934 = vmatmul.bf16.gmra.mxu3 %v9488_v25 }
 0x114   :  { %v2674_v37 = vpop.f32.mrf.mxu2  ;;  %v2647_v47 = vpop.f32.mrf.mxu1 }
 0x115   :  { %v2675_v38 = vadd.f32 %v2674_v37, %v2646_v33  ;;  %v2703_v44 = vpop.f32.mrf.mxu3  ;;  %v2618_v45 = vpop.f32.mrf.mxu0 }
 0x116   :  { %v2619_v46 = vadd.f32 %v2618_v45, %v9497_v29  ;;  %v7630_v29 = vld [vmem:[#allocation8 + $0x9c8] sm:$0xf]  ;;  %v8493_v45 = vld [vmem:[#allocation8 + $0x18c] sm:$0xf] }
 0x117   :  { %v9535_v48 = vadd.f32 %v2703_v44, %v2675_v38  ;;  %v7631_v8 = vor.u32 %v8761_v2, %v7630_v29  ;;  %v7599_v38 = vor.u32 %v8753_v21, %v7598_v20  ;;  %v8817_v44 = vld [vmem:[#allocation8 + $0xba4] sm:$0xf0] }
 0x118   :  { %v2648_v49 = vadd.f32 %v2647_v47, %v2619_v46  ;;  %v6576_v46 = vld [vmem:[#allocation8 + $0x1a8] sm:$0xf0]  ;;  %v7566_v2 = vld [vmem:[#allocation8 + $0x948] sm:$0xf] }
 0x119   :  { %3056 = vmatpush.bf16.msra.mxu0 %v7631_v8  ;;  %v7822_v8 = vld [vmem:[#allocation8 + $0xb48] sm:$0xf]  ;;  %v7567_v9 = vor.u32 %v8745_v4, %v7566_v2 }
 0x11a   :  { %v7534_v20 = vld [vmem:[#allocation8 + $0x908] sm:$0xf] }
 0x11b   :  { %v8737_v21 = vld [vmem:[#allocation8 + $0x924] sm:$0xf0] }
 0x11c   :  { %v2676_v50 = vpop.f32.mrf.mxu2  ;;  %v2746_v55 = vpop.f32.mrf.mxu1 }
 0x11d   :  { %v2677_v51 = vadd.f32 %v2676_v50, %v2648_v49  ;;  %v2705_v52 = vpop.f32.mrf.mxu3  ;;  %v2717_v53 = vpop.f32.mrf.mxu0  ;;  %v7855_v50 = vor.u32 %v8817_v44, %v7854_v22  ;;  %3057 = vmatpush.bf16.msra.mxu0 %v7599_v38  ;;  %v7790_v22 = vld [vmem:[#allocation8 + $0xb08] sm:$0xf]  ;;  %v7535_v38 = vor.u32 %v8737_v21, %v7534_v20 }
 0x11e   :  { %v2718_v54 = vadd.f32 %v2717_v53, %v9505_v19  ;;  %v8501_v19 = vld [vmem:[#allocation8 + $0x1cc] sm:$0xf]  ;;  %v8801_v44 = vld [vmem:[#allocation8 + $0xb24] sm:$0xf0] }
 0x11f   :  { %v9538_v60 = vadd.f32 %v2705_v52, %v2677_v51  ;;  %2977 = vmatmul.bf16.vlgmr.msrb.gmra.mxu1 %v9416_v41  ;;  %v6611_v28 = vor.u32 %v8501_v19, %v6608_v11  ;;  %v6579_v51 = vor.u32 %v8493_v45, %v6576_v46  ;;  %v8557_v52 = vld [vmem:[#allocation8 + $0x38c] sm:$0xf]  ;;  %v8809_v19 = vld [vmem:[#allocation8 + $0xb64] sm:$0xf0] }
 0x120   :  { %v9543_v63 = vadd.f32 %v2746_v55, %v2718_v54  ;;  %2948 = vmatmul.bf16.vlgmr.msrb.gmra.mxu0 %v9414_v40  ;;  %v6832_v53 = vld [vmem:[#allocation8 + $0x3a8] sm:$0xf0]  ;;  %3086 = vmatpush.bf16.msra.mxu1 %v7855_v50  ;;  %v7823_v12 = vor.u32 %v8809_v19, %v7822_v8  ;;  %v7791_v50 = vor.u32 %v8801_v44, %v7790_v22  ;;  %v7502_v8 = vld [vmem:[#allocation8 + $0x8c8] sm:$0xf] }
 0x121   :  { %3006 = vmatmul.bf16.vlgmr.msrb.gmra.mxu2 %v9418_v42  ;;  %v6835_v55 = vor.u32 %v8557_v52, %v6832_v53  ;;  %v6544_v11 = vld [vmem:[#allocation8 + $0x168] sm:$0xf0]  ;;  %3058 = vmatpush.bf16.msra.mxu0 %v7567_v9  ;;  %v8729_v9 = vld [vmem:[#allocation8 + $0x8e4] sm:$0xf0] }
 0x122   :  { %11360 = vst [vmem:[#allocation22_spill] sm:$0xff] %v9543_v63  ;;  %3035 = vmatmul.bf16.vlgmr.msrb.gmra.mxu3 %v9420_v43  ;;  %3114 = vmatpush.bf16.msra.mxu2 %v6611_v28  ;;  %v8477_v45 = vld [vmem:[#allocation8 + $0x10c] sm:$0xf]  ;;  %v7758_v19 = vld [vmem:[#allocation8 + $0xac8] sm:$0xf] }
 0x123   :  { %3144 = vmatpush.bf16.msra.mxu3 %v6835_v55  ;;  %v6512_v46 = vld [vmem:[#allocation8 + $0x128] sm:$0xf0]  ;;  %v7470_v21 = vld [vmem:[#allocation8 + $0x888] sm:$0xf] }
 0x124   :  { %v2775_v18 = vpop.f32.mrf.mxu2  ;;  %v2748_v49 = vpop.f32.mrf.mxu1  ;;  %3087 = vmatpush.bf16.msra.mxu1 %v7823_v12  ;;  %v8541_v52 = vld [vmem:[#allocation8 + $0x30c] sm:$0xf]  ;;  %v8721_v22 = vld [vmem:[#allocation8 + $0x8a4] sm:$0xf0] }
 0x125   :  { %v2776_v23 = vadd.f32 %v2775_v18, %v9541_v61  ;;  %v2804_v33 = vpop.f32.mrf.mxu3  ;;  %v2719_v37 = vpop.f32.mrf.mxu0  ;;  %v6768_v53 = vld [vmem:[#allocation8 + $0x328] sm:$0xf0]  ;;  %3059 = vmatpush.bf16.msra.mxu0 %v7535_v38  ;;  %v7471_v44 = vor.u32 %v8721_v22, %v7470_v21 }
 0x126   :  { %v2720_v47 = vadd.f32 %v2719_v37, %v9508_v13  ;;  %3115 = vmatpush.bf16.msra.mxu2 %v6579_v51  ;;  %v8485_v13 = vld [vmem:[#allocation8 + $0x14c] sm:$0xf]  ;;  %v6515_v51 = vor.u32 %v8477_v45, %v6512_v46  ;;  %v6771_v2 = vor.u32 %v8541_v52, %v6768_v53  ;;  %v8785_v45 = vld [vmem:[#allocation8 + $0xaa4] sm:$0xf0] }
 0x127   :  { %v9551_v54 = vadd.f32 %v2804_v33, %v2776_v23  ;;  %v6547_v28 = vor.u32 %v8485_v13, %v6544_v11  ;;  %3145 = vmatpush.bf16.msra.mxu3 %v6803_v17  ;;  %v8793_v13 = vld [vmem:[#allocation8 + $0xae4] sm:$0xf0]  ;;  %v8469_v11 = vld [vmem:[#allocation8 + $0xcc] sm:$0xf] }
 0x128   :  { %v9553_v29 = vadd.f32 %v2748_v49, %v2720_v47  ;;  %3088 = vmatpush.bf16.msra.mxu1 %v7791_v50  ;;  %v6480_v12 = vld [vmem:[#allocation8 + $0xe8] sm:$0xf0] }
 0x129   :  { %v6483_v14 = vor.u32 %v8469_v11, %v6480_v12  ;;  %v6736_v17 = vld [vmem:[#allocation8 + $0x2e8] sm:$0xf0]  ;;  %v7694_v11 = vld [vmem:[#allocation8 + $0xa48] sm:$0xf] }
 0x12a   :  { %11361 = vst [vmem:[#allocation23_spill] sm:$0xff] %v9553_v29  ;;  %3116 = vmatpush.bf16.msra.mxu2 %v6547_v28  ;;  %v7759_v28 = vor.u32 %v8793_v13, %v7758_v19  ;;  %v8461_v46 = vld [vmem:[#allocation8 + $0x8c] sm:$0xf]  ;;  %v8713_v13 = vld [vmem:[#allocation8 + $0x864] sm:$0xf0] }
 0x12b   :  { %3146 = vmatpush.bf16.msra.mxu3 %v6771_v2  ;;  %v8525_v53 = vld [vmem:[#allocation8 + $0x28c] sm:$0xf] }
 0x12c   :  { %v2777_v18 = vpop.f32.mrf.mxu2  ;;  %v2751_v49 = vpop.f32.mrf.mxu1  ;;  %3089 = vmatpush.bf16.msra.mxu1 %v7759_v28  ;;  %v6704_v2 = vld [vmem:[#allocation8 + $0x2a8] sm:$0xf0]  ;;  %v8777_v28 = vld [vmem:[#allocation8 + $0xa64] sm:$0xf0] }
 0x12d   :  { %v2778_v23 = vadd.f32 %v2777_v18, %v9541_v61  ;;  %v2806_v33 = vpop.f32.mrf.mxu3  ;;  %v2722_v37 = vpop.f32.mrf.mxu0  ;;  %v6739_v18 = vor.u32 %v8533_v16, %v6736_v17  ;;  %v6416_v16 = vld [vmem:[#allocation8 + $0x68] sm:$0xf0] }
 0x12e   :  { %v2723_v47 = vadd.f32 %v2722_v37, %v9515_v6  ;;  %v7503_v6 = vor.u32 %v8729_v9, %v7502_v8  ;;  %3117 = vmatpush.bf16.msra.mxu2 %v6515_v51  ;;  %v6707_v9 = vor.u32 %v8525_v53, %v6704_v2  ;;  %v6672_v21 = vld [vmem:[#allocation8 + $0x268] sm:$0xf0] }
 0x12f   :  { %v9557_v55 = vadd.f32 %v2806_v33, %v2778_v23  ;;  %2982 = vmatmul.bf16.gmra.mxu1 %v9428_v31  ;;  %v7726_v23 = vld [vmem:[#allocation8 + $0xa88] sm:$0xf]  ;;  %3147 = vmatpush.bf16.msra.mxu3 %v6739_v18 }
 0x130   :  { %v9559_v4 = vadd.f32 %v2751_v49, %v2723_v47  ;;  %2953 = vmatmul.bf16.gmra.mxu0 %v9426_v27  ;;  %v6448_v47 = vld [vmem:[#allocation8 + $0xa8] sm:$0xf0]  ;;  %v7727_v51 = vor.u32 %v8785_v45, %v7726_v23  ;;  %v7406_v23 = vld [vmem:[#allocation8 + $0x808] sm:$0xf] }
 0x131   :  { %3011 = vmatmul.bf16.gmra.mxu2 %v9430_v32  ;;  %3060 = vmatpush.bf16.msra.mxu0 %v7503_v6  ;;  %v6451_v52 = vor.u32 %v8461_v46, %v6448_v47  ;;  %v7438_v6 = vld [vmem:[#allocation8 + $0x848] sm:$0xf] }
 0x132   :  { %11362 = vst [vmem:[#allocation24_spill] sm:$0xff] %v9559_v4  ;;  %3040 = vmatmul.bf16.gmra.mxu3 %v9432_v35  ;;  %3118 = vmatpush.bf16.msra.mxu2 %v6483_v14  ;;  %v7439_v12 = vor.u32 %v8713_v13, %v7438_v6  ;;  %v7695_v14 = vor.u32 %v8777_v28, %v7694_v11  ;;  %v8769_v47 = vld [vmem:[#allocation8 + $0xa24] sm:$0xf0]  ;;  %v6640_v6 = vld [vmem:[#allocation8 + $0x228] sm:$0xf0] }
 0x133   :  { %3090 = vmatpush.bf16.msra.mxu1 %v7727_v51  ;;  %3148 = vmatpush.bf16.msra.mxu3 %v6707_v9  ;;  %v8509_v9 = vld [vmem:[#allocation8 + $0x20c] sm:$0xf]  ;;  %v8811_v4 = vld [vmem:[#allocation8 + $0xb74] sm:$0xf0] }
 0x134   :  { %v2780_v20 = vpop.f32.mrf.mxu2  ;;  %v2753_v50 = vpop.f32.mrf.mxu1  ;;  %v6643_v11 = vor.u32 %v8509_v9, %v6640_v6 }
 0x135   :  { %v2781_v33 = vadd.f32 %v2780_v20, %v9541_v61  ;;  %v2809_v37 = vpop.f32.mrf.mxu3  ;;  %v2724_v38 = vpop.f32.mrf.mxu0  ;;  %3061 = vmatpush.bf16.msra.mxu0 %v7471_v44  ;;  %v8517_v20 = vld [vmem:[#allocation8 + $0x24c] sm:$0xf] }
 0x136   :  { %v2725_v49 = vadd.f32 %v2724_v38, %v9518_v62  ;;  %v8453_v62 = vld [vmem:[#allocation8 + $0x4c] sm:$0xf]  ;;  %3119 = vmatpush.bf16.msra.mxu2 %v6451_v52  ;;  %v6675_v18 = vor.u32 %v8517_v20, %v6672_v21 }
 0x137   :  { %v9567_v8 = vadd.f32 %v2809_v37, %v2781_v33  ;;  %v6419_v17 = vor.u32 %v8453_v62, %v6416_v16  ;;  %3091 = vmatpush.bf16.msra.mxu1 %v7695_v14  ;;  %v8705_v33 = vld [vmem:[#allocation8 + $0x824] sm:$0xf0] }
 0x138   :  { %v9569_v19 = vadd.f32 %v2753_v50, %v2725_v49  ;;  %v7662_v37 = vld [vmem:[#allocation8 + $0xa08] sm:$0xf]  ;;  %v7407_v46 = vor.u32 %v8705_v33, %v7406_v23  ;;  %v8445_v49 = vld [vmem:[#allocation8 + $0xc] sm:$0xf]  ;;  %3149 = vmatpush.bf16.msra.mxu3 %v6675_v18 }
 0x139   :  { %3062 = vmatpush.bf16.msra.mxu0 %v7439_v12  ;;  %v6384_v50 = vld [vmem:[#allocation8 + $0x28] sm:$0xf0]  ;;  %v7663_v53 = vor.u32 %v8769_v47, %v7662_v37 }
 0x13a   :  { %11363 = vst [vmem:[#allocation25_spill] sm:$0xff] %v9569_v19  ;;  %3120 = vmatpush.bf16.msra.mxu2 %v6419_v17  ;;  %v6387_v2 = vor.u32 %v8445_v49, %v6384_v50 }
 0x13b   :  { %3092 = vmatpush.bf16.msra.mxu1 %v7663_v53 }
 0x13c   :  { %v2782_v22 = vpop.f32.mrf.mxu2  ;;  %v2756_v52 = vpop.f32.mrf.mxu1  ;;  %3150 = vmatpush.bf16.msra.mxu3 %v6643_v11 }
 0x13d   :  { %v2783_v38 = vadd.f32 %v2782_v22, %v9541_v61  ;;  %v2811_v44 = vpop.f32.mrf.mxu3  ;;  %v2727_v45 = vpop.f32.mrf.mxu0  ;;  %3063 = vmatpush.bf16.msra.mxu0 %v7407_v46 }
 0x13e   :  { %v2728_v51 = vadd.f32 %v2727_v45, %v9525_v15  ;;  %3121 = vmatpush.bf16.msra.mxu2 %v6387_v2 }
 0x13f   :  { %v9573_v13 = vadd.f32 %v2811_v44, %v2783_v38  ;;  %2987 = vmatmul.bf16.gmra.mxu1 %v9440_v34 }
 0x140   :  { %v9575_v12 = vadd.f32 %v2756_v52, %v2728_v51  ;;  %2958 = vmatmul.bf16.gmra.mxu0 %v9438_v26 }
 0x141   :  { %3016 = vmatmul.bf16.gmra.mxu2 %v9442_v36 }
 0x142   :  { %11364 = vst [vmem:[#allocation26_spill] sm:$0xff] %v9575_v12  ;;  %3045 = vmatmul.bf16.gmra.mxu3 %v9444_v39  ;;  %v8786_v12 = vld [vmem:[#allocation8 + $0xaac] sm:$0xf0] }
 0x144   :  { %v2785_v15 = vpop.f32.mrf.mxu2  ;;  %v2758_v17 = vpop.f32.mrf.mxu1 }
 0x145   :  { %v2786_v28 = vadd.f32 %v2785_v15, %v9541_v61  ;;  %v2814_v62 = vpop.f32.mrf.mxu3  ;;  %v2729_v16 = vpop.f32.mrf.mxu0 }
 0x146   :  { %v2730_v14 = vadd.f32 %v2729_v16, %v9528_v30  ;;  %v8629_v16 = vld [vmem:[#allocation8 + $0x5cc] sm:$0xf] }
 0x147   :  { %v9583_v20 = vadd.f32 %v2814_v62, %v2786_v28 }
 0x148   :  { %v9585_v21 = vadd.f32 %v2758_v17, %v2730_v14  ;;  %v8693_v14 = vld [vmem:[#allocation8 + $0x7cc] sm:$0xf] }
 0x14a   :  { %11365 = vst [vmem:[#allocation27_spill] sm:$0xff] %v9585_v21 }
 0x14c   :  { %v2787_v18 = vpop.f32.mrf.mxu2  ;;  %v2761_v38 = vpop.f32.mrf.mxu1 }
 0x14d   :  { %v2788_v22 = vadd.f32 %v2787_v18, %v9541_v61  ;;  %v2816_v23 = vpop.f32.mrf.mxu3  ;;  %v2732_v33 = vpop.f32.mrf.mxu0  ;;  %v7376_v18 = vld [vmem:[#allocation8 + $0x7e8] sm:$0xf0] }
 0x14e   :  { %v2733_v37 = vadd.f32 %v2732_v33, %v9535_v48  ;;  %v8821_v33 = vld [vmem:[#allocation8 + $0xbcc] sm:$0xf] }
 0x14f   :  { %v9589_v44 = vadd.f32 %v2816_v23, %v2788_v22  ;;  %2992 = vmatmul.bf16.gmra.mxu1 %v9452_v57  ;;  %v7632_v22 = vld [vmem:[#allocation8 + $0x9e8] sm:$0xf0] }
 0x150   :  { %v9591_v45 = vadd.f32 %v2761_v38, %v2733_v37  ;;  %2963 = vmatmul.bf16.gmra.mxu0 %v9450_v56  ;;  %v7888_v37 = vld [vmem:[#allocation8 + $0xbe8] sm:$0xf0] }
 0x151   :  { %3021 = vmatmul.bf16.gmra.mxu2 %v9454_v58  ;;  %v7891_v38 = vor.u32 %v8821_v33, %v7888_v37  ;;  %v8677_v33 = vld [vmem:[#allocation8 + $0x74c] sm:$0xf] }
 0x152   :  { %11366 = vst [vmem:[#allocation28_spill] sm:$0xff] %v9591_v45  ;;  %3050 = vmatmul.bf16.gmra.mxu3 %v9456_v59  ;;  %v8594_v45 = vld [vmem:[#allocation8 + $0x4ac] sm:$0xf0] }
 0x153   :  { %3259 = vmatpush.bf16.msrb.mxu3 %v7891_v38  ;;  %v7312_v38 = vld [vmem:[#allocation8 + $0x768] sm:$0xf0] }
 0x154   :  { %v2790_v30 = vpop.f32.mrf.mxu2  ;;  %v2763_v50 = vpop.f32.mrf.mxu1 }
 0x155   :  { %v2791_v46 = vadd.f32 %v2790_v30, %v9541_v61  ;;  %v2819_v47 = vpop.f32.mrf.mxu3  ;;  %v2734_v49 = vpop.f32.mrf.mxu0 }
 0x156   :  { %v2735_v48 = vadd.f32 %v2734_v49, %v9538_v60  ;;  %v7120_v60 = vld [vmem:[#allocation8 + $0x5e8] sm:$0xf0] }
 0x157   :  { %v9599_v51 = vadd.f32 %v2819_v47, %v2791_v46  ;;  %v7123_v17 = vor.u32 %v8629_v16, %v7120_v60  ;;  %v8621_v46 = vld [vmem:[#allocation8 + $0x58c] sm:$0xf] }
 0x158   :  { %v9601_v52 = vadd.f32 %v2763_v50, %v2735_v48  ;;  %v7088_v47 = vld [vmem:[#allocation8 + $0x5a8] sm:$0xf0] }
 0x159   :  { %3172 = vmatpush.bf16.msrb.mxu0 %v7123_v17  ;;  %v8685_v49 = vld [vmem:[#allocation8 + $0x78c] sm:$0xf] }
 0x15a   :  { %11367 = vst [vmem:[#allocation29_spill] sm:$0xff] %v9601_v52  ;;  %v8813_v17 = vld [vmem:[#allocation8 + $0xb8c] sm:$0xf] }
 0x15c   :  { %v2792_v53 = vpop.f32.mrf.mxu2  ;;  %v2862_v15 = vpop.f32.mrf.mxu1 }
 0x15d   :  { %v2793_v2 = vadd.f32 %v2792_v53, %v9541_v61  ;;  %v2821_v9 = vpop.f32.mrf.mxu3  ;;  %v2833_v6 = vpop.f32.mrf.mxu0  ;;  %v8757_v61 = vld [vmem:[#allocation8 + $0x9cc] sm:$0xf] }
 0x15e   :  { %v2834_v11 = vadd.f32 %v2833_v6, %v9551_v54  ;;  %v7379_v54 = vor.u32 %v8693_v14, %v7376_v18  ;;  %v7635_v23 = vor.u32 %v8757_v61, %v7632_v22  ;;  %v8749_v6 = vld [vmem:[#allocation8 + $0x98c] sm:$0xf] }
 0x15f   :  { %v9605_v28 = vadd.f32 %v2821_v9, %v2793_v2  ;;  %3093 = vmatmul.bf16.vlgmr.msra.gmra.mxu1 %v9464_v1  ;;  %v7091_v2 = vor.u32 %v8621_v46, %v7088_v47  ;;  %v7344_v9 = vld [vmem:[#allocation8 + $0x7a8] sm:$0xf0]  ;;  %v7315_v46 = vor.u32 %v8677_v33, %v7312_v38 }
 0x160   :  { %v2863_v62 = vadd.f32 %v2862_v15, %v2834_v11  ;;  %3064 = vmatmul.bf16.vlgmr.msra.gmra.mxu0 %v9462_v0  ;;  %3201 = vmatpush.bf16.msrb.mxu1 %v7379_v54  ;;  %v7600_v11 = vld [vmem:[#allocation8 + $0x9a8] sm:$0xf0]  ;;  %v7347_v60 = vor.u32 %v8685_v49, %v7344_v9 }
 0x161   :  { %3122 = vmatmul.bf16.vlgmr.msra.gmra.mxu2 %v9414_v40  ;;  %v7603_v14 = vor.u32 %v8749_v6, %v7600_v11  ;;  %v7856_v18 = vld [vmem:[#allocation8 + $0xba8] sm:$0xf0]  ;;  %3173 = vmatpush.bf16.msrb.mxu0 %v7091_v2 }
 0x162   :  { %3151 = vmatmul.bf16.vlgmr.msra.gmra.mxu3 %v9416_v41  ;;  %3230 = vmatpush.bf16.msrb.mxu2 %v7635_v23  ;;  %v7859_v22 = vor.u32 %v8813_v17, %v7856_v18  ;;  %v7056_v23 = vld [vmem:[#allocation8 + $0x568] sm:$0xf0] }
 0x163   :  { %v8805_v49 = vld [vmem:[#allocation8 + $0xb4c] sm:$0xf] }
 0x164   :  { %v2891_v30 = vpop.f32.mrf.mxu2  ;;  %v2864_v16 = vpop.f32.mrf.mxu1  ;;  %3202 = vmatpush.bf16.msrb.mxu1 %v7347_v60  ;;  %3260 = vmatpush.bf16.msrb.mxu3 %v7859_v22  ;;  %v8605_v2 = vld [vmem:[#allocation8 + $0x50c] sm:$0xf] }
 0x165   :  { %v2892_v48 = vadd.f32 %v2891_v30, %v2863_v62  ;;  %v2920_v50 = vpop.f32.mrf.mxu3  ;;  %v2835_v53 = vpop.f32.mrf.mxu0  ;;  %v8613_v62 = vld [vmem:[#allocation8 + $0x54c] sm:$0xf] }
 0x166   :  { %v2836_v15 = vadd.f32 %v2835_v53, %v9557_v55  ;;  %3231 = vmatpush.bf16.msrb.mxu2 %v7603_v14  ;;  %v7059_v37 = vor.u32 %v8613_v62, %v7056_v23  ;;  %v8741_v30 = vld [vmem:[#allocation8 + $0x94c] sm:$0xf] }
 0x167   :  { %v9612_v61 = vadd.f32 %v2920_v50, %v2892_v48  ;;  %v7568_v55 = vld [vmem:[#allocation8 + $0x968] sm:$0xf0] }
 0x168   :  { %v2865_v54 = vadd.f32 %v2864_v16, %v2836_v15  ;;  %v7571_v47 = vor.u32 %v8741_v30, %v7568_v55  ;;  %v7824_v53 = vld [vmem:[#allocation8 + $0xb68] sm:$0xf0]  ;;  %3174 = vmatpush.bf16.msrb.mxu0 %v7059_v37  ;;  %3203 = vmatpush.bf16.msrb.mxu1 %v7315_v46 }
 0x169   :  { %11368 = vst [vmem:[#allocation30_spill] sm:$0xff] %v9612_v61  ;;  %v7827_v48 = vor.u32 %v8805_v49, %v7824_v53  ;;  %v7024_v9 = vld [vmem:[#allocation8 + $0x528] sm:$0xf0] }
 0x16a   :  { %3232 = vmatpush.bf16.msrb.mxu2 %v7571_v47  ;;  %v8669_v6 = vld [vmem:[#allocation8 + $0x70c] sm:$0xf]  ;;  %v7027_v60 = vor.u32 %v8605_v2, %v7024_v9 }
 0x16b   :  { %3261 = vmatpush.bf16.msrb.mxu3 %v7827_v48  ;;  %v7280_v14 = vld [vmem:[#allocation8 + $0x728] sm:$0xf0] }
 0x16c   :  { %v2893_v50 = vpop.f32.mrf.mxu2  ;;  %v8733_v17 = vld [vmem:[#allocation8 + $0x90c] sm:$0xf]  ;;  %v2867_v62 = vpop.f32.mrf.mxu1  ;;  %v7283_v23 = vor.u32 %v8669_v6, %v7280_v14  ;;  %3175 = vmatpush.bf16.msrb.mxu0 %v7027_v60 }
 0x16d   :  { %v2894_v11 = vadd.f32 %v2893_v50, %v2865_v54  ;;  %v2922_v15 = vpop.f32.mrf.mxu3  ;;  %v2838_v16 = vpop.f32.mrf.mxu0  ;;  %v7536_v18 = vld [vmem:[#allocation8 + $0x928] sm:$0xf0] }
 0x16e   :  { %v2839_v22 = vadd.f32 %v2838_v16, %v9567_v8  ;;  %v7539_v33 = vor.u32 %v8733_v17, %v7536_v18  ;;  %v8797_v37 = vld [vmem:[#allocation8 + $0xb0c] sm:$0xf]  ;;  %3204 = vmatpush.bf16.msrb.mxu1 %v7283_v23 }
 0x16f   :  { %v7792_v38 = vld [vmem:[#allocation8 + $0xb28] sm:$0xf0]  ;;  %v9615_v30 = vadd.f32 %v2922_v15, %v2894_v11  ;;  %3098 = vmatmul.bf16.gmra.mxu1 %v9472_v7 }
 0x170   :  { %v7795_v55 = vor.u32 %v8797_v37, %v7792_v38  ;;  %v2868_v46 = vadd.f32 %v2867_v62, %v2839_v22  ;;  %3069 = vmatmul.bf16.gmra.mxu0 %v9470_v3  ;;  %v8597_v54 = vld [vmem:[#allocation8 + $0x4cc] sm:$0xf]  ;;  %3233 = vmatpush.bf16.msrb.mxu2 %v7539_v33 }
 0x171   :  { %11369 = vst [vmem:[#allocation31_spill] sm:$0xff] %v9615_v30  ;;  %v6992_v47 = vld [vmem:[#allocation8 + $0x4e8] sm:$0xf0]  ;;  %3127 = vmatmul.bf16.gmra.mxu2 %v9426_v27 }
 0x172   :  { %v8661_v49 = vld [vmem:[#allocation8 + $0x6cc] sm:$0xf]  ;;  %v6995_v8 = vor.u32 %v8597_v54, %v6992_v47  ;;  %3156 = vmatmul.bf16.gmra.mxu3 %v9428_v31 }
 0x173   :  { %v7248_v53 = vld [vmem:[#allocation8 + $0x6e8] sm:$0xf0]  ;;  %3262 = vmatpush.bf16.msrb.mxu3 %v7795_v55 }
 0x174   :  { %v8725_v48 = vld [vmem:[#allocation8 + $0x8cc] sm:$0xf]  ;;  %v7251_v2 = vor.u32 %v8661_v49, %v7248_v53  ;;  %3176 = vmatpush.bf16.msrb.mxu0 %v6995_v8  ;;  %v2896_v16 = vpop.f32.mrf.mxu2  ;;  %v2869_v47 = vpop.f32.mrf.mxu1 }
 0x175   :  { %v7504_v50 = vld [vmem:[#allocation8 + $0x8e8] sm:$0xf0]  ;;  %v2897_v18 = vadd.f32 %v2896_v16, %v2868_v46  ;;  %v2925_v22 = vpop.f32.mrf.mxu3  ;;  %v2840_v62 = vpop.f32.mrf.mxu0 }
 0x176   :  { %v7507_v9 = vor.u32 %v8725_v48, %v7504_v50  ;;  %v8789_v6 = vld [vmem:[#allocation8 + $0xacc] sm:$0xf]  ;;  %3205 = vmatpush.bf16.msrb.mxu1 %v7251_v2  ;;  %v2841_v33 = vadd.f32 %v2840_v62, %v9573_v13 }
 0x177   :  { %v7760_v11 = vld [vmem:[#allocation8 + $0xae8] sm:$0xf0]  ;;  %v9622_v48 = vadd.f32 %v2925_v22, %v2897_v18 }
 0x178   :  { %v7763_v15 = vor.u32 %v8789_v6, %v7760_v11  ;;  %v8589_v60 = vld [vmem:[#allocation8 + $0x48c] sm:$0xf]  ;;  %3234 = vmatpush.bf16.msrb.mxu2 %v7507_v9  ;;  %v2870_v46 = vadd.f32 %v2869_v47, %v2841_v33 }
 0x179   :  { %v6960_v14 = vld [vmem:[#allocation8 + $0x4a8] sm:$0xf0]  ;;  %11370 = vst [vmem:[#allocation32_spill] sm:$0xff] %v9622_v48  ;;  %v8778_v48 = vld [vmem:[#allocation8 + $0xa6c] sm:$0xf0] }
 0x17a   :  { %v8653_v17 = vld [vmem:[#allocation8 + $0x68c] sm:$0xf]  ;;  %v6963_v23 = vor.u32 %v8589_v60, %v6960_v14  ;;  %3263 = vmatpush.bf16.msrb.mxu3 %v7763_v15 }
 0x17b   :  { %v7216_v37 = vld [vmem:[#allocation8 + $0x6a8] sm:$0xf0] }
 0x17c   :  { %v8717_v38 = vld [vmem:[#allocation8 + $0x88c] sm:$0xf]  ;;  %v7219_v49 = vor.u32 %v8653_v17, %v7216_v37  ;;  %3177 = vmatpush.bf16.msrb.mxu0 %v6963_v23  ;;  %v2898_v15 = vpop.f32.mrf.mxu2 }
 0x17d   :  { %v7472_v54 = vld [vmem:[#allocation8 + $0x8a8] sm:$0xf0]  ;;  %v2927_v33 = vpop.f32.mrf.mxu3  ;;  %v2843_v47 = vpop.f32.mrf.mxu0 }
 0x17e   :  { %v7475_v55 = vor.u32 %v8717_v38, %v7472_v54  ;;  %v8781_v8 = vld [vmem:[#allocation8 + $0xa8c] sm:$0xf]  ;;  %3206 = vmatpush.bf16.msrb.mxu1 %v7219_v49  ;;  %v2899_v54 = vadd.f32 %v2898_v15, %v2870_v46 }
 0x17f   :  { %v7728_v53 = vld [vmem:[#allocation8 + $0xaa8] sm:$0xf0]  ;;  %3103 = vmatmul.bf16.gmra.mxu1 %v9480_v10 }
 0x180   :  { %v7731_v50 = vor.u32 %v8781_v8, %v7728_v53  ;;  %v8581_v2 = vld [vmem:[#allocation8 + $0x44c] sm:$0xf]  ;;  %3235 = vmatpush.bf16.msrb.mxu2 %v7475_v55  ;;  %v2844_v55 = vadd.f32 %v2843_v47, %v9583_v20  ;;  %3074 = vmatmul.bf16.gmra.mxu0 %v9478_v5 }
 0x181   :  { %v6928_v6 = vld [vmem:[#allocation8 + $0x468] sm:$0xf0]  ;;  %3132 = vmatmul.bf16.gmra.mxu2 %v9438_v26 }
 0x182   :  { %v8645_v11 = vld [vmem:[#allocation8 + $0x64c] sm:$0xf]  ;;  %v6931_v16 = vor.u32 %v8581_v2, %v6928_v6  ;;  %3264 = vmatpush.bf16.msrb.mxu3 %v7731_v50  ;;  %v2872_v6 = vpop.f32.mrf.mxu1 }
 0x183   :  { %v7184_v60 = vld [vmem:[#allocation8 + $0x668] sm:$0xf0]  ;;  %v2873_v46 = vadd.f32 %v2872_v6, %v2844_v55  ;;  %3161 = vmatmul.bf16.gmra.mxu3 %v9440_v34 }
 0x184   :  { %v8709_v14 = vld [vmem:[#allocation8 + $0x84c] sm:$0xf]  ;;  %v7187_v9 = vor.u32 %v8645_v11, %v7184_v60  ;;  %3178 = vmatpush.bf16.msrb.mxu0 %v6931_v16  ;;  %v2901_v20 = vpop.f32.mrf.mxu2 }
 0x185   :  { %v7440_v13 = vld [vmem:[#allocation8 + $0x868] sm:$0xf0] }
 0x186   :  { %v7443_v17 = vor.u32 %v8709_v14, %v7440_v13  ;;  %v8773_v62 = vld [vmem:[#allocation8 + $0xa4c] sm:$0xf]  ;;  %3207 = vmatpush.bf16.msrb.mxu1 %v7187_v9  ;;  %v9625_v14 = vadd.f32 %v2927_v33, %v2899_v54  ;;  %v2902_v9 = vadd.f32 %v2901_v20, %v2873_v46 }
 0x187   :  { %v7696_v37 = vld [vmem:[#allocation8 + $0xa68] sm:$0xf0] }
 0x188   :  { %v7699_v18 = vor.u32 %v8773_v62, %v7696_v37  ;;  %v8573_v22 = vld [vmem:[#allocation8 + $0x40c] sm:$0xf]  ;;  %3236 = vmatpush.bf16.msrb.mxu2 %v7443_v17  ;;  %11371 = vst [vmem:[#allocation33_spill] sm:$0xff] %v9625_v14  ;;  %v2930_v17 = vpop.f32.mrf.mxu3  ;;  %v2845_v62 = vpop.f32.mrf.mxu0  ;;  %v8462_v14 = vld [vmem:[#allocation8 + $0x94] sm:$0xf] }
 0x189   :  { %v6896_v23 = vld [vmem:[#allocation8 + $0x428] sm:$0xf0]  ;;  %v2846_v37 = vadd.f32 %v2845_v62, %v9589_v44  ;;  %v9632_v15 = vadd.f32 %v2930_v17, %v2902_v9 }
 0x18a   :  { %v8637_v38 = vld [vmem:[#allocation8 + $0x60c] sm:$0xf]  ;;  %v6899_v49 = vor.u32 %v8573_v22, %v6896_v23  ;;  %3265 = vmatpush.bf16.msrb.mxu3 %v7699_v18  ;;  %v2874_v18 = vpop.f32.mrf.mxu1 }
 0x18b   :  { %v7152_v8 = vld [vmem:[#allocation8 + $0x628] sm:$0xf0]  ;;  %11372 = vst [vmem:[#allocation34_spill] sm:$0xff] %v9632_v15  ;;  %v2875_v22 = vadd.f32 %v2874_v18, %v2846_v37  ;;  %v8810_v15 = vld [vmem:[#allocation8 + $0xb6c] sm:$0xf0] }
 0x18c   :  { %v8701_v53 = vld [vmem:[#allocation8 + $0x80c] sm:$0xf]  ;;  %v7155_v11 = vor.u32 %v8637_v38, %v7152_v8  ;;  %3179 = vmatpush.bf16.msrb.mxu0 %v6899_v49  ;;  %v2903_v23 = vpop.f32.mrf.mxu2 }
 0x18d   :  { %v7408_v2 = vld [vmem:[#allocation8 + $0x828] sm:$0xf0]  ;;  %v2904_v38 = vadd.f32 %v2903_v23, %v2875_v22  ;;  %v8506_v23 = vld [vmem:[#allocation8 + $0x1ec] sm:$0xf0] }
 0x18e   :  { %v7411_v50 = vor.u32 %v8701_v53, %v7408_v2  ;;  %v8765_v16 = vld [vmem:[#allocation8 + $0xa0c] sm:$0xf]  ;;  %3208 = vmatpush.bf16.msrb.mxu1 %v7155_v11 }
 0x18f   :  { %v7664_v60 = vld [vmem:[#allocation8 + $0xa28] sm:$0xf0]  ;;  %3108 = vmatmul.bf16.gmra.mxu1 %v9488_v25 }
 0x190   :  { %v7667_v13 = vor.u32 %v8765_v16, %v7664_v60  ;;  %3237 = vmatpush.bf16.msrb.mxu2 %v7411_v50  ;;  %v2932_v54 = vpop.f32.mrf.mxu3  ;;  %v2848_v33 = vpop.f32.mrf.mxu0  ;;  %3079 = vmatmul.bf16.gmra.mxu0 %v9486_v24  ;;  %v9644_v60 = vld [vmem:[#allocation10] sm:$0xff] }
 0x191   :  { %v2849_v47 = vadd.f32 %v2848_v33, %v9599_v51  ;;  %v9635_v8 = vadd.f32 %v2932_v54, %v2904_v38  ;;  %3137 = vmatmul.bf16.gmra.mxu2 %v9450_v56  ;;  %v6870_v38 = vld [vmem:[#allocation8 + $0x3d0] sm:$0xf] }
 0x192   :  { %3266 = vmatpush.bf16.msrb.mxu3 %v7667_v13  ;;  %v2877_v49 = vpop.f32.mrf.mxu1  ;;  %v9647_v13 = vperm.slane %v9644_v60, 2  ;;  %v8570_v33 = vld [vmem:[#allocation8 + $0x3ec] sm:$0xf0] }
 0x193   :  { %11373 = vst [vmem:[#allocation35_spill] sm:$0xff] %v9635_v8  ;;  %v2878_v53 = vadd.f32 %v2877_v49, %v2849_v47  ;;  %3166 = vmatmul.bf16.gmra.mxu3 %v9452_v57  ;;  %v7126_v47 = vld [vmem:[#allocation8 + $0x5d0] sm:$0xf] }
 0x194   :  { %v2906_v44 = vpop.f32.mrf.mxu2  ;;  %v8634_v49 = vld [vmem:[#allocation8 + $0x5ec] sm:$0xf0] }
 0x195   :  { %v2907_v2 = vadd.f32 %v2906_v44, %v2878_v53  ;;  %v6871_v53 = vor.u32 %v8570_v33, %v6870_v38  ;;  %v7127_v44 = vor.u32 %v8634_v49, %v7126_v47  ;;  %v7350_v49 = vld [vmem:[#allocation8 + $0x790] sm:$0xf] }
 0x196   :  { %v6934_v8 = vld [vmem:[#allocation8 + $0x450] sm:$0xf] }
 0x197   :  { %3317 = vmatpush.bf16.msra.mxu1 %v6871_v53  ;;  %3346 = vmatpush.bf16.msra.mxu2 %v7127_v44 }
 0x198   :  { %v2935_v55 = vpop.f32.mrf.mxu3  ;;  %v2850_v6 = vpop.f32.mrf.mxu0 }
 0x199   :  { %v2851_v11 = vadd.f32 %v2850_v6, %v9605_v28  ;;  %v9642_v51 = vadd.f32 %v2935_v55, %v2907_v2  ;;  %v6614_v28 = vld [vmem:[#allocation8 + $0x1d0] sm:$0xf] }
 0x19a   :  { %v2879_v50 = vpop.f32.mrf.mxu1  ;;  %v6615_v54 = vor.u32 %v8506_v23, %v6614_v28  ;;  %v7382_v2 = vld [vmem:[#allocation8 + $0x7d0] sm:$0xf] }
 0x19b   :  { %11374 = vst [vmem:[#allocation36_spill] sm:$0xff] %v9642_v51  ;;  %v2880_v16 = vadd.f32 %v2879_v50, %v2851_v11  ;;  %v8698_v55 = vld [vmem:[#allocation8 + $0x7ec] sm:$0xf0] }
 0x19c   :  { %v2908_v46 = vpop.f32.mrf.mxu2  ;;  %3288 = vmatpush.bf16.msra.mxu0 %v6615_v54  ;;  %v7383_v6 = vor.u32 %v8698_v55, %v7382_v2  ;;  %v6582_v50 = vld [vmem:[#allocation8 + $0x190] sm:$0xf] }
 0x19d   :  { %v2909_v20 = vadd.f32 %v2908_v46, %v2880_v16  ;;  %v8498_v16 = vld [vmem:[#allocation8 + $0x1ac] sm:$0xf0] }
 0x19e   :  { %v6838_v46 = vld [vmem:[#allocation8 + $0x390] sm:$0xf]  ;;  %3375 = vmatpush.bf16.msra.mxu3 %v7383_v6 }
 0x19f   :  { %3209 = vmatmul.bf16.vlgmr.msrb.gmra.mxu1 %v9420_v43  ;;  %v7094_v28 = vld [vmem:[#allocation8 + $0x590] sm:$0xf] }
 0x1a0   :  { %v2937_v9 = vpop.f32.mrf.mxu3  ;;  %v2949_v17 = vpop.f32.mrf.mxu0  ;;  %3180 = vmatmul.bf16.vlgmr.msrb.gmra.mxu0 %v9418_v42  ;;  %v8626_v23 = vld [vmem:[#allocation8 + $0x5ac] sm:$0xf0] }
 0x1a1   :  { %v2950_v62 = vadd.f32 %v2949_v17, %v9647_v13  ;;  %v9650_v18 = vadd.f32 %v2937_v9, %v2909_v20  ;;  %3238 = vmatmul.bf16.vlgmr.msrb.gmra.mxu2 %v9462_v0  ;;  %v7095_v54 = vor.u32 %v8626_v23, %v7094_v28  ;;  %v8690_v2 = vld [vmem:[#allocation8 + $0x7ac] sm:$0xf0] }
 0x1a2   :  { %v2978_v37 = vpop.f32.mrf.mxu1  ;;  %v7351_v44 = vor.u32 %v8690_v2, %v7350_v49  ;;  %v8490_v6 = vld [vmem:[#allocation8 + $0x16c] sm:$0xf0] }
 0x1a3   :  { %11375 = vst [vmem:[#allocation37_spill] sm:$0xff] %v9650_v18  ;;  %v2979_v22 = vadd.f32 %v2978_v37, %v2950_v62  ;;  %3267 = vmatmul.bf16.vlgmr.msrb.gmra.mxu3 %v9464_v1  ;;  %v6583_v62 = vor.u32 %v8498_v16, %v6582_v50  ;;  %v8562_v37 = vld [vmem:[#allocation8 + $0x3ac] sm:$0xf0]  ;;  %3347 = vmatpush.bf16.msra.mxu2 %v7095_v54 }
 0x1a4   :  { %v3007_v11 = vpop.f32.mrf.mxu2  ;;  %v6839_v47 = vor.u32 %v8562_v37, %v6838_v46  ;;  %3376 = vmatpush.bf16.msra.mxu3 %v7351_v44  ;;  %v8554_v16 = vld [vmem:[#allocation8 + $0x36c] sm:$0xf0] }
 0x1a5   :  { %v3008_v20 = vadd.f32 %v3007_v11, %v2979_v22  ;;  %3289 = vmatpush.bf16.msra.mxu0 %v6583_v62  ;;  %v6550_v22 = vld [vmem:[#allocation8 + $0x150] sm:$0xf] }
 0x1a6   :  { %3318 = vmatpush.bf16.msra.mxu1 %v6839_v47  ;;  %v6806_v11 = vld [vmem:[#allocation8 + $0x350] sm:$0xf]  ;;  %v6551_v50 = vor.u32 %v8490_v6, %v6550_v22 }
 0x1a7   :  { %v7062_v18 = vld [vmem:[#allocation8 + $0x550] sm:$0xf]  ;;  %v6807_v52 = vor.u32 %v8554_v16, %v6806_v11 }
 0x1a8   :  { %v3036_v9 = vpop.f32.mrf.mxu3  ;;  %v2951_v17 = vpop.f32.mrf.mxu0  ;;  %v7318_v37 = vld [vmem:[#allocation8 + $0x750] sm:$0xf] }
 0x1a9   :  { %v2952_v38 = vadd.f32 %v2951_v17, %v9647_v13  ;;  %v9657_v53 = vadd.f32 %v3036_v9, %v3008_v20  ;;  %v8618_v17 = vld [vmem:[#allocation8 + $0x56c] sm:$0xf0]  ;;  %3290 = vmatpush.bf16.msra.mxu0 %v6551_v50 }
 0x1aa   :  { %v2980_v33 = vpop.f32.mrf.mxu1  ;;  %v7063_v46 = vor.u32 %v8618_v17, %v7062_v18  ;;  %v8682_v28 = vld [vmem:[#allocation8 + $0x76c] sm:$0xf0]  ;;  %3319 = vmatpush.bf16.msra.mxu1 %v6807_v52 }
 0x1ab   :  { %v2981_v55 = vadd.f32 %v2980_v33, %v2952_v38  ;;  %v7319_v20 = vor.u32 %v8682_v28, %v7318_v37  ;;  %v6518_v62 = vld [vmem:[#allocation8 + $0x110] sm:$0xf] }
 0x1ac   :  { %v3009_v9 = vpop.f32.mrf.mxu2  ;;  %3348 = vmatpush.bf16.msra.mxu2 %v7063_v46  ;;  %v8482_v23 = vld [vmem:[#allocation8 + $0x12c] sm:$0xf0] }
 0x1ad   :  { %v6774_v38 = vld [vmem:[#allocation8 + $0x310] sm:$0xf]  ;;  %v3010_v33 = vadd.f32 %v3009_v9, %v2981_v55  ;;  %3377 = vmatpush.bf16.msra.mxu3 %v7319_v20  ;;  %v6519_v49 = vor.u32 %v8482_v23, %v6518_v62 }
 0x1ae   :  { %v8546_v2 = vld [vmem:[#allocation8 + $0x32c] sm:$0xf0] }
 0x1af   :  { %v7030_v44 = vld [vmem:[#allocation8 + $0x510] sm:$0xf]  ;;  %v6775_v11 = vor.u32 %v8546_v2, %v6774_v38  ;;  %3291 = vmatpush.bf16.msra.mxu0 %v6519_v49  ;;  %3214 = vmatmul.bf16.gmra.mxu1 %v9432_v35 }
 0x1b0   :  { %v3038_v47 = vpop.f32.mrf.mxu3  ;;  %v2954_v54 = vpop.f32.mrf.mxu0  ;;  %v8610_v22 = vld [vmem:[#allocation8 + $0x52c] sm:$0xf0]  ;;  %3185 = vmatmul.bf16.gmra.mxu0 %v9430_v32 }
 0x1b1   :  { %v2955_v18 = vadd.f32 %v2954_v54, %v9647_v13  ;;  %v7031_v50 = vor.u32 %v8610_v22, %v7030_v44  ;;  %v7286_v16 = vld [vmem:[#allocation8 + $0x710] sm:$0xf]  ;;  %v9660_v52 = vadd.f32 %v3038_v47, %v3010_v33  ;;  %3320 = vmatpush.bf16.msra.mxu1 %v6775_v11  ;;  %3243 = vmatmul.bf16.gmra.mxu2 %v9470_v3 }
 0x1b2   :  { %v2983_v6 = vpop.f32.mrf.mxu1  ;;  %v8674_v17 = vld [vmem:[#allocation8 + $0x72c] sm:$0xf0] }
 0x1b3   :  { %v7287_v46 = vor.u32 %v8674_v17, %v7286_v16  ;;  %v2984_v37 = vadd.f32 %v2983_v6, %v2955_v18  ;;  %v6486_v55 = vld [vmem:[#allocation8 + $0xd0] sm:$0xf]  ;;  %3272 = vmatmul.bf16.gmra.mxu3 %v9472_v7  ;;  %3349 = vmatpush.bf16.msra.mxu2 %v7031_v50 }
 0x1b4   :  { %v8474_v28 = vld [vmem:[#allocation8 + $0xec] sm:$0xf0]  ;;  %v3012_v44 = vpop.f32.mrf.mxu2 }
 0x1b5   :  { %v6742_v20 = vld [vmem:[#allocation8 + $0x2d0] sm:$0xf]  ;;  %v6487_v9 = vor.u32 %v8474_v28, %v6486_v55  ;;  %3378 = vmatpush.bf16.msra.mxu3 %v7287_v46  ;;  %v3013_v11 = vadd.f32 %v3012_v44, %v2984_v37 }
 0x1b6   :  { %v8538_v62 = vld [vmem:[#allocation8 + $0x2ec] sm:$0xf0] }
 0x1b7   :  { %v6998_v23 = vld [vmem:[#allocation8 + $0x4d0] sm:$0xf]  ;;  %v6743_v33 = vor.u32 %v8538_v62, %v6742_v20  ;;  %3292 = vmatpush.bf16.msra.mxu0 %v6487_v9 }
 0x1b8   :  { %v8602_v38 = vld [vmem:[#allocation8 + $0x4ec] sm:$0xf0]  ;;  %v3041_v16 = vpop.f32.mrf.mxu3  ;;  %v2956_v17 = vpop.f32.mrf.mxu0 }
 0x1b9   :  { %v6999_v47 = vor.u32 %v8602_v38, %v6998_v23  ;;  %v7254_v54 = vld [vmem:[#allocation8 + $0x6d0] sm:$0xf]  ;;  %3321 = vmatpush.bf16.msra.mxu1 %v6743_v33  ;;  %v2957_v50 = vadd.f32 %v2956_v17, %v9647_v13  ;;  %v9667_v38 = vadd.f32 %v3041_v16, %v3013_v11 }
 0x1ba   :  { %v8666_v49 = vld [vmem:[#allocation8 + $0x6ec] sm:$0xf0]  ;;  %v2985_v20 = vpop.f32.mrf.mxu1 }
 0x1bb   :  { %v7255_v2 = vor.u32 %v8666_v49, %v7254_v54  ;;  %v6454_v22 = vld [vmem:[#allocation8 + $0x90] sm:$0xf]  ;;  %3350 = vmatpush.bf16.msra.mxu2 %v6999_v47  ;;  %v2986_v37 = vadd.f32 %v2985_v20, %v2957_v50 }
 0x1bc   :  { %v8466_v18 = vld [vmem:[#allocation8 + $0xac] sm:$0xf0] }
 0x1bd   :  { %v6710_v6 = vld [vmem:[#allocation8 + $0x290] sm:$0xf]  ;;  %v6455_v55 = vor.u32 %v8466_v18, %v6454_v22  ;;  %3379 = vmatpush.bf16.msra.mxu3 %v7255_v2  ;;  %v3014_v2 = vpop.f32.mrf.mxu2 }
 0x1be   :  { %v8530_v28 = vld [vmem:[#allocation8 + $0x2ac] sm:$0xf0]  ;;  %v3015_v50 = vadd.f32 %v3014_v2, %v2986_v37 }
 0x1bf   :  { %v6966_v51 = vld [vmem:[#allocation8 + $0x490] sm:$0xf]  ;;  %v6711_v62 = vor.u32 %v8530_v28, %v6710_v6  ;;  %3293 = vmatpush.bf16.msra.mxu0 %v6455_v55  ;;  %3219 = vmatmul.bf16.gmra.mxu1 %v9444_v39 }
 0x1c0   :  { %v6967_v46 = vor.u32 %v8594_v45, %v6966_v51  ;;  %v7222_v9 = vld [vmem:[#allocation8 + $0x690] sm:$0xf]  ;;  %v3043_v20 = vpop.f32.mrf.mxu3  ;;  %3190 = vmatmul.bf16.gmra.mxu0 %v9442_v36 }
 0x1c1   :  { %v8658_v23 = vld [vmem:[#allocation8 + $0x6ac] sm:$0xf0]  ;;  %3322 = vmatpush.bf16.msra.mxu1 %v6711_v62  ;;  %v2959_v62 = vpop.f32.mrf.mxu0  ;;  %3248 = vmatmul.bf16.gmra.mxu2 %v9478_v5 }
 0x1c2   :  { %v7223_v33 = vor.u32 %v8658_v23, %v7222_v9  ;;  %v6422_v54 = vld [vmem:[#allocation8 + $0x50] sm:$0xf]  ;;  %3351 = vmatpush.bf16.msra.mxu2 %v6967_v46  ;;  %v2960_v46 = vadd.f32 %v2959_v62, %v9647_v13 }
 0x1c3   :  { %v8458_v49 = vld [vmem:[#allocation8 + $0x6c] sm:$0xf0]  ;;  %3277 = vmatmul.bf16.gmra.mxu3 %v9480_v10 }
 0x1c4   :  { %v6678_v44 = vld [vmem:[#allocation8 + $0x250] sm:$0xf]  ;;  %v6423_v22 = vor.u32 %v8458_v49, %v6422_v54  ;;  %3380 = vmatpush.bf16.msra.mxu3 %v7223_v33 }
 0x1c5   :  { %v8522_v18 = vld [vmem:[#allocation8 + $0x26c] sm:$0xf0] }
 0x1c6   :  { %v8586_v17 = vld [vmem:[#allocation8 + $0x46c] sm:$0xf0]  ;;  %v6679_v47 = vor.u32 %v8522_v18, %v6678_v44  ;;  %3294 = vmatpush.bf16.msra.mxu0 %v6423_v22 }
 0x1c7   :  { %v6935_v6 = vor.u32 %v8586_v17, %v6934_v8  ;;  %v7190_v45 = vld [vmem:[#allocation8 + $0x650] sm:$0xf]  ;;  %v2988_v8 = vpop.f32.mrf.mxu1  ;;  %v9670_v17 = vadd.f32 %v3043_v20, %v3015_v50 }
 0x1c8   :  { %v8650_v51 = vld [vmem:[#allocation8 + $0x66c] sm:$0xf0]  ;;  %3323 = vmatpush.bf16.msra.mxu1 %v6679_v47  ;;  %v2989_v37 = vadd.f32 %v2988_v8, %v2960_v46 }
 0x1c9   :  { %v7191_v11 = vor.u32 %v8650_v51, %v7190_v45  ;;  %v6390_v16 = vld [vmem:[#allocation8 + $0x10] sm:$0xf]  ;;  %3352 = vmatpush.bf16.msra.mxu2 %v6935_v6  ;;  %v3017_v6 = vpop.f32.mrf.mxu2  ;;  %v3046_v51 = vpop.f32.mrf.mxu3 }
 0x1ca   :  { %v8450_v55 = vld [vmem:[#allocation8 + $0x2c] sm:$0xf0]  ;;  %v3018_v45 = vadd.f32 %v3017_v6, %v2989_v37  ;;  %v2961_v2 = vpop.f32.mrf.mxu0 }
 0x1cb   :  { %v6646_v28 = vld [vmem:[#allocation8 + $0x210] sm:$0xf]  ;;  %v6391_v9 = vor.u32 %v8450_v55, %v6390_v16  ;;  %3381 = vmatpush.bf16.msra.mxu3 %v7191_v11  ;;  %v2962_v11 = vadd.f32 %v2961_v2, %v9647_v13 }
 0x1cc   :  { %v8514_v23 = vld [vmem:[#allocation8 + $0x22c] sm:$0xf0]  ;;  %v9677_v55 = vadd.f32 %v3046_v51, %v3018_v45 }
 0x1cd   :  { %v6902_v54 = vld [vmem:[#allocation8 + $0x410] sm:$0xf]  ;;  %v6647_v44 = vor.u32 %v8514_v23, %v6646_v28  ;;  %3295 = vmatpush.bf16.msra.mxu0 %v6391_v9 }
 0x1ce   :  { %v8578_v49 = vld [vmem:[#allocation8 + $0x42c] sm:$0xf0] }
 0x1cf   :  { %v6903_v33 = vor.u32 %v8578_v49, %v6902_v54  ;;  %v7158_v22 = vld [vmem:[#allocation8 + $0x610] sm:$0xf]  ;;  %3324 = vmatpush.bf16.msra.mxu1 %v6647_v44  ;;  %v2990_v16 = vpop.f32.mrf.mxu1 }
 0x1d0   :  { %v8642_v18 = vld [vmem:[#allocation8 + $0x62c] sm:$0xf0]  ;;  %v2991_v28 = vadd.f32 %v2990_v16, %v2962_v11  ;;  %3195 = vmatmul.bf16.gmra.mxu0 %v9454_v58  ;;  %3224 = vmatmul.bf16.gmra.mxu1 %v9456_v59 }
 0x1d1   :  { %v7159_v47 = vor.u32 %v8642_v18, %v7158_v22  ;;  %3353 = vmatpush.bf16.msra.mxu2 %v6903_v33  ;;  %v3019_v50 = vpop.f32.mrf.mxu2  ;;  %v3048_v62 = vpop.f32.mrf.mxu3 }
 0x1d2   :  { %v3020_v20 = vadd.f32 %v3019_v50, %v2991_v28  ;;  %v2964_v9 = vpop.f32.mrf.mxu0  ;;  %3253 = vmatmul.bf16.gmra.mxu2 %v9486_v24 }
 0x1d3   :  { %3382 = vmatpush.bf16.msra.mxu3 %v7159_v47  ;;  %v2965_v23 = vadd.f32 %v2964_v9, %v9647_v13  ;;  %v8762_v9 = vld [vmem:[#allocation8 + $0x9ec] sm:$0xf0] }
 0x1d4   :  { %v9680_v49 = vadd.f32 %v3048_v62, %v3020_v20  ;;  %3282 = vmatmul.bf16.gmra.mxu3 %v9488_v25  ;;  %v9693_v20 = vperm.slane %v9644_v60, 3 }
 0x1d7   :  { %v2993_v54 = vpop.f32.mrf.mxu1 }
 0x1d8   :  { %v2994_v46 = vadd.f32 %v2993_v54, %v2965_v23  ;;  %v7894_v23 = vld [vmem:[#allocation8 + $0xbd0] sm:$0xf] }
 0x1d9   :  { %v3022_v8 = vpop.f32.mrf.mxu2  ;;  %v3051_v33 = vpop.f32.mrf.mxu3 }
 0x1da   :  { %v3023_v44 = vadd.f32 %v3022_v8, %v2994_v46  ;;  %v2966_v22 = vpop.f32.mrf.mxu0  ;;  %v8826_v46 = vld [vmem:[#allocation8 + $0xbec] sm:$0xf0]  ;;  %v6616_v8 = vld [vmem:[#allocation8 + $0x1f0] sm:$0xf0] }
 0x1db   :  { %v2967_v18 = vadd.f32 %v2966_v22, %v9647_v13  ;;  %v7638_v13 = vld [vmem:[#allocation8 + $0x9d0] sm:$0xf]  ;;  %v6872_v22 = vld [vmem:[#allocation8 + $0x3f0] sm:$0xf0] }
 0x1dc   :  { %v9687_v37 = vadd.f32 %v3051_v33, %v3023_v44  ;;  %v7639_v54 = vor.u32 %v8762_v9, %v7638_v13  ;;  %v7895_v44 = vor.u32 %v8826_v46, %v7894_v23  ;;  %v8566_v33 = vld [vmem:[#allocation8 + $0x3d4] sm:$0xf]  ;;  %v8818_v13 = vld [vmem:[#allocation8 + $0xbac] sm:$0xf0] }
 0x1dd   :  { %v8494_v9 = vld [vmem:[#allocation8 + $0x194] sm:$0xf] }
 0x1de   :  { %3404 = vmatpush.bf16.msrb.mxu0 %v7639_v54  ;;  %3433 = vmatpush.bf16.msrb.mxu1 %v7895_v44  ;;  %v6584_v23 = vld [vmem:[#allocation8 + $0x1b0] sm:$0xf0] }
 0x1df   :  { %v2995_v47 = vpop.f32.mrf.mxu1  ;;  %v6840_v44 = vld [vmem:[#allocation8 + $0x3b0] sm:$0xf0] }
 0x1e0   :  { %v2996_v6 = vadd.f32 %v2995_v47, %v2967_v18  ;;  %3296 = vmatmul.bf16.vlgmr.msra.gmra.mxu0 %v9414_v40  ;;  %3325 = vmatmul.bf16.vlgmr.msra.gmra.mxu1 %v9416_v41  ;;  %v6875_v18 = vor.u32 %v8566_v33, %v6872_v22  ;;  %v8558_v33 = vld [vmem:[#allocation8 + $0x394] sm:$0xf] }
 0x1e1   :  { %v3024_v45 = vpop.f32.mrf.mxu2  ;;  %v3053_v2 = vpop.f32.mrf.mxu3  ;;  %v6843_v22 = vor.u32 %v8558_v33, %v6840_v44 }
 0x1e2   :  { %v3025_v51 = vadd.f32 %v3024_v45, %v2996_v6  ;;  %v3065_v11 = vpop.f32.mrf.mxu0  ;;  %3354 = vmatmul.bf16.vlgmr.msra.gmra.mxu2 %v9418_v42  ;;  %v7606_v6 = vld [vmem:[#allocation8 + $0x990] sm:$0xf]  ;;  %3491 = vmatpush.bf16.msrb.mxu3 %v6875_v18 }
 0x1e3   :  { %v3066_v16 = vadd.f32 %v3065_v11, %v9657_v53  ;;  %v8502_v53 = vld [vmem:[#allocation8 + $0x1d4] sm:$0xf]  ;;  %v8754_v45 = vld [vmem:[#allocation8 + $0x9ac] sm:$0xf0] }
 0x1e4   :  { %v9690_v50 = vadd.f32 %v3053_v2, %v3025_v51  ;;  %3383 = vmatmul.bf16.vlgmr.msra.gmra.mxu3 %v9420_v43  ;;  %v6619_v60 = vor.u32 %v8502_v53, %v6616_v8  ;;  %v7862_v51 = vld [vmem:[#allocation8 + $0xb90] sm:$0xf]  ;;  %v6587_v8 = vor.u32 %v8494_v9, %v6584_v23  ;;  %v8550_v9 = vld [vmem:[#allocation8 + $0x354] sm:$0xf] }
 0x1e5   :  { %v7863_v54 = vor.u32 %v8818_v13, %v7862_v51  ;;  %v7574_v18 = vld [vmem:[#allocation8 + $0x950] sm:$0xf]  ;;  %v6808_v23 = vld [vmem:[#allocation8 + $0x370] sm:$0xf0] }
 0x1e6   :  { %3462 = vmatpush.bf16.msrb.mxu2 %v6619_v60  ;;  %3492 = vmatpush.bf16.msrb.mxu3 %v6843_v22  ;;  %v8802_v22 = vld [vmem:[#allocation8 + $0xb2c] sm:$0xf0] }
 0x1e7   :  { %v3094_v28 = vpop.f32.mrf.mxu1  ;;  %3434 = vmatpush.bf16.msrb.mxu1 %v7863_v54 }
 0x1e8   :  { %v9695_v62 = vadd.f32 %v3094_v28, %v3066_v16  ;;  %v7607_v28 = vor.u32 %v8754_v45, %v7606_v6  ;;  %v7830_v6 = vld [vmem:[#allocation8 + $0xb50] sm:$0xf] }
 0x1e9   :  { %v3123_v47 = vpop.f32.mrf.mxu2  ;;  %v3152_v11 = vpop.f32.mrf.mxu3  ;;  %v7831_v51 = vor.u32 %v8810_v15, %v7830_v6  ;;  %v6520_v15 = vld [vmem:[#allocation8 + $0x130] sm:$0xf0] }
 0x1ea   :  { %11376 = vst [vmem:[#allocation38_spill] sm:$0xff] %v9695_v62  ;;  %v3124_v2 = vadd.f32 %v3123_v47, %v9693_v20  ;;  %v3067_v16 = vpop.f32.mrf.mxu0  ;;  %3405 = vmatpush.bf16.msrb.mxu0 %v7607_v28  ;;  %3463 = vmatpush.bf16.msrb.mxu2 %v6587_v8  ;;  %v8746_v47 = vld [vmem:[#allocation8 + $0x96c] sm:$0xf0] }
 0x1eb   :  { %v3068_v46 = vadd.f32 %v3067_v16, %v9660_v52  ;;  %v7575_v45 = vor.u32 %v8746_v47, %v7574_v18  ;;  %v8486_v52 = vld [vmem:[#allocation8 + $0x154] sm:$0xf]  ;;  %3435 = vmatpush.bf16.msrb.mxu1 %v7831_v51  ;;  %v7542_v28 = vld [vmem:[#allocation8 + $0x910] sm:$0xf] }
 0x1ec   :  { %v9703_v60 = vadd.f32 %v3152_v11, %v3124_v2  ;;  %v6552_v16 = vld [vmem:[#allocation8 + $0x170] sm:$0xf0]  ;;  %v6811_v2 = vor.u32 %v8550_v9, %v6808_v23 }
 0x1ed   :  { %v6555_v13 = vor.u32 %v8486_v52, %v6552_v16  ;;  %v8478_v18 = vld [vmem:[#allocation8 + $0x114] sm:$0xf] }
 0x1ee   :  { %3406 = vmatpush.bf16.msrb.mxu0 %v7575_v45  ;;  %3493 = vmatpush.bf16.msrb.mxu3 %v6811_v2  ;;  %v6523_v52 = vor.u32 %v8478_v18, %v6520_v15  ;;  %v8542_v16 = vld [vmem:[#allocation8 + $0x314] sm:$0xf]  ;;  %v7510_v2 = vld [vmem:[#allocation8 + $0x8d0] sm:$0xf] }
 0x1ef   :  { %v3096_v53 = vpop.f32.mrf.mxu1  ;;  %3464 = vmatpush.bf16.msrb.mxu2 %v6555_v13  ;;  %v6776_v51 = vld [vmem:[#allocation8 + $0x330] sm:$0xf0] }
 0x1f0   :  { %v9705_v21 = vadd.f32 %v3096_v53, %v3068_v46  ;;  %v8738_v46 = vld [vmem:[#allocation8 + $0x92c] sm:$0xf0]  ;;  %v6779_v9 = vor.u32 %v8542_v16, %v6776_v51  ;;  %3301 = vmatmul.bf16.gmra.mxu0 %v9426_v27  ;;  %3330 = vmatmul.bf16.gmra.mxu1 %v9428_v31 }
 0x1f1   :  { %v3125_v11 = vpop.f32.mrf.mxu2  ;;  %v7798_v53 = vld [vmem:[#allocation8 + $0xb10] sm:$0xf]  ;;  %v3154_v8 = vpop.f32.mrf.mxu3  ;;  %v7543_v44 = vor.u32 %v8738_v46, %v7542_v28 }
 0x1f2   :  { %11377 = vst [vmem:[#allocation39_spill] sm:$0xff] %v9705_v21  ;;  %v3126_v54 = vadd.f32 %v3125_v11, %v9693_v20  ;;  %v3070_v33 = vpop.f32.mrf.mxu0  ;;  %v7799_v45 = vor.u32 %v8802_v22, %v7798_v53  ;;  %v8730_v11 = vld [vmem:[#allocation8 + $0x8ec] sm:$0xf0]  ;;  %3359 = vmatmul.bf16.gmra.mxu2 %v9430_v32  ;;  %v8470_v53 = vld [vmem:[#allocation8 + $0xd4] sm:$0xf]  ;;  %3494 = vmatpush.bf16.msrb.mxu3 %v6779_v9 }
 0x1f3   :  { %v3071_v47 = vadd.f32 %v3070_v33, %v9667_v38  ;;  %3407 = vmatpush.bf16.msrb.mxu0 %v7543_v44  ;;  %v7766_v28 = vld [vmem:[#allocation8 + $0xad0] sm:$0xf]  ;;  %v7511_v38 = vor.u32 %v8730_v11, %v7510_v2  ;;  %v6488_v33 = vld [vmem:[#allocation8 + $0xf0] sm:$0xf0]  ;;  %3465 = vmatpush.bf16.msrb.mxu2 %v6523_v52 }
 0x1f4   :  { %v9709_v13 = vadd.f32 %v3154_v8, %v3126_v54  ;;  %3436 = vmatpush.bf16.msrb.mxu1 %v7799_v45  ;;  %v8794_v46 = vld [vmem:[#allocation8 + $0xaec] sm:$0xf0]  ;;  %3388 = vmatmul.bf16.gmra.mxu3 %v9432_v35  ;;  %v6491_v8 = vor.u32 %v8470_v53, %v6488_v33  ;;  %v8534_v44 = vld [vmem:[#allocation8 + $0x2d4] sm:$0xf] }
 0x1f5   :  { %v7767_v54 = vor.u32 %v8794_v46, %v7766_v28  ;;  %v6744_v22 = vld [vmem:[#allocation8 + $0x2f0] sm:$0xf0]  ;;  %v7734_v45 = vld [vmem:[#allocation8 + $0xa90] sm:$0xf] }
 0x1f6   :  { %v6747_v18 = vor.u32 %v8534_v44, %v6744_v22  ;;  %v6456_v52 = vld [vmem:[#allocation8 + $0xb0] sm:$0xf0]  ;;  %v7735_v9 = vor.u32 %v8786_v12, %v7734_v45 }
 0x1f7   :  { %v3099_v6 = vpop.f32.mrf.mxu1  ;;  %3408 = vmatpush.bf16.msrb.mxu0 %v7511_v38  ;;  %3466 = vmatpush.bf16.msrb.mxu2 %v6491_v8  ;;  %v6459_v38 = vor.u32 %v8462_v14, %v6456_v52  ;;  %v8526_v53 = vld [vmem:[#allocation8 + $0x294] sm:$0xf]  ;;  %v7670_v52 = vld [vmem:[#allocation8 + $0xa10] sm:$0xf] }
 0x1f8   :  { %v9711_v23 = vadd.f32 %v3099_v6, %v3071_v47  ;;  %3437 = vmatpush.bf16.msrb.mxu1 %v7767_v54  ;;  %v7478_v47 = vld [vmem:[#allocation8 + $0x890] sm:$0xf]  ;;  %v6712_v33 = vld [vmem:[#allocation8 + $0x2b0] sm:$0xf0]  ;;  %3495 = vmatpush.bf16.msrb.mxu3 %v6747_v18 }
 0x1f9   :  { %v3128_v15 = vpop.f32.mrf.mxu2  ;;  %v8722_v6 = vld [vmem:[#allocation8 + $0x8ac] sm:$0xf0]  ;;  %v3157_v51 = vpop.f32.mrf.mxu3  ;;  %v6715_v44 = vor.u32 %v8526_v53, %v6712_v33  ;;  %v8518_v8 = vld [vmem:[#allocation8 + $0x254] sm:$0xf] }
 0x1fa   :  { %11378 = vst [vmem:[#allocation40_spill] sm:$0xff] %v9711_v23  ;;  %v3129_v16 = vadd.f32 %v3128_v15, %v9693_v20  ;;  %v3072_v2 = vpop.f32.mrf.mxu0  ;;  %v7479_v11 = vor.u32 %v8722_v6, %v7478_v47  ;;  %v7446_v15 = vld [vmem:[#allocation8 + $0x850] sm:$0xf]  ;;  %v6680_v45 = vld [vmem:[#allocation8 + $0x270] sm:$0xf0] }
 0x1fb   :  { %v3073_v28 = vadd.f32 %v3072_v2, %v9670_v17  ;;  %v8714_v47 = vld [vmem:[#allocation8 + $0x86c] sm:$0xf0]  ;;  %v8454_v17 = vld [vmem:[#allocation8 + $0x54] sm:$0xf]  ;;  %3467 = vmatpush.bf16.msrb.mxu2 %v6459_v38  ;;  %v6683_v18 = vor.u32 %v8518_v8, %v6680_v45  ;;  %v8463_v23 = vld [vmem:[#allocation8 + $0x9c] sm:$0xf] }
 0x1fc   :  { %v9719_v54 = vadd.f32 %v3157_v51, %v3129_v16  ;;  %3409 = vmatpush.bf16.msrb.mxu0 %v7479_v11  ;;  %3438 = vmatpush.bf16.msrb.mxu1 %v7735_v9  ;;  %v7702_v6 = vld [vmem:[#allocation8 + $0xa50] sm:$0xf]  ;;  %v7447_v19 = vor.u32 %v8714_v47, %v7446_v15  ;;  %v6424_v2 = vld [vmem:[#allocation8 + $0x70] sm:$0xf0] }
 0x1fd   :  { %v7703_v12 = vor.u32 %v8778_v48, %v7702_v6  ;;  %v6427_v14 = vor.u32 %v8454_v17, %v6424_v2  ;;  %3496 = vmatpush.bf16.msrb.mxu3 %v6715_v44  ;;  %v7414_v51 = vld [vmem:[#allocation8 + $0x810] sm:$0xf]  ;;  %v8446_v15 = vld [vmem:[#allocation8 + $0x14] sm:$0xf] }
 0x1fe   :  { %v8706_v11 = vld [vmem:[#allocation8 + $0x82c] sm:$0xf0]  ;;  %v6392_v38 = vld [vmem:[#allocation8 + $0x30] sm:$0xf0] }
 0x1ff   :  { %v3101_v46 = vpop.f32.mrf.mxu1  ;;  %v7415_v53 = vor.u32 %v8706_v11, %v7414_v51  ;;  %v8770_v33 = vld [vmem:[#allocation8 + $0xa2c] sm:$0xf0]  ;;  %3468 = vmatpush.bf16.msrb.mxu2 %v6427_v14  ;;  %v8510_v6 = vld [vmem:[#allocation8 + $0x214] sm:$0xf] }
 0x200   :  { %v9721_v22 = vadd.f32 %v3101_v46, %v3073_v28  ;;  %3410 = vmatpush.bf16.msrb.mxu0 %v7447_v19  ;;  %3439 = vmatpush.bf16.msrb.mxu1 %v7703_v12  ;;  %v7671_v44 = vor.u32 %v8770_v33, %v7670_v52  ;;  %v6395_v19 = vor.u32 %v8446_v15, %v6392_v38  ;;  %v6648_v17 = vld [vmem:[#allocation8 + $0x230] sm:$0xf0] }
 0x201   :  { %v3130_v16 = vpop.f32.mrf.mxu2  ;;  %v3159_v46 = vpop.f32.mrf.mxu3  ;;  %3497 = vmatpush.bf16.msrb.mxu3 %v6683_v18  ;;  %v6651_v12 = vor.u32 %v8510_v6, %v6648_v17  ;;  %3306 = vmatmul.bf16.gmra.mxu0 %v9438_v26 }
 0x202   :  { %11379 = vst [vmem:[#allocation41_spill] sm:$0xff] %v9721_v22  ;;  %v3131_v28 = vadd.f32 %v3130_v16, %v9693_v20  ;;  %v3075_v9 = vpop.f32.mrf.mxu0  ;;  %3335 = vmatmul.bf16.gmra.mxu1 %v9440_v34  ;;  %3364 = vmatmul.bf16.gmra.mxu2 %v9442_v36  ;;  %v8710_v22 = vld [vmem:[#allocation8 + $0x854] sm:$0xf] }
 0x203   :  { %v3076_v48 = vadd.f32 %v3075_v9, %v9677_v55  ;;  %3469 = vmatpush.bf16.msrb.mxu2 %v6395_v19 }
 0x204   :  { %v9725_v2 = vadd.f32 %v3159_v46, %v3131_v28  ;;  %3411 = vmatpush.bf16.msrb.mxu0 %v7415_v53  ;;  %3440 = vmatpush.bf16.msrb.mxu1 %v7671_v44 }
 0x205   :  { %3393 = vmatmul.bf16.gmra.mxu3 %v9444_v39 }
 0x206   :  { %3498 = vmatpush.bf16.msrb.mxu3 %v6651_v12 }
 0x207   :  { %v3104_v47 = vpop.f32.mrf.mxu1 }
 0x208   :  { %v9727_v8 = vadd.f32 %v3104_v47, %v3076_v48 }
 0x209   :  { %v3133_v55 = vpop.f32.mrf.mxu2  ;;  %v3162_v45 = vpop.f32.mrf.mxu3 }
 0x20a   :  { %11380 = vst [vmem:[#allocation42_spill] sm:$0xff] %v9727_v8  ;;  %v3134_v14 = vadd.f32 %v3133_v55, %v9693_v20  ;;  %v3077_v18 = vpop.f32.mrf.mxu0  ;;  %v7480_v8 = vld [vmem:[#allocation8 + $0x8b0] sm:$0xf0] }
 0x20b   :  { %v3078_v16 = vadd.f32 %v3077_v18, %v9680_v49 }
 0x20c   :  { %v9735_v11 = vadd.f32 %v3162_v45, %v3134_v14 }
 0x20f   :  { %v3106_v51 = vpop.f32.mrf.mxu1 }
 0x210   :  { %v9737_v52 = vadd.f32 %v3106_v51, %v3078_v16 }
 0x211   :  { %v3135_v28 = vpop.f32.mrf.mxu2  ;;  %v3164_v9 = vpop.f32.mrf.mxu3  ;;  %3311 = vmatmul.bf16.gmra.mxu0 %v9450_v56 }
 0x212   :  { %11381 = vst [vmem:[#allocation43_spill] sm:$0xff] %v9737_v52  ;;  %v3136_v46 = vadd.f32 %v3135_v28, %v9693_v20  ;;  %v3080_v53 = vpop.f32.mrf.mxu0  ;;  %3340 = vmatmul.bf16.gmra.mxu1 %v9452_v57  ;;  %3369 = vmatmul.bf16.gmra.mxu2 %v9454_v58  ;;  %v8742_v52 = vld [vmem:[#allocation8 + $0x954] sm:$0xf] }
 0x213   :  { %v3081_v33 = vadd.f32 %v3080_v53, %v9687_v37  ;;  %v8694_v53 = vld [vmem:[#allocation8 + $0x7d4] sm:$0xf] }
 0x214   :  { %v9741_v38 = vadd.f32 %v3164_v9, %v3136_v46  ;;  %v8630_v9 = vld [vmem:[#allocation8 + $0x5d4] sm:$0xf] }
 0x215   :  { %3398 = vmatmul.bf16.gmra.mxu3 %v9456_v59 }
 0x217   :  { %v3109_v15 = vpop.f32.mrf.mxu1 }
 0x218   :  { %v9743_v48 = vadd.f32 %v3109_v15, %v3081_v33  ;;  %v7384_v15 = vld [vmem:[#allocation8 + $0x7f0] sm:$0xf0] }
 0x219   :  { %v3138_v49 = vpop.f32.mrf.mxu2  ;;  %v3167_v44 = vpop.f32.mrf.mxu3 }
 0x21a   :  { %11382 = vst [vmem:[#allocation44_spill] sm:$0xff] %v9743_v48  ;;  %v3139_v47 = vadd.f32 %v3138_v49, %v9693_v20  ;;  %v3082_v19 = vpop.f32.mrf.mxu0  ;;  %v7640_v49 = vld [vmem:[#allocation8 + $0x9f0] sm:$0xf0] }
 0x21b   :  { %v3083_v37 = vadd.f32 %v3082_v19, %v9690_v50  ;;  %v7128_v50 = vld [vmem:[#allocation8 + $0x5f0] sm:$0xf0] }
 0x21c   :  { %v9751_v17 = vadd.f32 %v3167_v44, %v3139_v47  ;;  %v7131_v33 = vor.u32 %v8630_v9, %v7128_v50  ;;  %v8822_v44 = vld [vmem:[#allocation8 + $0xbd4] sm:$0xf] }
 0x21d   :  { %v7896_v19 = vld [vmem:[#allocation8 + $0xbf0] sm:$0xf0] }
 0x21e   :  { %3520 = vmatpush.bf16.msra.mxu0 %v7131_v33  ;;  %v7352_v50 = vld [vmem:[#allocation8 + $0x7b0] sm:$0xf0] }
 0x21f   :  { %v3111_v6 = vpop.f32.mrf.mxu1  ;;  %v7608_v48 = vld [vmem:[#allocation8 + $0x9b0] sm:$0xf0] }
 0x220   :  { %v9753_v12 = vadd.f32 %v3111_v6, %v3083_v37  ;;  %v7899_v37 = vor.u32 %v8822_v44, %v7896_v19  ;;  %v7864_v44 = vld [vmem:[#allocation8 + $0xbb0] sm:$0xf0] }
 0x221   :  { %v3140_v55 = vpop.f32.mrf.mxu2  ;;  %v3169_v45 = vpop.f32.mrf.mxu3  ;;  %3412 = vmatmul.bf16.vlgmr.msrb.gmra.mxu0 %v9462_v0 }
 0x222   :  { %11383 = vst [vmem:[#allocation45_spill] sm:$0xff] %v9753_v12  ;;  %v3141_v14 = vadd.f32 %v3140_v55, %v9693_v20  ;;  %v3181_v18 = vpop.f32.mrf.mxu0  ;;  %3441 = vmatmul.bf16.vlgmr.msrb.gmra.mxu1 %v9464_v1  ;;  %3470 = vmatmul.bf16.vlgmr.msrb.gmra.mxu2 %v9414_v40  ;;  %v8758_v20 = vld [vmem:[#allocation8 + $0x9d4] sm:$0xf] }
 0x223   :  { %v3182_v16 = vadd.f32 %v3181_v18, %v9703_v60  ;;  %v7387_v60 = vor.u32 %v8694_v53, %v7384_v15  ;;  %v7643_v47 = vor.u32 %v8758_v20, %v7640_v49  ;;  %v8622_v55 = vld [vmem:[#allocation8 + $0x594] sm:$0xf]  ;;  %3607 = vmatpush.bf16.msra.mxu3 %v7899_v37 }
 0x224   :  { %v9757_v28 = vadd.f32 %v3169_v45, %v3141_v14  ;;  %v7096_v14 = vld [vmem:[#allocation8 + $0x5b0] sm:$0xf0] }
 0x225   :  { %3499 = vmatmul.bf16.vlgmr.msrb.gmra.mxu3 %v9416_v41  ;;  %3549 = vmatpush.bf16.msra.mxu1 %v7387_v60  ;;  %v8686_v45 = vld [vmem:[#allocation8 + $0x794] sm:$0xf]  ;;  %v7099_v9 = vor.u32 %v8622_v55, %v7096_v14 }
 0x226   :  { %3578 = vmatpush.bf16.msra.mxu2 %v7643_v47  ;;  %v8750_v12 = vld [vmem:[#allocation8 + $0x994] sm:$0xf]  ;;  %v7355_v20 = vor.u32 %v8686_v45, %v7352_v50 }
 0x227   :  { %v3210_v51 = vpop.f32.mrf.mxu1  ;;  %v7611_v33 = vor.u32 %v8750_v12, %v7608_v48  ;;  %v8814_v49 = vld [vmem:[#allocation8 + $0xb94] sm:$0xf]  ;;  %3521 = vmatpush.bf16.msra.mxu0 %v7099_v9 }
 0x228   :  { %v3211_v46 = vadd.f32 %v3210_v51, %v3182_v16  ;;  %v7867_v47 = vor.u32 %v8814_v49, %v7864_v44  ;;  %v7064_v37 = vld [vmem:[#allocation8 + $0x570] sm:$0xf0] }
 0x229   :  { %v3239_v6 = vpop.f32.mrf.mxu2  ;;  %v3268_v16 = vpop.f32.mrf.mxu3  ;;  %3550 = vmatpush.bf16.msra.mxu1 %v7355_v20  ;;  %v7320_v14 = vld [vmem:[#allocation8 + $0x770] sm:$0xf0] }
 0x22a   :  { %v3240_v18 = vadd.f32 %v3239_v6, %v3211_v46  ;;  %v3183_v51 = vpop.f32.mrf.mxu0  ;;  %3579 = vmatpush.bf16.msra.mxu2 %v7611_v33  ;;  %v8614_v46 = vld [vmem:[#allocation8 + $0x554] sm:$0xf]  ;;  %3608 = vmatpush.bf16.msra.mxu3 %v7867_v47 }
 0x22b   :  { %v3184_v53 = vadd.f32 %v3183_v51, %v9709_v13  ;;  %v8678_v6 = vld [vmem:[#allocation8 + $0x754] sm:$0xf]  ;;  %v7067_v55 = vor.u32 %v8614_v46, %v7064_v37 }
 0x22c   :  { %v9764_v60 = vadd.f32 %v3268_v16, %v3240_v18  ;;  %v7576_v13 = vld [vmem:[#allocation8 + $0x970] sm:$0xf0]  ;;  %v7323_v51 = vor.u32 %v8678_v6, %v7320_v14 }
 0x22d   :  { %v7579_v45 = vor.u32 %v8742_v52, %v7576_v13  ;;  %v8806_v48 = vld [vmem:[#allocation8 + $0xb54] sm:$0xf]  ;;  %3522 = vmatpush.bf16.msra.mxu0 %v7067_v55 }
 0x22e   :  { %11384 = vst [vmem:[#allocation46_spill] sm:$0xff] %v9764_v60  ;;  %v7832_v12 = vld [vmem:[#allocation8 + $0xb70] sm:$0xf0]  ;;  %3551 = vmatpush.bf16.msra.mxu1 %v7323_v51 }
 0x22f   :  { %v3212_v15 = vpop.f32.mrf.mxu1  ;;  %v7835_v18 = vor.u32 %v8806_v48, %v7832_v12  ;;  %3580 = vmatpush.bf16.msra.mxu2 %v7579_v45  ;;  %v8606_v9 = vld [vmem:[#allocation8 + $0x514] sm:$0xf] }
 0x230   :  { %v3213_v19 = vadd.f32 %v3212_v15, %v3184_v53  ;;  %v7032_v50 = vld [vmem:[#allocation8 + $0x530] sm:$0xf0] }
 0x231   :  { %v3241_v16 = vpop.f32.mrf.mxu2  ;;  %v8670_v53 = vld [vmem:[#allocation8 + $0x714] sm:$0xf]  ;;  %v3270_v20 = vpop.f32.mrf.mxu3  ;;  %3609 = vmatpush.bf16.msra.mxu3 %v7835_v18  ;;  %v7035_v49 = vor.u32 %v8606_v9, %v7032_v50  ;;  %3417 = vmatmul.bf16.gmra.mxu0 %v9470_v3 }
 0x232   :  { %v3242_v15 = vadd.f32 %v3241_v16, %v3213_v19  ;;  %v3186_v33 = vpop.f32.mrf.mxu0  ;;  %v7288_v44 = vld [vmem:[#allocation8 + $0x730] sm:$0xf0]  ;;  %3446 = vmatmul.bf16.gmra.mxu1 %v9472_v7  ;;  %3475 = vmatmul.bf16.gmra.mxu2 %v9426_v27 }
 0x233   :  { %v8734_v47 = vld [vmem:[#allocation8 + $0x914] sm:$0xf]  ;;  %v3187_v52 = vadd.f32 %v3186_v33, %v9719_v54  ;;  %v7291_v6 = vor.u32 %v8670_v53, %v7288_v44  ;;  %3523 = vmatpush.bf16.msra.mxu0 %v7035_v49 }
 0x234   :  { %v7544_v46 = vld [vmem:[#allocation8 + $0x930] sm:$0xf0]  ;;  %v9767_v51 = vadd.f32 %v3270_v20, %v3242_v15 }
 0x235   :  { %v7547_v55 = vor.u32 %v8734_v47, %v7544_v46  ;;  %v8798_v14 = vld [vmem:[#allocation8 + $0xb14] sm:$0xf]  ;;  %3552 = vmatpush.bf16.msra.mxu1 %v7291_v6  ;;  %3504 = vmatmul.bf16.gmra.mxu3 %v9428_v31 }
 0x236   :  { %v7800_v13 = vld [vmem:[#allocation8 + $0xb30] sm:$0xf0]  ;;  %11385 = vst [vmem:[#allocation47_spill] sm:$0xff] %v9767_v51 }
 0x237   :  { %v3215_v37 = vpop.f32.mrf.mxu1  ;;  %v7803_v45 = vor.u32 %v8798_v14, %v7800_v13  ;;  %v8598_v19 = vld [vmem:[#allocation8 + $0x4d4] sm:$0xf]  ;;  %3581 = vmatpush.bf16.msra.mxu2 %v7547_v55 }
 0x238   :  { %v3216_v48 = vadd.f32 %v3215_v37, %v3187_v52  ;;  %v7000_v12 = vld [vmem:[#allocation8 + $0x4f0] sm:$0xf0] }
 0x239   :  { %v8662_v18 = vld [vmem:[#allocation8 + $0x6d4] sm:$0xf]  ;;  %v7003_v54 = vor.u32 %v8598_v19, %v7000_v12  ;;  %3610 = vmatpush.bf16.msra.mxu3 %v7803_v45  ;;  %v3244_v44 = vpop.f32.mrf.mxu2  ;;  %v3273_v6 = vpop.f32.mrf.mxu3 }
 0x23a   :  { %v7256_v16 = vld [vmem:[#allocation8 + $0x6f0] sm:$0xf0]  ;;  %v3245_v37 = vadd.f32 %v3244_v44, %v3216_v48  ;;  %v3188_v14 = vpop.f32.mrf.mxu0 }
 0x23b   :  { %v8726_v9 = vld [vmem:[#allocation8 + $0x8d4] sm:$0xf]  ;;  %v7259_v53 = vor.u32 %v8662_v18, %v7256_v16  ;;  %3524 = vmatpush.bf16.msra.mxu0 %v7003_v54  ;;  %v3189_v55 = vadd.f32 %v3188_v14, %v9725_v2 }
 0x23c   :  { %v7512_v50 = vld [vmem:[#allocation8 + $0x8f0] sm:$0xf0] }
 0x23d   :  { %v7515_v15 = vor.u32 %v8726_v9, %v7512_v50  ;;  %v8790_v20 = vld [vmem:[#allocation8 + $0xad4] sm:$0xf]  ;;  %3553 = vmatpush.bf16.msra.mxu1 %v7259_v53  ;;  %v9774_v50 = vadd.f32 %v3273_v6, %v3245_v37 }
 0x23e   :  { %v7768_v33 = vld [vmem:[#allocation8 + $0xaf0] sm:$0xf0] }
 0x23f   :  { %v7771_v49 = vor.u32 %v8790_v20, %v7768_v33  ;;  %v8590_v47 = vld [vmem:[#allocation8 + $0x494] sm:$0xf]  ;;  %v3217_v18 = vpop.f32.mrf.mxu1  ;;  %3582 = vmatpush.bf16.msra.mxu2 %v7515_v15  ;;  %11386 = vst [vmem:[#allocation48_spill] sm:$0xff] %v9774_v50 }
 0x240   :  { %v6968_v46 = vld [vmem:[#allocation8 + $0x4b0] sm:$0xf0]  ;;  %v3218_v48 = vadd.f32 %v3217_v18, %v3189_v55 }
 0x241   :  { %v8654_v52 = vld [vmem:[#allocation8 + $0x694] sm:$0xf]  ;;  %v6971_v13 = vor.u32 %v8590_v47, %v6968_v46  ;;  %3611 = vmatpush.bf16.msra.mxu3 %v7771_v49  ;;  %v3246_v49 = vpop.f32.mrf.mxu2  ;;  %v3275_v55 = vpop.f32.mrf.mxu3  ;;  %3422 = vmatmul.bf16.gmra.mxu0 %v9478_v5 }
 0x242   :  { %v7224_v19 = vld [vmem:[#allocation8 + $0x6b0] sm:$0xf0]  ;;  %v3191_v18 = vpop.f32.mrf.mxu0  ;;  %3451 = vmatmul.bf16.gmra.mxu1 %v9480_v10  ;;  %3480 = vmatmul.bf16.gmra.mxu2 %v9438_v26 }
 0x243   :  { %v8718_v12 = vld [vmem:[#allocation8 + $0x894] sm:$0xf]  ;;  %v7227_v16 = vor.u32 %v8654_v52, %v7224_v19  ;;  %3525 = vmatpush.bf16.msra.mxu0 %v6971_v13 }
 0x244   :  { %v7483_v45 = vor.u32 %v8718_v12, %v7480_v8  ;;  %v8782_v54 = vld [vmem:[#allocation8 + $0xa94] sm:$0xf]  ;;  %v3247_v12 = vadd.f32 %v3246_v49, %v3218_v48 }
 0x245   :  { %v7736_v9 = vld [vmem:[#allocation8 + $0xab0] sm:$0xf0]  ;;  %3554 = vmatpush.bf16.msra.mxu1 %v7227_v16  ;;  %3509 = vmatmul.bf16.gmra.mxu3 %v9440_v34 }
 0x246   :  { %v7739_v53 = vor.u32 %v8782_v54, %v7736_v9  ;;  %v8582_v20 = vld [vmem:[#allocation8 + $0x454] sm:$0xf]  ;;  %3583 = vmatpush.bf16.msra.mxu2 %v7483_v45  ;;  %v3192_v45 = vadd.f32 %v3191_v18, %v9735_v11 }
 0x247   :  { %v6936_v33 = vld [vmem:[#allocation8 + $0x470] sm:$0xf0] }
 0x248   :  { %v8646_v44 = vld [vmem:[#allocation8 + $0x654] sm:$0xf]  ;;  %v6939_v47 = vor.u32 %v8582_v20, %v6936_v33  ;;  %3612 = vmatpush.bf16.msra.mxu3 %v7739_v53 }
 0x249   :  { %v7192_v46 = vld [vmem:[#allocation8 + $0x670] sm:$0xf0]  ;;  %v3249_v11 = vpop.f32.mrf.mxu2 }
 0x24a   :  { %v7448_v2 = vld [vmem:[#allocation8 + $0x870] sm:$0xf0]  ;;  %v7195_v15 = vor.u32 %v8646_v44, %v7192_v46  ;;  %3526 = vmatpush.bf16.msra.mxu0 %v6939_v47  ;;  %v9777_v46 = vadd.f32 %v3275_v55, %v3247_v12 }
 0x24b   :  { %v7451_v52 = vor.u32 %v8710_v22, %v7448_v2  ;;  %v8774_v8 = vld [vmem:[#allocation8 + $0xa54] sm:$0xf]  ;;  %v3220_v22 = vpop.f32.mrf.mxu1 }
 0x24c   :  { %v7704_v14 = vld [vmem:[#allocation8 + $0xa70] sm:$0xf0]  ;;  %3555 = vmatpush.bf16.msra.mxu1 %v7195_v15  ;;  %11387 = vst [vmem:[#allocation49_spill] sm:$0xff] %v9777_v46  ;;  %v3221_v48 = vadd.f32 %v3220_v22, %v3192_v45  ;;  %v6942_v46 = vld [vmem:[#allocation8 + $0x458] sm:$0xf] }
 0x24d   :  { %v7707_v37 = vor.u32 %v8774_v8, %v7704_v14  ;;  %v8574_v6 = vld [vmem:[#allocation8 + $0x414] sm:$0xf]  ;;  %3584 = vmatpush.bf16.msra.mxu2 %v7451_v52  ;;  %v3278_v52 = vpop.f32.mrf.mxu3  ;;  %v3193_v8 = vpop.f32.mrf.mxu0 }
 0x24e   :  { %v6904_v13 = vld [vmem:[#allocation8 + $0x430] sm:$0xf0]  ;;  %v3250_v15 = vadd.f32 %v3249_v11, %v3221_v48  ;;  %v3194_v14 = vadd.f32 %v3193_v8, %v9741_v38 }
 0x24f   :  { %v8638_v19 = vld [vmem:[#allocation8 + $0x614] sm:$0xf]  ;;  %v6907_v16 = vor.u32 %v8574_v6, %v6904_v13  ;;  %3613 = vmatpush.bf16.msra.mxu3 %v7707_v37 }
 0x250   :  { %v7160_v54 = vld [vmem:[#allocation8 + $0x630] sm:$0xf0]  ;;  %v9784_v49 = vadd.f32 %v3278_v52, %v3250_v15 }
 0x251   :  { %v8702_v9 = vld [vmem:[#allocation8 + $0x814] sm:$0xf]  ;;  %v7163_v33 = vor.u32 %v8638_v19, %v7160_v54  ;;  %3527 = vmatpush.bf16.msra.mxu0 %v6907_v16  ;;  %v3251_v13 = vpop.f32.mrf.mxu2 }
 0x252   :  { %v7416_v20 = vld [vmem:[#allocation8 + $0x830] sm:$0xf0]  ;;  %11388 = vst [vmem:[#allocation50_spill] sm:$0xff] %v9784_v49  ;;  %3427 = vmatmul.bf16.gmra.mxu0 %v9486_v24  ;;  %3456 = vmatmul.bf16.gmra.mxu1 %v9488_v25  ;;  %v8595_v49 = vld [vmem:[#allocation8 + $0x4b4] sm:$0xf0] }
 0x253   :  { %v7419_v53 = vor.u32 %v8702_v9, %v7416_v20  ;;  %v8766_v44 = vld [vmem:[#allocation8 + $0xa14] sm:$0xf]  ;;  %3556 = vmatpush.bf16.msra.mxu1 %v7163_v33  ;;  %v3222_v37 = vpop.f32.mrf.mxu1  ;;  %3485 = vmatmul.bf16.gmra.mxu2 %v9450_v56 }
 0x254   :  { %v7672_v47 = vld [vmem:[#allocation8 + $0xa30] sm:$0xf0]  ;;  %v3223_v6 = vadd.f32 %v3222_v37, %v3194_v14 }
 0x255   :  { %v7675_v2 = vor.u32 %v8766_v44, %v7672_v47  ;;  %3585 = vmatpush.bf16.msra.mxu2 %v7419_v53  ;;  %v3280_v12 = vpop.f32.mrf.mxu3  ;;  %v3196_v55 = vpop.f32.mrf.mxu0  ;;  %3514 = vmatmul.bf16.gmra.mxu3 %v9452_v57  ;;  %v9796_v47 = vld [vmem:[#allocation10] sm:$0xff] }
 0x256   :  { %v3252_v19 = vadd.f32 %v3251_v13, %v3223_v6  ;;  %v3197_v18 = vadd.f32 %v3196_v55, %v9751_v17  ;;  %v8507_v13 = vld [vmem:[#allocation8 + $0x1f4] sm:$0xf0] }
 0x257   :  { %3614 = vmatpush.bf16.msra.mxu3 %v7675_v2  ;;  %v9799_v2 = vperm.slane %v9796_v47, 4  ;;  %v8571_v55 = vld [vmem:[#allocation8 + $0x3f4] sm:$0xf0] }
 0x258   :  { %v9787_v54 = vadd.f32 %v3280_v12, %v3252_v19  ;;  %v6878_v19 = vld [vmem:[#allocation8 + $0x3d8] sm:$0xf] }
 0x259   :  { %v3254_v38 = vpop.f32.mrf.mxu2 }
 0x25a   :  { %11389 = vst [vmem:[#allocation51_spill] sm:$0xff] %v9787_v54  ;;  %v6974_v54 = vld [vmem:[#allocation8 + $0x498] sm:$0xf] }
 0x25b   :  { %v3225_v16 = vpop.f32.mrf.mxu1 }
 0x25c   :  { %v3226_v9 = vadd.f32 %v3225_v16, %v3197_v18  ;;  %v7134_v18 = vld [vmem:[#allocation8 + $0x5d8] sm:$0xf] }
 0x25d   :  { %v3283_v45 = vpop.f32.mrf.mxu3  ;;  %v3198_v22 = vpop.f32.mrf.mxu0  ;;  %v8635_v16 = vld [vmem:[#allocation8 + $0x5f4] sm:$0xf0] }
 0x25e   :  { %v3255_v20 = vadd.f32 %v3254_v38, %v3226_v9  ;;  %v3199_v33 = vadd.f32 %v3198_v22, %v9757_v28  ;;  %v6622_v28 = vld [vmem:[#allocation8 + $0x1d8] sm:$0xf]  ;;  %v6879_v9 = vor.u32 %v8571_v55, %v6878_v19  ;;  %v7135_v38 = vor.u32 %v8635_v16, %v7134_v18 }
 0x25f   :  { %v6623_v12 = vor.u32 %v8507_v13, %v6622_v28  ;;  %v7102_v28 = vld [vmem:[#allocation8 + $0x598] sm:$0xf] }
 0x260   :  { %v9794_v17 = vadd.f32 %v3283_v45, %v3255_v20  ;;  %v7390_v20 = vld [vmem:[#allocation8 + $0x7d8] sm:$0xf]  ;;  %3665 = vmatpush.bf16.msrb.mxu1 %v6879_v9  ;;  %3694 = vmatpush.bf16.msrb.mxu2 %v7135_v38 }
 0x261   :  { %v3256_v48 = vpop.f32.mrf.mxu2  ;;  %v8699_v45 = vld [vmem:[#allocation8 + $0x7f4] sm:$0xf0]  ;;  %3636 = vmatpush.bf16.msrb.mxu0 %v6623_v12 }
 0x262   :  { %11390 = vst [vmem:[#allocation52_spill] sm:$0xff] %v9794_v17  ;;  %3528 = vmatmul.bf16.vlgmr.msra.gmra.mxu0 %v9418_v42  ;;  %3557 = vmatmul.bf16.vlgmr.msra.gmra.mxu1 %v9420_v43  ;;  %v7391_v22 = vor.u32 %v8699_v45, %v7390_v20  ;;  %v8627_v13 = vld [vmem:[#allocation8 + $0x5b4] sm:$0xf0] }
 0x263   :  { %v3227_v53 = vpop.f32.mrf.mxu1  ;;  %3586 = vmatmul.bf16.vlgmr.msra.gmra.mxu2 %v9462_v0  ;;  %v7103_v12 = vor.u32 %v8627_v13, %v7102_v28  ;;  %v7358_v16 = vld [vmem:[#allocation8 + $0x798] sm:$0xf] }
 0x264   :  { %v3228_v44 = vadd.f32 %v3227_v53, %v3199_v33  ;;  %v6590_v53 = vld [vmem:[#allocation8 + $0x198] sm:$0xf]  ;;  %3723 = vmatpush.bf16.msrb.mxu3 %v7391_v22 }
 0x265   :  { %v3285_v15 = vpop.f32.mrf.mxu3  ;;  %v3297_v52 = vpop.f32.mrf.mxu0  ;;  %3615 = vmatmul.bf16.vlgmr.msra.gmra.mxu3 %v9464_v1  ;;  %v8691_v20 = vld [vmem:[#allocation8 + $0x7b4] sm:$0xf0]  ;;  %3695 = vmatpush.bf16.msrb.mxu2 %v7103_v12 }
 0x266   :  { %v3257_v11 = vadd.f32 %v3256_v48, %v3228_v44  ;;  %v3298_v8 = vadd.f32 %v3297_v52, %v9799_v2  ;;  %v8499_v44 = vld [vmem:[#allocation8 + $0x1b4] sm:$0xf0]  ;;  %v7359_v38 = vor.u32 %v8691_v20, %v7358_v16 }
 0x267   :  { %v6846_v48 = vld [vmem:[#allocation8 + $0x398] sm:$0xf] }
 0x268   :  { %v9802_v37 = vadd.f32 %v3285_v15, %v3257_v11  ;;  %v8491_v22 = vld [vmem:[#allocation8 + $0x174] sm:$0xf0]  ;;  %3724 = vmatpush.bf16.msrb.mxu3 %v7359_v38 }
 0x269   :  { %v3355_v33 = vpop.f32.mrf.mxu2  ;;  %v8683_v28 = vld [vmem:[#allocation8 + $0x774] sm:$0xf0] }
 0x26a   :  { %11391 = vst [vmem:[#allocation53_spill] sm:$0xff] %v9802_v37  ;;  %v7070_v37 = vld [vmem:[#allocation8 + $0x558] sm:$0xf] }
 0x26b   :  { %v3326_v14 = vpop.f32.mrf.mxu1  ;;  %v8483_v13 = vld [vmem:[#allocation8 + $0x134] sm:$0xf0] }
 0x26c   :  { %v3327_v6 = vadd.f32 %v3326_v14, %v3298_v8  ;;  %v6591_v8 = vor.u32 %v8499_v44, %v6590_v53  ;;  %v8563_v14 = vld [vmem:[#allocation8 + $0x3b4] sm:$0xf0] }
 0x26d   :  { %v3384_v15 = vpop.f32.mrf.mxu3  ;;  %v3299_v52 = vpop.f32.mrf.mxu0  ;;  %v6847_v18 = vor.u32 %v8563_v14, %v6846_v48  ;;  %v8555_v44 = vld [vmem:[#allocation8 + $0x374] sm:$0xf0] }
 0x26e   :  { %v3356_v11 = vadd.f32 %v3355_v33, %v3327_v6  ;;  %v3300_v19 = vadd.f32 %v3299_v52, %v9799_v2  ;;  %3637 = vmatpush.bf16.msrb.mxu0 %v6591_v8  ;;  %v6558_v6 = vld [vmem:[#allocation8 + $0x158] sm:$0xf] }
 0x26f   :  { %3666 = vmatpush.bf16.msrb.mxu1 %v6847_v18  ;;  %v6814_v33 = vld [vmem:[#allocation8 + $0x358] sm:$0xf]  ;;  %v6559_v53 = vor.u32 %v8491_v22, %v6558_v6 }
 0x270   :  { %v9809_v9 = vadd.f32 %v3384_v15, %v3356_v11  ;;  %v8619_v52 = vld [vmem:[#allocation8 + $0x574] sm:$0xf0]  ;;  %v6815_v17 = vor.u32 %v8555_v44, %v6814_v33 }
 0x271   :  { %v7071_v48 = vor.u32 %v8619_v52, %v7070_v37  ;;  %v7326_v14 = vld [vmem:[#allocation8 + $0x758] sm:$0xf]  ;;  %v3357_v15 = vpop.f32.mrf.mxu2 }
 0x272   :  { %3638 = vmatpush.bf16.msrb.mxu0 %v6559_v53  ;;  %v7327_v11 = vor.u32 %v8683_v28, %v7326_v14  ;;  %v6526_v8 = vld [vmem:[#allocation8 + $0x118] sm:$0xf]  ;;  %3562 = vmatmul.bf16.gmra.mxu1 %v9432_v35 }
 0x273   :  { %v3328_v55 = vpop.f32.mrf.mxu1  ;;  %3667 = vmatpush.bf16.msrb.mxu1 %v6815_v17  ;;  %3696 = vmatpush.bf16.msrb.mxu2 %v7071_v48  ;;  %v6527_v16 = vor.u32 %v8483_v13, %v6526_v8  ;;  %v8547_v20 = vld [vmem:[#allocation8 + $0x334] sm:$0xf0] }
 0x274   :  { %v3329_v45 = vadd.f32 %v3328_v55, %v3300_v19  ;;  %v6782_v19 = vld [vmem:[#allocation8 + $0x318] sm:$0xf]  ;;  %3725 = vmatpush.bf16.msrb.mxu3 %v7327_v11  ;;  %3533 = vmatmul.bf16.gmra.mxu0 %v9430_v32 }
 0x275   :  { %v3386_v18 = vpop.f32.mrf.mxu3  ;;  %v3302_v12 = vpop.f32.mrf.mxu0  ;;  %v7038_v38 = vld [vmem:[#allocation8 + $0x518] sm:$0xf]  ;;  %v6783_v33 = vor.u32 %v8547_v20, %v6782_v19  ;;  %3591 = vmatmul.bf16.gmra.mxu2 %v9470_v3  ;;  %3620 = vmatmul.bf16.gmra.mxu3 %v9472_v7 }
 0x276   :  { %v3358_v55 = vadd.f32 %v3357_v15, %v3329_v45  ;;  %v8611_v6 = vld [vmem:[#allocation8 + $0x534] sm:$0xf0]  ;;  %v3303_v37 = vadd.f32 %v3302_v12, %v9799_v2  ;;  %3639 = vmatpush.bf16.msrb.mxu0 %v6527_v16 }
 0x277   :  { %v7039_v53 = vor.u32 %v8611_v6, %v7038_v38  ;;  %v7294_v44 = vld [vmem:[#allocation8 + $0x718] sm:$0xf]  ;;  %3668 = vmatpush.bf16.msrb.mxu1 %v6783_v33 }
 0x278   :  { %v8675_v52 = vld [vmem:[#allocation8 + $0x734] sm:$0xf0]  ;;  %v9812_v17 = vadd.f32 %v3386_v18, %v3358_v55 }
 0x279   :  { %v7295_v48 = vor.u32 %v8675_v52, %v7294_v44  ;;  %v6494_v45 = vld [vmem:[#allocation8 + $0xd8] sm:$0xf]  ;;  %3697 = vmatpush.bf16.msrb.mxu2 %v7039_v53  ;;  %v3360_v38 = vpop.f32.mrf.mxu2 }
 0x27a   :  { %v8475_v28 = vld [vmem:[#allocation8 + $0xf4] sm:$0xf0] }
 0x27b   :  { %v3331_v22 = vpop.f32.mrf.mxu1  ;;  %v6750_v11 = vld [vmem:[#allocation8 + $0x2d8] sm:$0xf]  ;;  %v6495_v15 = vor.u32 %v8475_v28, %v6494_v45  ;;  %3726 = vmatpush.bf16.msrb.mxu3 %v7295_v48  ;;  %v6975_v48 = vor.u32 %v8595_v49, %v6974_v54 }
 0x27c   :  { %v3332_v14 = vadd.f32 %v3331_v22, %v3303_v37  ;;  %v8539_v8 = vld [vmem:[#allocation8 + $0x2f4] sm:$0xf0] }
 0x27d   :  { %v7006_v13 = vld [vmem:[#allocation8 + $0x4d8] sm:$0xf]  ;;  %v6751_v55 = vor.u32 %v8539_v8, %v6750_v11  ;;  %3640 = vmatpush.bf16.msrb.mxu0 %v6495_v15  ;;  %v3389_v44 = vpop.f32.mrf.mxu3  ;;  %v3304_v52 = vpop.f32.mrf.mxu0 }
 0x27e   :  { %v8603_v19 = vld [vmem:[#allocation8 + $0x4f4] sm:$0xf0]  ;;  %v3361_v33 = vadd.f32 %v3360_v38, %v3332_v14  ;;  %v3305_v53 = vadd.f32 %v3304_v52, %v9799_v2 }
 0x27f   :  { %v7007_v18 = vor.u32 %v8603_v19, %v7006_v13  ;;  %v7262_v12 = vld [vmem:[#allocation8 + $0x6d8] sm:$0xf]  ;;  %3669 = vmatpush.bf16.msrb.mxu1 %v6751_v55 }
 0x280   :  { %v8667_v16 = vld [vmem:[#allocation8 + $0x6f4] sm:$0xf0]  ;;  %v9819_v19 = vadd.f32 %v3389_v44, %v3361_v33 }
 0x281   :  { %v7263_v20 = vor.u32 %v8667_v16, %v7262_v12  ;;  %v6462_v6 = vld [vmem:[#allocation8 + $0x98] sm:$0xf]  ;;  %3698 = vmatpush.bf16.msrb.mxu2 %v7007_v18 }
 0x282   :  { %v8467_v37 = vld [vmem:[#allocation8 + $0xb4] sm:$0xf0]  ;;  %3567 = vmatmul.bf16.gmra.mxu1 %v9444_v39 }
 0x283   :  { %v6718_v22 = vld [vmem:[#allocation8 + $0x298] sm:$0xf]  ;;  %v6463_v45 = vor.u32 %v8467_v37, %v6462_v6  ;;  %v3333_v11 = vpop.f32.mrf.mxu1  ;;  %3727 = vmatpush.bf16.msrb.mxu3 %v7263_v20  ;;  %v3362_v20 = vpop.f32.mrf.mxu2 }
 0x284   :  { %v8531_v28 = vld [vmem:[#allocation8 + $0x2b4] sm:$0xf0]  ;;  %v3334_v14 = vadd.f32 %v3333_v11, %v3305_v53  ;;  %3538 = vmatmul.bf16.gmra.mxu0 %v9442_v36 }
 0x285   :  { %v6719_v8 = vor.u32 %v8531_v28, %v6718_v22  ;;  %v7230_v15 = vld [vmem:[#allocation8 + $0x698] sm:$0xf]  ;;  %3641 = vmatpush.bf16.msrb.mxu0 %v6463_v45  ;;  %3699 = vmatpush.bf16.msrb.mxu2 %v6975_v48  ;;  %v3391_v11 = vpop.f32.mrf.mxu3 }
 0x286   :  { %v8659_v13 = vld [vmem:[#allocation8 + $0x6b4] sm:$0xf0]  ;;  %v3363_v53 = vadd.f32 %v3362_v20, %v3334_v14  ;;  %3596 = vmatmul.bf16.gmra.mxu2 %v9478_v5  ;;  %3625 = vmatmul.bf16.gmra.mxu3 %v9480_v10 }
 0x287   :  { %v7231_v55 = vor.u32 %v8659_v13, %v7230_v15  ;;  %3670 = vmatpush.bf16.msrb.mxu1 %v6719_v8  ;;  %v6430_v12 = vld [vmem:[#allocation8 + $0x58] sm:$0xf]  ;;  %v3307_v8 = vpop.f32.mrf.mxu0 }
 0x288   :  { %v8459_v16 = vld [vmem:[#allocation8 + $0x74] sm:$0xf0]  ;;  %v3308_v48 = vadd.f32 %v3307_v8, %v9799_v2 }
 0x289   :  { %v6686_v38 = vld [vmem:[#allocation8 + $0x258] sm:$0xf]  ;;  %v6431_v6 = vor.u32 %v8459_v16, %v6430_v12  ;;  %3728 = vmatpush.bf16.msrb.mxu3 %v7231_v55 }
 0x28a   :  { %v8523_v37 = vld [vmem:[#allocation8 + $0x274] sm:$0xf0] }
 0x28b   :  { %v8587_v52 = vld [vmem:[#allocation8 + $0x474] sm:$0xf0]  ;;  %v6687_v18 = vor.u32 %v8523_v37, %v6686_v38  ;;  %3642 = vmatpush.bf16.msrb.mxu0 %v6431_v6 }
 0x28c   :  { %v6943_v22 = vor.u32 %v8587_v52, %v6942_v46  ;;  %v7198_v49 = vld [vmem:[#allocation8 + $0x658] sm:$0xf]  ;;  %v3336_v46 = vpop.f32.mrf.mxu1  ;;  %v9822_v52 = vadd.f32 %v3391_v11, %v3363_v53 }
 0x28d   :  { %v8651_v54 = vld [vmem:[#allocation8 + $0x674] sm:$0xf0]  ;;  %3671 = vmatpush.bf16.msrb.mxu1 %v6687_v18  ;;  %v3337_v14 = vadd.f32 %v3336_v46, %v3308_v48 }
 0x28e   :  { %v7199_v33 = vor.u32 %v8651_v54, %v7198_v49  ;;  %v6398_v44 = vld [vmem:[#allocation8 + $0x18] sm:$0xf]  ;;  %3700 = vmatpush.bf16.msrb.mxu2 %v6943_v22  ;;  %v3365_v22 = vpop.f32.mrf.mxu2  ;;  %v3394_v54 = vpop.f32.mrf.mxu3 }
 0x28f   :  { %v8451_v45 = vld [vmem:[#allocation8 + $0x34] sm:$0xf0]  ;;  %v3366_v49 = vadd.f32 %v3365_v22, %v3337_v14  ;;  %v3309_v20 = vpop.f32.mrf.mxu0 }
 0x290   :  { %v6654_v28 = vld [vmem:[#allocation8 + $0x218] sm:$0xf]  ;;  %v6399_v15 = vor.u32 %v8451_v45, %v6398_v44  ;;  %3729 = vmatpush.bf16.msrb.mxu3 %v7199_v33  ;;  %v3310_v33 = vadd.f32 %v3309_v20, %v9799_v2 }
 0x291   :  { %v8515_v13 = vld [vmem:[#allocation8 + $0x234] sm:$0xf0]  ;;  %v9829_v45 = vadd.f32 %v3394_v54, %v3366_v49 }
 0x292   :  { %v6910_v12 = vld [vmem:[#allocation8 + $0x418] sm:$0xf]  ;;  %v6655_v38 = vor.u32 %v8515_v13, %v6654_v28  ;;  %3643 = vmatpush.bf16.msrb.mxu0 %v6399_v15  ;;  %3572 = vmatmul.bf16.gmra.mxu1 %v9456_v59 }
 0x293   :  { %v8579_v16 = vld [vmem:[#allocation8 + $0x434] sm:$0xf0] }
 0x294   :  { %v6911_v55 = vor.u32 %v8579_v16, %v6910_v12  ;;  %v7166_v6 = vld [vmem:[#allocation8 + $0x618] sm:$0xf]  ;;  %3672 = vmatpush.bf16.msrb.mxu1 %v6655_v38  ;;  %v3338_v44 = vpop.f32.mrf.mxu1  ;;  %3543 = vmatmul.bf16.gmra.mxu0 %v9454_v58 }
 0x295   :  { %v8643_v37 = vld [vmem:[#allocation8 + $0x634] sm:$0xf0]  ;;  %v3339_v28 = vadd.f32 %v3338_v44, %v3310_v33 }
 0x296   :  { %v7167_v18 = vor.u32 %v8643_v37, %v7166_v6  ;;  %3701 = vmatpush.bf16.msrb.mxu2 %v6911_v55  ;;  %v3367_v53 = vpop.f32.mrf.mxu2  ;;  %v3396_v8 = vpop.f32.mrf.mxu3  ;;  %3630 = vmatmul.bf16.gmra.mxu3 %v9488_v25 }
 0x297   :  { %v3368_v11 = vadd.f32 %v3367_v53, %v3339_v28  ;;  %v3312_v15 = vpop.f32.mrf.mxu0  ;;  %3601 = vmatmul.bf16.gmra.mxu2 %v9486_v24 }
 0x298   :  { %3730 = vmatpush.bf16.msrb.mxu3 %v7167_v18  ;;  %v3313_v13 = vadd.f32 %v3312_v15, %v9799_v2  ;;  %v8763_v15 = vld [vmem:[#allocation8 + $0x9f4] sm:$0xf0] }
 0x299   :  { %v9832_v16 = vadd.f32 %v3396_v8, %v3368_v11  ;;  %v9845_v11 = vperm.slane %v9796_v47, 5 }
 0x29c   :  { %v3341_v12 = vpop.f32.mrf.mxu1 }
 0x29d   :  { %v3342_v48 = vadd.f32 %v3341_v12, %v3313_v13  ;;  %v7902_v13 = vld [vmem:[#allocation8 + $0xbd8] sm:$0xf] }
 0x29e   :  { %v3370_v46 = vpop.f32.mrf.mxu2  ;;  %v3399_v55 = vpop.f32.mrf.mxu3 }
 0x29f   :  { %v3371_v38 = vadd.f32 %v3370_v46, %v3342_v48  ;;  %v3314_v6 = vpop.f32.mrf.mxu0  ;;  %v8827_v48 = vld [vmem:[#allocation8 + $0xbf4] sm:$0xf0]  ;;  %v6624_v46 = vld [vmem:[#allocation8 + $0x1f8] sm:$0xf0] }
 0x2a0   :  { %v3315_v37 = vadd.f32 %v3314_v6, %v9799_v2  ;;  %v7646_v2 = vld [vmem:[#allocation8 + $0x9d8] sm:$0xf]  ;;  %v6880_v6 = vld [vmem:[#allocation8 + $0x3f8] sm:$0xf0] }
 0x2a1   :  { %v9839_v14 = vadd.f32 %v3399_v55, %v3371_v38  ;;  %v7647_v12 = vor.u32 %v8763_v15, %v7646_v2  ;;  %v7903_v38 = vor.u32 %v8827_v48, %v7902_v13  ;;  %v8567_v55 = vld [vmem:[#allocation8 + $0x3dc] sm:$0xf]  ;;  %v8819_v2 = vld [vmem:[#allocation8 + $0xbb4] sm:$0xf0] }
 0x2a2   :  { %3673 = vmatmul.bf16.vlgmr.msrb.gmra.mxu1 %v9416_v41  ;;  %v8495_v15 = vld [vmem:[#allocation8 + $0x19c] sm:$0xf] }
 0x2a3   :  { %3752 = vmatpush.bf16.msra.mxu0 %v7647_v12  ;;  %3781 = vmatpush.bf16.msra.mxu1 %v7903_v38  ;;  %v6592_v13 = vld [vmem:[#allocation8 + $0x1b8] sm:$0xf0] }
 0x2a4   :  { %v3343_v18 = vpop.f32.mrf.mxu1  ;;  %3644 = vmatmul.bf16.vlgmr.msrb.gmra.mxu0 %v9414_v40  ;;  %v6848_v38 = vld [vmem:[#allocation8 + $0x3b8] sm:$0xf0] }
 0x2a5   :  { %v3344_v22 = vadd.f32 %v3343_v18, %v3315_v37  ;;  %v6883_v37 = vor.u32 %v8567_v55, %v6880_v6  ;;  %v8559_v55 = vld [vmem:[#allocation8 + $0x39c] sm:$0xf] }
 0x2a6   :  { %v3372_v49 = vpop.f32.mrf.mxu2  ;;  %v3401_v20 = vpop.f32.mrf.mxu3  ;;  %3731 = vmatmul.bf16.vlgmr.msrb.gmra.mxu3 %v9420_v43  ;;  %v6851_v6 = vor.u32 %v8559_v55, %v6848_v38 }
 0x2a7   :  { %v3373_v54 = vadd.f32 %v3372_v49, %v3344_v22  ;;  %v3413_v33 = vpop.f32.mrf.mxu0  ;;  %3702 = vmatmul.bf16.vlgmr.msrb.gmra.mxu2 %v9418_v42  ;;  %v7614_v22 = vld [vmem:[#allocation8 + $0x998] sm:$0xf]  ;;  %3839 = vmatpush.bf16.msra.mxu3 %v6883_v37 }
 0x2a8   :  { %v3414_v44 = vadd.f32 %v3413_v33, %v9809_v9  ;;  %v8503_v9 = vld [vmem:[#allocation8 + $0x1dc] sm:$0xf]  ;;  %v8755_v49 = vld [vmem:[#allocation8 + $0x9b4] sm:$0xf0] }
 0x2a9   :  { %v9842_v53 = vadd.f32 %v3401_v20, %v3373_v54  ;;  %v6627_v47 = vor.u32 %v8503_v9, %v6624_v46  ;;  %v7870_v54 = vld [vmem:[#allocation8 + $0xb98] sm:$0xf]  ;;  %v6595_v46 = vor.u32 %v8495_v15, %v6592_v13  ;;  %v8551_v15 = vld [vmem:[#allocation8 + $0x35c] sm:$0xf] }
 0x2aa   :  { %v7871_v12 = vor.u32 %v8819_v2, %v7870_v54  ;;  %v7582_v37 = vld [vmem:[#allocation8 + $0x958] sm:$0xf]  ;;  %v6816_v13 = vld [vmem:[#allocation8 + $0x378] sm:$0xf0] }
 0x2ab   :  { %3810 = vmatpush.bf16.msra.mxu2 %v6627_v47  ;;  %3840 = vmatpush.bf16.msra.mxu3 %v6851_v6  ;;  %v8803_v6 = vld [vmem:[#allocation8 + $0xb34] sm:$0xf0] }
 0x2ac   :  { %v3442_v28 = vpop.f32.mrf.mxu1  ;;  %3782 = vmatpush.bf16.msra.mxu1 %v7871_v12 }
 0x2ad   :  { %v9847_v8 = vadd.f32 %v3442_v28, %v3414_v44  ;;  %v7615_v28 = vor.u32 %v8755_v49, %v7614_v22  ;;  %v7838_v22 = vld [vmem:[#allocation8 + $0xb58] sm:$0xf] }
 0x2ae   :  { %v3471_v18 = vpop.f32.mrf.mxu2  ;;  %v3500_v33 = vpop.f32.mrf.mxu3  ;;  %v7839_v54 = vor.u32 %v8811_v4, %v7838_v22  ;;  %v6528_v4 = vld [vmem:[#allocation8 + $0x138] sm:$0xf0] }
 0x2af   :  { %11392 = vst [vmem:[#allocation54_spill] sm:$0xff] %v9847_v8  ;;  %v3472_v20 = vadd.f32 %v3471_v18, %v9845_v11  ;;  %v3415_v44 = vpop.f32.mrf.mxu0  ;;  %3753 = vmatpush.bf16.msra.mxu0 %v7615_v28  ;;  %3811 = vmatpush.bf16.msra.mxu2 %v6595_v46  ;;  %v8747_v18 = vld [vmem:[#allocation8 + $0x974] sm:$0xf0] }
 0x2b0   :  { %v3416_v48 = vadd.f32 %v3415_v44, %v9812_v17  ;;  %v7583_v49 = vor.u32 %v8747_v18, %v7582_v37  ;;  %v8487_v17 = vld [vmem:[#allocation8 + $0x15c] sm:$0xf]  ;;  %3783 = vmatpush.bf16.msra.mxu1 %v7839_v54  ;;  %v7550_v28 = vld [vmem:[#allocation8 + $0x918] sm:$0xf] }
 0x2b1   :  { %v9855_v47 = vadd.f32 %v3500_v33, %v3472_v20  ;;  %v6560_v44 = vld [vmem:[#allocation8 + $0x178] sm:$0xf0]  ;;  %v6819_v20 = vor.u32 %v8551_v15, %v6816_v13  ;;  %v8779_v8 = vld [vmem:[#allocation8 + $0xa74] sm:$0xf0] }
 0x2b2   :  { %v6563_v2 = vor.u32 %v8487_v17, %v6560_v44  ;;  %v8479_v37 = vld [vmem:[#allocation8 + $0x11c] sm:$0xf]  ;;  %3678 = vmatmul.bf16.gmra.mxu1 %v9428_v31 }
 0x2b3   :  { %3754 = vmatpush.bf16.msra.mxu0 %v7583_v49  ;;  %3841 = vmatpush.bf16.msra.mxu3 %v6819_v20  ;;  %v6531_v17 = vor.u32 %v8479_v37, %v6528_v4  ;;  %v8543_v44 = vld [vmem:[#allocation8 + $0x31c] sm:$0xf]  ;;  %v7518_v20 = vld [vmem:[#allocation8 + $0x8d8] sm:$0xf] }
 0x2b4   :  { %v3444_v9 = vpop.f32.mrf.mxu1  ;;  %3812 = vmatpush.bf16.msra.mxu2 %v6563_v2  ;;  %v6784_v54 = vld [vmem:[#allocation8 + $0x338] sm:$0xf0]  ;;  %3649 = vmatmul.bf16.gmra.mxu0 %v9426_v27 }
 0x2b5   :  { %v9857_v50 = vadd.f32 %v3444_v9, %v3416_v48  ;;  %v8739_v48 = vld [vmem:[#allocation8 + $0x934] sm:$0xf0]  ;;  %v6787_v15 = vor.u32 %v8543_v44, %v6784_v54 }
 0x2b6   :  { %v3473_v33 = vpop.f32.mrf.mxu2  ;;  %v7806_v9 = vld [vmem:[#allocation8 + $0xb18] sm:$0xf]  ;;  %v3502_v46 = vpop.f32.mrf.mxu3  ;;  %v7551_v38 = vor.u32 %v8739_v48, %v7550_v28  ;;  %3736 = vmatmul.bf16.gmra.mxu3 %v9432_v35 }
 0x2b7   :  { %11393 = vst [vmem:[#allocation55_spill] sm:$0xff] %v9857_v50  ;;  %v3474_v12 = vadd.f32 %v3473_v33, %v9845_v11  ;;  %v3418_v55 = vpop.f32.mrf.mxu0  ;;  %v7807_v49 = vor.u32 %v8803_v6, %v7806_v9  ;;  %v8731_v33 = vld [vmem:[#allocation8 + $0x8f4] sm:$0xf0]  ;;  %3707 = vmatmul.bf16.gmra.mxu2 %v9430_v32  ;;  %v8471_v9 = vld [vmem:[#allocation8 + $0xdc] sm:$0xf]  ;;  %3842 = vmatpush.bf16.msra.mxu3 %v6787_v15 }
 0x2b8   :  { %v3419_v18 = vadd.f32 %v3418_v55, %v9819_v19  ;;  %3755 = vmatpush.bf16.msra.mxu0 %v7551_v38  ;;  %v7774_v28 = vld [vmem:[#allocation8 + $0xad8] sm:$0xf]  ;;  %v7519_v19 = vor.u32 %v8731_v33, %v7518_v20  ;;  %v6496_v55 = vld [vmem:[#allocation8 + $0xf8] sm:$0xf0]  ;;  %3813 = vmatpush.bf16.msra.mxu2 %v6531_v17 }
 0x2b9   :  { %v9861_v2 = vadd.f32 %v3502_v46, %v3474_v12  ;;  %3784 = vmatpush.bf16.msra.mxu1 %v7807_v49  ;;  %v8795_v48 = vld [vmem:[#allocation8 + $0xaf4] sm:$0xf0]  ;;  %v6499_v46 = vor.u32 %v8471_v9, %v6496_v55  ;;  %v8535_v38 = vld [vmem:[#allocation8 + $0x2dc] sm:$0xf] }
 0x2ba   :  { %v7775_v12 = vor.u32 %v8795_v48, %v7774_v28  ;;  %v6752_v6 = vld [vmem:[#allocation8 + $0x2f8] sm:$0xf0]  ;;  %v7742_v49 = vld [vmem:[#allocation8 + $0xa98] sm:$0xf] }
 0x2bb   :  { %v6755_v37 = vor.u32 %v8535_v38, %v6752_v6  ;;  %v6464_v17 = vld [vmem:[#allocation8 + $0xb8] sm:$0xf0] }
 0x2bc   :  { %v3447_v22 = vpop.f32.mrf.mxu1  ;;  %3756 = vmatpush.bf16.msra.mxu0 %v7519_v19  ;;  %3814 = vmatpush.bf16.msra.mxu2 %v6499_v46  ;;  %v6467_v19 = vor.u32 %v8463_v23, %v6464_v17  ;;  %v8527_v9 = vld [vmem:[#allocation8 + $0x29c] sm:$0xf]  ;;  %v7678_v17 = vld [vmem:[#allocation8 + $0xa18] sm:$0xf] }
 0x2bd   :  { %v9863_v13 = vadd.f32 %v3447_v22, %v3419_v18  ;;  %3785 = vmatpush.bf16.msra.mxu1 %v7775_v12  ;;  %v7486_v18 = vld [vmem:[#allocation8 + $0x898] sm:$0xf]  ;;  %v6720_v55 = vld [vmem:[#allocation8 + $0x2b8] sm:$0xf0]  ;;  %3843 = vmatpush.bf16.msra.mxu3 %v6755_v37 }
 0x2be   :  { %v3476_v4 = vpop.f32.mrf.mxu2  ;;  %v8723_v22 = vld [vmem:[#allocation8 + $0x8b4] sm:$0xf0]  ;;  %v3505_v54 = vpop.f32.mrf.mxu3  ;;  %v6723_v38 = vor.u32 %v8527_v9, %v6720_v55  ;;  %v8519_v46 = vld [vmem:[#allocation8 + $0x25c] sm:$0xf] }
 0x2bf   :  { %11394 = vst [vmem:[#allocation56_spill] sm:$0xff] %v9863_v13  ;;  %v3477_v44 = vadd.f32 %v3476_v4, %v9845_v11  ;;  %v3420_v20 = vpop.f32.mrf.mxu0  ;;  %v7487_v33 = vor.u32 %v8723_v22, %v7486_v18  ;;  %v8787_v13 = vld [vmem:[#allocation8 + $0xab4] sm:$0xf0] }
 0x2c0   :  { %v3421_v28 = vadd.f32 %v3420_v20, %v9822_v52  ;;  %v7743_v15 = vor.u32 %v8787_v13, %v7742_v49  ;;  %v7454_v4 = vld [vmem:[#allocation8 + $0x858] sm:$0xf]  ;;  %v8455_v52 = vld [vmem:[#allocation8 + $0x5c] sm:$0xf]  ;;  %3815 = vmatpush.bf16.msra.mxu2 %v6467_v19 }
 0x2c1   :  { %v9871_v12 = vadd.f32 %v3505_v54, %v3477_v44  ;;  %3757 = vmatpush.bf16.msra.mxu0 %v7487_v33  ;;  %v8715_v18 = vld [vmem:[#allocation8 + $0x874] sm:$0xf0]  ;;  %v6432_v20 = vld [vmem:[#allocation8 + $0x78] sm:$0xf0]  ;;  %3844 = vmatpush.bf16.msra.mxu3 %v6723_v38 }
 0x2c2   :  { %3786 = vmatpush.bf16.msra.mxu1 %v7743_v15  ;;  %v7710_v22 = vld [vmem:[#allocation8 + $0xa58] sm:$0xf]  ;;  %v7455_v50 = vor.u32 %v8715_v18, %v7454_v4  ;;  %v6435_v23 = vor.u32 %v8455_v52, %v6432_v20  ;;  %v6688_v49 = vld [vmem:[#allocation8 + $0x278] sm:$0xf0] }
 0x2c3   :  { %v7711_v13 = vor.u32 %v8779_v8, %v7710_v22  ;;  %v6691_v37 = vor.u32 %v8519_v46, %v6688_v49  ;;  %v7422_v54 = vld [vmem:[#allocation8 + $0x818] sm:$0xf]  ;;  %v8447_v4 = vld [vmem:[#allocation8 + $0x1c] sm:$0xf]  ;;  %3683 = vmatmul.bf16.gmra.mxu1 %v9440_v34 }
 0x2c4   :  { %v3449_v48 = vpop.f32.mrf.mxu1  ;;  %v8707_v33 = vld [vmem:[#allocation8 + $0x834] sm:$0xf0]  ;;  %v6400_v19 = vld [vmem:[#allocation8 + $0x38] sm:$0xf0]  ;;  %3816 = vmatpush.bf16.msra.mxu2 %v6435_v23  ;;  %3654 = vmatmul.bf16.gmra.mxu0 %v9438_v26 }
 0x2c5   :  { %v9873_v6 = vadd.f32 %v3449_v48, %v3421_v28  ;;  %3758 = vmatpush.bf16.msra.mxu0 %v7455_v50  ;;  %v7423_v9 = vor.u32 %v8707_v33, %v7422_v54  ;;  %v8771_v55 = vld [vmem:[#allocation8 + $0xa34] sm:$0xf0]  ;;  %v6403_v50 = vor.u32 %v8447_v4, %v6400_v19  ;;  %v8511_v22 = vld [vmem:[#allocation8 + $0x21c] sm:$0xf]  ;;  %3845 = vmatpush.bf16.msra.mxu3 %v6691_v37 }
 0x2c6   :  { %v3478_v44 = vpop.f32.mrf.mxu2  ;;  %3787 = vmatpush.bf16.msra.mxu1 %v7711_v13  ;;  %v3507_v48 = vpop.f32.mrf.mxu3  ;;  %v7679_v38 = vor.u32 %v8771_v55, %v7678_v17  ;;  %v6656_v52 = vld [vmem:[#allocation8 + $0x238] sm:$0xf0]  ;;  %3741 = vmatmul.bf16.gmra.mxu3 %v9444_v39 }
 0x2c7   :  { %11395 = vst [vmem:[#allocation57_spill] sm:$0xff] %v9873_v6  ;;  %v3479_v28 = vadd.f32 %v3478_v44, %v9845_v11  ;;  %v3423_v15 = vpop.f32.mrf.mxu0  ;;  %v6659_v13 = vor.u32 %v8511_v22, %v6656_v52  ;;  %3712 = vmatmul.bf16.gmra.mxu2 %v9442_v36 }
 0x2c8   :  { %v3424_v8 = vadd.f32 %v3423_v15, %v9829_v45  ;;  %3817 = vmatpush.bf16.msra.mxu2 %v6403_v50 }
 0x2c9   :  { %v9877_v20 = vadd.f32 %v3507_v48, %v3479_v28  ;;  %3759 = vmatpush.bf16.msra.mxu0 %v7423_v9  ;;  %3846 = vmatpush.bf16.msra.mxu3 %v6659_v13 }
 0x2ca   :  { %3788 = vmatpush.bf16.msra.mxu1 %v7679_v38 }
 0x2cc   :  { %v3452_v18 = vpop.f32.mrf.mxu1 }
 0x2cd   :  { %v9879_v46 = vadd.f32 %v3452_v18, %v3424_v8 }
 0x2ce   :  { %v3481_v45 = vpop.f32.mrf.mxu2  ;;  %v3510_v49 = vpop.f32.mrf.mxu3 }
 0x2cf   :  { %11396 = vst [vmem:[#allocation58_spill] sm:$0xff] %v9879_v46  ;;  %v3482_v23 = vadd.f32 %v3481_v45, %v9845_v11  ;;  %v3425_v37 = vpop.f32.mrf.mxu0  ;;  %v8230_v46 = vld [vmem:[#allocation11 + $0x280] sm:$0xf] }
 0x2d0   :  { %v3426_v44 = vadd.f32 %v3425_v37, %v9832_v16 }
 0x2d1   :  { %v9887_v33 = vadd.f32 %v3510_v49, %v3482_v23 }
 0x2d3   :  { %3688 = vmatmul.bf16.gmra.mxu1 %v9452_v57 }
 0x2d4   :  { %v3454_v54 = vpop.f32.mrf.mxu1  ;;  %3659 = vmatmul.bf16.gmra.mxu0 %v9450_v56 }
 0x2d5   :  { %v9889_v17 = vadd.f32 %v3454_v54, %v3426_v44 }
 0x2d6   :  { %v3483_v28 = vpop.f32.mrf.mxu2  ;;  %v3512_v15 = vpop.f32.mrf.mxu3  ;;  %3746 = vmatmul.bf16.gmra.mxu3 %v9456_v59 }
 0x2d7   :  { %11397 = vst [vmem:[#allocation59_spill] sm:$0xff] %v9889_v17  ;;  %v3484_v48 = vadd.f32 %v3483_v28, %v9845_v11  ;;  %v3428_v9 = vpop.f32.mrf.mxu0  ;;  %3717 = vmatmul.bf16.gmra.mxu2 %v9454_v58 }
 0x2d8   :  { %v3429_v55 = vadd.f32 %v3428_v9, %v9839_v14  ;;  %v8695_v9 = vld [vmem:[#allocation8 + $0x7dc] sm:$0xf] }
 0x2d9   :  { %v9893_v19 = vadd.f32 %v3512_v15, %v3484_v48  ;;  %v8631_v15 = vld [vmem:[#allocation8 + $0x5dc] sm:$0xf] }
 0x2dc   :  { %v3457_v4 = vpop.f32.mrf.mxu1 }
 0x2dd   :  { %v9895_v8 = vadd.f32 %v3457_v4, %v3429_v55  ;;  %v7392_v4 = vld [vmem:[#allocation8 + $0x7f8] sm:$0xf0] }
 0x2de   :  { %v3486_v16 = vpop.f32.mrf.mxu2  ;;  %v3515_v38 = vpop.f32.mrf.mxu3 }
 0x2df   :  { %11398 = vst [vmem:[#allocation60_spill] sm:$0xff] %v9895_v8  ;;  %v3487_v18 = vadd.f32 %v3486_v16, %v9845_v11  ;;  %v3430_v50 = vpop.f32.mrf.mxu0  ;;  %v7648_v16 = vld [vmem:[#allocation8 + $0x9f8] sm:$0xf0]  ;;  %v8262_v8 = vld [vmem:[#allocation11 + $0x2c0] sm:$0xf] }
 0x2e0   :  { %v3431_v14 = vadd.f32 %v3430_v50, %v9842_v53  ;;  %v7136_v53 = vld [vmem:[#allocation8 + $0x5f8] sm:$0xf0] }
 0x2e1   :  { %v9903_v52 = vadd.f32 %v3515_v38, %v3487_v18  ;;  %v7139_v55 = vor.u32 %v8631_v15, %v7136_v53  ;;  %v8823_v38 = vld [vmem:[#allocation8 + $0xbdc] sm:$0xf] }
 0x2e2   :  { %v7904_v50 = vld [vmem:[#allocation8 + $0xbf8] sm:$0xf0] }
 0x2e3   :  { %3789 = vmatmul.bf16.vlgmr.msra.gmra.mxu1 %v9464_v1  ;;  %3868 = vmatpush.bf16.msrb.mxu0 %v7139_v55  ;;  %v7360_v15 = vld [vmem:[#allocation8 + $0x7b8] sm:$0xf0] }
 0x2e4   :  { %v3459_v22 = vpop.f32.mrf.mxu1  ;;  %3760 = vmatmul.bf16.vlgmr.msra.gmra.mxu0 %v9462_v0  ;;  %v8751_v53 = vld [vmem:[#allocation8 + $0x99c] sm:$0xf] }
 0x2e5   :  { %v9905_v13 = vadd.f32 %v3459_v22, %v3431_v14  ;;  %v7907_v14 = vor.u32 %v8823_v38, %v7904_v50  ;;  %v7872_v38 = vld [vmem:[#allocation8 + $0xbb8] sm:$0xf0] }
 0x2e6   :  { %v3488_v45 = vpop.f32.mrf.mxu2  ;;  %v3517_v49 = vpop.f32.mrf.mxu3  ;;  %3847 = vmatmul.bf16.vlgmr.msra.gmra.mxu3 %v9416_v41  ;;  %v7616_v41 = vld [vmem:[#allocation8 + $0x9b8] sm:$0xf0] }
 0x2e7   :  { %11399 = vst [vmem:[#allocation61_spill] sm:$0xff] %v9905_v13  ;;  %v3489_v23 = vadd.f32 %v3488_v45, %v9845_v11  ;;  %v3529_v37 = vpop.f32.mrf.mxu0  ;;  %3818 = vmatmul.bf16.vlgmr.msra.gmra.mxu2 %v9414_v40  ;;  %v8759_v11 = vld [vmem:[#allocation8 + $0x9dc] sm:$0xf]  ;;  %3955 = vmatpush.bf16.msrb.mxu3 %v7907_v14  ;;  %v7619_v55 = vor.u32 %v8751_v53, %v7616_v41 }
 0x2e8   :  { %v3530_v44 = vadd.f32 %v3529_v37, %v9855_v47  ;;  %v7395_v47 = vor.u32 %v8695_v9, %v7392_v4  ;;  %v7651_v18 = vor.u32 %v8759_v11, %v7648_v16  ;;  %v8623_v45 = vld [vmem:[#allocation8 + $0x59c] sm:$0xf] }
 0x2e9   :  { %v9909_v28 = vadd.f32 %v3517_v49, %v3489_v23  ;;  %v7104_v23 = vld [vmem:[#allocation8 + $0x5b8] sm:$0xf0] }
 0x2ea   :  { %3897 = vmatpush.bf16.msrb.mxu1 %v7395_v47  ;;  %3926 = vmatpush.bf16.msrb.mxu2 %v7651_v18  ;;  %v8687_v49 = vld [vmem:[#allocation8 + $0x79c] sm:$0xf] }
 0x2eb   :  { %v7363_v11 = vor.u32 %v8687_v49, %v7360_v15  ;;  %v8815_v16 = vld [vmem:[#allocation8 + $0xb9c] sm:$0xf] }
 0x2ec   :  { %v3558_v54 = vpop.f32.mrf.mxu1  ;;  %v7875_v18 = vor.u32 %v8815_v16, %v7872_v38  ;;  %v7072_v14 = vld [vmem:[#allocation8 + $0x578] sm:$0xf0] }
 0x2ed   :  { %v3559_v48 = vadd.f32 %v3558_v54, %v3530_v44  ;;  %v7107_v54 = vor.u32 %v8623_v45, %v7104_v23  ;;  %v7328_v23 = vld [vmem:[#allocation8 + $0x778] sm:$0xf0] }
 0x2ee   :  { %v3587_v22 = vpop.f32.mrf.mxu2  ;;  %v3616_v40 = vpop.f32.mrf.mxu3  ;;  %3898 = vmatpush.bf16.msrb.mxu1 %v7363_v11  ;;  %3927 = vmatpush.bf16.msrb.mxu2 %v7619_v55  ;;  %v8743_v13 = vld [vmem:[#allocation8 + $0x95c] sm:$0xf] }
 0x2ef   :  { %v3588_v37 = vadd.f32 %v3587_v22, %v3559_v48  ;;  %v3531_v44 = vpop.f32.mrf.mxu0  ;;  %3869 = vmatpush.bf16.msrb.mxu0 %v7107_v54  ;;  %v8615_v48 = vld [vmem:[#allocation8 + $0x55c] sm:$0xf]  ;;  %3956 = vmatpush.bf16.msrb.mxu3 %v7875_v18 }
 0x2f0   :  { %v3532_v9 = vadd.f32 %v3531_v44, %v9861_v2  ;;  %v8679_v22 = vld [vmem:[#allocation8 + $0x75c] sm:$0xf]  ;;  %v7075_v45 = vor.u32 %v8615_v48, %v7072_v14 }
 0x2f1   :  { %v9916_v47 = vadd.f32 %v3616_v40, %v3588_v37  ;;  %v7584_v2 = vld [vmem:[#allocation8 + $0x978] sm:$0xf0]  ;;  %v7331_v44 = vor.u32 %v8679_v22, %v7328_v23 }
 0x2f2   :  { %v7587_v49 = vor.u32 %v8743_v13, %v7584_v2  ;;  %v8807_v15 = vld [vmem:[#allocation8 + $0xb5c] sm:$0xf] }
 0x2f3   :  { %11400 = vst [vmem:[#allocation62_spill] sm:$0xff] %v9916_v47  ;;  %v7840_v53 = vld [vmem:[#allocation8 + $0xb78] sm:$0xf0]  ;;  %3870 = vmatpush.bf16.msrb.mxu0 %v7075_v45  ;;  %3899 = vmatpush.bf16.msrb.mxu1 %v7331_v44  ;;  %v8198_v47 = vld [vmem:[#allocation11 + $0x240] sm:$0xf] }
 0x2f4   :  { %v3560_v4 = vpop.f32.mrf.mxu1  ;;  %v7843_v37 = vor.u32 %v8807_v15, %v7840_v53  ;;  %3928 = vmatpush.bf16.msrb.mxu2 %v7587_v49  ;;  %v8607_v54 = vld [vmem:[#allocation8 + $0x51c] sm:$0xf]  ;;  %3765 = vmatmul.bf16.gmra.mxu0 %v9470_v3 }
 0x2f5   :  { %v3561_v50 = vadd.f32 %v3560_v4, %v3532_v9  ;;  %v7040_v41 = vld [vmem:[#allocation8 + $0x538] sm:$0xf0]  ;;  %3794 = vmatmul.bf16.gmra.mxu1 %v9472_v7 }
 0x2f6   :  { %v3589_v40 = vpop.f32.mrf.mxu2  ;;  %v8671_v9 = vld [vmem:[#allocation8 + $0x71c] sm:$0xf]  ;;  %v3618_v11 = vpop.f32.mrf.mxu3  ;;  %3957 = vmatpush.bf16.msrb.mxu3 %v7843_v37  ;;  %v7043_v16 = vor.u32 %v8607_v54, %v7040_v41 }
 0x2f7   :  { %v3590_v4 = vadd.f32 %v3589_v40, %v3561_v50  ;;  %v3534_v55 = vpop.f32.mrf.mxu0  ;;  %v7296_v38 = vld [vmem:[#allocation8 + $0x738] sm:$0xf0]  ;;  %3823 = vmatmul.bf16.gmra.mxu2 %v9426_v27  ;;  %3852 = vmatmul.bf16.gmra.mxu3 %v9428_v31 }
 0x2f8   :  { %v8735_v18 = vld [vmem:[#allocation8 + $0x91c] sm:$0xf]  ;;  %v3535_v13 = vadd.f32 %v3534_v55, %v9871_v12  ;;  %v7299_v22 = vor.u32 %v8671_v9, %v7296_v38  ;;  %3871 = vmatpush.bf16.msrb.mxu0 %v7043_v16 }
 0x2f9   :  { %v7552_v48 = vld [vmem:[#allocation8 + $0x938] sm:$0xf0]  ;;  %v9919_v44 = vadd.f32 %v3618_v11, %v3590_v4 }
 0x2fa   :  { %v7555_v45 = vor.u32 %v8735_v18, %v7552_v48  ;;  %v8799_v23 = vld [vmem:[#allocation8 + $0xb1c] sm:$0xf]  ;;  %3900 = vmatpush.bf16.msrb.mxu1 %v7299_v22 }
 0x2fb   :  { %v7808_v2 = vld [vmem:[#allocation8 + $0xb38] sm:$0xf0]  ;;  %11401 = vst [vmem:[#allocation63_spill] sm:$0xff] %v9919_v44 }
 0x2fc   :  { %v3563_v14 = vpop.f32.mrf.mxu1  ;;  %v7811_v49 = vor.u32 %v8799_v23, %v7808_v2  ;;  %v8599_v50 = vld [vmem:[#allocation8 + $0x4dc] sm:$0xf]  ;;  %3929 = vmatpush.bf16.msrb.mxu2 %v7555_v45 }
 0x2fd   :  { %v3564_v15 = vadd.f32 %v3563_v14, %v3535_v13  ;;  %v7008_v53 = vld [vmem:[#allocation8 + $0x4f8] sm:$0xf0] }
 0x2fe   :  { %v8663_v37 = vld [vmem:[#allocation8 + $0x6dc] sm:$0xf]  ;;  %v7011_v12 = vor.u32 %v8599_v50, %v7008_v53  ;;  %3958 = vmatpush.bf16.msrb.mxu3 %v7811_v49  ;;  %v3592_v38 = vpop.f32.mrf.mxu2  ;;  %v3621_v14 = vpop.f32.mrf.mxu3 }
 0x2ff   :  { %v7264_v40 = vld [vmem:[#allocation8 + $0x6f8] sm:$0xf0]  ;;  %v3593_v27 = vadd.f32 %v3592_v38, %v3564_v15  ;;  %v3536_v22 = vpop.f32.mrf.mxu0 }
 0x300   :  { %v8727_v54 = vld [vmem:[#allocation8 + $0x8dc] sm:$0xf]  ;;  %v7267_v9 = vor.u32 %v8663_v37, %v7264_v40  ;;  %3872 = vmatpush.bf16.msrb.mxu0 %v7011_v12  ;;  %v3537_v45 = vadd.f32 %v3536_v22, %v9877_v20 }
 0x301   :  { %v7520_v41 = vld [vmem:[#allocation8 + $0x8f8] sm:$0xf0] }
 0x302   :  { %v7523_v4 = vor.u32 %v8727_v54, %v7520_v41  ;;  %v8791_v11 = vld [vmem:[#allocation8 + $0xadc] sm:$0xf]  ;;  %3901 = vmatpush.bf16.msrb.mxu1 %v7267_v9  ;;  %v9926_v54 = vadd.f32 %v3621_v14, %v3593_v27 }
 0x303   :  { %v7776_v55 = vld [vmem:[#allocation8 + $0xaf8] sm:$0xf0] }
 0x304   :  { %v7779_v16 = vor.u32 %v8791_v11, %v7776_v55  ;;  %v8591_v18 = vld [vmem:[#allocation8 + $0x49c] sm:$0xf]  ;;  %v3565_v53 = vpop.f32.mrf.mxu1  ;;  %3930 = vmatpush.bf16.msrb.mxu2 %v7523_v4  ;;  %11402 = vst [vmem:[#allocation64_spill] sm:$0xff] %v9926_v54  ;;  %3770 = vmatmul.bf16.gmra.mxu0 %v9478_v5 }
 0x305   :  { %v6976_v48 = vld [vmem:[#allocation8 + $0x4b8] sm:$0xf0]  ;;  %v3566_v15 = vadd.f32 %v3565_v53, %v3537_v45  ;;  %3799 = vmatmul.bf16.gmra.mxu1 %v9480_v10 }
 0x306   :  { %v8655_v13 = vld [vmem:[#allocation8 + $0x69c] sm:$0xf]  ;;  %v6979_v23 = vor.u32 %v8591_v18, %v6976_v48  ;;  %3959 = vmatpush.bf16.msrb.mxu3 %v7779_v16  ;;  %v3594_v16 = vpop.f32.mrf.mxu2  ;;  %v3623_v45 = vpop.f32.mrf.mxu3 }
 0x307   :  { %v7232_v2 = vld [vmem:[#allocation8 + $0x6b8] sm:$0xf0]  ;;  %v3539_v53 = vpop.f32.mrf.mxu0  ;;  %3828 = vmatmul.bf16.gmra.mxu2 %v9438_v26  ;;  %3857 = vmatmul.bf16.gmra.mxu3 %v9440_v34 }
 0x308   :  { %v8719_v50 = vld [vmem:[#allocation8 + $0x89c] sm:$0xf]  ;;  %v7235_v37 = vor.u32 %v8655_v13, %v7232_v2  ;;  %3873 = vmatpush.bf16.msrb.mxu0 %v6979_v23 }
 0x309   :  { %v7488_v31 = vld [vmem:[#allocation8 + $0x8b8] sm:$0xf0] }
 0x30a   :  { %v7491_v49 = vor.u32 %v8719_v50, %v7488_v31  ;;  %v8783_v12 = vld [vmem:[#allocation8 + $0xa9c] sm:$0xf]  ;;  %3902 = vmatpush.bf16.msrb.mxu1 %v7235_v37  ;;  %v3595_v31 = vadd.f32 %v3594_v16, %v3566_v15  ;;  %v8390_v16 = vld [vmem:[#allocation11 + $0x3c0] sm:$0xf] }
 0x30b   :  { %v7744_v40 = vld [vmem:[#allocation8 + $0xab8] sm:$0xf0] }
 0x30c   :  { %v7747_v41 = vor.u32 %v8783_v12, %v7744_v40  ;;  %v8583_v9 = vld [vmem:[#allocation8 + $0x45c] sm:$0xf]  ;;  %3931 = vmatpush.bf16.msrb.mxu2 %v7491_v49  ;;  %v3540_v49 = vadd.f32 %v3539_v53, %v9887_v33  ;;  %v8136_v53 = vld [vmem:[#allocation11 + $0x1e0] sm:$0xf0] }
 0x30d   :  { %v6944_v11 = vld [vmem:[#allocation8 + $0x478] sm:$0xf0] }
 0x30e   :  { %v8647_v55 = vld [vmem:[#allocation8 + $0x65c] sm:$0xf]  ;;  %v6947_v38 = vor.u32 %v8583_v9, %v6944_v11  ;;  %3960 = vmatpush.bf16.msrb.mxu3 %v7747_v41  ;;  %v3568_v11 = vpop.f32.mrf.mxu1  ;;  %v3597_v33 = vpop.f32.mrf.mxu2 }
 0x30f   :  { %v7200_v18 = vld [vmem:[#allocation8 + $0x678] sm:$0xf0]  ;;  %v3569_v15 = vadd.f32 %v3568_v11, %v3540_v49  ;;  %v8880_v11 = vld [vmem:[#allocation11 + $0x19c] sm:$0xf0] }
 0x310   :  { %v8711_v48 = vld [vmem:[#allocation8 + $0x85c] sm:$0xf]  ;;  %v7203_v4 = vor.u32 %v8647_v55, %v7200_v18  ;;  %3874 = vmatpush.bf16.msrb.mxu0 %v6947_v38 }
 0x311   :  { %v7456_v20 = vld [vmem:[#allocation8 + $0x878] sm:$0xf0] }
 0x312   :  { %v7459_v13 = vor.u32 %v8711_v48, %v7456_v20  ;;  %v8775_v22 = vld [vmem:[#allocation8 + $0xa5c] sm:$0xf]  ;;  %3903 = vmatpush.bf16.msrb.mxu1 %v7203_v4  ;;  %v9929_v48 = vadd.f32 %v3623_v45, %v3595_v31  ;;  %v3598_v4 = vadd.f32 %v3597_v33, %v3569_v15  ;;  %v8952_v31 = vld [vmem:[#allocation11 + $0x3dc] sm:$0xf0]  ;;  %v8884_v45 = vld [vmem:[#allocation11 + $0x1c4] sm:$0xf] }
 0x313   :  { %v7712_v2 = vld [vmem:[#allocation8 + $0xa78] sm:$0xf0]  ;;  %v9940_v34 = vor.u32 %v8952_v31, %v8390_v16  ;;  %v8872_v31 = vld [vmem:[#allocation11 + $0x15c] sm:$0xf0] }
 0x314   :  { %v7715_v27 = vor.u32 %v8775_v22, %v7712_v2  ;;  %v8575_v14 = vld [vmem:[#allocation8 + $0x41c] sm:$0xf]  ;;  %3932 = vmatpush.bf16.msrb.mxu2 %v7459_v13  ;;  %11403 = vst [vmem:[#allocation65_spill] sm:$0xff] %v9929_v48  ;;  %v3626_v13 = vpop.f32.mrf.mxu3  ;;  %v3541_v22 = vpop.f32.mrf.mxu0  ;;  %v8134_v2 = vld [vmem:[#allocation11 + $0x1c0] sm:$0xf]  ;;  %3775 = vmatmul.bf16.gmra.mxu0 %v9486_v24  ;;  %v10004_v48 = vld [vmem:[#allocation10] sm:$0xff] }
 0x315   :  { %v6912_v23 = vld [vmem:[#allocation8 + $0x438] sm:$0xf0]  ;;  %v9938_v26 = vadd.f32 %v3626_v13, %v3598_v4  ;;  %11406 = vst [vmem:[#allocation68_spill] sm:$0xff] %v9940_v34  ;;  %v8940_v4 = vld [vmem:[#allocation11 + $0x384] sm:$0xf]  ;;  %3804 = vmatmul.bf16.gmra.mxu1 %v9488_v25 }
 0x316   :  { %v8639_v50 = vld [vmem:[#allocation8 + $0x61c] sm:$0xf]  ;;  %v6915_v37 = vor.u32 %v8575_v14, %v6912_v23  ;;  %3961 = vmatpush.bf16.msrb.mxu3 %v7715_v27  ;;  %v8888_v27 = vld [vmem:[#allocation11 + $0x1dc] sm:$0xf0]  ;;  %v3542_v14 = vadd.f32 %v3541_v22, %v9893_v19  ;;  %v3570_v23 = vpop.f32.mrf.mxu1  ;;  %v8360_v13 = vld [vmem:[#allocation11 + $0x3a0] sm:$0xf0] }
 0x317   :  { %v7168_v12 = vld [vmem:[#allocation8 + $0x638] sm:$0xf0]  ;;  %11405 = vst [vmem:[#allocation67_spill] sm:$0xff] %v9938_v26  ;;  %v8102_v19 = vld [vmem:[#allocation11 + $0x180] sm:$0xf]  ;;  %v9956_v22 = vor.u32 %v8940_v4, %v8360_v13  ;;  %3833 = vmatmul.bf16.gmra.mxu2 %v9450_v56  ;;  %3862 = vmatmul.bf16.gmra.mxu3 %v9452_v57 }
 0x318   :  { %v8703_v40 = vld [vmem:[#allocation8 + $0x81c] sm:$0xf]  ;;  %v7171_v55 = vor.u32 %v8639_v50, %v7168_v12  ;;  %3875 = vmatpush.bf16.msrb.mxu0 %v6915_v37  ;;  %v9936_v50 = vor.u32 %v8888_v27, %v8134_v2  ;;  %v9942_v37 = vor.u32 %v8884_v45, %v8136_v53  ;;  %v8948_v12 = vld [vmem:[#allocation11 + $0x3c4] sm:$0xf]  ;;  %v3599_v2 = vpop.f32.mrf.mxu2  ;;  %v8326_v45 = vld [vmem:[#allocation11 + $0x340] sm:$0xf] }
 0x319   :  { %v7424_v9 = vld [vmem:[#allocation8 + $0x838] sm:$0xf0]  ;;  %11412 = vst [vmem:[#allocation74_spill] sm:$0xff] %v9956_v22  ;;  %v8328_v4 = vld [vmem:[#allocation11 + $0x360] sm:$0xf0] }
 0x31a   :  { %v7427_v41 = vor.u32 %v8703_v40, %v7424_v9  ;;  %v8767_v38 = vld [vmem:[#allocation8 + $0xa1c] sm:$0xf]  ;;  %3904 = vmatpush.bf16.msrb.mxu1 %v7171_v55  ;;  %11404 = vst [vmem:[#allocation66_spill] sm:$0xff] %v9936_v50  ;;  %v8392_v40 = vld [vmem:[#allocation11 + $0x3e0] sm:$0xf0]  ;;  %v3571_v9 = vadd.f32 %v3570_v23, %v3542_v14 }
 0x31b   :  { %v7680_v18 = vld [vmem:[#allocation8 + $0xa38] sm:$0xf0]  ;;  %11407 = vst [vmem:[#allocation69_spill] sm:$0xff] %v9942_v37  ;;  %v9945_v49 = vor.u32 %v8948_v12, %v8392_v40  ;;  %v8358_v55 = vld [vmem:[#allocation11 + $0x380] sm:$0xf] }
 0x31c   :  { %v7683_v20 = vor.u32 %v8767_v38, %v7680_v18  ;;  %3933 = vmatpush.bf16.msrb.mxu2 %v7427_v41  ;;  %4845 = vmatpush.bf16.msra.mxu0 %v9936_v50  ;;  %v9949_v41 = vor.u32 %v8880_v11, %v8102_v19  ;;  %v8944_v38 = vld [vmem:[#allocation11 + $0x39c] sm:$0xf0]  ;;  %v8876_v18 = vld [vmem:[#allocation11 + $0x184] sm:$0xf]  ;;  %v3600_v27 = vadd.f32 %v3599_v2, %v3571_v9  ;;  %v3628_v16 = vpop.f32.mrf.mxu3  ;;  %v3544_v14 = vpop.f32.mrf.mxu0 }
 0x31d   :  { %11408 = vst [vmem:[#allocation70_spill] sm:$0xff] %v9945_v49  ;;  %v9952_v15 = vor.u32 %v8944_v38, %v8358_v55  ;;  %v8070_v23 = vld [vmem:[#allocation11 + $0x140] sm:$0xf]  ;;  %v3545_v53 = vadd.f32 %v3544_v14, %v9903_v52  ;;  %v8868_v11 = vld [vmem:[#allocation11 + $0x144] sm:$0xf] }
 0x31e   :  { %3962 = vmatpush.bf16.msrb.mxu3 %v7683_v20  ;;  %4859 = vmatpush.bf16.msra.mxu1 %v9940_v34  ;;  %11409 = vst [vmem:[#allocation71_spill] sm:$0xff] %v9949_v41  ;;  %v8104_v20 = vld [vmem:[#allocation11 + $0x1a0] sm:$0xf0]  ;;  %v3573_v12 = vpop.f32.mrf.mxu1  ;;  %v9963_v40 = vor.u32 %v8872_v31, %v8070_v23  ;;  %v8936_v19 = vld [vmem:[#allocation11 + $0x35c] sm:$0xf0]  ;;  %v9965_v9 = vadd.f32 %v3628_v16, %v3600_v27 }
 0x31f   :  { %11410 = vst [vmem:[#allocation72_spill] sm:$0xff] %v9952_v15  ;;  %v9954_v33 = vor.u32 %v8876_v18, %v8104_v20  ;;  %v8072_v55 = vld [vmem:[#allocation11 + $0x160] sm:$0xf0]  ;;  %v9967_v38 = vor.u32 %v8936_v19, %v8326_v45  ;;  %v3574_v13 = vadd.f32 %v3573_v12, %v3545_v53  ;;  %v8038_v2 = vld [vmem:[#allocation11 + $0x100] sm:$0xf] }
 0x320   :  { %4873 = vmatpush.bf16.msra.mxu2 %v9942_v37  ;;  %4846 = vmatpush.bf16.msra.mxu0 %v9949_v41  ;;  %11413 = vst [vmem:[#allocation75_spill] sm:$0xff] %v9963_v40  ;;  %v9969_v18 = vor.u32 %v8868_v11, %v8072_v55  ;;  %v8932_v20 = vld [vmem:[#allocation11 + $0x344] sm:$0xf]  ;;  %v8864_v14 = vld [vmem:[#allocation11 + $0x11c] sm:$0xf0]  ;;  %v3602_v11 = vpop.f32.mrf.mxu2 }
 0x321   :  { %11411 = vst [vmem:[#allocation73_spill] sm:$0xff] %v9954_v33  ;;  %v9972_v52 = vor.u32 %v8932_v20, %v8328_v4  ;;  %v8294_v23 = vld [vmem:[#allocation11 + $0x300] sm:$0xf]  ;;  %v9978_v27 = vor.u32 %v8864_v14, %v8038_v2  ;;  %v8860_v31 = vld [vmem:[#allocation11 + $0x104] sm:$0xf]  ;;  %v3603_v55 = vadd.f32 %v3602_v11, %v3574_v13 }
 0x322   :  { %4887 = vmatpush.bf16.msra.mxu3 %v9945_v49  ;;  %4860 = vmatpush.bf16.msra.mxu1 %v9952_v15  ;;  %11414 = vst [vmem:[#allocation76_spill] sm:$0xff] %v9965_v9  ;;  %v8928_v16 = vld [vmem:[#allocation11 + $0x31c] sm:$0xf0]  ;;  %v8040_v45 = vld [vmem:[#allocation11 + $0x120] sm:$0xf0] }
 0x323   :  { %11415 = vst [vmem:[#allocation77_spill] sm:$0xff] %v9967_v38  ;;  %v9982_v53 = vor.u32 %v8928_v16, %v8294_v23  ;;  %v9984_v12 = vor.u32 %v8860_v31, %v8040_v45  ;;  %v8924_v56 = vld [vmem:[#allocation11 + $0x304] sm:$0xf]  ;;  %v8006_v2 = vld [vmem:[#allocation11 + $0xc0] sm:$0xf] }
 0x324   :  { %4874 = vmatpush.bf16.msra.mxu2 %v9954_v33  ;;  %11416 = vst [vmem:[#allocation78_spill] sm:$0xff] %v9969_v18  ;;  %4847 = vmatpush.bf16.msra.mxu0 %v9963_v40  ;;  %v8296_v19 = vld [vmem:[#allocation11 + $0x320] sm:$0xf0]  ;;  %v3631_v20 = vpop.f32.mrf.mxu3  ;;  %v3546_v4 = vpop.f32.mrf.mxu0  ;;  %v8856_v14 = vld [vmem:[#allocation11 + $0xdc] sm:$0xf0] }
 0x325   :  { %11417 = vst [vmem:[#allocation79_spill] sm:$0xff] %v9972_v52  ;;  %v9987_v57 = vor.u32 %v8924_v56, %v8296_v19  ;;  %v3547_v9 = vadd.f32 %v3546_v4, %v9909_v28  ;;  %v9991_v23 = vor.u32 %v8856_v14, %v8006_v2  ;;  %v8920_v16 = vld [vmem:[#allocation11 + $0x2dc] sm:$0xf0]  ;;  %v8852_v31 = vld [vmem:[#allocation11 + $0xc4] sm:$0xf]  ;;  %v9993_v26 = vadd.f32 %v3631_v20, %v3603_v55 }
 0x326   :  { %4888 = vmatpush.bf16.msra.mxu3 %v9956_v22  ;;  %11418 = vst [vmem:[#allocation80_spill] sm:$0xff] %v9978_v27  ;;  %4861 = vmatpush.bf16.msra.mxu1 %v9967_v38  ;;  %v3575_v17 = vpop.f32.mrf.mxu1  ;;  %v8008_v45 = vld [vmem:[#allocation11 + $0xe0] sm:$0xf0]  ;;  %v9997_v13 = vor.u32 %v8920_v16, %v8262_v8  ;;  %v7974_v2 = vld [vmem:[#allocation11 + $0x80] sm:$0xf]  ;;  %v10007_v8 = vperm.slane %v10004_v48, 6 }
 0x327   :  { %11419 = vst [vmem:[#allocation81_spill] sm:$0xff] %v9982_v53  ;;  %v9999_v56 = vor.u32 %v8852_v31, %v8008_v45  ;;  %v8916_v19 = vld [vmem:[#allocation11 + $0x2c4] sm:$0xf]  ;;  %v3576_v11 = vadd.f32 %v3575_v17, %v3547_v9  ;;  %v8848_v14 = vld [vmem:[#allocation11 + $0x9c] sm:$0xf0]  ;;  %3876 = vmatmul.bf16.vlgmr.msrb.gmra.mxu0 %v9418_v42  ;;  %3905 = vmatmul.bf16.vlgmr.msrb.gmra.mxu1 %v9420_v43 }
 0x328   :  { %4875 = vmatpush.bf16.msra.mxu2 %v9969_v18  ;;  %11420 = vst [vmem:[#allocation82_spill] sm:$0xff] %v9984_v12  ;;  %4848 = vmatpush.bf16.msra.mxu0 %v9978_v27  ;;  %v8264_v28 = vld [vmem:[#allocation11 + $0x2e0] sm:$0xf0]  ;;  %v8912_v55 = vld [vmem:[#allocation11 + $0x29c] sm:$0xf0]  ;;  %v10010_v16 = vor.u32 %v8848_v14, %v7974_v2 }
 0x329   :  { %11421 = vst [vmem:[#allocation83_spill] sm:$0xff] %v9987_v57  ;;  %v10002_v4 = vor.u32 %v8916_v19, %v8264_v28  ;;  %v8844_v20 = vld [vmem:[#allocation11 + $0x84] sm:$0xf]  ;;  %v10014_v31 = vor.u32 %v8912_v55, %v8230_v46  ;;  %v3604_v19 = vpop.f32.mrf.mxu2  ;;  %v7942_v2 = vld [vmem:[#allocation11 + $0x40] sm:$0xf]  ;;  %3934 = vmatmul.bf16.vlgmr.msrb.gmra.mxu2 %v9462_v0  ;;  %3963 = vmatmul.bf16.vlgmr.msrb.gmra.mxu3 %v9464_v1 }
 0x32a   :  { %4889 = vmatpush.bf16.msra.mxu3 %v9972_v52  ;;  %11422 = vst [vmem:[#allocation84_spill] sm:$0xff] %v9991_v23  ;;  %4862 = vmatpush.bf16.msra.mxu1 %v9982_v53  ;;  %v8908_v17 = vld [vmem:[#allocation11 + $0x284] sm:$0xf]  ;;  %v3605_v6 = vadd.f32 %v3604_v19, %v3576_v11  ;;  %v8840_v14 = vld [vmem:[#allocation11 + $0x5c] sm:$0xf0] }
 0x32b   :  { %11423 = vst [vmem:[#allocation85_spill] sm:$0xff] %v9993_v26  ;;  %v7976_v26 = vld [vmem:[#allocation11 + $0xa0] sm:$0xf0]  ;;  %v10023_v46 = vor.u32 %v8840_v14, %v7942_v2  ;;  %v8166_v14 = vld [vmem:[#allocation11 + $0x200] sm:$0xf] }
 0x32c   :  { %4876 = vmatpush.bf16.msra.mxu2 %v9984_v12  ;;  %11424 = vst [vmem:[#allocation86_spill] sm:$0xff] %v9997_v13  ;;  %4849 = vmatpush.bf16.msra.mxu0 %v9991_v23  ;;  %v8232_v9 = vld [vmem:[#allocation11 + $0x2a0] sm:$0xf0]  ;;  %v10016_v45 = vor.u32 %v8844_v20, %v7976_v26  ;;  %v3633_v54 = vpop.f32.mrf.mxu3  ;;  %v3645_v44 = vpop.f32.mrf.mxu0  ;;  %v8904_v26 = vld [vmem:[#allocation11 + $0x25c] sm:$0xf0] }
 0x32d   :  { %11425 = vst [vmem:[#allocation87_spill] sm:$0xff] %v9999_v56  ;;  %v10019_v28 = vor.u32 %v8908_v17, %v8232_v9  ;;  %v3646_v30 = vadd.f32 %v3645_v44, %v10007_v8  ;;  %v8836_v55 = vld [vmem:[#allocation11 + $0x44] sm:$0xf]  ;;  %v10025_v29 = vadd.f32 %v3633_v54, %v3605_v6  ;;  %v10029_v11 = vor.u32 %v8904_v26, %v8198_v47  ;;  %v7910_v6 = vld [vmem:[#allocation11] sm:$0xf] }
 0x32e   :  { %4890 = vmatpush.bf16.msra.mxu3 %v9987_v57  ;;  %11426 = vst [vmem:[#allocation88_spill] sm:$0xff] %v10002_v4  ;;  %4863 = vmatpush.bf16.msra.mxu1 %v9997_v13  ;;  %v3674_v51 = vpop.f32.mrf.mxu1  ;;  %v7944_v20 = vld [vmem:[#allocation11 + $0x60] sm:$0xf0]  ;;  %v8832_v54 = vld [vmem:[#allocation11 + $0x1c] sm:$0xf0] }
 0x32f   :  { %11427 = vst [vmem:[#allocation89_spill] sm:$0xff] %v10007_v8  ;;  %v10031_v17 = vor.u32 %v8836_v55, %v7944_v20  ;;  %v8900_v9 = vld [vmem:[#allocation11 + $0x244] sm:$0xf]  ;;  %v3675_v19 = vadd.f32 %v3674_v51, %v3646_v30  ;;  %v10041_v47 = vor.u32 %v8832_v54, %v7910_v6  ;;  %v8896_v30 = vld [vmem:[#allocation11 + $0x21c] sm:$0xf0] }
 0x330   :  { %11428 = vst [vmem:[#allocation90_spill] sm:$0xff] %v10010_v16  ;;  %4877 = vmatpush.bf16.msra.mxu2 %v9999_v56  ;;  %4850 = vmatpush.bf16.msra.mxu0 %v10010_v16  ;;  %v8200_v44 = vld [vmem:[#allocation11 + $0x260] sm:$0xf0]  ;;  %v10045_v26 = vor.u32 %v8896_v30, %v8166_v14  ;;  %v8142_v20 = vld [vmem:[#allocation11 + $0x1c8] sm:$0xf] }
 0x331   :  { %11429 = vst [vmem:[#allocation91_spill] sm:$0xff] %v10014_v31  ;;  %v10035_v2 = vor.u32 %v8900_v9, %v8200_v44  ;;  %v8828_v51 = vld [vmem:[#allocation11 + $0x4] sm:$0xf]  ;;  %v3703_v9 = vpop.f32.mrf.mxu2  ;;  %v8889_v44 = vld [vmem:[#allocation11 + $0x1e4] sm:$0xf0] }
 0x332   :  { %11430 = vst [vmem:[#allocation92_spill] sm:$0xff] %v10016_v45  ;;  %4891 = vmatpush.bf16.msra.mxu3 %v10002_v4  ;;  %4864 = vmatpush.bf16.msra.mxu1 %v10014_v31  ;;  %v7912_v42 = vld [vmem:[#allocation11 + $0x20] sm:$0xf0]  ;;  %v8398_v6 = vld [vmem:[#allocation11 + $0x3c8] sm:$0xf]  ;;  %v10052_v61 = vor.u32 %v8889_v44, %v8142_v20 }
 0x333   :  { %11431 = vst [vmem:[#allocation93_spill] sm:$0xff] %v10019_v28  ;;  %v10047_v43 = vor.u32 %v8828_v51, %v7912_v42  ;;  %v8892_v0 = vld [vmem:[#allocation11 + $0x204] sm:$0xf]  ;;  %v8953_v54 = vld [vmem:[#allocation11 + $0x3e4] sm:$0xf0] }
 0x334   :  { %11432 = vst [vmem:[#allocation94_spill] sm:$0xff] %v10023_v46  ;;  %4878 = vmatpush.bf16.msra.mxu2 %v10016_v45  ;;  %4851 = vmatpush.bf16.msra.mxu0 %v10023_v46  ;;  %v8168_v55 = vld [vmem:[#allocation11 + $0x220] sm:$0xf0]  ;;  %v3732_v21 = vpop.f32.mrf.mxu3  ;;  %v3647_v60 = vpop.f32.mrf.mxu0  ;;  %v10054_v14 = vor.u32 %v8953_v54, %v8398_v6  ;;  %v8885_v30 = vld [vmem:[#allocation11 + $0x1cc] sm:$0xf] }
 0x335   :  { %11433 = vst [vmem:[#allocation95_spill] sm:$0xff] %v10025_v29  ;;  %v10050_v1 = vor.u32 %v8892_v0, %v8168_v55  ;;  %v3704_v29 = vadd.f32 %v3703_v9, %v3675_v19  ;;  %v8144_v51 = vld [vmem:[#allocation11 + $0x1e8] sm:$0xf0]  ;;  %v3648_v63 = vadd.f32 %v3647_v60, %v10007_v8  ;;  %v8366_v9 = vld [vmem:[#allocation11 + $0x388] sm:$0xf] }
 0x336   :  { %11434 = vst [vmem:[#allocation96_spill] sm:$0xff] %v10029_v11  ;;  %4892 = vmatpush.bf16.msra.mxu3 %v10019_v28  ;;  %4865 = vmatpush.bf16.msra.mxu1 %v10029_v11  ;;  %v8949_v42 = vld [vmem:[#allocation11 + $0x3cc] sm:$0xf]  ;;  %v3676_v62 = vpop.f32.mrf.mxu1  ;;  %v10058_v0 = vor.u32 %v8885_v30, %v8144_v51  ;;  %v8881_v11 = vld [vmem:[#allocation11 + $0x1a4] sm:$0xf0] }
 0x337   :  { %11435 = vst [vmem:[#allocation97_spill] sm:$0xff] %v10031_v17  ;;  %v8400_v55 = vld [vmem:[#allocation11 + $0x3e8] sm:$0xf0]  ;;  %v10060_v19 = vadd.f32 %v3732_v21, %v3704_v29  ;;  %v8945_v44 = vld [vmem:[#allocation11 + $0x3a4] sm:$0xf0]  ;;  %v3677_v60 = vadd.f32 %v3676_v62, %v3648_v63  ;;  %3881 = vmatmul.bf16.gmra.mxu0 %v9430_v32  ;;  %3910 = vmatmul.bf16.gmra.mxu1 %v9432_v35 }
 0x338   :  { %11436 = vst [vmem:[#allocation98_spill] sm:$0xff] %v10035_v2  ;;  %4879 = vmatpush.bf16.msra.mxu2 %v10031_v17  ;;  %4852 = vmatpush.bf16.msra.mxu0 %v10041_v47  ;;  %v10064_v20 = vor.u32 %v8949_v42, %v8400_v55  ;;  %v8877_v6 = vld [vmem:[#allocation11 + $0x18c] sm:$0xf]  ;;  %v10072_v21 = vor.u32 %v8945_v44, %v8366_v9  ;;  %v8078_v62 = vld [vmem:[#allocation11 + $0x148] sm:$0xf] }
 0x339   :  { %11437 = vst [vmem:[#allocation99_spill] sm:$0xff] %v10041_v47  ;;  %v8112_v30 = vld [vmem:[#allocation11 + $0x1a8] sm:$0xf0]  ;;  %v8873_v55 = vld [vmem:[#allocation11 + $0x164] sm:$0xf0]  ;;  %3939 = vmatmul.bf16.gmra.mxu2 %v9470_v3  ;;  %3968 = vmatmul.bf16.gmra.mxu3 %v9472_v7 }
 0x33a   :  { %11438 = vst [vmem:[#allocation100_spill] sm:$0xff] %v10045_v26  ;;  %4893 = vmatpush.bf16.msra.mxu3 %v10035_v2  ;;  %v8110_v2 = vld [vmem:[#allocation11 + $0x188] sm:$0xf]  ;;  %4866 = vmatpush.bf16.msra.mxu1 %v10045_v26  ;;  %v8941_v51 = vld [vmem:[#allocation11 + $0x38c] sm:$0xf]  ;;  %v10074_v42 = vor.u32 %v8877_v6, %v8112_v30 }
 0x33b   :  { %11439 = vst [vmem:[#allocation101_spill] sm:$0xff] %v10047_v43  ;;  %v10068_v54 = vor.u32 %v8881_v11, %v8110_v2  ;;  %v8368_v29 = vld [vmem:[#allocation11 + $0x3a8] sm:$0xf0]  ;;  %v3705_v11 = vpop.f32.mrf.mxu2  ;;  %v8937_v2 = vld [vmem:[#allocation11 + $0x364] sm:$0xf0] }
 0x33c   :  { %11440 = vst [vmem:[#allocation102_spill] sm:$0xff] %v10050_v1  ;;  %4880 = vmatpush.bf16.msra.mxu2 %v10047_v43  ;;  %4901 = vmatpush.bf16.msrb.mxu0 %v10052_v61  ;;  %v10077_v63 = vor.u32 %v8941_v51, %v8368_v29  ;;  %v8869_v26 = vld [vmem:[#allocation11 + $0x14c] sm:$0xf]  ;;  %v3734_v43 = vpop.f32.mrf.mxu3  ;;  %v10084_v51 = vor.u32 %v8873_v55, %v8078_v62  ;;  %v8857_v35 = vld [vmem:[#allocation11 + $0xe4] sm:$0xf0] }
 0x33d   :  { %11441 = vst [vmem:[#allocation103_spill] sm:$0xff] %v10052_v61  ;;  %v8080_v61 = vld [vmem:[#allocation11 + $0x168] sm:$0xf0]  ;;  %v8270_v62 = vld [vmem:[#allocation11 + $0x2c8] sm:$0xf] }
 0x33e   :  { %11442 = vst [vmem:[#allocation104_spill] sm:$0xff] %v10054_v14  ;;  %4894 = vmatpush.bf16.msra.mxu3 %v10050_v1  ;;  %4915 = vmatpush.bf16.msrb.mxu1 %v10054_v14  ;;  %v8334_v1 = vld [vmem:[#allocation11 + $0x348] sm:$0xf]  ;;  %v3706_v14 = vadd.f32 %v3705_v11, %v3677_v60  ;;  %v8933_v9 = vld [vmem:[#allocation11 + $0x34c] sm:$0xf]  ;;  %v3679_v30 = vpop.f32.mrf.mxu1  ;;  %v10090_v60 = vor.u32 %v8869_v26, %v8080_v61 }
 0x33f   :  { %11443 = vst [vmem:[#allocation105_spill] sm:$0xff] %v10058_v0  ;;  %v8336_v44 = vld [vmem:[#allocation11 + $0x368] sm:$0xf0]  ;;  %v8046_v11 = vld [vmem:[#allocation11 + $0x108] sm:$0xf] }
 0x340   :  { %11444 = vst [vmem:[#allocation106_spill] sm:$0xff] %v10064_v20  ;;  %4929 = vmatpush.bf16.msrb.mxu2 %v10058_v0  ;;  %4902 = vmatpush.bf16.msrb.mxu0 %v10068_v54  ;;  %v3650_v0 = vpop.f32.mrf.mxu0  ;;  %v10086_v29 = vadd.f32 %v3734_v43, %v3706_v14  ;;  %v8861_v17 = vld [vmem:[#allocation11 + $0x10c] sm:$0xf]  ;;  %v8014_v14 = vld [vmem:[#allocation11 + $0xc8] sm:$0xf] }
 0x341   :  { %11445 = vst [vmem:[#allocation107_spill] sm:$0xff] %v10068_v54  ;;  %v3651_v6 = vadd.f32 %v3650_v0, %v10007_v8  ;;  %v8865_v54 = vld [vmem:[#allocation11 + $0x124] sm:$0xf0]  ;;  %v8048_v28 = vld [vmem:[#allocation11 + $0x128] sm:$0xf0] }
 0x342   :  { %11446 = vst [vmem:[#allocation108_spill] sm:$0xff] %v10072_v21  ;;  %4943 = vmatpush.bf16.msrb.mxu3 %v10064_v20  ;;  %4916 = vmatpush.bf16.msrb.mxu1 %v10072_v21  ;;  %v10088_v20 = vor.u32 %v8937_v2, %v8334_v1  ;;  %v8302_v21 = vld [vmem:[#allocation11 + $0x308] sm:$0xf]  ;;  %v8925_v43 = vld [vmem:[#allocation11 + $0x30c] sm:$0xf]  ;;  %v10099_v61 = vor.u32 %v8865_v54, %v8046_v11 }
 0x343   :  { %11447 = vst [vmem:[#allocation109_spill] sm:$0xff] %v10074_v42  ;;  %v3680_v47 = vadd.f32 %v3679_v30, %v3651_v6  ;;  %v8929_v0 = vld [vmem:[#allocation11 + $0x324] sm:$0xf0]  ;;  %v8304_v1 = vld [vmem:[#allocation11 + $0x328] sm:$0xf0]  ;;  %v10105_v26 = vor.u32 %v8861_v17, %v8048_v28  ;;  %v3708_v3 = vpop.f32.mrf.mxu2  ;;  %v10112_v17 = vor.u32 %v8857_v35, %v8014_v14 }
 0x344   :  { %11448 = vst [vmem:[#allocation110_spill] sm:$0xff] %v10077_v63  ;;  %4930 = vmatpush.bf16.msrb.mxu2 %v10074_v42  ;;  %v10093_v42 = vor.u32 %v8933_v9, %v8336_v44  ;;  %4903 = vmatpush.bf16.msrb.mxu0 %v10084_v51  ;;  %v10103_v32 = vor.u32 %v8929_v0, %v8302_v21  ;;  %v8921_v7 = vld [vmem:[#allocation11 + $0x2e4] sm:$0xf0]  ;;  %v8853_v2 = vld [vmem:[#allocation11 + $0xcc] sm:$0xf]  ;;  %v3737_v44 = vpop.f32.mrf.mxu3 }
 0x345   :  { %11449 = vst [vmem:[#allocation111_spill] sm:$0xff] %v10084_v51  ;;  %v10108_v55 = vor.u32 %v8925_v43, %v8304_v1  ;;  %v8016_v54 = vld [vmem:[#allocation11 + $0xe8] sm:$0xf0]  ;;  %v3709_v9 = vadd.f32 %v3708_v3, %v3680_v47  ;;  %v10118_v43 = vor.u32 %v8921_v7, %v8270_v62  ;;  %v7982_v1 = vld [vmem:[#allocation11 + $0x88] sm:$0xf] }
 0x346   :  { %4944 = vmatpush.bf16.msrb.mxu3 %v10077_v63  ;;  %11450 = vst [vmem:[#allocation112_spill] sm:$0xff] %v10086_v29  ;;  %4917 = vmatpush.bf16.msrb.mxu1 %v10088_v20  ;;  %v8917_v30 = vld [vmem:[#allocation11 + $0x2cc] sm:$0xf]  ;;  %v3681_v28 = vpop.f32.mrf.mxu1  ;;  %v10120_v47 = vor.u32 %v8853_v2, %v8016_v54  ;;  %v8849_v3 = vld [vmem:[#allocation11 + $0xa4] sm:$0xf0] }
 0x347   :  { %11451 = vst [vmem:[#allocation113_spill] sm:$0xff] %v10088_v20  ;;  %v8272_v11 = vld [vmem:[#allocation11 + $0x2e8] sm:$0xf0]  ;;  %v10114_v0 = vadd.f32 %v3737_v44, %v3709_v9  ;;  %v8238_v29 = vld [vmem:[#allocation11 + $0x288] sm:$0xf]  ;;  %3886 = vmatmul.bf16.gmra.mxu0 %v9442_v36  ;;  %3915 = vmatmul.bf16.gmra.mxu1 %v9444_v39 }
 0x348   :  { %11452 = vst [vmem:[#allocation114_spill] sm:$0xff] %v10090_v60  ;;  %4931 = vmatpush.bf16.msrb.mxu2 %v10090_v60  ;;  %v3652_v6 = vpop.f32.mrf.mxu0  ;;  %4904 = vmatpush.bf16.msrb.mxu0 %v10099_v61  ;;  %v8913_v14 = vld [vmem:[#allocation11 + $0x2a4] sm:$0xf0]  ;;  %v8845_v35 = vld [vmem:[#allocation11 + $0x8c] sm:$0xf] }
 0x349   :  { %11453 = vst [vmem:[#allocation115_spill] sm:$0xff] %v10093_v42  ;;  %v3653_v21 = vadd.f32 %v3652_v6, %v10007_v8  ;;  %v10123_v6 = vor.u32 %v8917_v30, %v8272_v11  ;;  %v7984_v9 = vld [vmem:[#allocation11 + $0xa8] sm:$0xf0]  ;;  %v10130_v62 = vor.u32 %v8913_v14, %v8238_v29  ;;  %v7950_v2 = vld [vmem:[#allocation11 + $0x48] sm:$0xf]  ;;  %3944 = vmatmul.bf16.gmra.mxu2 %v9478_v5 }
 0x34a   :  { %11454 = vst [vmem:[#allocation116_spill] sm:$0xff] %v10099_v61  ;;  %4945 = vmatpush.bf16.msrb.mxu3 %v10093_v42  ;;  %4918 = vmatpush.bf16.msrb.mxu1 %v10103_v32  ;;  %v8909_v44 = vld [vmem:[#allocation11 + $0x28c] sm:$0xf]  ;;  %v10132_v7 = vor.u32 %v8845_v35, %v7984_v9  ;;  %v8841_v54 = vld [vmem:[#allocation11 + $0x64] sm:$0xf0] }
 0x34b   :  { %11455 = vst [vmem:[#allocation117_spill] sm:$0xff] %v10103_v32  ;;  %v3682_v42 = vadd.f32 %v3681_v28, %v3653_v21  ;;  %v8240_v61 = vld [vmem:[#allocation11 + $0x2a8] sm:$0xf0]  ;;  %v10126_v32 = vor.u32 %v8849_v3, %v7982_v1  ;;  %v8206_v30 = vld [vmem:[#allocation11 + $0x248] sm:$0xf]  ;;  %v3710_v11 = vpop.f32.mrf.mxu2  ;;  %v10139_v35 = vor.u32 %v8841_v54, %v7950_v2  ;;  %3973 = vmatmul.bf16.gmra.mxu3 %v9480_v10 }
 0x34c   :  { %11456 = vst [vmem:[#allocation118_spill] sm:$0xff] %v10105_v26  ;;  %4932 = vmatpush.bf16.msrb.mxu2 %v10105_v26  ;;  %4905 = vmatpush.bf16.msrb.mxu0 %v10112_v17  ;;  %v10135_v21 = vor.u32 %v8909_v44, %v8240_v61  ;;  %v8905_v28 = vld [vmem:[#allocation11 + $0x264] sm:$0xf0]  ;;  %v7952_v1 = vld [vmem:[#allocation11 + $0x68] sm:$0xf0] }
 0x34d   :  { %11457 = vst [vmem:[#allocation119_spill] sm:$0xff] %v10108_v55  ;;  %v3711_v3 = vadd.f32 %v3710_v11, %v3682_v42  ;;  %v8901_v26 = vld [vmem:[#allocation11 + $0x24c] sm:$0xf]  ;;  %v10145_v61 = vor.u32 %v8905_v28, %v8206_v30  ;;  %v7918_v44 = vld [vmem:[#allocation11 + $0x8] sm:$0xf] }
 0x34e   :  { %11458 = vst [vmem:[#allocation120_spill] sm:$0xff] %v10112_v17  ;;  %4946 = vmatpush.bf16.msrb.mxu3 %v10108_v55  ;;  %4919 = vmatpush.bf16.msrb.mxu1 %v10118_v43  ;;  %v8837_v55 = vld [vmem:[#allocation11 + $0x4c] sm:$0xf]  ;;  %v3739_v17 = vpop.f32.mrf.mxu3  ;;  %v3684_v14 = vpop.f32.mrf.mxu1  ;;  %v8833_v11 = vld [vmem:[#allocation11 + $0x24] sm:$0xf0] }
 0x34f   :  { %11459 = vst [vmem:[#allocation121_spill] sm:$0xff] %v10118_v43  ;;  %v10141_v9 = vadd.f32 %v3739_v17, %v3711_v3  ;;  %v10147_v42 = vor.u32 %v8837_v55, %v7952_v1  ;;  %v8897_v17 = vld [vmem:[#allocation11 + $0x224] sm:$0xf0]  ;;  %v8829_v2 = vld [vmem:[#allocation11 + $0xc] sm:$0xf]  ;;  %v10157_v28 = vor.u32 %v8833_v11, %v7918_v44 }
 0x350   :  { %11460 = vst [vmem:[#allocation122_spill] sm:$0xff] %v10120_v47  ;;  %4933 = vmatpush.bf16.msrb.mxu2 %v10120_v47  ;;  %v3655_v43 = vpop.f32.mrf.mxu0  ;;  %v8208_v47 = vld [vmem:[#allocation11 + $0x268] sm:$0xf0]  ;;  %4906 = vmatpush.bf16.msrb.mxu0 %v10126_v32 }
 0x351   :  { %11461 = vst [vmem:[#allocation123_spill] sm:$0xff] %v10123_v6  ;;  %v3656_v29 = vadd.f32 %v3655_v43, %v10007_v8  ;;  %v10151_v43 = vor.u32 %v8901_v26, %v8208_v47  ;;  %v7920_v54 = vld [vmem:[#allocation11 + $0x28] sm:$0xf0] }
 0x352   :  { %11462 = vst [vmem:[#allocation124_spill] sm:$0xff] %v10126_v32  ;;  %4947 = vmatpush.bf16.msrb.mxu3 %v10123_v6  ;;  %4920 = vmatpush.bf16.msrb.mxu1 %v10130_v62  ;;  %v8174_v6 = vld [vmem:[#allocation11 + $0x208] sm:$0xf]  ;;  %v8893_v30 = vld [vmem:[#allocation11 + $0x20c] sm:$0xf]  ;;  %v10163_v26 = vor.u32 %v8829_v2, %v7920_v54 }
 0x353   :  { %11463 = vst [vmem:[#allocation125_spill] sm:$0xff] %v10130_v62  ;;  %v3685_v20 = vadd.f32 %v3684_v14, %v3656_v29  ;;  %v8176_v55 = vld [vmem:[#allocation11 + $0x228] sm:$0xf0]  ;;  %v10161_v36 = vor.u32 %v8897_v17, %v8174_v6  ;;  %v3713_v47 = vpop.f32.mrf.mxu2 }
 0x354   :  { %11464 = vst [vmem:[#allocation126_spill] sm:$0xff] %v10132_v7  ;;  %4934 = vmatpush.bf16.msrb.mxu2 %v10132_v7  ;;  %4907 = vmatpush.bf16.msrb.mxu0 %v10139_v35  ;;  %v10166_v39 = vor.u32 %v8893_v30, %v8176_v55 }
 0x355   :  { %11465 = vst [vmem:[#allocation127_spill] sm:$0xff] %v10135_v21  ;;  %v3714_v5 = vadd.f32 %v3713_v47, %v3685_v20 }
 0x356   :  { %11466 = vst [vmem:[#allocation128_spill] sm:$0xff] %v10139_v35  ;;  %4948 = vmatpush.bf16.msrb.mxu3 %v10135_v21  ;;  %4921 = vmatpush.bf16.msrb.mxu1 %v10145_v61  ;;  %v3742_v1 = vpop.f32.mrf.mxu3  ;;  %v3686_v29 = vpop.f32.mrf.mxu1 }
 0x357   :  { %11467 = vst [vmem:[#allocation129_spill] sm:$0xff] %v10141_v9  ;;  %v10170_v14 = vadd.f32 %v3742_v1, %v3714_v5  ;;  %3891 = vmatmul.bf16.gmra.mxu0 %v9454_v58  ;;  %3920 = vmatmul.bf16.gmra.mxu1 %v9456_v59  ;;  %v8954_v58 = vld [vmem:[#allocation11 + $0x3ec] sm:$0xf0]  ;;  %v8886_v59 = vld [vmem:[#allocation11 + $0x1d4] sm:$0xf]  ;;  %v11166_v9 = vmov 0.0|0.0  }
 0x358   :  { %11468 = vst [vmem:[#allocation130_spill] sm:$0xff] %v10145_v61  ;;  %4935 = vmatpush.bf16.msrb.mxu2 %v10147_v42  ;;  %v3657_v10 = vpop.f32.mrf.mxu0  ;;  %4908 = vmatpush.bf16.msrb.mxu0 %v10157_v28 }
 0x359   :  { %11469 = vst [vmem:[#allocation131_spill] sm:$0xff] %v10147_v42  ;;  %v3658_v3 = vadd.f32 %v3657_v10, %v10007_v8  ;;  %3949 = vmatmul.bf16.gmra.mxu2 %v9486_v24 }
 0x35a   :  { %11470 = vst [vmem:[#allocation132_spill] sm:$0xff] %v10151_v43  ;;  %4949 = vmatpush.bf16.msrb.mxu3 %v10151_v43  ;;  %4922 = vmatpush.bf16.msrb.mxu1 %v10161_v36  ;;  %v8830_v43 = vld [vmem:[#allocation11 + $0x14] sm:$0xf] }
 0x35b   :  { %11471 = vst [vmem:[#allocation133_spill] sm:$0xff] %v10157_v28  ;;  %v3687_v6 = vadd.f32 %v3686_v29, %v3658_v3  ;;  %v3715_v44 = vpop.f32.mrf.mxu2  ;;  %3978 = vmatmul.bf16.gmra.mxu3 %v9488_v25  ;;  %v8414_v28 = vld [vmem:[#allocation11 + $0x3d8] sm:$0xf] }
 0x35c   :  { %11472 = vst [vmem:[#allocation134_spill] sm:$0xff] %v10161_v36  ;;  %4936 = vmatpush.bf16.msrb.mxu2 %v10163_v26  ;;  %v8878_v36 = vld [vmem:[#allocation11 + $0x194] sm:$0xf] }
 0x35d   :  { %11473 = vst [vmem:[#allocation135_spill] sm:$0xff] %v10163_v26  ;;  %v3716_v11 = vadd.f32 %v3715_v44, %v3687_v6  ;;  %v8150_v6 = vld [vmem:[#allocation11 + $0x1d0] sm:$0xf] }
 0x35e   :  { %11474 = vst [vmem:[#allocation136_spill] sm:$0xff] %v10166_v39  ;;  %4950 = vmatpush.bf16.msrb.mxu3 %v10166_v39  ;;  %v3744_v17 = vpop.f32.mrf.mxu3  ;;  %v3689_v54 = vpop.f32.mrf.mxu1  ;;  %v8890_v44 = vld [vmem:[#allocation11 + $0x1ec] sm:$0xf0] }
 0x35f   :  { %v10176_v30 = vadd.f32 %v3744_v17, %v3716_v11  ;;  %v8406_v11 = vld [vmem:[#allocation11 + $0x3d0] sm:$0xf] }
 0x360   :  { %v3660_v20 = vpop.f32.mrf.mxu0  ;;  %v8946_v39 = vld [vmem:[#allocation11 + $0x3ac] sm:$0xf0] }
 0x361   :  { %v3661_v2 = vadd.f32 %v3660_v20, %v10007_v8  ;;  %11475 = vst [vmem:[#allocation137_spill] sm:$0xff] %v10176_v30  ;;  %v8152_v20 = vld [vmem:[#allocation11 + $0x1f0] sm:$0xf0]  ;;  %v8882_v8 = vld [vmem:[#allocation11 + $0x1ac] sm:$0xf0] }
 0x362   :  { %v8898_v26 = vld [vmem:[#allocation11 + $0x22c] sm:$0xf0] }
 0x363   :  { %v3690_v55 = vadd.f32 %v3689_v54, %v3661_v2  ;;  %v3718_v47 = vpop.f32.mrf.mxu2  ;;  %v8950_v2 = vld [vmem:[#allocation11 + $0x3d4] sm:$0xf] }
 0x364   :  { %v8408_v54 = vld [vmem:[#allocation11 + $0x3f0] sm:$0xf0] }
 0x365   :  { %v3719_v5 = vadd.f32 %v3718_v47, %v3690_v55 }
 0x366   :  { %v3747_v1 = vpop.f32.mrf.mxu3  ;;  %v10184_v3 = vpop.f32.mrf.mxu1 }
 0x367   :  { %11477 = vst [vmem:[#allocation139_spill] sm:$0xff] %v10184_v3  ;;  %v10186_v29 = vadd.f32 %v3747_v1, %v3719_v5  ;;  %v10195_v5 = vor.u32 %v8954_v58, %v8406_v11  ;;  %v10197_v1 = vor.u32 %v8886_v59, %v8152_v20  ;;  %v8118_v3 = vld [vmem:[#allocation11 + $0x190] sm:$0xf]  ;;  %4853 = vmatmul.bf16.vlgmr.msra.gmra.mxu0 %v11166_v9  ;;  %v8376_v11 = vld [vmem:[#allocation11 + $0x3b0] sm:$0xf0] }
 0x368   :  { %v10182_v10 = vpop.f32.mrf.mxu0  ;;  %4867 = vmatmul.bf16.vlgmr.msra.gmra.mxu1 %v11166_v9  ;;  %v10211_v58 = vor.u32 %v8882_v8, %v8118_v3  ;;  %v8088_v8 = vld [vmem:[#allocation11 + $0x170] sm:$0xf0] }
 0x369   :  { %11476 = vst [vmem:[#allocation138_spill] sm:$0xff] %v10182_v10  ;;  %v10193_v10 = vor.u32 %v8890_v44, %v8150_v6  ;;  %4881 = vmatmul.bf16.vlgmr.msra.gmra.mxu2 %v11166_v9  ;;  %v10207_v6 = vperm.slane %v10004_v48, 7  ;;  %v8942_v44 = vld [vmem:[#allocation11 + $0x394] sm:$0xf]  ;;  %4971 = vmatpush.bf16.msra.mxu1 %v10195_v5  ;;  %v8342_v48 = vld [vmem:[#allocation11 + $0x350] sm:$0xf] }
 0x36a   :  { %11481 = vst [vmem:[#allocation143_spill] sm:$0xff] %v10195_v5  ;;  %4985 = vmatpush.bf16.msra.mxu2 %v10197_v1 }
 0x36b   :  { %v10188_v17 = vpop.f32.mrf.mxu2  ;;  %11480 = vst [vmem:[#allocation142_spill] sm:$0xff] %v10193_v10  ;;  %4895 = vmatmul.bf16.vlgmr.msra.gmra.mxu3 %v11166_v9  ;;  %4957 = vmatpush.bf16.msra.mxu0 %v10193_v10  ;;  %v8870_v9 = vld [vmem:[#allocation11 + $0x154] sm:$0xf] }
 0x36c   :  { %11478 = vst [vmem:[#allocation140_spill] sm:$0xff] %v10188_v17  ;;  %v8374_v17 = vld [vmem:[#allocation11 + $0x390] sm:$0xf] }
 0x36d   :  { %11482 = vst [vmem:[#allocation144_spill] sm:$0xff] %v10197_v1  ;;  %v10215_v59 = vor.u32 %v8946_v39, %v8374_v17  ;;  %v8934_v39 = vld [vmem:[#allocation11 + $0x354] sm:$0xf]  ;;  %v8866_v1 = vld [vmem:[#allocation11 + $0x12c] sm:$0xf0] }
 0x36e   :  { %v10190_v24 = vpop.f32.mrf.mxu3  ;;  %v3790_v47 = vpop.f32.mrf.mxu1  ;;  %11485 = vst [vmem:[#allocation147_spill] sm:$0xff] %v10211_v58  ;;  %v8344_v17 = vld [vmem:[#allocation11 + $0x370] sm:$0xf0] }
 0x36f   :  { %11479 = vst [vmem:[#allocation141_spill] sm:$0xff] %v10190_v24  ;;  %v10202_v24 = vor.u32 %v8950_v2, %v8408_v54  ;;  %v8874_v2 = vld [vmem:[#allocation11 + $0x16c] sm:$0xf0]  ;;  %4958 = vmatpush.bf16.msra.mxu0 %v10211_v58  ;;  %4972 = vmatpush.bf16.msra.mxu1 %v10215_v59  ;;  %v10239_v58 = vor.u32 %v8934_v39, %v8344_v17 }
 0x370   :  { %v3761_v25 = vpop.f32.mrf.mxu0  ;;  %11486 = vst [vmem:[#allocation148_spill] sm:$0xff] %v10215_v59  ;;  %v8278_v39 = vld [vmem:[#allocation11 + $0x2d0] sm:$0xf] }
 0x371   :  { %v3762_v55 = vadd.f32 %v3761_v25, %v10060_v19  ;;  %11484 = vst [vmem:[#allocation146_spill] sm:$0xff] %v10202_v24  ;;  %v8120_v19 = vld [vmem:[#allocation11 + $0x1b0] sm:$0xf0]  ;;  %v8086_v25 = vld [vmem:[#allocation11 + $0x150] sm:$0xf]  ;;  %4999 = vmatpush.bf16.msra.mxu3 %v10202_v24 }
 0x372   :  { %v10217_v20 = vor.u32 %v8878_v36, %v8120_v19  ;;  %v10228_v19 = vor.u32 %v8874_v2, %v8086_v25  ;;  %11494 = vst [vmem:[#allocation156_spill] sm:$0xff] %v10239_v58  ;;  %v8862_v25 = vld [vmem:[#allocation11 + $0x114] sm:$0xf] }
 0x373   :  { %v10199_v30 = vadd.f32 %v3790_v47, %v3762_v55  ;;  %v3819_v54 = vpop.f32.mrf.mxu2  ;;  %v10220_v55 = vor.u32 %v8942_v44, %v8376_v11  ;;  %v8938_v47 = vld [vmem:[#allocation11 + $0x36c] sm:$0xf0]  ;;  %v10236_v11 = vor.u32 %v8870_v9, %v8088_v8  ;;  %v8056_v2 = vld [vmem:[#allocation11 + $0x130] sm:$0xf0] }
 0x374   :  { %11487 = vst [vmem:[#allocation149_spill] sm:$0xff] %v10217_v20  ;;  %v3820_v3 = vadd.f32 %v3819_v54, %v10207_v6  ;;  %4986 = vmatpush.bf16.msra.mxu2 %v10217_v20  ;;  %v10234_v44 = vor.u32 %v8938_v47, %v8342_v48  ;;  %v8054_v54 = vld [vmem:[#allocation11 + $0x110] sm:$0xf]  ;;  %4959 = vmatpush.bf16.msra.mxu0 %v10228_v19 }
 0x375   :  { %11483 = vst [vmem:[#allocation145_spill] sm:$0xff] %v10199_v30  ;;  %5000 = vmatpush.bf16.msra.mxu3 %v10220_v55  ;;  %v10242_v59 = vor.u32 %v8866_v1, %v8054_v54  ;;  %v10248_v48 = vor.u32 %v8862_v25, %v8056_v2  ;;  %v8022_v47 = vld [vmem:[#allocation11 + $0xd0] sm:$0xf]  ;;  %v8854_v1 = vld [vmem:[#allocation11 + $0xd4] sm:$0xf] }
 0x376   :  { %11488 = vst [vmem:[#allocation150_spill] sm:$0xff] %v10220_v55  ;;  %v3848_v5 = vpop.f32.mrf.mxu3  ;;  %v10226_v36 = vpop.f32.mrf.mxu1  ;;  %4973 = vmatpush.bf16.msra.mxu1 %v10234_v44  ;;  %v8858_v8 = vld [vmem:[#allocation11 + $0xec] sm:$0xf0]  ;;  %v8024_v54 = vld [vmem:[#allocation11 + $0xf0] sm:$0xf0] }
 0x377   :  { %11490 = vst [vmem:[#allocation152_spill] sm:$0xff] %v10226_v36  ;;  %v10230_v24 = vadd.f32 %v3848_v5, %v3820_v3  ;;  %v8930_v36 = vld [vmem:[#allocation11 + $0x32c] sm:$0xf0]  ;;  %v8926_v5 = vld [vmem:[#allocation11 + $0x314] sm:$0xf]  ;;  %v10259_v2 = vor.u32 %v8858_v8, %v8022_v47 }
 0x378   :  { %v10223_v10 = vpop.f32.mrf.mxu0  ;;  %11491 = vst [vmem:[#allocation153_spill] sm:$0xff] %v10228_v19  ;;  %v8312_v3 = vld [vmem:[#allocation11 + $0x330] sm:$0xf0]  ;;  %4987 = vmatpush.bf16.msra.mxu2 %v10236_v11  ;;  %v8922_v19 = vld [vmem:[#allocation11 + $0x2ec] sm:$0xf0]  ;;  %4960 = vmatpush.bf16.msra.mxu0 %v10242_v59 }
 0x379   :  { %11489 = vst [vmem:[#allocation151_spill] sm:$0xff] %v10223_v10  ;;  %v8310_v10 = vld [vmem:[#allocation11 + $0x310] sm:$0xf]  ;;  %5001 = vmatpush.bf16.msra.mxu3 %v10239_v58  ;;  %v10253_v55 = vor.u32 %v8926_v5, %v8312_v3  ;;  %v10263_v5 = vor.u32 %v8922_v19, %v8278_v39  ;;  %v10265_v3 = vor.u32 %v8854_v1, %v8024_v54  ;;  %v8846_v47 = vld [vmem:[#allocation11 + $0x94] sm:$0xf] }
 0x37a   :  { %11492 = vst [vmem:[#allocation154_spill] sm:$0xff] %v10234_v44  ;;  %v10246_v9 = vor.u32 %v8930_v36, %v8310_v10  ;;  %v8280_v10 = vld [vmem:[#allocation11 + $0x2f0] sm:$0xf0]  ;;  %v7990_v58 = vld [vmem:[#allocation11 + $0x90] sm:$0xf] }
 0x37b   :  { %11493 = vst [vmem:[#allocation155_spill] sm:$0xff] %v10236_v11  ;;  %v10251_v17 = vpop.f32.mrf.mxu2  ;;  %v8918_v11 = vld [vmem:[#allocation11 + $0x2d4] sm:$0xf]  ;;  %v8246_v30 = vld [vmem:[#allocation11 + $0x290] sm:$0xf] }
 0x37c   :  { %11495 = vst [vmem:[#allocation157_spill] sm:$0xff] %v10242_v59  ;;  %4974 = vmatpush.bf16.msra.mxu1 %v10246_v9  ;;  %4988 = vmatpush.bf16.msra.mxu2 %v10248_v48  ;;  %v11505_v59 = vmov 0.0|0.0   ;;  %v7992_v8 = vld [vmem:[#allocation11 + $0xb0] sm:$0xf0] }
 0x37d   :  { %11496 = vst [vmem:[#allocation158_spill] sm:$0xff] %v10246_v9  ;;  %5002 = vmatpush.bf16.msra.mxu3 %v10253_v55  ;;  %4909 = vmatmul.bf16.vlgmr.msrb.gmra.mxu0 %v11505_v59  ;;  %v8910_v19 = vld [vmem:[#allocation11 + $0x294] sm:$0xf]  ;;  %v10283_v54 = vor.u32 %v8846_v47, %v7992_v8  ;;  %v8906_v9 = vld [vmem:[#allocation11 + $0x26c] sm:$0xf0] }
 0x37e   :  { %11497 = vst [vmem:[#allocation159_spill] sm:$0xff] %v10248_v48  ;;  %v10255_v20 = vpop.f32.mrf.mxu3  ;;  %v3795_v25 = vpop.f32.mrf.mxu1  ;;  %4923 = vmatmul.bf16.vlgmr.msrb.gmra.mxu1 %v11505_v59  ;;  %4937 = vmatmul.bf16.vlgmr.msrb.gmra.mxu2 %v11505_v59  ;;  %v8248_v39 = vld [vmem:[#allocation11 + $0x2b0] sm:$0xf0] }
 0x37f   :  { %11498 = vst [vmem:[#allocation160_spill] sm:$0xff] %v10251_v17  ;;  %4951 = vmatmul.bf16.vlgmr.msrb.gmra.mxu3 %v11505_v59  ;;  %4961 = vmatpush.bf16.msra.mxu0 %v10259_v2 }
 0x380   :  { %11499 = vst [vmem:[#allocation161_spill] sm:$0xff] %v10253_v55  ;;  %v3766_v44 = vpop.f32.mrf.mxu0  ;;  %4975 = vmatpush.bf16.msra.mxu1 %v10263_v5  ;;  %4989 = vmatpush.bf16.msra.mxu2 %v10265_v3  ;;  %v10286_v55 = vor.u32 %v8910_v19, %v8248_v39 }
 0x381   :  { %11500 = vst [vmem:[#allocation162_spill] sm:$0xff] %v10255_v20  ;;  %v3767_v36 = vadd.f32 %v3766_v44, %v10114_v0  ;;  %v8850_v20 = vld [vmem:[#allocation11 + $0xac] sm:$0xf0]  ;;  %v10271_v0 = vor.u32 %v8918_v11, %v8280_v10 }
 0x382   :  { %11501 = vst [vmem:[#allocation163_spill] sm:$0xff] %v10259_v2  ;;  %v8914_v44 = vld [vmem:[#allocation11 + $0x2ac] sm:$0xf0]  ;;  %v10277_v1 = vor.u32 %v8850_v20, %v7990_v58  ;;  %v8838_v2 = vld [vmem:[#allocation11 + $0x54] sm:$0xf] }
 0x383   :  { %11502 = vst [vmem:[#allocation164_spill] sm:$0xff] %v10263_v5  ;;  %v10268_v17 = vadd.f32 %v3795_v25, %v3767_v36  ;;  %v10281_v11 = vor.u32 %v8914_v44, %v8246_v30  ;;  %v7958_v10 = vld [vmem:[#allocation11 + $0x50] sm:$0xf]  ;;  %5003 = vmatpush.bf16.msra.mxu3 %v10271_v0  ;;  %v7960_v58 = vld [vmem:[#allocation11 + $0x70] sm:$0xf0] }
 0x384   :  { %11503 = vst [vmem:[#allocation165_spill] sm:$0xff] %v10265_v3  ;;  %v8842_v36 = vld [vmem:[#allocation11 + $0x6c] sm:$0xf0]  ;;  %v8902_v30 = vld [vmem:[#allocation11 + $0x254] sm:$0xf]  ;;  %4962 = vmatpush.bf16.msra.mxu0 %v10277_v1  ;;  %4990 = vmatpush.bf16.msra.mxu2 %v10283_v54  ;;  %v10302_v39 = vor.u32 %v8838_v2, %v7960_v58 }
 0x385   :  { %11504 = vst [vmem:[#allocation166_spill] sm:$0xff] %v10268_v17  ;;  %v8214_v25 = vld [vmem:[#allocation11 + $0x250] sm:$0xf]  ;;  %v3824_v17 = vpop.f32.mrf.mxu2  ;;  %v8216_v44 = vld [vmem:[#allocation11 + $0x270] sm:$0xf0]  ;;  %v10294_v8 = vor.u32 %v8842_v36, %v7958_v10  ;;  %4976 = vmatpush.bf16.msra.mxu1 %v10281_v11 }
 0x386   :  { %11506 = vst [vmem:[#allocation167_spill] sm:$0xff] %v10271_v0  ;;  %v3825_v20 = vadd.f32 %v3824_v17, %v10207_v6  ;;  %v3853_v5 = vpop.f32.mrf.mxu3  ;;  %v10292_v47 = vpop.f32.mrf.mxu1  ;;  %v7926_v0 = vld [vmem:[#allocation11 + $0x10] sm:$0xf]  ;;  %v10300_v17 = vor.u32 %v8906_v9, %v8214_v25  ;;  %v7928_v10 = vld [vmem:[#allocation11 + $0x30] sm:$0xf0] }
 0x387   :  { %11507 = vst [vmem:[#allocation168_spill] sm:$0xff] %v10277_v1  ;;  %v8834_v3 = vld [vmem:[#allocation11 + $0x2c] sm:$0xf0]  ;;  %5004 = vmatpush.bf16.msra.mxu3 %v10286_v55  ;;  %v8894_v36 = vld [vmem:[#allocation11 + $0x214] sm:$0xf] }
 0x388   :  { %11508 = vst [vmem:[#allocation169_spill] sm:$0xff] %v10281_v11  ;;  %v10289_v48 = vpop.f32.mrf.mxu0  ;;  %v10296_v19 = vadd.f32 %v3853_v5, %v3825_v20  ;;  %v8184_v1 = vld [vmem:[#allocation11 + $0x230] sm:$0xf0]  ;;  %v8158_v5 = vld [vmem:[#allocation11 + $0x1d8] sm:$0xf]  ;;  %4963 = vmatpush.bf16.msra.mxu0 %v10294_v8  ;;  %v10308_v11 = vor.u32 %v8834_v3, %v7926_v0  ;;  %4991 = vmatpush.bf16.msra.mxu2 %v10302_v39 }
 0x389   :  { %11509 = vst [vmem:[#allocation170_spill] sm:$0xff] %v10283_v54  ;;  %v8891_v20 = vld [vmem:[#allocation11 + $0x1f4] sm:$0xf0]  ;;  %v8887_v2 = vld [vmem:[#allocation11 + $0x1dc] sm:$0xf]  ;;  %4977 = vmatpush.bf16.msra.mxu1 %v10300_v17 }
 0x38a   :  { %11510 = vst [vmem:[#allocation171_spill] sm:$0xff] %v10286_v55  ;;  %v8955_v9 = vld [vmem:[#allocation11 + $0x3f4] sm:$0xf0]  ;;  %v8160_v25 = vld [vmem:[#allocation11 + $0x1f8] sm:$0xf0]  ;;  %v10321_v3 = vor.u32 %v8891_v20, %v8158_v5 }
 0x38b   :  { %11511 = vst [vmem:[#allocation172_spill] sm:$0xff] %v10289_v48  ;;  %v8182_v48 = vld [vmem:[#allocation11 + $0x210] sm:$0xf]  ;;  %v8416_v55 = vld [vmem:[#allocation11 + $0x3f8] sm:$0xf0] }
 0x38c   :  { %11512 = vst [vmem:[#allocation173_spill] sm:$0xff] %v10292_v47  ;;  %v10305_v47 = vor.u32 %v8902_v30, %v8216_v44  ;;  %v10312_v58 = vor.u32 %v8898_v26, %v8182_v48  ;;  %v10314_v30 = vor.u32 %v8830_v43, %v7928_v10  ;;  %v8951_v44 = vld [vmem:[#allocation11 + $0x3dc] sm:$0xf]  ;;  %v8126_v26 = vld [vmem:[#allocation11 + $0x198] sm:$0xf]  ;;  %4964 = vmatpush.bf16.msra.mxu0 %v10308_v11 }
 0x38d   :  { %11513 = vst [vmem:[#allocation174_spill] sm:$0xff] %v10294_v8  ;;  %v10317_v54 = vpop.f32.mrf.mxu2  ;;  %v10319_v8 = vor.u32 %v8894_v36, %v8184_v1  ;;  %v8883_v43 = vld [vmem:[#allocation11 + $0x1b4] sm:$0xf0]  ;;  %v8879_v36 = vld [vmem:[#allocation11 + $0x19c] sm:$0xf] }
 0x38e   :  { %11514 = vst [vmem:[#allocation175_spill] sm:$0xff] %v10300_v17  ;;  %5005 = vmatpush.bf16.msra.mxu3 %v10305_v47  ;;  %v10323_v0 = vpop.f32.mrf.mxu3  ;;  %v10325_v17 = vor.u32 %v8955_v9, %v8414_v28  ;;  %v8382_v48 = vld [vmem:[#allocation11 + $0x398] sm:$0xf]  ;;  %v8128_v5 = vld [vmem:[#allocation11 + $0x1b8] sm:$0xf0]  ;;  %4978 = vmatpush.bf16.msra.mxu1 %v10312_v58 }
 0x38f   :  { %11515 = vst [vmem:[#allocation176_spill] sm:$0xff] %v10302_v39  ;;  %v10327_v39 = vor.u32 %v8887_v2, %v8160_v25  ;;  %v8947_v1 = vld [vmem:[#allocation11 + $0x3b4] sm:$0xf0]  ;;  %4992 = vmatpush.bf16.msra.mxu2 %v10314_v30  ;;  %v8943_v28 = vld [vmem:[#allocation11 + $0x39c] sm:$0xf]  ;;  %v10339_v2 = vor.u32 %v8883_v43, %v8126_v26  ;;  %4965 = vmatmul.bf16.vlgmr.msra.gmra.mxu0 %v11505_v59 }
 0x390   :  { %11516 = vst [vmem:[#allocation177_spill] sm:$0xff] %v10305_v47  ;;  %v3771_v61 = vpop.f32.mrf.mxu0  ;;  %v3800_v47 = vpop.f32.mrf.mxu1  ;;  %v8384_v20 = vld [vmem:[#allocation11 + $0x3b8] sm:$0xf0]  ;;  %5013 = vmatpush.bf16.msrb.mxu0 %v10321_v3  ;;  %v8875_v25 = vld [vmem:[#allocation11 + $0x174] sm:$0xf0] }
 0x391   :  { %11517 = vst [vmem:[#allocation178_spill] sm:$0xff] %v10308_v11  ;;  %v3772_v10 = vadd.f32 %v3771_v61, %v10170_v14  ;;  %v10343_v61 = vor.u32 %v8947_v1, %v8382_v48  ;;  %v10345_v14 = vor.u32 %v8879_v36, %v8128_v5  ;;  %v8871_v26 = vld [vmem:[#allocation11 + $0x15c] sm:$0xf]  ;;  %4979 = vmatmul.bf16.vlgmr.msra.gmra.mxu1 %v11505_v59 }
 0x392   :  { %11518 = vst [vmem:[#allocation179_spill] sm:$0xff] %v10312_v58  ;;  %5006 = vmatpush.bf16.msra.mxu3 %v10319_v8  ;;  %5027 = vmatpush.bf16.msrb.mxu1 %v10325_v17  ;;  %v8096_v43 = vld [vmem:[#allocation11 + $0x178] sm:$0xf0]  ;;  %v8318_v58 = vld [vmem:[#allocation11 + $0x318] sm:$0xf] }
 0x393   :  { %11519 = vst [vmem:[#allocation180_spill] sm:$0xff] %v10314_v30  ;;  %v10336_v9 = vadd.f32 %v3800_v47, %v3772_v10  ;;  %5041 = vmatpush.bf16.msrb.mxu2 %v10327_v39  ;;  %v10349_v47 = vor.u32 %v8943_v28, %v8384_v20  ;;  %v8939_v10 = vld [vmem:[#allocation11 + $0x374] sm:$0xf0]  ;;  %v8935_v48 = vld [vmem:[#allocation11 + $0x35c] sm:$0xf] }
 0x394   :  { %11520 = vst [vmem:[#allocation181_spill] sm:$0xff] %v10317_v54  ;;  %v10331_v54 = vor.u32 %v8951_v44, %v8416_v55  ;;  %v8094_v55 = vld [vmem:[#allocation11 + $0x158] sm:$0xf]  ;;  %4993 = vmatmul.bf16.vlgmr.msra.gmra.mxu2 %v11505_v59  ;;  %v8352_v1 = vld [vmem:[#allocation11 + $0x378] sm:$0xf0]  ;;  %5014 = vmatpush.bf16.msrb.mxu0 %v10339_v2 }
 0x395   :  { %11521 = vst [vmem:[#allocation182_spill] sm:$0xff] %v10319_v8  ;;  %v8350_v44 = vld [vmem:[#allocation11 + $0x358] sm:$0xf]  ;;  %5007 = vmatmul.bf16.vlgmr.msra.gmra.mxu3 %v11505_v59  ;;  %v3829_v36 = vpop.f32.mrf.mxu2  ;;  %v10355_v5 = vor.u32 %v8875_v25, %v8094_v55  ;;  %v10369_v25 = vor.u32 %v8935_v48, %v8352_v1 }
 0x396   :  { %11522 = vst [vmem:[#allocation183_spill] sm:$0xff] %v10321_v3  ;;  %5055 = vmatpush.bf16.msrb.mxu3 %v10331_v54  ;;  %5028 = vmatpush.bf16.msrb.mxu1 %v10343_v61  ;;  %v3830_v28 = vadd.f32 %v3829_v36, %v10207_v6  ;;  %v3858_v20 = vpop.f32.mrf.mxu3  ;;  %v8867_v8 = vld [vmem:[#allocation11 + $0x134] sm:$0xf0] }
 0x397   :  { %11523 = vst [vmem:[#allocation184_spill] sm:$0xff] %v10323_v0  ;;  %5042 = vmatpush.bf16.msrb.mxu2 %v10345_v14  ;;  %v10362_v0 = vor.u32 %v8939_v10, %v8350_v44  ;;  %v8859_v48 = vld [vmem:[#allocation11 + $0xf4] sm:$0xf0] }
 0x398   :  { %11524 = vst [vmem:[#allocation185_spill] sm:$0xff] %v10325_v17  ;;  %v8062_v17 = vld [vmem:[#allocation11 + $0x118] sm:$0xf]  ;;  %v10367_v55 = vpop.f32.mrf.mxu1  ;;  %v10371_v36 = vadd.f32 %v3858_v20, %v3830_v28  ;;  %5015 = vmatpush.bf16.msrb.mxu0 %v10355_v5 }
 0x399   :  { %11525 = vst [vmem:[#allocation186_spill] sm:$0xff] %v10327_v39  ;;  %v8927_v39 = vld [vmem:[#allocation11 + $0x31c] sm:$0xf]  ;;  %v10374_v44 = vor.u32 %v8867_v8, %v8062_v17  ;;  %v8286_v1 = vld [vmem:[#allocation11 + $0x2d8] sm:$0xf] }
 0x39a   :  { %11526 = vst [vmem:[#allocation187_spill] sm:$0xff] %v10331_v54  ;;  %v10364_v54 = vor.u32 %v8871_v26, %v8096_v43  ;;  %5056 = vmatpush.bf16.msrb.mxu3 %v10349_v47  ;;  %5029 = vmatpush.bf16.msrb.mxu1 %v10362_v0  ;;  %v8030_v43 = vld [vmem:[#allocation11 + $0xd8] sm:$0xf]  ;;  %v8919_v8 = vld [vmem:[#allocation11 + $0x2dc] sm:$0xf] }
 0x39b   :  { %11527 = vst [vmem:[#allocation188_spill] sm:$0xff] %v10336_v9  ;;  %v10360_v9 = vpop.f32.mrf.mxu0  ;;  %v8923_v20 = vld [vmem:[#allocation11 + $0x2f4] sm:$0xf0]  ;;  %v8288_v17 = vld [vmem:[#allocation11 + $0x2f8] sm:$0xf0] }
 0x39c   :  { %11528 = vst [vmem:[#allocation189_spill] sm:$0xff] %v10339_v2  ;;  %v8064_v2 = vld [vmem:[#allocation11 + $0x138] sm:$0xf0]  ;;  %5043 = vmatpush.bf16.msrb.mxu2 %v10364_v54  ;;  %5016 = vmatpush.bf16.msrb.mxu0 %v10374_v44 }
 0x39d   :  { %11529 = vst [vmem:[#allocation190_spill] sm:$0xff] %v10343_v61  ;;  %v8931_v61 = vld [vmem:[#allocation11 + $0x334] sm:$0xf0] }
 0x39e   :  { %11530 = vst [vmem:[#allocation191_spill] sm:$0xff] %v10345_v14  ;;  %v8863_v14 = vld [vmem:[#allocation11 + $0x11c] sm:$0xf]  ;;  %v10378_v10 = vor.u32 %v8931_v61, %v8318_v58  ;;  %5057 = vmatpush.bf16.msrb.mxu3 %v10369_v25  ;;  %v10388_v58 = vor.u32 %v8859_v48, %v8030_v43  ;;  %v10400_v48 = vor.u32 %v8919_v8, %v8288_v17  ;;  %v8222_v8 = vld [vmem:[#allocation11 + $0x258] sm:$0xf] }
 0x39f   :  { %11531 = vst [vmem:[#allocation192_spill] sm:$0xff] %v10349_v47  ;;  %v10380_v26 = vor.u32 %v8863_v14, %v8064_v2  ;;  %v8032_v47 = vld [vmem:[#allocation11 + $0xf8] sm:$0xf0]  ;;  %v10392_v2 = vpop.f32.mrf.mxu3  ;;  %v7998_v14 = vld [vmem:[#allocation11 + $0x98] sm:$0xf] }
 0x3a0   :  { %11532 = vst [vmem:[#allocation193_spill] sm:$0xff] %v10355_v5  ;;  %5030 = vmatpush.bf16.msrb.mxu1 %v10378_v10  ;;  %v3805_v43 = vpop.f32.mrf.mxu1  ;;  %v8911_v5 = vld [vmem:[#allocation11 + $0x29c] sm:$0xf]  ;;  %5017 = vmatpush.bf16.msrb.mxu0 %v10388_v58 }
 0x3a1   :  { %11533 = vst [vmem:[#allocation194_spill] sm:$0xff] %v10360_v9  ;;  %v8320_v9 = vld [vmem:[#allocation11 + $0x338] sm:$0xf0]  ;;  %5044 = vmatpush.bf16.msrb.mxu2 %v10380_v26 }
 0x3a2   :  { %11534 = vst [vmem:[#allocation195_spill] sm:$0xff] %v10362_v0  ;;  %v10383_v28 = vor.u32 %v8927_v39, %v8320_v9  ;;  %v10386_v0 = vpop.f32.mrf.mxu2  ;;  %v10394_v39 = vor.u32 %v8923_v20, %v8286_v1  ;;  %v7966_v1 = vld [vmem:[#allocation11 + $0x58] sm:$0xf] }
 0x3a3   :  { %11535 = vst [vmem:[#allocation196_spill] sm:$0xff] %v10364_v54  ;;  %v3776_v61 = vpop.f32.mrf.mxu0  ;;  %v8254_v54 = vld [vmem:[#allocation11 + $0x298] sm:$0xf] }
 0x3a4   :  { %11536 = vst [vmem:[#allocation197_spill] sm:$0xff] %v10367_v55  ;;  %v8855_v55 = vld [vmem:[#allocation11 + $0xdc] sm:$0xf]  ;;  %5058 = vmatpush.bf16.msrb.mxu3 %v10383_v28  ;;  %5031 = vmatpush.bf16.msrb.mxu1 %v10394_v39  ;;  %v8843_v20 = vld [vmem:[#allocation11 + $0x74] sm:$0xf0] }
 0x3a5   :  { %11537 = vst [vmem:[#allocation198_spill] sm:$0xff] %v10369_v25  ;;  %v10396_v9 = vor.u32 %v8855_v55, %v8032_v47  ;;  %v8851_v25 = vld [vmem:[#allocation11 + $0xb4] sm:$0xf0] }
 0x3a6   :  { %11538 = vst [vmem:[#allocation199_spill] sm:$0xff] %v10374_v44  ;;  %v8847_v44 = vld [vmem:[#allocation11 + $0x9c] sm:$0xf]  ;;  %v10405_v47 = vor.u32 %v8851_v25, %v7998_v14 }
 0x3a7   :  { %11539 = vst [vmem:[#allocation200_spill] sm:$0xff] %v10378_v10  ;;  %v8915_v10 = vld [vmem:[#allocation11 + $0x2b4] sm:$0xf0]  ;;  %5045 = vmatpush.bf16.msrb.mxu2 %v10396_v9  ;;  %v8903_v25 = vld [vmem:[#allocation11 + $0x25c] sm:$0xf] }
 0x3a8   :  { %11540 = vst [vmem:[#allocation201_spill] sm:$0xff] %v10380_v26  ;;  %v8000_v26 = vld [vmem:[#allocation11 + $0xb8] sm:$0xf0]  ;;  %v10409_v55 = vor.u32 %v8915_v10, %v8254_v54  ;;  %5059 = vmatpush.bf16.msrb.mxu3 %v10400_v48  ;;  %5018 = vmatpush.bf16.msrb.mxu0 %v10405_v47 }
 0x3a9   :  { %11541 = vst [vmem:[#allocation202_spill] sm:$0xff] %v10383_v28  ;;  %v8224_v14 = vld [vmem:[#allocation11 + $0x278] sm:$0xf0]  ;;  %v8190_v28 = vld [vmem:[#allocation11 + $0x218] sm:$0xf] }
 0x3aa   :  { %11542 = vst [vmem:[#allocation203_spill] sm:$0xff] %v10386_v0  ;;  %v3777_v0 = vadd.f32 %v3776_v61, %v10186_v29  ;;  %v10411_v29 = vor.u32 %v8847_v44, %v8000_v26  ;;  %v8839_v61 = vld [vmem:[#allocation11 + $0x5c] sm:$0xf]  ;;  %5032 = vmatpush.bf16.msrb.mxu1 %v10409_v55  ;;  %v3863_v44 = vpop.f32.mrf.mxu3 }
 0x3ab   :  { %11543 = vst [vmem:[#allocation204_spill] sm:$0xff] %v10388_v58  ;;  %v10422_v10 = vpop.f32.mrf.mxu0 }
 0x3ac   :  { %11544 = vst [vmem:[#allocation205_spill] sm:$0xff] %v10392_v2  ;;  %v8256_v2 = vld [vmem:[#allocation11 + $0x2b8] sm:$0xf0]  ;;  %v10402_v3 = vadd.f32 %v3805_v43, %v3777_v0  ;;  %v8907_v0 = vld [vmem:[#allocation11 + $0x274] sm:$0xf0]  ;;  %5046 = vmatpush.bf16.msrb.mxu2 %v10411_v29 }
 0x3ad   :  { %11545 = vst [vmem:[#allocation206_spill] sm:$0xff] %v10394_v39  ;;  %v10414_v17 = vor.u32 %v8911_v5, %v8256_v2  ;;  %v7968_v43 = vld [vmem:[#allocation11 + $0x78] sm:$0xf0]  ;;  %v10417_v39 = vor.u32 %v8843_v20, %v7966_v1  ;;  %v10424_v5 = vor.u32 %v8907_v0, %v8222_v8  ;;  %v7934_v2 = vld [vmem:[#allocation11 + $0x18] sm:$0xf]  ;;  %v10429_v1 = vpop.f32.mrf.mxu1  ;;  %v10431_v20 = vor.u32 %v8903_v25, %v8224_v14 }
 0x3ae   :  { %11546 = vst [vmem:[#allocation207_spill] sm:$0xff] %v10396_v9  ;;  %v10426_v26 = vor.u32 %v8839_v61, %v7968_v43  ;;  %v8895_v9 = vld [vmem:[#allocation11 + $0x21c] sm:$0xf] }
 0x3af   :  { %11547 = vst [vmem:[#allocation208_spill] sm:$0xff] %v10400_v48  ;;  %v8835_v48 = vld [vmem:[#allocation11 + $0x34] sm:$0xf0]  ;;  %5060 = vmatpush.bf16.msrb.mxu3 %v10414_v17  ;;  %5019 = vmatpush.bf16.msrb.mxu0 %v10417_v39 }
 0x3b0   :  { %11548 = vst [vmem:[#allocation209_spill] sm:$0xff] %v10402_v3  ;;  %v3834_v3 = vpop.f32.mrf.mxu2  ;;  %v10436_v8 = vor.u32 %v8835_v48, %v7934_v2  ;;  %5033 = vmatpush.bf16.msrb.mxu1 %v10424_v5  ;;  %5047 = vmatpush.bf16.msrb.mxu2 %v10426_v26 }
 0x3b1   :  { %11549 = vst [vmem:[#allocation210_spill] sm:$0xff] %v10405_v47  ;;  %v3835_v54 = vadd.f32 %v3834_v3, %v10207_v6  ;;  %v7936_v47 = vld [vmem:[#allocation11 + $0x38] sm:$0xf0] }
 0x3b2   :  { %11550 = vst [vmem:[#allocation211_spill] sm:$0xff] %v10409_v55  ;;  %v8899_v55 = vld [vmem:[#allocation11 + $0x234] sm:$0xf0]  ;;  %v10452_v48 = vpop.f32.mrf.mxu3 }
 0x3b3   :  { %11551 = vst [vmem:[#allocation212_spill] sm:$0xff] %v10411_v29  ;;  %v8831_v29 = vld [vmem:[#allocation11 + $0x1c] sm:$0xf]  ;;  %v10433_v3 = vadd.f32 %v3863_v44, %v3835_v54  ;;  %v10440_v0 = vor.u32 %v8899_v55, %v8190_v28  ;;  %5061 = vmatpush.bf16.msrb.mxu3 %v10431_v20  ;;  %5020 = vmatpush.bf16.msrb.mxu0 %v10436_v8  ;;  %v3877_v14 = vpop.f32.mrf.mxu0 }
 0x3b4   :  { %11552 = vst [vmem:[#allocation213_spill] sm:$0xff] %v10414_v17  ;;  %v10442_v61 = vor.u32 %v8831_v29, %v7936_v47  ;;  %v3878_v28 = vadd.f32 %v3877_v14, %v10230_v24 }
 0x3b5   :  { %11553 = vst [vmem:[#allocation214_spill] sm:$0xff] %v10417_v39  ;;  %5034 = vmatpush.bf16.msrb.mxu1 %v10440_v0  ;;  %v3906_v47 = vpop.f32.mrf.mxu1 }
 0x3b6   :  { %11554 = vst [vmem:[#allocation215_spill] sm:$0xff] %v10422_v10  ;;  %v8192_v10 = vld [vmem:[#allocation11 + $0x238] sm:$0xf0]  ;;  %5048 = vmatpush.bf16.msrb.mxu2 %v10442_v61  ;;  %5021 = vmatmul.bf16.vlgmr.msrb.gmra.mxu0 %v11505_v59 }
 0x3b7   :  { %11555 = vst [vmem:[#allocation216_spill] sm:$0xff] %v10424_v5  ;;  %v10445_v43 = vor.u32 %v8895_v9, %v8192_v10  ;;  %5178 = vmatpush.bf16.msra.mxu0 %v9936_v50  ;;  %v3907_v9 = vadd.f32 %v3906_v47, %v3878_v28 }
 0x3b8   :  { %11556 = vst [vmem:[#allocation217_spill] sm:$0xff] %v10426_v26  ;;  %v10448_v25 = vpop.f32.mrf.mxu2  ;;  %5035 = vmatmul.bf16.vlgmr.msrb.gmra.mxu1 %v11505_v59 }
 0x3b9   :  { %11557 = vst [vmem:[#allocation218_spill] sm:$0xff] %v10429_v1  ;;  %5062 = vmatpush.bf16.msrb.mxu3 %v10445_v43  ;;  %5049 = vmatmul.bf16.vlgmr.msrb.gmra.mxu2 %v11505_v59  ;;  %v11569_v1 = vld [vmem:[#allocation97_spill] sm:$0xff] }
 0x3ba   :  { %11558 = vst [vmem:[#allocation219_spill] sm:$0xff] %v10431_v20  ;;  %5206 = vmatpush.bf16.msra.mxu2 %v9942_v37  ;;  %5192 = vmatpush.bf16.msra.mxu1 %v9940_v34  ;;  %v3964_v29 = vpop.f32.mrf.mxu3 }
 0x3bb   :  { %11559 = vst [vmem:[#allocation220_spill] sm:$0xff] %v10436_v8  ;;  %5179 = vmatpush.bf16.msra.mxu0 %v9949_v41  ;;  %v10466_v54 = vpop.f32.mrf.mxu0 }
 0x3bc   :  { %11560 = vst [vmem:[#allocation221_spill] sm:$0xff] %v10440_v0  ;;  %5063 = vmatmul.bf16.vlgmr.msrb.gmra.mxu3 %v11505_v59 }
 0x3bd   :  { %11561 = vst [vmem:[#allocation222_spill] sm:$0xff] %v10442_v61  ;;  %5220 = vmatpush.bf16.msra.mxu3 %v9945_v49  ;;  %v10469_v44 = vpop.f32.mrf.mxu1 }
 0x3be   :  { %11562 = vst [vmem:[#allocation223_spill] sm:$0xff] %v10445_v43  ;;  %5207 = vmatpush.bf16.msra.mxu2 %v9954_v33  ;;  %5193 = vmatpush.bf16.msra.mxu1 %v9952_v15 }
 0x3bf   :  { %11563 = vst [vmem:[#allocation224_spill] sm:$0xff] %v10448_v25  ;;  %5180 = vmatpush.bf16.msra.mxu0 %v9963_v40  ;;  %v11571_v25 = vld [vmem:[#allocation99_spill] sm:$0xff] }
 0x3c0   :  { %11564 = vst [vmem:[#allocation225_spill] sm:$0xff] %v10452_v48  ;;  %v3935_v24 = vpop.f32.mrf.mxu2  ;;  %v11570_v48 = vld [vmem:[#allocation96_spill] sm:$0xff] }
 0x3c1   :  { %v3936_v55 = vadd.f32 %v3935_v24, %v3907_v9  ;;  %5221 = vmatpush.bf16.msra.mxu3 %v9956_v22 }
 0x3c2   :  { %5208 = vmatpush.bf16.msra.mxu2 %v9969_v18  ;;  %5194 = vmatpush.bf16.msra.mxu1 %v9967_v38  ;;  %v10482_v2 = vpop.f32.mrf.mxu3 }
 0x3c3   :  { %v10473_v59 = vadd.f32 %v3964_v29, %v3936_v55  ;;  %5181 = vmatpush.bf16.msra.mxu0 %v9978_v27  ;;  %v3882_v14 = vpop.f32.mrf.mxu0 }
 0x3c4   :  { %v3883_v28 = vadd.f32 %v3882_v14, %v10296_v19 }
 0x3c5   :  { %5222 = vmatpush.bf16.msra.mxu3 %v9972_v52  ;;  %v3911_v47 = vpop.f32.mrf.mxu1 }
 0x3c6   :  { %5209 = vmatpush.bf16.msra.mxu2 %v9984_v12  ;;  %5195 = vmatpush.bf16.msra.mxu1 %v9982_v53  ;;  %v3912_v9 = vadd.f32 %v3911_v47, %v3883_v28  ;;  %v11567_v28 = vld [vmem:[#allocation93_spill] sm:$0xff] }
 0x3c7   :  { %5182 = vmatpush.bf16.msra.mxu0 %v9991_v23 }
 0x3c8   :  { %v10480_v10 = vpop.f32.mrf.mxu2 }
 0x3c9   :  { %5223 = vmatpush.bf16.msra.mxu3 %v9987_v57  ;;  %v11614_v57 = vld [vmem:[#allocation46_spill] sm:$0xff] }
 0x3ca   :  { %5210 = vmatpush.bf16.msra.mxu2 %v9999_v56  ;;  %5196 = vmatpush.bf16.msra.mxu1 %v9997_v13  ;;  %v3969_v29 = vpop.f32.mrf.mxu3 }
 0x3cb   :  { %5183 = vmatpush.bf16.msra.mxu0 %v10010_v16  ;;  %v10493_v19 = vpop.f32.mrf.mxu0 }
 0x3cc   :  { %11565 = vst [vmem:[#allocation226_spill] sm:$0xff] %v10493_v19  ;;  %v11574_v19 = vld [vmem:[#allocation103_spill] sm:$0xff] }
 0x3cd   :  { %5224 = vmatpush.bf16.msra.mxu3 %v10002_v4  ;;  %v10496_v14 = vpop.f32.mrf.mxu1 }
 0x3ce   :  { %5211 = vmatpush.bf16.msra.mxu2 %v10016_v45  ;;  %5197 = vmatpush.bf16.msra.mxu1 %v10014_v31  ;;  %11566 = vst [vmem:[#allocation227_spill] sm:$0xff] %v10496_v14  ;;  %v11576_v14 = vld [vmem:[#allocation105_spill] sm:$0xff]  ;;  %v11613_v45 = vld [vmem:[#allocation30_spill] sm:$0xff] }
 0x3cf   :  { %5184 = vmatpush.bf16.msra.mxu0 %v10023_v46 }
 0x3d0   :  { %v3940_v24 = vpop.f32.mrf.mxu2 }
 0x3d1   :  { %v3941_v55 = vadd.f32 %v3940_v24, %v3912_v9  ;;  %5225 = vmatpush.bf16.msra.mxu3 %v11567_v28  ;;  %v11572_v9 = vld [vmem:[#allocation98_spill] sm:$0xff]  ;;  %v11573_v24 = vld [vmem:[#allocation101_spill] sm:$0xff] }
 0x3d2   :  { %5212 = vmatpush.bf16.msra.mxu2 %v11569_v1  ;;  %5198 = vmatpush.bf16.msra.mxu1 %v11570_v48  ;;  %v10511_v46 = vpop.f32.mrf.mxu3  ;;  %v11579_v28 = vld [vmem:[#allocation102_spill] sm:$0xff] }
 0x3d3   :  { %v10500_v47 = vadd.f32 %v3969_v29, %v3941_v55  ;;  %5185 = vmatpush.bf16.msra.mxu0 %v11571_v25  ;;  %11577 = vst [vmem:[#allocation230_spill] sm:$0xff] %v10511_v46  ;;  %v3887_v55 = vpop.f32.mrf.mxu0  ;;  %v11578_v29 = vld [vmem:[#allocation100_spill] sm:$0xff] }
 0x3d4   :  { %v11580_v25 = vld [vmem:[#allocation104_spill] sm:$0xff] }
 0x3d5   :  { %11568 = vst [vmem:[#allocation228_spill] sm:$0xff] %v10500_v47  ;;  %5226 = vmatpush.bf16.msra.mxu3 %v11572_v9  ;;  %v3888_v47 = vadd.f32 %v3887_v55, %v10371_v36  ;;  %v3916_v48 = vpop.f32.mrf.mxu1  ;;  %v11581_v9 = vld [vmem:[#allocation107_spill] sm:$0xff] }
 0x3d6   :  { %5213 = vmatpush.bf16.msra.mxu2 %v11573_v24  ;;  %5199 = vmatpush.bf16.msra.mxu1 %v11578_v29  ;;  %v11582_v24 = vld [vmem:[#allocation106_spill] sm:$0xff]  ;;  %v11587_v29 = vld [vmem:[#allocation113_spill] sm:$0xff] }
 0x3d7   :  { %5234 = vmatpush.bf16.msrb.mxu0 %v11574_v19  ;;  %v3917_v19 = vadd.f32 %v3916_v48, %v3888_v47  ;;  %v11589_v47 = vld [vmem:[#allocation116_spill] sm:$0xff] }
 0x3d8   :  { %v10508_v31 = vpop.f32.mrf.mxu2 }
 0x3d9   :  { %11575 = vst [vmem:[#allocation229_spill] sm:$0xff] %v10508_v31  ;;  %5227 = vmatpush.bf16.msra.mxu3 %v11579_v28  ;;  %v11583_v31 = vld [vmem:[#allocation109_spill] sm:$0xff] }
 0x3da   :  { %5262 = vmatpush.bf16.msrb.mxu2 %v11576_v14  ;;  %5248 = vmatpush.bf16.msrb.mxu1 %v11580_v25  ;;  %v11584_v14 = vld [vmem:[#allocation108_spill] sm:$0xff]  ;;  %v3974_v55 = vpop.f32.mrf.mxu3 }
 0x3db   :  { %5235 = vmatpush.bf16.msrb.mxu0 %v11581_v9  ;;  %v10524_v28 = vpop.f32.mrf.mxu0 }
 0x3dc   :  { %11585 = vst [vmem:[#allocation231_spill] sm:$0xff] %v10524_v28  ;;  %v11596_v28 = vld [vmem:[#allocation122_spill] sm:$0xff] }
 0x3dd   :  { %5276 = vmatpush.bf16.msrb.mxu3 %v11582_v24  ;;  %v10526_v25 = vpop.f32.mrf.mxu1  ;;  %v11593_v24 = vld [vmem:[#allocation120_spill] sm:$0xff] }
 0x3de   :  { %5263 = vmatpush.bf16.msrb.mxu2 %v11583_v31  ;;  %5249 = vmatpush.bf16.msrb.mxu1 %v11584_v14  ;;  %11586 = vst [vmem:[#allocation232_spill] sm:$0xff] %v10526_v25  ;;  %v11590_v14 = vld [vmem:[#allocation115_spill] sm:$0xff] }
 0x3df   :  { %5236 = vmatpush.bf16.msrb.mxu0 %v10084_v51  ;;  %v11591_v51 = vld [vmem:[#allocation118_spill] sm:$0xff] }
 0x3e0   :  { %v3945_v46 = vpop.f32.mrf.mxu2 }
 0x3e1   :  { %5277 = vmatpush.bf16.msrb.mxu3 %v10077_v63  ;;  %v3946_v36 = vadd.f32 %v3945_v46, %v3917_v19  ;;  %v11592_v63 = vld [vmem:[#allocation117_spill] sm:$0xff]  ;;  %v11594_v46 = vld [vmem:[#allocation119_spill] sm:$0xff] }
 0x3e2   :  { %5264 = vmatpush.bf16.msrb.mxu2 %v10090_v60  ;;  %5250 = vmatpush.bf16.msrb.mxu1 %v11587_v29  ;;  %v10540_v25 = vpop.f32.mrf.mxu3  ;;  %v11598_v29 = vld [vmem:[#allocation121_spill] sm:$0xff] }
 0x3e3   :  { %v10529_v48 = vadd.f32 %v3974_v55, %v3946_v36  ;;  %5237 = vmatpush.bf16.msrb.mxu0 %v11589_v47  ;;  %11597 = vst [vmem:[#allocation235_spill] sm:$0xff] %v10540_v25  ;;  %v3892_v36 = vpop.f32.mrf.mxu0 }
 0x3e4   :  { %v3893_v55 = vadd.f32 %v3892_v36, %v10433_v3 }
 0x3e5   :  { %11588 = vst [vmem:[#allocation233_spill] sm:$0xff] %v10529_v48  ;;  %5278 = vmatpush.bf16.msrb.mxu3 %v11590_v14  ;;  %v3921_v48 = vpop.f32.mrf.mxu1  ;;  %v11599_v14 = vld [vmem:[#allocation123_spill] sm:$0xff] }
 0x3e6   :  { %5265 = vmatpush.bf16.msrb.mxu2 %v11591_v51  ;;  %5251 = vmatpush.bf16.msrb.mxu1 %v11592_v63  ;;  %v3922_v63 = vadd.f32 %v3921_v48, %v3893_v55  ;;  %v11604_v55 = vld [vmem:[#allocation133_spill] sm:$0xff] }
 0x3e7   :  { %5238 = vmatpush.bf16.msrb.mxu0 %v11593_v24 }
 0x3e8   :  { %v10537_v19 = vpop.f32.mrf.mxu2 }
 0x3e9   :  { %5279 = vmatpush.bf16.msrb.mxu3 %v11594_v46  ;;  %11595 = vst [vmem:[#allocation234_spill] sm:$0xff] %v10537_v19 }
 0x3ea   :  { %5266 = vmatpush.bf16.msrb.mxu2 %v11596_v28  ;;  %5252 = vmatpush.bf16.msrb.mxu1 %v11598_v29  ;;  %v3979_v36 = vpop.f32.mrf.mxu3  ;;  %v11611_v28 = vld [vmem:[#allocation38_spill] sm:$0xff] }
 0x3eb   :  { %5239 = vmatpush.bf16.msrb.mxu0 %v10126_v32  ;;  %v10551_v19 = vpop.f32.mrf.mxu0  ;;  %v11602_v32 = vld [vmem:[#allocation130_spill] sm:$0xff] }
 0x3ec   :  { %11600 = vst [vmem:[#allocation236_spill] sm:$0xff] %v10551_v19 }
 0x3ed   :  { %5280 = vmatpush.bf16.msrb.mxu3 %v11599_v14  ;;  %v10553_v29 = vpop.f32.mrf.mxu1  ;;  %v11608_v14 = vld [vmem:[#allocation136_spill] sm:$0xff] }
 0x3ee   :  { %5267 = vmatpush.bf16.msrb.mxu2 %v10132_v7  ;;  %5253 = vmatpush.bf16.msrb.mxu1 %v10130_v62  ;;  %11601 = vst [vmem:[#allocation237_spill] sm:$0xff] %v10553_v29  ;;  %v11605_v62 = vld [vmem:[#allocation132_spill] sm:$0xff] }
 0x3ef   :  { %5240 = vmatpush.bf16.msrb.mxu0 %v10139_v35  ;;  %v11606_v35 = vld [vmem:[#allocation135_spill] sm:$0xff] }
 0x3f0   :  { %v3950_v25 = vpop.f32.mrf.mxu2 }
 0x3f1   :  { %5281 = vmatpush.bf16.msrb.mxu3 %v10135_v21  ;;  %v3951_v3 = vadd.f32 %v3950_v25, %v3922_v63  ;;  %v11607_v21 = vld [vmem:[#allocation134_spill] sm:$0xff] }
 0x3f2   :  { %5268 = vmatpush.bf16.msrb.mxu2 %v10147_v42  ;;  %5254 = vmatpush.bf16.msrb.mxu1 %v11602_v32  ;;  %v10565_v25 = vpop.f32.mrf.mxu3 }
 0x3f3   :  { %v10556_v48 = vadd.f32 %v3979_v36, %v3951_v3  ;;  %5241 = vmatpush.bf16.msrb.mxu0 %v11604_v55  ;;  %11610 = vst [vmem:[#allocation240_spill] sm:$0xff] %v10565_v25  ;;  %v4854_v19 = vpop.f32.mrf.mxu0 }
 0x3f5   :  { %11603 = vst [vmem:[#allocation238_spill] sm:$0xff] %v10556_v48  ;;  %5282 = vmatpush.bf16.msrb.mxu3 %v11605_v62  ;;  %v4868_v29 = vpop.f32.mrf.mxu1 }
 0x3f6   :  { %5269 = vmatpush.bf16.msrb.mxu2 %v11606_v35  ;;  %5255 = vmatpush.bf16.msrb.mxu1 %v11607_v21  ;;  %v4869_v35 = vadd.f32 %v4868_v29, %v4854_v19 }
 0x3f8   :  { %v10563_v63 = vpop.f32.mrf.mxu2 }
 0x3f9   :  { %5283 = vmatpush.bf16.msrb.mxu3 %v11608_v14  ;;  %11609 = vst [vmem:[#allocation239_spill] sm:$0xff] %v10563_v63  ;;  %v11612_v14 = vld [vmem:[#allocation22_spill] sm:$0xff] }
 0x3fa   :  { %v4896_v32 = vpop.f32.mrf.mxu3  ;;  %v5069_v51 = vadd.f32 %v4869_v35, %v11612_v14 }
 0x3fb   :  { %v4856_v3 = vpop.f32.mrf.mxu0 }
 0x3fc   :  { %v5085_v13 = vmul.f32 0.5, %v5069_v51 }
 0x3fd   :  { %v4870_v36 = vpop.f32.mrf.mxu1 }
 0x3fe   :  { %v4871_v4 = vadd.f32 %v4870_v36, %v4856_v3 }
 0x400   :  { %v4882_v42 = vpop.f32.mrf.mxu2 }
 0x401   :  { %v4897_v63 = vadd.f32 %v4896_v32, %v4882_v42 }
 0x402   :  { %v4898_v55 = vpop.f32.mrf.mxu3 }
 0x403   :  { %v4910_v7 = vpop.f32.mrf.mxu0  ;;  %v5070_v16 = vadd.f32 %v4897_v63, %v11613_v45 }
 0x405   :  { %v4924_v62 = vpop.f32.mrf.mxu1  ;;  %v5086_v32 = vmul.f32 0.5, %v5070_v16 }
 0x406   :  { %v4925_v46 = vadd.f32 %v4924_v62, %v4910_v7  ;;  %v11615_v62 = vld [vmem:[#allocation39_spill] sm:$0xff] }
 0x408   :  { %v4884_v48 = vpop.f32.mrf.mxu2  ;;  %v5071_v21 = vadd.f32 %v4925_v46, %v11611_v28  ;;  %v11616_v28 = vld [vmem:[#allocation23_spill] sm:$0xff] }
 0x409   :  { %v5077_v29 = vadd.f32 %v4871_v4, %v11616_v28 }
 0x40a   :  { %v4952_v47 = vpop.f32.mrf.mxu3  ;;  %v5101_v9 = vmul.f32 0.5, %v5071_v21 }
 0x40b   :  { %v4912_v25 = vpop.f32.mrf.mxu0 }
 0x40c   :  { %9003 = vtanh.f32 %v5101_v9  ;;  %v11618_v9 = vld [vmem:[#allocation31_spill] sm:$0xff] }
 0x40d   :  { %v4926_v31 = vpop.f32.mrf.mxu1  ;;  %9005 = vtanh.f32 %v5085_v13  ;;  %v11619_v13 = vld [vmem:[#allocation54_spill] sm:$0xff] }
 0x40e   :  { %v4927_v1 = vadd.f32 %v4926_v31, %v4912_v25  ;;  %9007 = vtanh.f32 %v5086_v32 }
 0x410   :  { %v4938_v24 = vpop.f32.mrf.mxu2  ;;  %v5079_v7 = vadd.f32 %v4927_v1, %v11615_v62 }
 0x411   :  { %v4953_v60 = vadd.f32 %v4952_v47, %v4938_v24  ;;  %v4899_v24 = vadd.f32 %v4898_v55, %v4884_v48  ;;  %v5087_v47 = vmul.f32 0.5, %v5077_v29 }
 0x412   :  { %v4954_v35 = vpop.f32.mrf.mxu3  ;;  %v5103_v21 = vmul.f32 0.5, %v5079_v7  ;;  %v9004_v19 = vpop.eup %9003 }
 0x413   :  { %v5072_v53 = vadd.f32 %v4953_v60, %v11614_v57  ;;  %v4966_v31 = vpop.f32.mrf.mxu0  ;;  %v11617_v57 = vld [vmem:[#allocation47_spill] sm:$0xff]  ;;  %v9006_v1 = vpop.eup %9005  ;;  %v5078_v4 = vadd.f32 %v4899_v24, %v11618_v9  ;;  %v11620_v24 = vld [vmem:[#allocation62_spill] sm:$0xff] }
 0x414   :  { %v5093_v48 = vmul.f32 0.5, %v9006_v1  ;;  %v9008_v25 = vpop.eup %9007 }
 0x415   :  { %v5102_v42 = vmul.f32 0.5, %v5072_v53  ;;  %v4980_v51 = vpop.f32.mrf.mxu1  ;;  %v5109_v53 = vmul.f32 0.5, %v9004_v19  ;;  %v5088_v3 = vmul.f32 0.5, %v5078_v4  ;;  %v5094_v1 = vmul.f32 0.5, %v9008_v25 }
 0x416   :  { %v4981_v45 = vadd.f32 %v4980_v51, %v4966_v31  ;;  %v11621_v51 = vld [vmem:[#allocation55_spill] sm:$0xff] }
 0x417   :  { %9009 = vtanh.f32 %v5102_v42  ;;  %v5113_v28 = vadd.f32 0.5, %v5109_v53 }
 0x418   :  { %v4940_v46 = vpop.f32.mrf.mxu2  ;;  %9011 = vtanh.f32 %v5103_v21  ;;  %v5073_v16 = vadd.f32 %v4981_v45, %v11619_v13 }
 0x419   :  { %v4955_v14 = vadd.f32 %v4954_v35, %v4940_v46  ;;  %9013 = vtanh.f32 %v5087_v47  ;;  %v5137_v45 = vmul.f32 0.0, %v5113_v28 }
 0x41a   :  { %9015 = vtanh.f32 %v5073_v16  ;;  %v5008_v36 = vpop.f32.mrf.mxu3 }
 0x41b   :  { %v5080_v60 = vadd.f32 %v4955_v14, %v11617_v57  ;;  %v4968_v62 = vpop.f32.mrf.mxu0  ;;  %v5097_v14 = vadd.f32 0.5, %v5093_v48 }
 0x41d   :  { %v5104_v55 = vmul.f32 0.5, %v5080_v60  ;;  %v9010_v7 = vpop.eup %9009  ;;  %v4982_v46 = vpop.f32.mrf.mxu1 }
 0x41e   :  { %v9012_v32 = vpop.eup %9011  ;;  %v4983_v35 = vadd.f32 %v4982_v46, %v4968_v62  ;;  %v5110_v47 = vmul.f32 0.5, %v9010_v7 }
 0x41f   :  { %v9014_v42 = vpop.eup %9013  ;;  %9017 = vtanh.f32 %v5104_v55  ;;  %v5111_v57 = vmul.f32 0.5, %v9012_v32 }
 0x420   :  { %v4994_v63 = vpop.f32.mrf.mxu2  ;;  %v9016_v31 = vpop.eup %9015  ;;  %9019 = vtanh.f32 %v5088_v3  ;;  %v5081_v19 = vadd.f32 %v4983_v35, %v11621_v51  ;;  %v5095_v9 = vmul.f32 0.5, %v9014_v42  ;;  %v5114_v16 = vadd.f32 0.5, %v5110_v47 }
 0x421   :  { %v5009_v29 = vadd.f32 %v5008_v36, %v4994_v63  ;;  %v5141_v60 = vmul.f32 %v9016_v31, %v5097_v14  ;;  %v5115_v55 = vadd.f32 0.5, %v5111_v57  ;;  %v5098_v3 = vadd.f32 0.5, %v5094_v1  ;;  %v11623_v1 = vld [vmem:[#allocation160_spill] sm:$0xff] }
 0x422   :  { %v5010_v53 = vpop.f32.mrf.mxu3  ;;  %v5099_v7 = vadd.f32 0.5, %v5095_v9  ;;  %v5138_v32 = vmul.f32 0.0, %v5114_v16  ;;  %v3822_v9 = vadd.f32 %v11623_v1, %v10207_v6 }
 0x423   :  { %v5074_v21 = vadd.f32 %v5009_v29, %v11620_v24  ;;  %v10578_v4 = vadd.f32 %v5141_v60, %v5137_v45  ;;  %v11622_v29 = vld [vmem:[#allocation63_spill] sm:$0xff]  ;;  %v5139_v14 = vmul.f32 0.0, %v5115_v55 }
 0x425   :  { %9021 = vtanh.f32 %v5074_v21  ;;  %v9018_v48 = vpop.eup %9017 }
 0x426   :  { %9023 = vtanh.f32 %v5081_v19  ;;  %v9020_v36 = vpop.eup %9019  ;;  %v5112_v35 = vmul.f32 0.5, %v9018_v48  ;;  %v11624_v48 = vld [vmem:[#allocation145_spill] sm:$0xff] }
 0x427   :  { %v5096_v24 = vmul.f32 0.5, %v9020_v36 }
 0x428   :  { %v4996_v13 = vpop.f32.mrf.mxu2  ;;  %v5116_v47 = vadd.f32 0.5, %v5112_v35 }
 0x429   :  { %v5011_v63 = vadd.f32 %v5010_v53, %v4996_v13  ;;  %v5100_v51 = vadd.f32 0.5, %v5096_v24 }
 0x42a   :  { %v5140_v45 = vmul.f32 0.0, %v5116_v47 }
 0x42b   :  { %v9022_v62 = vpop.eup %9021  ;;  %v5082_v28 = vadd.f32 %v5011_v63, %v11622_v29  ;;  %v11625_v63 = vld [vmem:[#allocation162_spill] sm:$0xff] }
 0x42c   :  { %v9024_v46 = vpop.eup %9023  ;;  %v5142_v25 = vmul.f32 %v9022_v62, %v5098_v3  ;;  %v3851_v36 = vadd.f32 %v11625_v63, %v3822_v9  ;;  %v11626_v3 = vld [vmem:[#allocation112_spill] sm:$0xff]  ;;  %v11627_v62 = vld [vmem:[#allocation151_spill] sm:$0xff] }
 0x42d   :  { %v5143_v42 = vmul.f32 %v9024_v46, %v5099_v7  ;;  %9025 = vtanh.f32 %v5082_v28  ;;  %v3764_v7 = vadd.f32 %v11627_v62, %v11626_v3 }
 0x42e   :  { %v10581_v21 = vadd.f32 %v5142_v25, %v5138_v32  ;;  %v3880_v28 = vadd.f32 %v10466_v54, %v3851_v36 }
 0x42f   :  { %v10583_v31 = vadd.f32 %v5143_v42, %v5139_v14  ;;  %v11628_v42 = vld [vmem:[#allocation152_spill] sm:$0xff] }
 0x430   :  { %v3793_v24 = vadd.f32 %v11628_v42, %v3764_v7 }
 0x433   :  { %v9026_v19 = vpop.eup %9025  ;;  %v5022_v60 = vpop.f32.mrf.mxu0 }
 0x434   :  { %v5144_v57 = vmul.f32 %v9026_v19, %v5100_v51  ;;  %v3909_v51 = vadd.f32 %v10469_v44, %v3880_v28 }
 0x435   :  { %v5036_v16 = vpop.f32.mrf.mxu1 }
 0x436   :  { %v10587_v13 = vadd.f32 %v5144_v57, %v5140_v45  ;;  %v5037_v53 = vadd.f32 %v5036_v16, %v5022_v60  ;;  %v3938_v57 = vadd.f32 %v10480_v10, %v3909_v51  ;;  %v11630_v51 = vld [vmem:[#allocation144_spill] sm:$0xff] }
 0x438   :  { %v5075_v55 = vadd.f32 %v5037_v53, %v11624_v48  ;;  %v3967_v53 = vadd.f32 %v10482_v2, %v3938_v57 }
 0x43a   :  { %v5121_v29 = vmul.f32 0.5, %v5075_v55 }
 0x43b   :  { %v5024_v35 = vpop.f32.mrf.mxu0 }
 0x43c   :  { %v5050_v46 = vpop.f32.mrf.mxu2  ;;  %9027 = vtanh.f32 %v5121_v29 }
 0x43d   :  { %v5038_v14 = vpop.f32.mrf.mxu1 }
 0x43e   :  { %v5039_v47 = vadd.f32 %v5038_v14, %v5024_v35 }
 0x43f   :  { %v5064_v32 = vpop.f32.mrf.mxu3 }
 0x440   :  { %v5065_v25 = vadd.f32 %v5064_v32, %v5050_v46  ;;  %v5083_v45 = vadd.f32 %v5039_v47, %v3793_v24  ;;  %v11629_v47 = vld [vmem:[#allocation142_spill] sm:$0xff] }
 0x442   :  { %v5076_v19 = vadd.f32 %v5065_v25, %v10473_v59  ;;  %v5123_v1 = vmul.f32 0.5, %v5083_v45  ;;  %v9028_v54 = vpop.eup %9027 }
 0x443   :  { %v5129_v55 = vmul.f32 0.5, %v9028_v54  ;;  %v11633_v54 = vld [vmem:[#allocation143_spill] sm:$0xff] }
 0x444   :  { %v5122_v60 = vmul.f32 0.5, %v5076_v19  ;;  %v5052_v9 = vpop.f32.mrf.mxu2  ;;  %9029 = vtanh.f32 %v5123_v1  ;;  %v11631_v1 = vld [vmem:[#allocation147_spill] sm:$0xff] }
 0x445   :  { %v5133_v10 = vadd.f32 0.5, %v5129_v55  ;;  %v11637_v55 = vld [vmem:[#allocation148_spill] sm:$0xff] }
 0x446   :  { %9031 = vtanh.f32 %v5122_v60 }
 0x447   :  { %v5066_v16 = vpop.f32.mrf.mxu3  ;;  %9033 = vtanh.f32 %v10578_v4 }
 0x448   :  { %v5067_v48 = vadd.f32 %v5066_v16, %v5052_v9  ;;  %9035 = vtanh.f32 %v10583_v31  ;;  %v11632_v9 = vld [vmem:[#allocation149_spill] sm:$0xff]  ;;  %v11634_v16 = vld [vmem:[#allocation146_spill] sm:$0xff] }
 0x44a   :  { %v5084_v63 = vadd.f32 %v5067_v48, %v3967_v53  ;;  %v9030_v59 = vpop.eup %9029  ;;  %v11635_v53 = vld [vmem:[#allocation153_spill] sm:$0xff]  ;;  %v11636_v48 = vld [vmem:[#allocation155_spill] sm:$0xff] }
 0x44b   :  { %v5131_v3 = vmul.f32 0.5, %v9030_v59  ;;  %v11640_v59 = vld [vmem:[#allocation159_spill] sm:$0xff] }
 0x44c   :  { %v5124_v44 = vmul.f32 0.5, %v5084_v63  ;;  %v9032_v36 = vpop.eup %9031  ;;  %v11638_v63 = vld [vmem:[#allocation150_spill] sm:$0xff] }
 0x44d   :  { %v9034_v62 = vpop.eup %9033  ;;  %v5135_v7 = vadd.f32 0.5, %v5131_v3  ;;  %v5130_v2 = vmul.f32 0.5, %v9032_v36  ;;  %v11641_v36 = vld [vmem:[#allocation154_spill] sm:$0xff]  ;;  %v11643_v3 = vld [vmem:[#allocation163_spill] sm:$0xff] }
 0x44e   :  { %9037 = vtanh.f32 %v5124_v44  ;;  %v9036_v29 = vpop.eup %9035  ;;  %v5153_v28 = vmul.f32 %v9034_v62, %v5133_v10  ;;  %v11639_v44 = vld [vmem:[#allocation157_spill] sm:$0xff]  ;;  %v11642_v10 = vld [vmem:[#allocation156_spill] sm:$0xff] }
 0x44f   :  { %9039 = vtanh.f32 %v10581_v21  ;;  %v5155_v46 = vmul.f32 %v9036_v29, %v5135_v7  ;;  %v5134_v25 = vadd.f32 0.5, %v5130_v2  ;;  %v11644_v62 = vld [vmem:[#allocation165_spill] sm:$0xff]  ;;  %v11645_v7 = vld [vmem:[#allocation158_spill] sm:$0xff]  ;;  %v11647_v2 = vld [vmem:[#allocation168_spill] sm:$0xff] }
 0x450   :  { %9041 = vtanh.f32 %v10587_v13  ;;  %v11646_v29 = vld [vmem:[#allocation161_spill] sm:$0xff] }
 0x451   :  { %v10603_v35 = vpack.c.bf16 %v5155_v46, %v5153_v28  ;;  %v11648_v28 = vld [vmem:[#allocation170_spill] sm:$0xff]  ;;  %v11649_v46 = vld [vmem:[#allocation164_spill] sm:$0xff] }
 0x453   :  { %5186 = vmatmul.bf16.vlgmr.msra.gmra.mxu0 %v10603_v35  ;;  %5214 = vmatmul.bf16.vlgmr.msra.gmra.mxu2 %v10603_v35 }
 0x454   :  { %v9038_v32 = vpop.eup %9037  ;;  %5290 = vmatpush.bf16.msra.mxu0 %v11629_v47  ;;  %5318 = vmatpush.bf16.msra.mxu2 %v11630_v51 }
 0x455   :  { %v5132_v14 = vmul.f32 0.5, %v9038_v32  ;;  %v9040_v42 = vpop.eup %9039  ;;  %v11650_v32 = vld [vmem:[#allocation167_spill] sm:$0xff] }
 0x456   :  { %v9042_v19 = vpop.eup %9041  ;;  %v5154_v45 = vmul.f32 %v9040_v42, %v5134_v25  ;;  %v11651_v25 = vld [vmem:[#allocation174_spill] sm:$0xff]  ;;  %v11653_v42 = vld [vmem:[#allocation169_spill] sm:$0xff] }
 0x457   :  { %v5136_v24 = vadd.f32 0.5, %v5132_v14  ;;  %v11652_v14 = vld [vmem:[#allocation176_spill] sm:$0xff] }
 0x458   :  { %5291 = vmatpush.bf16.msra.mxu0 %v11631_v1  ;;  %5319 = vmatpush.bf16.msra.mxu2 %v11632_v9 }
 0x459   :  { %v5156_v57 = vmul.f32 %v9042_v19, %v5136_v24  ;;  %v11654_v24 = vld [vmem:[#allocation171_spill] sm:$0xff] }
 0x45a   :  { %v11655_v19 = vld [vmem:[#allocation183_spill] sm:$0xff] }
 0x45b   :  { %v10609_v60 = vpack.c.bf16 %v5156_v57, %v5154_v45  ;;  %v11656_v45 = vld [vmem:[#allocation186_spill] sm:$0xff]  ;;  %v11657_v57 = vld [vmem:[#allocation175_spill] sm:$0xff] }
 0x45c   :  { %5292 = vmatpush.bf16.msra.mxu0 %v11635_v53  ;;  %5320 = vmatpush.bf16.msra.mxu2 %v11636_v48 }
 0x45d   :  { %5200 = vmatmul.bf16.vlgmr.msra.gmra.mxu1 %v10609_v60  ;;  %5228 = vmatmul.bf16.vlgmr.msra.gmra.mxu3 %v10609_v60 }
 0x45e   :  { %5304 = vmatpush.bf16.msra.mxu1 %v11633_v54  ;;  %5332 = vmatpush.bf16.msra.mxu3 %v11634_v16 }
 0x460   :  { %5293 = vmatpush.bf16.msra.mxu0 %v11639_v44  ;;  %5321 = vmatpush.bf16.msra.mxu2 %v11640_v59 }
 0x462   :  { %5305 = vmatpush.bf16.msra.mxu1 %v11637_v55  ;;  %5333 = vmatpush.bf16.msra.mxu3 %v11638_v63 }
 0x463   :  { %5242 = vmatmul.bf16.vlgmr.msrb.gmra.mxu0 %v10603_v35  ;;  %5270 = vmatmul.bf16.vlgmr.msrb.gmra.mxu2 %v10603_v35 }
 0x464   :  { %5294 = vmatpush.bf16.msra.mxu0 %v11643_v3  ;;  %5322 = vmatpush.bf16.msra.mxu2 %v11644_v62 }
 0x466   :  { %5306 = vmatpush.bf16.msra.mxu1 %v11641_v36  ;;  %5334 = vmatpush.bf16.msra.mxu3 %v11642_v10 }
 0x468   :  { %5295 = vmatpush.bf16.msra.mxu0 %v11647_v2  ;;  %5323 = vmatpush.bf16.msra.mxu2 %v11648_v28 }
 0x46a   :  { %5307 = vmatpush.bf16.msra.mxu1 %v11645_v7  ;;  %5335 = vmatpush.bf16.msra.mxu3 %v11646_v29 }
 0x46c   :  { %5296 = vmatpush.bf16.msra.mxu0 %v11651_v25  ;;  %5324 = vmatpush.bf16.msra.mxu2 %v11652_v14  ;;  %v11659_v14 = vld [vmem:[#allocation189_spill] sm:$0xff]  ;;  %v11676_v25 = vld [vmem:[#allocation210_spill] sm:$0xff] }
 0x46d   :  { %5256 = vmatmul.bf16.vlgmr.msrb.gmra.mxu1 %v10609_v60  ;;  %5284 = vmatmul.bf16.vlgmr.msrb.gmra.mxu3 %v10609_v60 }
 0x46e   :  { %5308 = vmatpush.bf16.msra.mxu1 %v11649_v46  ;;  %5336 = vmatpush.bf16.msra.mxu3 %v11650_v32  ;;  %v11658_v46 = vld [vmem:[#allocation177_spill] sm:$0xff] }
 0x470   :  { %5297 = vmatpush.bf16.msra.mxu0 %v10308_v11  ;;  %5325 = vmatpush.bf16.msra.mxu2 %v10314_v30  ;;  %v11662_v11 = vld [vmem:[#allocation182_spill] sm:$0xff]  ;;  %v11663_v30 = vld [vmem:[#allocation185_spill] sm:$0xff] }
 0x472   :  { %5309 = vmatpush.bf16.msra.mxu1 %v11653_v42  ;;  %5337 = vmatpush.bf16.msra.mxu3 %v11654_v24  ;;  %v11660_v42 = vld [vmem:[#allocation191_spill] sm:$0xff] }
 0x473   :  { %5298 = vmatmul.bf16.vlgmr.msra.gmra.mxu0 %v10603_v35  ;;  %5326 = vmatmul.bf16.vlgmr.msra.gmra.mxu2 %v10603_v35  ;;  %v11661_v24 = vld [vmem:[#allocation179_spill] sm:$0xff] }
 0x474   :  { %5346 = vmatpush.bf16.msrb.mxu0 %v11655_v19  ;;  %5374 = vmatpush.bf16.msrb.mxu2 %v11656_v45  ;;  %v11664_v19 = vld [vmem:[#allocation187_spill] sm:$0xff]  ;;  %v11665_v45 = vld [vmem:[#allocation193_spill] sm:$0xff] }
 0x476   :  { %5310 = vmatpush.bf16.msra.mxu1 %v11657_v57  ;;  %5338 = vmatpush.bf16.msra.mxu3 %v11658_v46  ;;  %v11666_v57 = vld [vmem:[#allocation196_spill] sm:$0xff]  ;;  %v11667_v46 = vld [vmem:[#allocation190_spill] sm:$0xff] }
 0x478   :  { %5347 = vmatpush.bf16.msrb.mxu0 %v11659_v14  ;;  %5375 = vmatpush.bf16.msrb.mxu2 %v11660_v42  ;;  %v11668_v14 = vld [vmem:[#allocation192_spill] sm:$0xff]  ;;  %v11669_v42 = vld [vmem:[#allocation199_spill] sm:$0xff] }
 0x47a   :  { %5311 = vmatpush.bf16.msra.mxu1 %v11661_v24  ;;  %5339 = vmatpush.bf16.msra.mxu3 %v11662_v11  ;;  %v11670_v24 = vld [vmem:[#allocation201_spill] sm:$0xff]  ;;  %v11671_v11 = vld [vmem:[#allocation195_spill] sm:$0xff] }
 0x47c   :  { %5348 = vmatpush.bf16.msrb.mxu0 %v11665_v45  ;;  %5376 = vmatpush.bf16.msrb.mxu2 %v11666_v57  ;;  %v11673_v45 = vld [vmem:[#allocation207_spill] sm:$0xff]  ;;  %v11674_v57 = vld [vmem:[#allocation200_spill] sm:$0xff] }
 0x47d   :  { %5312 = vmatmul.bf16.vlgmr.msra.gmra.mxu1 %v10609_v60  ;;  %5340 = vmatmul.bf16.vlgmr.msra.gmra.mxu3 %v10609_v60 }
 0x47e   :  { %5360 = vmatpush.bf16.msrb.mxu1 %v11663_v30  ;;  %5388 = vmatpush.bf16.msrb.mxu3 %v11664_v19  ;;  %v11672_v30 = vld [vmem:[#allocation198_spill] sm:$0xff] }
 0x47f   :  { %v11675_v19 = vld [vmem:[#allocation202_spill] sm:$0xff] }
 0x480   :  { %5349 = vmatpush.bf16.msrb.mxu0 %v11669_v42  ;;  %5377 = vmatpush.bf16.msrb.mxu2 %v11670_v24  ;;  %v11679_v42 = vld [vmem:[#allocation208_spill] sm:$0xff] }
 0x482   :  { %5361 = vmatpush.bf16.msrb.mxu1 %v11667_v46  ;;  %5389 = vmatpush.bf16.msrb.mxu3 %v11668_v14  ;;  %v11677_v46 = vld [vmem:[#allocation212_spill] sm:$0xff]  ;;  %v11678_v14 = vld [vmem:[#allocation206_spill] sm:$0xff] }
 0x484   :  { %5350 = vmatpush.bf16.msrb.mxu0 %v10388_v58  ;;  %5378 = vmatpush.bf16.msrb.mxu2 %v11673_v45 }
 0x486   :  { %5362 = vmatpush.bf16.msrb.mxu1 %v11671_v11  ;;  %5390 = vmatpush.bf16.msrb.mxu3 %v11672_v30  ;;  %v11680_v30 = vld [vmem:[#allocation211_spill] sm:$0xff] }
 0x488   :  { %5351 = vmatpush.bf16.msrb.mxu0 %v11676_v25  ;;  %5379 = vmatpush.bf16.msrb.mxu2 %v11677_v46 }
 0x48a   :  { %5363 = vmatpush.bf16.msrb.mxu1 %v11674_v57  ;;  %5391 = vmatpush.bf16.msrb.mxu3 %v11675_v19 }
 0x48c   :  { %5352 = vmatpush.bf16.msrb.mxu0 %v10417_v39  ;;  %5380 = vmatpush.bf16.msrb.mxu2 %v10426_v26  ;;  %v11731_v26 = vld [vmem:[#allocation48_spill] sm:$0xff] }
 0x48e   :  { %5364 = vmatpush.bf16.msrb.mxu1 %v11678_v14  ;;  %5392 = vmatpush.bf16.msrb.mxu3 %v11679_v42  ;;  %v11732_v42 = vld [vmem:[#allocation32_spill] sm:$0xff] }
 0x490   :  { %5353 = vmatpush.bf16.msrb.mxu0 %v10436_v8  ;;  %5381 = vmatpush.bf16.msrb.mxu2 %v10442_v61 }
 0x492   :  { %5365 = vmatpush.bf16.msrb.mxu1 %v11680_v30  ;;  %5393 = vmatpush.bf16.msrb.mxu3 %v10414_v17 }
 0x493   :  { %5354 = vmatmul.bf16.vlgmr.msrb.gmra.mxu0 %v10603_v35  ;;  %5382 = vmatmul.bf16.vlgmr.msrb.gmra.mxu2 %v10603_v35  ;;  %v11681_v35 = vld [vmem:[#allocation81_spill] sm:$0xff] }
 0x494   :  { %5511 = vmatpush.bf16.msra.mxu0 %v9936_v50  ;;  %5539 = vmatpush.bf16.msra.mxu2 %v9942_v37 }
 0x496   :  { %5366 = vmatpush.bf16.msrb.mxu1 %v10424_v5  ;;  %5394 = vmatpush.bf16.msrb.mxu3 %v10431_v20  ;;  %v11730_v20 = vld [vmem:[#allocation24_spill] sm:$0xff] }
 0x498   :  { %5512 = vmatpush.bf16.msra.mxu0 %v9949_v41  ;;  %5540 = vmatpush.bf16.msra.mxu2 %v9954_v33 }
 0x49a   :  { %5367 = vmatpush.bf16.msrb.mxu1 %v10440_v0  ;;  %5395 = vmatpush.bf16.msrb.mxu3 %v10445_v43 }
 0x49c   :  { %5513 = vmatpush.bf16.msra.mxu0 %v9963_v40  ;;  %5541 = vmatpush.bf16.msra.mxu2 %v9969_v18  ;;  %v11683_v18 = vld [vmem:[#allocation90_spill] sm:$0xff] }
 0x49d   :  { %5368 = vmatmul.bf16.vlgmr.msrb.gmra.mxu1 %v10609_v60  ;;  %5396 = vmatmul.bf16.vlgmr.msrb.gmra.mxu3 %v10609_v60  ;;  %v11682_v60 = vld [vmem:[#allocation83_spill] sm:$0xff] }
 0x49e   :  { %5525 = vmatpush.bf16.msra.mxu1 %v9940_v34  ;;  %5553 = vmatpush.bf16.msra.mxu3 %v9945_v49 }
 0x4a0   :  { %5514 = vmatpush.bf16.msra.mxu0 %v9978_v27  ;;  %5542 = vmatpush.bf16.msra.mxu2 %v9984_v12  ;;  %v11686_v27 = vld [vmem:[#allocation88_spill] sm:$0xff]  ;;  %v11687_v12 = vld [vmem:[#allocation94_spill] sm:$0xff] }
 0x4a2   :  { %5526 = vmatpush.bf16.msra.mxu1 %v9952_v15  ;;  %5554 = vmatpush.bf16.msra.mxu3 %v9956_v22  ;;  %v11684_v15 = vld [vmem:[#allocation92_spill] sm:$0xff]  ;;  %v11685_v22 = vld [vmem:[#allocation86_spill] sm:$0xff] }
 0x4a4   :  { %5515 = vmatpush.bf16.msra.mxu0 %v9991_v23  ;;  %5543 = vmatpush.bf16.msra.mxu2 %v9999_v56  ;;  %v11690_v23 = vld [vmem:[#allocation93_spill] sm:$0xff]  ;;  %v11691_v56 = vld [vmem:[#allocation99_spill] sm:$0xff] }
 0x4a6   :  { %5527 = vmatpush.bf16.msra.mxu1 %v9967_v38  ;;  %5555 = vmatpush.bf16.msra.mxu3 %v9972_v52  ;;  %v11688_v38 = vld [vmem:[#allocation97_spill] sm:$0xff]  ;;  %v11689_v52 = vld [vmem:[#allocation91_spill] sm:$0xff] }
 0x4a8   :  { %5516 = vmatpush.bf16.msra.mxu0 %v11683_v18  ;;  %5544 = vmatpush.bf16.msra.mxu2 %v11684_v15  ;;  %v11694_v18 = vld [vmem:[#allocation105_spill] sm:$0xff]  ;;  %v11695_v15 = vld [vmem:[#allocation96_spill] sm:$0xff] }
 0x4aa   :  { %5528 = vmatpush.bf16.msra.mxu1 %v11681_v35  ;;  %5556 = vmatpush.bf16.msra.mxu3 %v11682_v60  ;;  %v11692_v35 = vld [vmem:[#allocation101_spill] sm:$0xff]  ;;  %v11693_v60 = vld [vmem:[#allocation103_spill] sm:$0xff] }
 0x4ac   :  { %5517 = vmatpush.bf16.msra.mxu0 %v11687_v12  ;;  %5545 = vmatpush.bf16.msra.mxu2 %v11688_v38  ;;  %v11698_v12 = vld [vmem:[#allocation109_spill] sm:$0xff]  ;;  %v11699_v38 = vld [vmem:[#allocation100_spill] sm:$0xff] }
 0x4ae   :  { %5529 = vmatpush.bf16.msra.mxu1 %v11685_v22  ;;  %5557 = vmatpush.bf16.msra.mxu3 %v11686_v27  ;;  %v11696_v22 = vld [vmem:[#allocation98_spill] sm:$0xff]  ;;  %v11697_v27 = vld [vmem:[#allocation107_spill] sm:$0xff] }
 0x4b0   :  { %5518 = vmatpush.bf16.msra.mxu0 %v11691_v56  ;;  %5546 = vmatpush.bf16.msra.mxu2 %v11692_v35  ;;  %v11702_v56 = vld [vmem:[#allocation106_spill] sm:$0xff]  ;;  %v11703_v35 = vld [vmem:[#allocation111_spill] sm:$0xff] }
 0x4b2   :  { %5530 = vmatpush.bf16.msra.mxu1 %v11689_v52  ;;  %5558 = vmatpush.bf16.msra.mxu3 %v11690_v23  ;;  %v11700_v52 = vld [vmem:[#allocation102_spill] sm:$0xff]  ;;  %v11701_v23 = vld [vmem:[#allocation104_spill] sm:$0xff] }
 0x4b4   :  { %5567 = vmatpush.bf16.msrb.mxu0 %v11693_v60  ;;  %5595 = vmatpush.bf16.msrb.mxu2 %v11694_v18  ;;  %v11704_v60 = vld [vmem:[#allocation114_spill] sm:$0xff]  ;;  %v11705_v18 = vld [vmem:[#allocation108_spill] sm:$0xff] }
 0x4b6   :  { %5531 = vmatpush.bf16.msra.mxu1 %v11695_v15  ;;  %5559 = vmatpush.bf16.msra.mxu3 %v11696_v22  ;;  %v11706_v15 = vld [vmem:[#allocation110_spill] sm:$0xff]  ;;  %v11707_v22 = vld [vmem:[#allocation116_spill] sm:$0xff] }
 0x4b8   :  { %5568 = vmatpush.bf16.msrb.mxu0 %v11697_v27  ;;  %5596 = vmatpush.bf16.msrb.mxu2 %v11698_v12  ;;  %v11708_v27 = vld [vmem:[#allocation118_spill] sm:$0xff]  ;;  %v11709_v12 = vld [vmem:[#allocation113_spill] sm:$0xff] }
 0x4ba   :  { %5532 = vmatpush.bf16.msra.mxu1 %v11699_v38  ;;  %5560 = vmatpush.bf16.msra.mxu3 %v11700_v52  ;;  %v11710_v38 = vld [vmem:[#allocation115_spill] sm:$0xff]  ;;  %v11711_v52 = vld [vmem:[#allocation120_spill] sm:$0xff] }
 0x4bc   :  { %5569 = vmatpush.bf16.msrb.mxu0 %v11703_v35  ;;  %5597 = vmatpush.bf16.msrb.mxu2 %v11704_v60  ;;  %v11714_v35 = vld [vmem:[#allocation119_spill] sm:$0xff]  ;;  %v11715_v60 = vld [vmem:[#allocation124_spill] sm:$0xff] }
 0x4be   :  { %5581 = vmatpush.bf16.msrb.mxu1 %v11701_v23  ;;  %5609 = vmatpush.bf16.msrb.mxu3 %v11702_v56  ;;  %v11712_v23 = vld [vmem:[#allocation122_spill] sm:$0xff]  ;;  %v11713_v56 = vld [vmem:[#allocation117_spill] sm:$0xff] }
 0x4c0   :  { %5570 = vmatpush.bf16.msrb.mxu0 %v11707_v22  ;;  %5598 = vmatpush.bf16.msrb.mxu2 %v11708_v27  ;;  %v11718_v22 = vld [vmem:[#allocation123_spill] sm:$0xff]  ;;  %v11719_v27 = vld [vmem:[#allocation128_spill] sm:$0xff] }
 0x4c2   :  { %5582 = vmatpush.bf16.msrb.mxu1 %v11705_v18  ;;  %5610 = vmatpush.bf16.msrb.mxu3 %v11706_v15  ;;  %v11716_v18 = vld [vmem:[#allocation126_spill] sm:$0xff]  ;;  %v11717_v15 = vld [vmem:[#allocation121_spill] sm:$0xff] }
 0x4c4   :  { %5571 = vmatpush.bf16.msrb.mxu0 %v11711_v52  ;;  %5599 = vmatpush.bf16.msrb.mxu2 %v11712_v23  ;;  %v11722_v52 = vld [vmem:[#allocation127_spill] sm:$0xff]  ;;  %v11723_v23 = vld [vmem:[#allocation133_spill] sm:$0xff] }
 0x4c6   :  { %5583 = vmatpush.bf16.msrb.mxu1 %v11709_v12  ;;  %5611 = vmatpush.bf16.msrb.mxu3 %v11710_v38  ;;  %v11720_v12 = vld [vmem:[#allocation131_spill] sm:$0xff]  ;;  %v11721_v38 = vld [vmem:[#allocation125_spill] sm:$0xff] }
 0x4c8   :  { %5572 = vmatpush.bf16.msrb.mxu0 %v11715_v60  ;;  %5600 = vmatpush.bf16.msrb.mxu2 %v11716_v18  ;;  %v11726_v60 = vld [vmem:[#allocation132_spill] sm:$0xff]  ;;  %v11727_v18 = vld [vmem:[#allocation134_spill] sm:$0xff] }
 0x4ca   :  { %5584 = vmatpush.bf16.msrb.mxu1 %v11713_v56  ;;  %5612 = vmatpush.bf16.msrb.mxu3 %v11714_v35  ;;  %v11724_v56 = vld [vmem:[#allocation135_spill] sm:$0xff]  ;;  %v11725_v35 = vld [vmem:[#allocation130_spill] sm:$0xff] }
 0x4cc   :  { %5573 = vmatpush.bf16.msrb.mxu0 %v11719_v27  ;;  %5601 = vmatpush.bf16.msrb.mxu2 %v11720_v12 }
 0x4ce   :  { %5585 = vmatpush.bf16.msrb.mxu1 %v11717_v15  ;;  %5613 = vmatpush.bf16.msrb.mxu3 %v11718_v22  ;;  %v11728_v15 = vld [vmem:[#allocation136_spill] sm:$0xff] }
 0x4d0   :  { %5574 = vmatpush.bf16.msrb.mxu0 %v11723_v23  ;;  %5602 = vmatpush.bf16.msrb.mxu2 %v11724_v56  ;;  %v5187_v22 = vpop.f32.mrf.mxu0 }
 0x4d2   :  { %5586 = vmatpush.bf16.msrb.mxu1 %v11721_v38  ;;  %5614 = vmatpush.bf16.msrb.mxu3 %v11722_v52 }
 0x4d6   :  { %5587 = vmatpush.bf16.msrb.mxu1 %v11725_v35  ;;  %5615 = vmatpush.bf16.msrb.mxu3 %v11726_v60  ;;  %v5215_v27 = vpop.f32.mrf.mxu2  ;;  %v11729_v35 = vld [vmem:[#allocation40_spill] sm:$0xff] }
 0x4d8   :  { %v5189_v12 = vpop.f32.mrf.mxu0 }
 0x4da   :  { %5588 = vmatpush.bf16.msrb.mxu1 %v11727_v18  ;;  %5616 = vmatpush.bf16.msrb.mxu3 %v11728_v15  ;;  %v5201_v40 = vpop.f32.mrf.mxu1 }
 0x4db   :  { %v5202_v33 = vadd.f32 %v5201_v40, %v5187_v22  ;;  %v11733_v22 = vld [vmem:[#allocation41_spill] sm:$0xff] }
 0x4dd   :  { %v5402_v18 = vadd.f32 %v5202_v33, %v11730_v20 }
 0x4de   :  { %v5217_v38 = vpop.f32.mrf.mxu2 }
 0x4df   :  { %v5418_v30 = vmul.f32 0.5, %v5402_v18 }
 0x4e0   :  { %v5229_v49 = vpop.f32.mrf.mxu3  ;;  %v5243_v52 = vpop.f32.mrf.mxu0 }
 0x4e1   :  { %v5230_v15 = vadd.f32 %v5229_v49, %v5215_v27 }
 0x4e2   :  { %v5203_v34 = vpop.f32.mrf.mxu1 }
 0x4e3   :  { %v5204_v8 = vadd.f32 %v5203_v34, %v5189_v12  ;;  %v5403_v14 = vadd.f32 %v5230_v15, %v11732_v42 }
 0x4e5   :  { %v5419_v49 = vmul.f32 0.5, %v5403_v14 }
 0x4e6   :  { %v5271_v56 = vpop.f32.mrf.mxu2 }
 0x4e8   :  { %v5231_v43 = vpop.f32.mrf.mxu3  ;;  %v5245_v60 = vpop.f32.mrf.mxu0 }
 0x4e9   :  { %v5232_v27 = vadd.f32 %v5231_v43, %v5217_v38 }
 0x4ea   :  { %v5257_v23 = vpop.f32.mrf.mxu1 }
 0x4eb   :  { %v5258_v0 = vadd.f32 %v5257_v23, %v5243_v52  ;;  %v11734_v23 = vld [vmem:[#allocation25_spill] sm:$0xff] }
 0x4ed   :  { %v5404_v41 = vadd.f32 %v5258_v0, %v11729_v35  ;;  %v5410_v0 = vadd.f32 %v5204_v8, %v11734_v23 }
 0x4ee   :  { %v5273_v52 = vpop.f32.mrf.mxu2 }
 0x4ef   :  { %v5434_v50 = vmul.f32 0.5, %v5404_v41  ;;  %v5420_v12 = vmul.f32 0.5, %v5410_v0 }
 0x4f0   :  { %v5285_v5 = vpop.f32.mrf.mxu3  ;;  %v5299_v41 = vpop.f32.mrf.mxu0 }
 0x4f1   :  { %v5286_v37 = vadd.f32 %v5285_v5, %v5271_v56  ;;  %9043 = vtanh.f32 %v5434_v50  ;;  %v11736_v50 = vld [vmem:[#allocation33_spill] sm:$0xff] }
 0x4f2   :  { %v5259_v61 = vpop.f32.mrf.mxu1  ;;  %9045 = vtanh.f32 %v5418_v30  ;;  %v11737_v30 = vld [vmem:[#allocation56_spill] sm:$0xff] }
 0x4f3   :  { %v5260_v17 = vadd.f32 %v5259_v61, %v5245_v60  ;;  %v5405_v39 = vadd.f32 %v5286_v37, %v11731_v26  ;;  %v11735_v37 = vld [vmem:[#allocation49_spill] sm:$0xff] }
 0x4f5   :  { %v5412_v40 = vadd.f32 %v5260_v17, %v11733_v22  ;;  %v5435_v33 = vmul.f32 0.5, %v5405_v39  ;;  %v5411_v17 = vadd.f32 %v5232_v27, %v11736_v50 }
 0x4f6   :  { %v5327_v38 = vpop.f32.mrf.mxu2 }
 0x4f7   :  { %v5436_v34 = vmul.f32 0.5, %v5412_v40  ;;  %v9044_v5 = vpop.eup %9043  ;;  %9047 = vtanh.f32 %v5435_v33  ;;  %v5421_v42 = vmul.f32 0.5, %v5411_v17 }
 0x4f8   :  { %v5287_v20 = vpop.f32.mrf.mxu3  ;;  %9049 = vtanh.f32 %v5419_v49  ;;  %v9046_v61 = vpop.eup %9045  ;;  %v5442_v8 = vmul.f32 0.5, %v9044_v5 }
 0x4f9   :  { %v5288_v56 = vadd.f32 %v5287_v20, %v5273_v52  ;;  %9051 = vtanh.f32 %v5436_v34  ;;  %v5426_v14 = vmul.f32 0.5, %v9046_v61  ;;  %v5301_v23 = vpop.f32.mrf.mxu0  ;;  %v11738_v20 = vld [vmem:[#allocation64_spill] sm:$0xff] }
 0x4fa   :  { %v5313_v18 = vpop.f32.mrf.mxu1  ;;  %9053 = vtanh.f32 %v5420_v12  ;;  %v5446_v40 = vadd.f32 0.5, %v5442_v8 }
 0x4fb   :  { %v5413_v15 = vadd.f32 %v5288_v56, %v11735_v37  ;;  %v5314_v26 = vadd.f32 %v5313_v18, %v5299_v41  ;;  %v5430_v56 = vadd.f32 0.5, %v5426_v14  ;;  %v11739_v18 = vld [vmem:[#allocation57_spill] sm:$0xff] }
 0x4fd   :  { %v5406_v39 = vadd.f32 %v5314_v26, %v11737_v30  ;;  %v5437_v43 = vmul.f32 0.5, %v5413_v15  ;;  %v9048_v60 = vpop.eup %9047  ;;  %v5470_v15 = vmul.f32 %v5446_v40, %v10578_v4 }
 0x4fe   :  { %v9050_v22 = vpop.eup %9049  ;;  %v5443_v34 = vmul.f32 0.5, %v9048_v60 }
 0x4ff   :  { %9055 = vtanh.f32 %v5406_v39  ;;  %v9052_v33 = vpop.eup %9051  ;;  %v5427_v37 = vmul.f32 0.5, %v9050_v22  ;;  %v5329_v39 = vpop.f32.mrf.mxu2 }
 0x500   :  { %v5341_v35 = vpop.f32.mrf.mxu3  ;;  %9057 = vtanh.f32 %v5437_v43  ;;  %v9054_v41 = vpop.eup %9053  ;;  %v5444_v26 = vmul.f32 0.5, %v9052_v33  ;;  %v5447_v61 = vadd.f32 0.5, %v5443_v34 }
 0x501   :  { %v5342_v52 = vadd.f32 %v5341_v35, %v5327_v38  ;;  %9059 = vtanh.f32 %v5421_v42  ;;  %v5428_v17 = vmul.f32 0.5, %v9054_v41  ;;  %v5431_v42 = vadd.f32 0.5, %v5427_v37 }
 0x502   :  { %v5315_v0 = vpop.f32.mrf.mxu1  ;;  %v5448_v35 = vadd.f32 0.5, %v5444_v26  ;;  %v5471_v4 = vmul.f32 %v5447_v61, %v10581_v21  ;;  %v11741_v21 = vld [vmem:[#allocation181_spill] sm:$0xff] }
 0x503   :  { %v5407_v49 = vadd.f32 %v5342_v52, %v11738_v20  ;;  %v5316_v27 = vadd.f32 %v5315_v0, %v5301_v23  ;;  %v11740_v52 = vld [vmem:[#allocation65_spill] sm:$0xff]  ;;  %v5432_v22 = vadd.f32 0.5, %v5428_v17  ;;  %v3827_v26 = vadd.f32 %v11741_v21, %v10207_v6 }
 0x505   :  { %v9056_v12 = vpop.eup %9055  ;;  %9061 = vtanh.f32 %v5407_v49  ;;  %v5414_v5 = vadd.f32 %v5316_v27, %v11739_v18  ;;  %v5472_v49 = vmul.f32 %v5448_v35, %v10583_v31  ;;  %v11742_v31 = vld [vmem:[#allocation184_spill] sm:$0xff] }
 0x506   :  { %v5474_v50 = vmul.f32 %v9056_v12, %v5430_v56  ;;  %v9058_v38 = vpop.eup %9057 }
 0x507   :  { %9063 = vtanh.f32 %v5414_v5  ;;  %v9060_v14 = vpop.eup %9059  ;;  %v5445_v40 = vmul.f32 0.5, %v9058_v38 }
 0x508   :  { %v10763_v30 = vadd.f32 %v5474_v50, %v5470_v15  ;;  %v5343_v8 = vpop.f32.mrf.mxu3  ;;  %v5429_v20 = vmul.f32 0.5, %v9060_v14  ;;  %v11745_v14 = vld [vmem:[#allocation172_spill] sm:$0xff] }
 0x509   :  { %v5344_v43 = vadd.f32 %v5343_v8, %v5329_v39  ;;  %v5449_v56 = vadd.f32 0.5, %v5445_v40  ;;  %v3856_v39 = vadd.f32 %v11742_v31, %v3827_v26  ;;  %v11743_v8 = vld [vmem:[#allocation166_spill] sm:$0xff] }
 0x50a   :  { %v5433_v12 = vadd.f32 0.5, %v5429_v20  ;;  %v11748_v20 = vld [vmem:[#allocation227_spill] sm:$0xff]  ;;  %v11751_v31 = vld [vmem:[#allocation230_spill] sm:$0xff] }
 0x50b   :  { %v9062_v60 = vpop.eup %9061  ;;  %v5415_v23 = vadd.f32 %v5344_v43, %v11740_v52  ;;  %v5473_v5 = vmul.f32 %v5449_v56, %v10587_v13  ;;  %v11744_v43 = vld [vmem:[#allocation129_spill] sm:$0xff] }
 0x50c   :  { %v5475_v0 = vmul.f32 %v9062_v60, %v5431_v42  ;;  %v3769_v42 = vadd.f32 %v11745_v14, %v11744_v43  ;;  %v11746_v60 = vld [vmem:[#allocation226_spill] sm:$0xff] }
 0x50d   :  { %v9064_v33 = vpop.eup %9063  ;;  %9065 = vtanh.f32 %v5415_v23  ;;  %v3885_v52 = vadd.f32 %v11746_v60, %v3856_v39 }
 0x50e   :  { %v10768_v27 = vadd.f32 %v5475_v0, %v5471_v4  ;;  %v5476_v41 = vmul.f32 %v9064_v33, %v5432_v22  ;;  %v11747_v4 = vld [vmem:[#allocation173_spill] sm:$0xff] }
 0x50f   :  { %v3798_v40 = vadd.f32 %v11747_v4, %v3769_v42 }
 0x510   :  { %v10770_v34 = vadd.f32 %v5476_v41, %v5472_v49  ;;  %v5355_v15 = vpop.f32.mrf.mxu0  ;;  %v3914_v49 = vadd.f32 %v11748_v20, %v3885_v52  ;;  %v11749_v41 = vld [vmem:[#allocation228_spill] sm:$0xff] }
 0x513   :  { %v9066_v18 = vpop.eup %9065 }
 0x514   :  { %v5477_v37 = vmul.f32 %v9066_v18, %v5433_v12  ;;  %v11750_v18 = vld [vmem:[#allocation229_spill] sm:$0xff] }
 0x516   :  { %v10775_v50 = vadd.f32 %v5477_v37, %v5473_v5  ;;  %v5383_v35 = vpop.f32.mrf.mxu2  ;;  %v3943_v5 = vadd.f32 %v11750_v18, %v3914_v49 }
 0x518   :  { %v5357_v0 = vpop.f32.mrf.mxu0  ;;  %v3972_v39 = vadd.f32 %v11751_v31, %v3943_v5  ;;  %v11756_v31 = vld [vmem:[#allocation171_spill] sm:$0xff] }
 0x51a   :  { %v5369_v17 = vpop.f32.mrf.mxu1 }
 0x51b   :  { %v5370_v61 = vadd.f32 %v5369_v17, %v5355_v15 }
 0x51d   :  { %v5408_v38 = vadd.f32 %v5370_v61, %v11743_v8 }
 0x51e   :  { %v5385_v26 = vpop.f32.mrf.mxu2 }
 0x51f   :  { %v5454_v13 = vmul.f32 0.5, %v5408_v38 }
 0x520   :  { %v5397_v23 = vpop.f32.mrf.mxu3 }
 0x521   :  { %v5398_v22 = vadd.f32 %v5397_v23, %v5383_v35  ;;  %9067 = vtanh.f32 %v5454_v13 }
 0x522   :  { %v5371_v33 = vpop.f32.mrf.mxu1 }
 0x523   :  { %v5409_v56 = vadd.f32 %v5398_v22, %v11749_v41  ;;  %v5372_v12 = vadd.f32 %v5371_v33, %v5357_v0 }
 0x525   :  { %v5455_v37 = vmul.f32 0.5, %v5409_v56  ;;  %v5416_v15 = vadd.f32 %v5372_v12, %v3798_v40 }
 0x527   :  { %v5456_v21 = vmul.f32 0.5, %v5416_v15  ;;  %9069 = vtanh.f32 %v5455_v37  ;;  %v9068_v61 = vpop.eup %9067 }
 0x528   :  { %v5399_v17 = vpop.f32.mrf.mxu3  ;;  %v5462_v43 = vmul.f32 0.5, %v9068_v61  ;;  %v11755_v61 = vld [vmem:[#allocation169_spill] sm:$0xff] }
 0x529   :  { %9071 = vtanh.f32 %v5456_v21  ;;  %v5400_v8 = vadd.f32 %v5399_v17, %v5385_v26  ;;  %v11752_v21 = vld [vmem:[#allocation164_spill] sm:$0xff]  ;;  %v11753_v26 = vld [vmem:[#allocation174_spill] sm:$0xff] }
 0x52a   :  { %9073 = vtanh.f32 %v10763_v30  ;;  %v5466_v60 = vadd.f32 0.5, %v5462_v43  ;;  %v11754_v17 = vld [vmem:[#allocation176_spill] sm:$0xff]  ;;  %v11760_v43 = vld [vmem:[#allocation186_spill] sm:$0xff] }
 0x52b   :  { %v5417_v38 = vadd.f32 %v5400_v8, %v3972_v39  ;;  %9075 = vtanh.f32 %v10770_v34  ;;  %v11757_v39 = vld [vmem:[#allocation178_spill] sm:$0xff]  ;;  %v11758_v8 = vld [vmem:[#allocation180_spill] sm:$0xff] }
 0x52d   :  { %v5457_v14 = vmul.f32 0.5, %v5417_v38  ;;  %v9070_v42 = vpop.eup %9069  ;;  %v11759_v38 = vld [vmem:[#allocation183_spill] sm:$0xff] }
 0x52e   :  { %v5463_v23 = vmul.f32 0.5, %v9070_v42  ;;  %v11762_v42 = vld [vmem:[#allocation177_spill] sm:$0xff] }
 0x52f   :  { %v9072_v35 = vpop.eup %9071  ;;  %9077 = vtanh.f32 %v5457_v14  ;;  %v11761_v14 = vld [vmem:[#allocation175_spill] sm:$0xff] }
 0x530   :  { %v5464_v52 = vmul.f32 0.5, %v9072_v35  ;;  %v9074_v13 = vpop.eup %9073  ;;  %9079 = vtanh.f32 %v10768_v27  ;;  %v5467_v20 = vadd.f32 0.5, %v5463_v23  ;;  %v11763_v35 = vld [vmem:[#allocation189_spill] sm:$0xff] }
 0x531   :  { %v9076_v4 = vpop.eup %9075  ;;  %9081 = vtanh.f32 %v10775_v50  ;;  %v5486_v40 = vmul.f32 %v9074_v13, %v5466_v60  ;;  %v11764_v60 = vld [vmem:[#allocation191_spill] sm:$0xff]  ;;  %v11766_v13 = vld [vmem:[#allocation182_spill] sm:$0xff]  ;;  %v11767_v23 = vld [vmem:[#allocation185_spill] sm:$0xff] }
 0x532   :  { %v5468_v22 = vadd.f32 0.5, %v5464_v52  ;;  %v11765_v52 = vld [vmem:[#allocation179_spill] sm:$0xff] }
 0x534   :  { %v5488_v0 = vmul.f32 %v9076_v4, %v5468_v22  ;;  %v11768_v22 = vld [vmem:[#allocation187_spill] sm:$0xff]  ;;  %v11769_v4 = vld [vmem:[#allocation193_spill] sm:$0xff] }
 0x535   :  { %v9078_v33 = vpop.eup %9077 }
 0x536   :  { %v10791_v49 = vpack.c.bf16 %v5488_v0, %v5486_v40  ;;  %v5465_v41 = vmul.f32 0.5, %v9078_v33  ;;  %v9080_v56 = vpop.eup %9079  ;;  %v11770_v40 = vld [vmem:[#allocation196_spill] sm:$0xff]  ;;  %v11771_v0 = vld [vmem:[#allocation190_spill] sm:$0xff] }
 0x537   :  { %v9082_v18 = vpop.eup %9081  ;;  %v5487_v5 = vmul.f32 %v9080_v56, %v5467_v20  ;;  %v11772_v33 = vld [vmem:[#allocation192_spill] sm:$0xff]  ;;  %v11773_v20 = vld [vmem:[#allocation199_spill] sm:$0xff]  ;;  %v11775_v56 = vld [vmem:[#allocation206_spill] sm:$0xff] }
 0x538   :  { %v5469_v12 = vadd.f32 0.5, %v5465_v41  ;;  %5519 = vmatmul.bf16.vlgmr.msra.gmra.mxu0 %v10791_v49  ;;  %5547 = vmatmul.bf16.vlgmr.msra.gmra.mxu2 %v10791_v49  ;;  %v11774_v41 = vld [vmem:[#allocation198_spill] sm:$0xff] }
 0x539   :  { %5623 = vmatpush.bf16.msra.mxu0 %v11629_v47  ;;  %5651 = vmatpush.bf16.msra.mxu2 %v11630_v51 }
 0x53a   :  { %v5489_v37 = vmul.f32 %v9082_v18, %v5469_v12  ;;  %v11776_v12 = vld [vmem:[#allocation208_spill] sm:$0xff]  ;;  %v11777_v18 = vld [vmem:[#allocation214_spill] sm:$0xff] }
 0x53c   :  { %v10797_v15 = vpack.c.bf16 %v5489_v37, %v5487_v5  ;;  %v11778_v5 = vld [vmem:[#allocation217_spill] sm:$0xff]  ;;  %v11779_v37 = vld [vmem:[#allocation211_spill] sm:$0xff] }
 0x53d   :  { %5624 = vmatpush.bf16.msra.mxu0 %v11631_v1  ;;  %5652 = vmatpush.bf16.msra.mxu2 %v11632_v9 }
 0x53e   :  { %5533 = vmatmul.bf16.vlgmr.msra.gmra.mxu1 %v10797_v15  ;;  %5561 = vmatmul.bf16.vlgmr.msra.gmra.mxu3 %v10797_v15 }
 0x53f   :  { %5637 = vmatpush.bf16.msra.mxu1 %v11633_v54  ;;  %5665 = vmatpush.bf16.msra.mxu3 %v11634_v16 }
 0x541   :  { %5625 = vmatpush.bf16.msra.mxu0 %v11635_v53  ;;  %5653 = vmatpush.bf16.msra.mxu2 %v11636_v48 }
 0x543   :  { %5638 = vmatpush.bf16.msra.mxu1 %v11637_v55  ;;  %5666 = vmatpush.bf16.msra.mxu3 %v11638_v63 }
 0x545   :  { %5626 = vmatpush.bf16.msra.mxu0 %v11639_v44  ;;  %5654 = vmatpush.bf16.msra.mxu2 %v11640_v59 }
 0x547   :  { %5639 = vmatpush.bf16.msra.mxu1 %v11641_v36  ;;  %5667 = vmatpush.bf16.msra.mxu3 %v11642_v10 }
 0x548   :  { %5575 = vmatmul.bf16.vlgmr.msrb.gmra.mxu0 %v10791_v49  ;;  %5603 = vmatmul.bf16.vlgmr.msrb.gmra.mxu2 %v10791_v49 }
 0x549   :  { %5627 = vmatpush.bf16.msra.mxu0 %v11643_v3  ;;  %5655 = vmatpush.bf16.msra.mxu2 %v11644_v62 }
 0x54b   :  { %5640 = vmatpush.bf16.msra.mxu1 %v11645_v7  ;;  %5668 = vmatpush.bf16.msra.mxu3 %v11646_v29 }
 0x54d   :  { %5628 = vmatpush.bf16.msra.mxu0 %v11647_v2  ;;  %5656 = vmatpush.bf16.msra.mxu2 %v11648_v28 }
 0x54e   :  { %5589 = vmatmul.bf16.vlgmr.msrb.gmra.mxu1 %v10797_v15  ;;  %5617 = vmatmul.bf16.vlgmr.msrb.gmra.mxu3 %v10797_v15 }
 0x54f   :  { %5641 = vmatpush.bf16.msra.mxu1 %v11752_v21  ;;  %5669 = vmatpush.bf16.msra.mxu3 %v11650_v32 }
 0x551   :  { %5629 = vmatpush.bf16.msra.mxu0 %v11753_v26  ;;  %5657 = vmatpush.bf16.msra.mxu2 %v11754_v17 }
 0x553   :  { %5642 = vmatpush.bf16.msra.mxu1 %v11755_v61  ;;  %5670 = vmatpush.bf16.msra.mxu3 %v11756_v31 }
 0x555   :  { %5630 = vmatpush.bf16.msra.mxu0 %v11757_v39  ;;  %5658 = vmatpush.bf16.msra.mxu2 %v11758_v8 }
 0x557   :  { %5643 = vmatpush.bf16.msra.mxu1 %v11761_v14  ;;  %5671 = vmatpush.bf16.msra.mxu3 %v11762_v42  ;;  %v11854_v14 = vld [vmem:[#allocation34_spill] sm:$0xff] }
 0x558   :  { %5631 = vmatmul.bf16.vlgmr.msra.gmra.mxu0 %v10791_v49  ;;  %5659 = vmatmul.bf16.vlgmr.msra.gmra.mxu2 %v10791_v49 }
 0x559   :  { %5679 = vmatpush.bf16.msrb.mxu0 %v11759_v38  ;;  %5707 = vmatpush.bf16.msrb.mxu2 %v11760_v43 }
 0x55b   :  { %5644 = vmatpush.bf16.msra.mxu1 %v11765_v52  ;;  %5672 = vmatpush.bf16.msra.mxu3 %v11766_v13 }
 0x55d   :  { %5680 = vmatpush.bf16.msrb.mxu0 %v11763_v35  ;;  %5708 = vmatpush.bf16.msrb.mxu2 %v11764_v60  ;;  %v11853_v35 = vld [vmem:[#allocation50_spill] sm:$0xff] }
 0x55e   :  { %5645 = vmatmul.bf16.vlgmr.msra.gmra.mxu1 %v10797_v15  ;;  %5673 = vmatmul.bf16.vlgmr.msra.gmra.mxu3 %v10797_v15 }
 0x55f   :  { %5693 = vmatpush.bf16.msrb.mxu1 %v11767_v23  ;;  %5721 = vmatpush.bf16.msrb.mxu3 %v11768_v22 }
 0x561   :  { %5681 = vmatpush.bf16.msrb.mxu0 %v11769_v4  ;;  %5709 = vmatpush.bf16.msrb.mxu2 %v11770_v40 }
 0x563   :  { %5694 = vmatpush.bf16.msrb.mxu1 %v11771_v0  ;;  %5722 = vmatpush.bf16.msrb.mxu3 %v11772_v33  ;;  %v11852_v0 = vld [vmem:[#allocation26_spill] sm:$0xff] }
 0x565   :  { %5682 = vmatpush.bf16.msrb.mxu0 %v11773_v20  ;;  %5710 = vmatpush.bf16.msrb.mxu2 %v11670_v24 }
 0x567   :  { %5695 = vmatpush.bf16.msrb.mxu1 %v11671_v11  ;;  %5723 = vmatpush.bf16.msrb.mxu3 %v11774_v41 }
 0x569   :  { %5683 = vmatpush.bf16.msrb.mxu0 %v10388_v58  ;;  %5711 = vmatpush.bf16.msrb.mxu2 %v11673_v45  ;;  %v11780_v58 = vld [vmem:[#allocation213_spill] sm:$0xff]  ;;  %v11781_v45 = vld [vmem:[#allocation220_spill] sm:$0xff] }
 0x56b   :  { %5696 = vmatpush.bf16.msrb.mxu1 %v11674_v57  ;;  %5724 = vmatpush.bf16.msrb.mxu3 %v11675_v19  ;;  %v11782_v57 = vld [vmem:[#allocation222_spill] sm:$0xff] }
 0x56c   :  { %v11783_v19 = vld [vmem:[#allocation66_spill] sm:$0xff] }
 0x56d   :  { %5684 = vmatpush.bf16.msrb.mxu0 %v11676_v25  ;;  %5712 = vmatpush.bf16.msrb.mxu2 %v11677_v46  ;;  %v11784_v25 = vld [vmem:[#allocation69_spill] sm:$0xff]  ;;  %v11785_v46 = vld [vmem:[#allocation216_spill] sm:$0xff] }
 0x56f   :  { %5697 = vmatpush.bf16.msrb.mxu1 %v11775_v56  ;;  %5725 = vmatpush.bf16.msrb.mxu3 %v11776_v12  ;;  %v11786_v56 = vld [vmem:[#allocation219_spill] sm:$0xff] }
 0x571   :  { %5685 = vmatpush.bf16.msrb.mxu0 %v11777_v18  ;;  %5713 = vmatpush.bf16.msrb.mxu2 %v11778_v5  ;;  %v11787_v5 = vld [vmem:[#allocation71_spill] sm:$0xff] }
 0x573   :  { %5698 = vmatpush.bf16.msrb.mxu1 %v11779_v37  ;;  %5726 = vmatpush.bf16.msrb.mxu3 %v11780_v58  ;;  %v11788_v37 = vld [vmem:[#allocation73_spill] sm:$0xff] }
 0x574   :  { %v11789_v58 = vld [vmem:[#allocation221_spill] sm:$0xff] }
 0x575   :  { %5686 = vmatpush.bf16.msrb.mxu0 %v11781_v45  ;;  %5714 = vmatpush.bf16.msrb.mxu2 %v11782_v57  ;;  %v11790_v45 = vld [vmem:[#allocation223_spill] sm:$0xff]  ;;  %v11791_v57 = vld [vmem:[#allocation68_spill] sm:$0xff] }
 0x577   :  { %5699 = vmatpush.bf16.msrb.mxu1 %v11785_v46  ;;  %5727 = vmatpush.bf16.msrb.mxu3 %v11786_v56  ;;  %v11794_v56 = vld [vmem:[#allocation78_spill] sm:$0xff]  ;;  %v11802_v46 = vld [vmem:[#allocation87_spill] sm:$0xff] }
 0x578   :  { %5687 = vmatmul.bf16.vlgmr.msrb.gmra.mxu0 %v10791_v49  ;;  %5715 = vmatmul.bf16.vlgmr.msrb.gmra.mxu2 %v10791_v49  ;;  %v11795_v49 = vld [vmem:[#allocation72_spill] sm:$0xff] }
 0x579   :  { %5844 = vmatpush.bf16.msra.mxu0 %v11783_v19  ;;  %5872 = vmatpush.bf16.msra.mxu2 %v11784_v25  ;;  %v11792_v19 = vld [vmem:[#allocation70_spill] sm:$0xff]  ;;  %v11793_v25 = vld [vmem:[#allocation75_spill] sm:$0xff] }
 0x57b   :  { %5700 = vmatpush.bf16.msrb.mxu1 %v11789_v58  ;;  %5728 = vmatpush.bf16.msrb.mxu3 %v11790_v45  ;;  %v11798_v58 = vld [vmem:[#allocation82_spill] sm:$0xff]  ;;  %v11799_v45 = vld [vmem:[#allocation77_spill] sm:$0xff] }
 0x57d   :  { %5845 = vmatpush.bf16.msra.mxu0 %v11787_v5  ;;  %5873 = vmatpush.bf16.msra.mxu2 %v11788_v37  ;;  %v11796_v5 = vld [vmem:[#allocation74_spill] sm:$0xff]  ;;  %v11797_v37 = vld [vmem:[#allocation80_spill] sm:$0xff] }
 0x57e   :  { %5701 = vmatmul.bf16.vlgmr.msrb.gmra.mxu1 %v10797_v15  ;;  %5729 = vmatmul.bf16.vlgmr.msrb.gmra.mxu3 %v10797_v15  ;;  %v11803_v15 = vld [vmem:[#allocation81_spill] sm:$0xff] }
 0x57f   :  { %5858 = vmatpush.bf16.msra.mxu1 %v11791_v57  ;;  %5886 = vmatpush.bf16.msra.mxu3 %v11792_v19  ;;  %v11800_v57 = vld [vmem:[#allocation79_spill] sm:$0xff]  ;;  %v11801_v19 = vld [vmem:[#allocation84_spill] sm:$0xff] }
 0x581   :  { %5846 = vmatpush.bf16.msra.mxu0 %v11793_v25  ;;  %5874 = vmatpush.bf16.msra.mxu2 %v11794_v56  ;;  %v11804_v25 = vld [vmem:[#allocation83_spill] sm:$0xff]  ;;  %v11805_v56 = vld [vmem:[#allocation90_spill] sm:$0xff] }
 0x583   :  { %5859 = vmatpush.bf16.msra.mxu1 %v11795_v49  ;;  %5887 = vmatpush.bf16.msra.mxu3 %v11796_v5  ;;  %v11806_v49 = vld [vmem:[#allocation92_spill] sm:$0xff]  ;;  %v11807_v5 = vld [vmem:[#allocation86_spill] sm:$0xff] }
 0x585   :  { %5847 = vmatpush.bf16.msra.mxu0 %v11797_v37  ;;  %5875 = vmatpush.bf16.msra.mxu2 %v11798_v58  ;;  %v11808_v37 = vld [vmem:[#allocation88_spill] sm:$0xff]  ;;  %v11809_v58 = vld [vmem:[#allocation94_spill] sm:$0xff] }
 0x587   :  { %5860 = vmatpush.bf16.msra.mxu1 %v11799_v45  ;;  %5888 = vmatpush.bf16.msra.mxu3 %v11800_v57  ;;  %v11810_v45 = vld [vmem:[#allocation97_spill] sm:$0xff]  ;;  %v11811_v57 = vld [vmem:[#allocation91_spill] sm:$0xff] }
 0x589   :  { %5848 = vmatpush.bf16.msra.mxu0 %v11801_v19  ;;  %5876 = vmatpush.bf16.msra.mxu2 %v11802_v46  ;;  %v11812_v19 = vld [vmem:[#allocation93_spill] sm:$0xff]  ;;  %v11813_v46 = vld [vmem:[#allocation99_spill] sm:$0xff] }
 0x58b   :  { %5861 = vmatpush.bf16.msra.mxu1 %v11803_v15  ;;  %5889 = vmatpush.bf16.msra.mxu3 %v11804_v25  ;;  %v11814_v15 = vld [vmem:[#allocation101_spill] sm:$0xff]  ;;  %v11815_v25 = vld [vmem:[#allocation103_spill] sm:$0xff] }
 0x58d   :  { %5849 = vmatpush.bf16.msra.mxu0 %v11805_v56  ;;  %5877 = vmatpush.bf16.msra.mxu2 %v11806_v49  ;;  %v11816_v56 = vld [vmem:[#allocation105_spill] sm:$0xff]  ;;  %v11817_v49 = vld [vmem:[#allocation96_spill] sm:$0xff] }
 0x58f   :  { %5862 = vmatpush.bf16.msra.mxu1 %v11807_v5  ;;  %5890 = vmatpush.bf16.msra.mxu3 %v11808_v37  ;;  %v11818_v5 = vld [vmem:[#allocation98_spill] sm:$0xff]  ;;  %v11819_v37 = vld [vmem:[#allocation107_spill] sm:$0xff] }
 0x591   :  { %5850 = vmatpush.bf16.msra.mxu0 %v11809_v58  ;;  %5878 = vmatpush.bf16.msra.mxu2 %v11810_v45  ;;  %v11820_v58 = vld [vmem:[#allocation109_spill] sm:$0xff]  ;;  %v11821_v45 = vld [vmem:[#allocation100_spill] sm:$0xff] }
 0x593   :  { %5863 = vmatpush.bf16.msra.mxu1 %v11811_v57  ;;  %5891 = vmatpush.bf16.msra.mxu3 %v11812_v19  ;;  %v11822_v57 = vld [vmem:[#allocation102_spill] sm:$0xff]  ;;  %v11823_v19 = vld [vmem:[#allocation104_spill] sm:$0xff] }
 0x595   :  { %5851 = vmatpush.bf16.msra.mxu0 %v11813_v46  ;;  %5879 = vmatpush.bf16.msra.mxu2 %v11814_v15  ;;  %v11824_v46 = vld [vmem:[#allocation106_spill] sm:$0xff]  ;;  %v11825_v15 = vld [vmem:[#allocation111_spill] sm:$0xff] }
 0x597   :  { %5864 = vmatpush.bf16.msra.mxu1 %v11817_v49  ;;  %5892 = vmatpush.bf16.msra.mxu3 %v11818_v5  ;;  %v11828_v49 = vld [vmem:[#allocation110_spill] sm:$0xff]  ;;  %v11829_v5 = vld [vmem:[#allocation116_spill] sm:$0xff] }
 0x599   :  { %5900 = vmatpush.bf16.msrb.mxu0 %v11815_v25  ;;  %5928 = vmatpush.bf16.msrb.mxu2 %v11816_v56  ;;  %v11826_v25 = vld [vmem:[#allocation114_spill] sm:$0xff]  ;;  %v11827_v56 = vld [vmem:[#allocation108_spill] sm:$0xff] }
 0x59b   :  { %5865 = vmatpush.bf16.msra.mxu1 %v11821_v45  ;;  %5893 = vmatpush.bf16.msra.mxu3 %v11822_v57  ;;  %v11832_v45 = vld [vmem:[#allocation115_spill] sm:$0xff]  ;;  %v11833_v57 = vld [vmem:[#allocation120_spill] sm:$0xff] }
 0x59d   :  { %5901 = vmatpush.bf16.msrb.mxu0 %v11819_v37  ;;  %5929 = vmatpush.bf16.msrb.mxu2 %v11820_v58  ;;  %v11830_v37 = vld [vmem:[#allocation118_spill] sm:$0xff]  ;;  %v11831_v58 = vld [vmem:[#allocation113_spill] sm:$0xff] }
 0x59f   :  { %5914 = vmatpush.bf16.msrb.mxu1 %v11823_v19  ;;  %5942 = vmatpush.bf16.msrb.mxu3 %v11824_v46  ;;  %v11834_v19 = vld [vmem:[#allocation122_spill] sm:$0xff]  ;;  %v11835_v46 = vld [vmem:[#allocation117_spill] sm:$0xff] }
 0x5a1   :  { %5902 = vmatpush.bf16.msrb.mxu0 %v11825_v15  ;;  %5930 = vmatpush.bf16.msrb.mxu2 %v11826_v25  ;;  %v11836_v15 = vld [vmem:[#allocation119_spill] sm:$0xff]  ;;  %v11837_v25 = vld [vmem:[#allocation124_spill] sm:$0xff] }
 0x5a3   :  { %5915 = vmatpush.bf16.msrb.mxu1 %v11827_v56  ;;  %5943 = vmatpush.bf16.msrb.mxu3 %v11828_v49  ;;  %v11838_v56 = vld [vmem:[#allocation126_spill] sm:$0xff]  ;;  %v11839_v49 = vld [vmem:[#allocation121_spill] sm:$0xff] }
 0x5a5   :  { %5903 = vmatpush.bf16.msrb.mxu0 %v11829_v5  ;;  %5931 = vmatpush.bf16.msrb.mxu2 %v11830_v37  ;;  %v11840_v5 = vld [vmem:[#allocation123_spill] sm:$0xff]  ;;  %v11841_v37 = vld [vmem:[#allocation128_spill] sm:$0xff] }
 0x5a7   :  { %5916 = vmatpush.bf16.msrb.mxu1 %v11831_v58  ;;  %5944 = vmatpush.bf16.msrb.mxu3 %v11832_v45  ;;  %v11842_v58 = vld [vmem:[#allocation131_spill] sm:$0xff]  ;;  %v11843_v45 = vld [vmem:[#allocation125_spill] sm:$0xff] }
 0x5a9   :  { %5904 = vmatpush.bf16.msrb.mxu0 %v11833_v57  ;;  %5932 = vmatpush.bf16.msrb.mxu2 %v11834_v19  ;;  %v11844_v57 = vld [vmem:[#allocation127_spill] sm:$0xff]  ;;  %v11845_v19 = vld [vmem:[#allocation133_spill] sm:$0xff] }
 0x5ab   :  { %5917 = vmatpush.bf16.msrb.mxu1 %v11835_v46  ;;  %5945 = vmatpush.bf16.msrb.mxu3 %v11836_v15  ;;  %v11846_v46 = vld [vmem:[#allocation135_spill] sm:$0xff]  ;;  %v11847_v15 = vld [vmem:[#allocation130_spill] sm:$0xff] }
 0x5ad   :  { %5905 = vmatpush.bf16.msrb.mxu0 %v11837_v25  ;;  %5933 = vmatpush.bf16.msrb.mxu2 %v11838_v56  ;;  %v11848_v25 = vld [vmem:[#allocation132_spill] sm:$0xff]  ;;  %v11849_v56 = vld [vmem:[#allocation134_spill] sm:$0xff] }
 0x5af   :  { %5918 = vmatpush.bf16.msrb.mxu1 %v11839_v49  ;;  %5946 = vmatpush.bf16.msrb.mxu3 %v11840_v5  ;;  %v11850_v49 = vld [vmem:[#allocation136_spill] sm:$0xff] }
 0x5b1   :  { %5906 = vmatpush.bf16.msrb.mxu0 %v11841_v37  ;;  %5934 = vmatpush.bf16.msrb.mxu2 %v11842_v58 }
 0x5b3   :  { %5919 = vmatpush.bf16.msrb.mxu1 %v11843_v45  ;;  %5947 = vmatpush.bf16.msrb.mxu3 %v11844_v57 }
 0x5b5   :  { %5907 = vmatpush.bf16.msrb.mxu0 %v11845_v19  ;;  %5935 = vmatpush.bf16.msrb.mxu2 %v11846_v46  ;;  %v5520_v5 = vpop.f32.mrf.mxu0 }
 0x5b7   :  { %5920 = vmatpush.bf16.msrb.mxu1 %v11847_v15  ;;  %5948 = vmatpush.bf16.msrb.mxu3 %v11848_v25  ;;  %v11851_v15 = vld [vmem:[#allocation42_spill] sm:$0xff] }
 0x5bb   :  { %5921 = vmatpush.bf16.msrb.mxu1 %v11849_v56  ;;  %5949 = vmatpush.bf16.msrb.mxu3 %v11850_v49  ;;  %v5534_v37 = vpop.f32.mrf.mxu1  ;;  %v5548_v18 = vpop.f32.mrf.mxu2 }
 0x5bc   :  { %v5535_v20 = vadd.f32 %v5534_v37, %v5520_v5  ;;  %v11855_v5 = vld [vmem:[#allocation43_spill] sm:$0xff] }
 0x5bd   :  { %v5522_v58 = vpop.f32.mrf.mxu0 }
 0x5be   :  { %v5735_v56 = vadd.f32 %v5535_v20, %v11852_v0 }
 0x5c0   :  { %v5751_v60 = vmul.f32 0.5, %v5735_v56 }
 0x5c1   :  { %v5562_v12 = vpop.f32.mrf.mxu3 }
 0x5c2   :  { %v5563_v49 = vadd.f32 %v5562_v12, %v5548_v18 }
 0x5c3   :  { %v5536_v45 = vpop.f32.mrf.mxu1  ;;  %v5550_v41 = vpop.f32.mrf.mxu2 }
 0x5c4   :  { %v5537_v13 = vadd.f32 %v5536_v45, %v5522_v58  ;;  %v5736_v43 = vadd.f32 %v5563_v49, %v11854_v14 }
 0x5c5   :  { %v5576_v57 = vpop.f32.mrf.mxu0 }
 0x5c6   :  { %v5752_v12 = vmul.f32 0.5, %v5736_v43 }
 0x5c9   :  { %v5564_v11 = vpop.f32.mrf.mxu3 }
 0x5cb   :  { %v5590_v19 = vpop.f32.mrf.mxu1  ;;  %v5604_v46 = vpop.f32.mrf.mxu2 }
 0x5cc   :  { %v5591_v24 = vadd.f32 %v5590_v19, %v5576_v57 }
 0x5cd   :  { %v5578_v25 = vpop.f32.mrf.mxu0 }
 0x5ce   :  { %v5737_v33 = vadd.f32 %v5591_v24, %v11851_v15  ;;  %v11856_v24 = vld [vmem:[#allocation27_spill] sm:$0xff] }
 0x5cf   :  { %v5743_v19 = vadd.f32 %v5537_v13, %v11856_v24 }
 0x5d0   :  { %v5767_v22 = vmul.f32 0.5, %v5737_v33 }
 0x5d1   :  { %v5618_v40 = vpop.f32.mrf.mxu3 }
 0x5d2   :  { %v5619_v4 = vadd.f32 %v5618_v40, %v5604_v46  ;;  %9083 = vtanh.f32 %v5767_v22  ;;  %v5565_v40 = vadd.f32 %v5564_v11, %v5550_v41  ;;  %v11858_v22 = vld [vmem:[#allocation35_spill] sm:$0xff] }
 0x5d3   :  { %v5592_v23 = vpop.f32.mrf.mxu1  ;;  %v5606_v57 = vpop.f32.mrf.mxu2  ;;  %9085 = vtanh.f32 %v5751_v60  ;;  %v11859_v60 = vld [vmem:[#allocation58_spill] sm:$0xff] }
 0x5d4   :  { %v5593_v52 = vadd.f32 %v5592_v23, %v5578_v25  ;;  %v5738_v42 = vadd.f32 %v5619_v4, %v11853_v35  ;;  %v5753_v23 = vmul.f32 0.5, %v5743_v19  ;;  %v11857_v35 = vld [vmem:[#allocation51_spill] sm:$0xff] }
 0x5d5   :  { %v5632_v33 = vpop.f32.mrf.mxu0 }
 0x5d6   :  { %v5745_v37 = vadd.f32 %v5593_v52, %v11855_v5  ;;  %v5768_v0 = vmul.f32 0.5, %v5738_v42  ;;  %v5744_v52 = vadd.f32 %v5565_v40, %v11858_v22 }
 0x5d8   :  { %v5769_v58 = vmul.f32 0.5, %v5745_v37  ;;  %v9084_v46 = vpop.eup %9083  ;;  %9087 = vtanh.f32 %v5768_v0  ;;  %v5754_v25 = vmul.f32 0.5, %v5744_v52 }
 0x5d9   :  { %v5620_v20 = vpop.f32.mrf.mxu3  ;;  %9089 = vtanh.f32 %v5752_v12  ;;  %v9086_v15 = vpop.eup %9085  ;;  %v5775_v43 = vmul.f32 0.5, %v9084_v46 }
 0x5da   :  { %v5621_v18 = vadd.f32 %v5620_v20, %v5606_v57  ;;  %9091 = vtanh.f32 %v5769_v58  ;;  %v5759_v41 = vmul.f32 0.5, %v9086_v15  ;;  %v11860_v20 = vld [vmem:[#allocation67_spill] sm:$0xff] }
 0x5db   :  { %v5646_v45 = vpop.f32.mrf.mxu1  ;;  %9093 = vtanh.f32 %v5753_v23  ;;  %v5660_v11 = vpop.f32.mrf.mxu2  ;;  %v5779_v37 = vadd.f32 0.5, %v5775_v43 }
 0x5dc   :  { %v5746_v14 = vadd.f32 %v5621_v18, %v11857_v35  ;;  %v5647_v4 = vadd.f32 %v5646_v45, %v5632_v33  ;;  %v5763_v18 = vadd.f32 0.5, %v5759_v41  ;;  %v11861_v45 = vld [vmem:[#allocation59_spill] sm:$0xff] }
 0x5dd   :  { %v5634_v24 = vpop.f32.mrf.mxu0 }
 0x5de   :  { %v5739_v42 = vadd.f32 %v5647_v4, %v11859_v60  ;;  %v5770_v13 = vmul.f32 0.5, %v5746_v14  ;;  %v9088_v49 = vpop.eup %9087  ;;  %v5803_v14 = vmul.f32 %v5779_v37, %v10763_v30 }
 0x5df   :  { %v9090_v5 = vpop.eup %9089  ;;  %v5776_v58 = vmul.f32 0.5, %v9088_v49 }
 0x5e0   :  { %9095 = vtanh.f32 %v5739_v42  ;;  %v9092_v0 = vpop.eup %9091  ;;  %v5760_v35 = vmul.f32 0.5, %v9090_v5 }
 0x5e1   :  { %v5674_v56 = vpop.f32.mrf.mxu3  ;;  %9097 = vtanh.f32 %v5770_v13  ;;  %v9094_v33 = vpop.eup %9093  ;;  %v5777_v4 = vmul.f32 0.5, %v9092_v0  ;;  %v5780_v15 = vadd.f32 0.5, %v5776_v58 }
 0x5e2   :  { %v5675_v57 = vadd.f32 %v5674_v56, %v5660_v11  ;;  %9099 = vtanh.f32 %v5754_v25  ;;  %v5761_v52 = vmul.f32 0.5, %v9094_v33  ;;  %v5764_v25 = vadd.f32 0.5, %v5760_v35 }
 0x5e3   :  { %v5648_v19 = vpop.f32.mrf.mxu1  ;;  %v5662_v42 = vpop.f32.mrf.mxu2  ;;  %v5781_v56 = vadd.f32 0.5, %v5777_v4  ;;  %v5804_v30 = vmul.f32 %v5780_v15, %v10768_v27  ;;  %v11863_v27 = vld [vmem:[#allocation203_spill] sm:$0xff] }
 0x5e4   :  { %v5740_v12 = vadd.f32 %v5675_v57, %v11860_v20  ;;  %v5649_v40 = vadd.f32 %v5648_v19, %v5634_v24  ;;  %v11862_v57 = vld [vmem:[#allocation76_spill] sm:$0xff]  ;;  %v5765_v5 = vadd.f32 0.5, %v5761_v52  ;;  %v3832_v4 = vadd.f32 %v11863_v27, %v10207_v6 }
 0x5e6   :  { %v9096_v23 = vpop.eup %9095  ;;  %9101 = vtanh.f32 %v5740_v12  ;;  %v5747_v46 = vadd.f32 %v5649_v40, %v11861_v45  ;;  %v5805_v12 = vmul.f32 %v5781_v56, %v10770_v34  ;;  %v11864_v34 = vld [vmem:[#allocation205_spill] sm:$0xff] }
 0x5e7   :  { %v5807_v22 = vmul.f32 %v9096_v23, %v5763_v18  ;;  %v9098_v11 = vpop.eup %9097 }
 0x5e8   :  { %9103 = vtanh.f32 %v5747_v46  ;;  %v9100_v41 = vpop.eup %9099  ;;  %v5778_v37 = vmul.f32 0.5, %v9098_v11 }
 0x5e9   :  { %v10951_v60 = vadd.f32 %v5807_v22, %v5803_v14  ;;  %v5676_v43 = vpop.f32.mrf.mxu3  ;;  %v5762_v20 = vmul.f32 0.5, %v9100_v41  ;;  %v11867_v41 = vld [vmem:[#allocation194_spill] sm:$0xff] }
 0x5ea   :  { %v5677_v13 = vadd.f32 %v5676_v43, %v5662_v42  ;;  %v5782_v18 = vadd.f32 0.5, %v5778_v37  ;;  %v3861_v42 = vadd.f32 %v11864_v34, %v3832_v4  ;;  %v11865_v43 = vld [vmem:[#allocation188_spill] sm:$0xff]  ;;  %v11873_v34 = vld [vmem:[#allocation235_spill] sm:$0xff] }
 0x5eb   :  { %v5766_v23 = vadd.f32 0.5, %v5762_v20  ;;  %v11870_v20 = vld [vmem:[#allocation232_spill] sm:$0xff] }
 0x5ec   :  { %v9102_v49 = vpop.eup %9101  ;;  %v5748_v24 = vadd.f32 %v5677_v13, %v11862_v57  ;;  %v5806_v46 = vmul.f32 %v5782_v18, %v10775_v50  ;;  %v11866_v13 = vld [vmem:[#allocation137_spill] sm:$0xff] }
 0x5ed   :  { %v5808_v19 = vmul.f32 %v9102_v49, %v5764_v25  ;;  %v3774_v25 = vadd.f32 %v11867_v41, %v11866_v13  ;;  %v11868_v49 = vld [vmem:[#allocation231_spill] sm:$0xff] }
 0x5ee   :  { %v9104_v0 = vpop.eup %9103  ;;  %9105 = vtanh.f32 %v5748_v24  ;;  %v3890_v57 = vadd.f32 %v11868_v49, %v3861_v42 }
 0x5ef   :  { %v10956_v40 = vadd.f32 %v5808_v19, %v5804_v30  ;;  %v5809_v33 = vmul.f32 %v9104_v0, %v5765_v5  ;;  %v11869_v30 = vld [vmem:[#allocation197_spill] sm:$0xff] }
 0x5f0   :  { %v3803_v37 = vadd.f32 %v11869_v30, %v3774_v25 }
 0x5f1   :  { %v10958_v58 = vadd.f32 %v5809_v33, %v5805_v12  ;;  %v3919_v12 = vadd.f32 %v11870_v20, %v3890_v57  ;;  %v11871_v33 = vld [vmem:[#allocation233_spill] sm:$0xff] }
 0x5f4   :  { %v9106_v45 = vpop.eup %9105 }
 0x5f5   :  { %v5810_v35 = vmul.f32 %v9106_v45, %v5766_v23  ;;  %v5688_v14 = vpop.f32.mrf.mxu0  ;;  %v11872_v45 = vld [vmem:[#allocation234_spill] sm:$0xff] }
 0x5f7   :  { %v10963_v22 = vadd.f32 %v5810_v35, %v5806_v46  ;;  %v3948_v46 = vadd.f32 %v11872_v45, %v3919_v12 }
 0x5f9   :  { %v3977_v42 = vadd.f32 %v11873_v34, %v3948_v46  ;;  %v11907_v34 = vld [vmem:[#allocation221_spill] sm:$0xff] }
 0x5fb   :  { %v5702_v52 = vpop.f32.mrf.mxu1  ;;  %v5716_v56 = vpop.f32.mrf.mxu2 }
 0x5fc   :  { %v5703_v15 = vadd.f32 %v5702_v52, %v5688_v14 }
 0x5fd   :  { %v5690_v19 = vpop.f32.mrf.mxu0 }
 0x5fe   :  { %v5741_v11 = vadd.f32 %v5703_v15, %v11865_v43 }
 0x600   :  { %v5787_v50 = vmul.f32 0.5, %v5741_v11 }
 0x601   :  { %v5730_v24 = vpop.f32.mrf.mxu3 }
 0x602   :  { %v5731_v5 = vadd.f32 %v5730_v24, %v5716_v56  ;;  %9107 = vtanh.f32 %v5787_v50 }
 0x603   :  { %v5704_v0 = vpop.f32.mrf.mxu1  ;;  %v5718_v4 = vpop.f32.mrf.mxu2 }
 0x604   :  { %v5742_v18 = vadd.f32 %v5731_v5, %v11871_v33  ;;  %v5705_v23 = vadd.f32 %v5704_v0, %v5690_v19 }
 0x606   :  { %v5788_v35 = vmul.f32 0.5, %v5742_v18  ;;  %v5749_v14 = vadd.f32 %v5705_v23, %v3803_v37 }
 0x608   :  { %v5789_v27 = vmul.f32 0.5, %v5749_v14  ;;  %9109 = vtanh.f32 %v5788_v35  ;;  %v9108_v15 = vpop.eup %9107 }
 0x609   :  { %v5732_v52 = vpop.f32.mrf.mxu3  ;;  %v5795_v13 = vmul.f32 0.5, %v9108_v15  ;;  %v11906_v15 = vld [vmem:[#allocation219_spill] sm:$0xff] }
 0x60a   :  { %9111 = vtanh.f32 %v5789_v27  ;;  %v5733_v43 = vadd.f32 %v5732_v52, %v5718_v4  ;;  %v11903_v27 = vld [vmem:[#allocation220_spill] sm:$0xff]  ;;  %v11904_v4 = vld [vmem:[#allocation222_spill] sm:$0xff] }
 0x60b   :  { %9113 = vtanh.f32 %v10951_v60  ;;  %v5799_v49 = vadd.f32 0.5, %v5795_v13  ;;  %v11905_v52 = vld [vmem:[#allocation216_spill] sm:$0xff] }
 0x60c   :  { %v5750_v11 = vadd.f32 %v5733_v43, %v3977_v42  ;;  %9115 = vtanh.f32 %v10958_v58  ;;  %v11908_v42 = vld [vmem:[#allocation223_spill] sm:$0xff] }
 0x60e   :  { %v5790_v41 = vmul.f32 0.5, %v5750_v11  ;;  %v9110_v25 = vpop.eup %9109 }
 0x60f   :  { %v5796_v24 = vmul.f32 0.5, %v9110_v25 }
 0x610   :  { %v9112_v56 = vpop.eup %9111  ;;  %9117 = vtanh.f32 %v5790_v41 }
 0x611   :  { %v5797_v57 = vmul.f32 0.5, %v9112_v56  ;;  %v9114_v50 = vpop.eup %9113  ;;  %9119 = vtanh.f32 %v10956_v40  ;;  %v5800_v20 = vadd.f32 0.5, %v5796_v24 }
 0x612   :  { %v9116_v30 = vpop.eup %9115  ;;  %9121 = vtanh.f32 %v10963_v22  ;;  %v5819_v37 = vmul.f32 %v9114_v50, %v5799_v49 }
 0x613   :  { %v5801_v5 = vadd.f32 0.5, %v5797_v57 }
 0x615   :  { %v5821_v19 = vmul.f32 %v9116_v30, %v5801_v5 }
 0x616   :  { %v9118_v0 = vpop.eup %9117 }
 0x617   :  { %v10979_v12 = vpack.c.bf16 %v5821_v19, %v5819_v37  ;;  %v5798_v33 = vmul.f32 0.5, %v9118_v0  ;;  %v9120_v18 = vpop.eup %9119  ;;  %v6182_v37 = vld [vmem:[#allocation13 + $0x78] sm:$0xff]  ;;  %v6181_v0 = vld [vmem:[#allocation13 + $0x70] sm:$0xff] }
 0x618   :  { %v9122_v45 = vpop.eup %9121  ;;  %v5820_v46 = vmul.f32 %v9120_v18, %v5800_v20  ;;  %v11909_v20 = vld [vmem:[#allocation44_spill] sm:$0xff] }
 0x619   :  { %v5802_v23 = vadd.f32 0.5, %v5798_v33  ;;  %5852 = vmatmul.bf16.vlgmr.msra.gmra.mxu0 %v10979_v12  ;;  %5880 = vmatmul.bf16.vlgmr.msra.gmra.mxu2 %v10979_v12  ;;  %v6180_v18 = vld [vmem:[#allocation13 + $0x68] sm:$0xff] }
 0x61a   :  { %5956 = vmatpush.bf16.msra.mxu0 %v11629_v47  ;;  %5984 = vmatpush.bf16.msra.mxu2 %v11630_v51  ;;  %v11874_v47 = vld [vmem:[#allocation186_spill] sm:$0xff]  ;;  %v11875_v51 = vld [vmem:[#allocation175_spill] sm:$0xff] }
 0x61b   :  { %v5822_v35 = vmul.f32 %v9122_v45, %v5802_v23  ;;  %v11910_v23 = vld [vmem:[#allocation28_spill] sm:$0xff] }
 0x61d   :  { %v10985_v14 = vpack.c.bf16 %v5822_v35, %v5820_v46 }
 0x61e   :  { %5957 = vmatpush.bf16.msra.mxu0 %v11631_v1  ;;  %5985 = vmatpush.bf16.msra.mxu2 %v11632_v9  ;;  %v11876_v1 = vld [vmem:[#allocation177_spill] sm:$0xff] }
 0x61f   :  { %5866 = vmatmul.bf16.vlgmr.msra.gmra.mxu1 %v10985_v14  ;;  %5894 = vmatmul.bf16.vlgmr.msra.gmra.mxu3 %v10985_v14  ;;  %v11877_v9 = vld [vmem:[#allocation189_spill] sm:$0xff] }
 0x620   :  { %5970 = vmatpush.bf16.msra.mxu1 %v11633_v54  ;;  %5998 = vmatpush.bf16.msra.mxu3 %v11634_v16  ;;  %v11878_v54 = vld [vmem:[#allocation191_spill] sm:$0xff] }
 0x621   :  { %v11879_v16 = vld [vmem:[#allocation179_spill] sm:$0xff] }
 0x622   :  { %5958 = vmatpush.bf16.msra.mxu0 %v11635_v53  ;;  %5986 = vmatpush.bf16.msra.mxu2 %v11636_v48  ;;  %v11880_v53 = vld [vmem:[#allocation182_spill] sm:$0xff]  ;;  %v11881_v48 = vld [vmem:[#allocation185_spill] sm:$0xff] }
 0x624   :  { %5971 = vmatpush.bf16.msra.mxu1 %v11637_v55  ;;  %5999 = vmatpush.bf16.msra.mxu3 %v11638_v63  ;;  %v11882_v55 = vld [vmem:[#allocation187_spill] sm:$0xff]  ;;  %v11883_v63 = vld [vmem:[#allocation193_spill] sm:$0xff] }
 0x626   :  { %5959 = vmatpush.bf16.msra.mxu0 %v11639_v44  ;;  %5987 = vmatpush.bf16.msra.mxu2 %v11640_v59  ;;  %v11884_v44 = vld [vmem:[#allocation196_spill] sm:$0xff]  ;;  %v11885_v59 = vld [vmem:[#allocation190_spill] sm:$0xff] }
 0x628   :  { %5972 = vmatpush.bf16.msra.mxu1 %v11641_v36  ;;  %6000 = vmatpush.bf16.msra.mxu3 %v11642_v10  ;;  %v11886_v36 = vld [vmem:[#allocation192_spill] sm:$0xff]  ;;  %v11887_v10 = vld [vmem:[#allocation199_spill] sm:$0xff] }
 0x629   :  { %5908 = vmatmul.bf16.vlgmr.msrb.gmra.mxu0 %v10979_v12  ;;  %5936 = vmatmul.bf16.vlgmr.msrb.gmra.mxu2 %v10979_v12 }
 0x62a   :  { %5960 = vmatpush.bf16.msra.mxu0 %v11643_v3  ;;  %5988 = vmatpush.bf16.msra.mxu2 %v11644_v62  ;;  %v11888_v3 = vld [vmem:[#allocation201_spill] sm:$0xff]  ;;  %v11889_v62 = vld [vmem:[#allocation195_spill] sm:$0xff] }
 0x62c   :  { %5973 = vmatpush.bf16.msra.mxu1 %v11645_v7  ;;  %6001 = vmatpush.bf16.msra.mxu3 %v11646_v29  ;;  %v11890_v7 = vld [vmem:[#allocation198_spill] sm:$0xff]  ;;  %v11891_v29 = vld [vmem:[#allocation204_spill] sm:$0xff] }
 0x62e   :  { %5961 = vmatpush.bf16.msra.mxu0 %v11647_v2  ;;  %5989 = vmatpush.bf16.msra.mxu2 %v11648_v28  ;;  %v11892_v2 = vld [vmem:[#allocation207_spill] sm:$0xff]  ;;  %v11893_v28 = vld [vmem:[#allocation200_spill] sm:$0xff] }
 0x62f   :  { %5922 = vmatmul.bf16.vlgmr.msrb.gmra.mxu1 %v10985_v14  ;;  %5950 = vmatmul.bf16.vlgmr.msrb.gmra.mxu3 %v10985_v14 }
 0x630   :  { %5974 = vmatpush.bf16.msra.mxu1 %v11752_v21  ;;  %6002 = vmatpush.bf16.msra.mxu3 %v11650_v32  ;;  %v11894_v32 = vld [vmem:[#allocation202_spill] sm:$0xff] }
 0x631   :  { %v11895_v21 = vld [vmem:[#allocation210_spill] sm:$0xff] }
 0x632   :  { %5962 = vmatpush.bf16.msra.mxu0 %v11753_v26  ;;  %5990 = vmatpush.bf16.msra.mxu2 %v11754_v17  ;;  %v11896_v26 = vld [vmem:[#allocation212_spill] sm:$0xff]  ;;  %v11897_v17 = vld [vmem:[#allocation206_spill] sm:$0xff] }
 0x634   :  { %5975 = vmatpush.bf16.msra.mxu1 %v11755_v61  ;;  %6003 = vmatpush.bf16.msra.mxu3 %v11756_v31  ;;  %v11898_v61 = vld [vmem:[#allocation208_spill] sm:$0xff]  ;;  %v11899_v31 = vld [vmem:[#allocation214_spill] sm:$0xff] }
 0x636   :  { %5963 = vmatpush.bf16.msra.mxu0 %v11757_v39  ;;  %5991 = vmatpush.bf16.msra.mxu2 %v11758_v8  ;;  %v11900_v39 = vld [vmem:[#allocation217_spill] sm:$0xff]  ;;  %v11901_v8 = vld [vmem:[#allocation211_spill] sm:$0xff] }
 0x638   :  { %5976 = vmatpush.bf16.msra.mxu1 %v11875_v51  ;;  %6004 = vmatpush.bf16.msra.mxu3 %v11876_v1  ;;  %v6198_v51 = vld [vmem:[#allocation13 + $0xf8] sm:$0xff] }
 0x639   :  { %5964 = vmatmul.bf16.vlgmr.msra.gmra.mxu0 %v10979_v12  ;;  %5992 = vmatmul.bf16.vlgmr.msra.gmra.mxu2 %v10979_v12 }
 0x63a   :  { %6012 = vmatpush.bf16.msrb.mxu0 %v11759_v38  ;;  %6040 = vmatpush.bf16.msrb.mxu2 %v11874_v47  ;;  %v11902_v38 = vld [vmem:[#allocation213_spill] sm:$0xff]  ;;  %v6179_v47 = vld [vmem:[#allocation13 + $0x60] sm:$0xff] }
 0x63c   :  { %5977 = vmatpush.bf16.msra.mxu1 %v11879_v16  ;;  %6005 = vmatpush.bf16.msra.mxu3 %v11880_v53  ;;  %v6178_v53 = vld [vmem:[#allocation13 + $0x58] sm:$0xff] }
 0x63e   :  { %6013 = vmatpush.bf16.msrb.mxu0 %v11877_v9  ;;  %6041 = vmatpush.bf16.msrb.mxu2 %v11878_v54 }
 0x63f   :  { %5978 = vmatmul.bf16.vlgmr.msra.gmra.mxu1 %v10985_v14  ;;  %6006 = vmatmul.bf16.vlgmr.msra.gmra.mxu3 %v10985_v14 }
 0x640   :  { %6026 = vmatpush.bf16.msrb.mxu1 %v11881_v48  ;;  %6054 = vmatpush.bf16.msrb.mxu3 %v11882_v55  ;;  %v6197_v48 = vld [vmem:[#allocation13 + $0xf0] sm:$0xff] }
 0x642   :  { %6014 = vmatpush.bf16.msrb.mxu0 %v11883_v63  ;;  %6042 = vmatpush.bf16.msrb.mxu2 %v11884_v44  ;;  %v11911_v63 = vld [vmem:[#allocation52_spill] sm:$0xff] }
 0x644   :  { %6027 = vmatpush.bf16.msrb.mxu1 %v11885_v59  ;;  %6055 = vmatpush.bf16.msrb.mxu3 %v11886_v36  ;;  %v11912_v59 = vld [vmem:[#allocation36_spill] sm:$0xff] }
 0x646   :  { %6015 = vmatpush.bf16.msrb.mxu0 %v11887_v10  ;;  %6043 = vmatpush.bf16.msrb.mxu2 %v11888_v3  ;;  %v6177_v3 = vld [vmem:[#allocation13 + $0x50] sm:$0xff] }
 0x648   :  { %6028 = vmatpush.bf16.msrb.mxu1 %v11889_v62  ;;  %6056 = vmatpush.bf16.msrb.mxu3 %v11890_v7  ;;  %v6196_v62 = vld [vmem:[#allocation13 + $0xe8] sm:$0xff] }
 0x649   :  { %v11913_v7 = vld [vmem:[#allocation45_spill] sm:$0xff] }
 0x64a   :  { %6016 = vmatpush.bf16.msrb.mxu0 %v11891_v29  ;;  %6044 = vmatpush.bf16.msrb.mxu2 %v11892_v2  ;;  %v11914_v2 = vld [vmem:[#allocation29_spill] sm:$0xff] }
 0x64c   :  { %6029 = vmatpush.bf16.msrb.mxu1 %v11893_v28  ;;  %6057 = vmatpush.bf16.msrb.mxu3 %v11894_v32  ;;  %v6176_v32 = vld [vmem:[#allocation13 + $0x48] sm:$0xff] }
 0x64e   :  { %6017 = vmatpush.bf16.msrb.mxu0 %v11895_v21  ;;  %6045 = vmatpush.bf16.msrb.mxu2 %v11896_v26  ;;  %v6195_v21 = vld [vmem:[#allocation13 + $0xe0] sm:$0xff] }
 0x650   :  { %6030 = vmatpush.bf16.msrb.mxu1 %v11897_v17  ;;  %6058 = vmatpush.bf16.msrb.mxu3 %v11898_v61 }
 0x652   :  { %6018 = vmatpush.bf16.msrb.mxu0 %v11899_v31  ;;  %6046 = vmatpush.bf16.msrb.mxu2 %v11900_v39 }
 0x654   :  { %6031 = vmatpush.bf16.msrb.mxu1 %v11901_v8  ;;  %6059 = vmatpush.bf16.msrb.mxu3 %v11902_v38  ;;  %v6175_v38 = vld [vmem:[#allocation13 + $0x40] sm:$0xff] }
 0x656   :  { %6019 = vmatpush.bf16.msrb.mxu0 %v11903_v27  ;;  %6047 = vmatpush.bf16.msrb.mxu2 %v11904_v4  ;;  %v6194_v27 = vld [vmem:[#allocation13 + $0xd8] sm:$0xff] }
 0x658   :  { %6032 = vmatpush.bf16.msrb.mxu1 %v11905_v52  ;;  %6060 = vmatpush.bf16.msrb.mxu3 %v11906_v15 }
 0x659   :  { %6020 = vmatmul.bf16.vlgmr.msrb.gmra.mxu0 %v10979_v12  ;;  %6048 = vmatmul.bf16.vlgmr.msrb.gmra.mxu2 %v10979_v12 }
 0x65a   :  { %6203 = vmatpush.msra.mxu0 %v6182_v37  ;;  %8956 = vmatpush.msra.mxu2 %v6182_v37 }
 0x65c   :  { %6033 = vmatpush.bf16.msrb.mxu1 %v11907_v34  ;;  %6061 = vmatpush.bf16.msrb.mxu3 %v11908_v42  ;;  %v6174_v34 = vld [vmem:[#allocation13 + $0x38] sm:$0xff]  ;;  %v6193_v42 = vld [vmem:[#allocation13 + $0xd0] sm:$0xff] }
 0x65d   :  { %6204 = vmatpush.msra.mxu0 %v6181_v0  ;;  %8957 = vmatpush.msra.mxu2 %v6181_v0  ;;  %v6191_v0 = vld [vmem:[#allocation13 + $0xc0] sm:$0xff] }
 0x65f   :  { %6034 = vmatmul.bf16.vlgmr.msrb.gmra.mxu1 %v10985_v14  ;;  %6062 = vmatmul.bf16.vlgmr.msrb.gmra.mxu3 %v10985_v14 }
 0x660   :  { %6205 = vmatpush.msra.mxu0 %v6180_v18  ;;  %8958 = vmatpush.msra.mxu2 %v6180_v18 }
 0x661   :  { %6226 = vmatpush.msra.mxu1 %v6198_v51  ;;  %8972 = vmatpush.msra.mxu3 %v6198_v51 }
 0x662   :  { %6206 = vmatpush.msra.mxu0 %v6179_v47  ;;  %8959 = vmatpush.msra.mxu2 %v6179_v47 }
 0x663   :  { %6227 = vmatpush.msra.mxu1 %v6197_v48  ;;  %8973 = vmatpush.msra.mxu3 %v6197_v48 }
 0x664   :  { %6207 = vmatpush.msra.mxu0 %v6178_v53  ;;  %8960 = vmatpush.msra.mxu2 %v6178_v53  ;;  %v11918_v53 = vld [vmem:[#allocation85_spill] sm:$0xff] }
 0x665   :  { %6228 = vmatpush.msra.mxu1 %v6196_v62  ;;  %8974 = vmatpush.msra.mxu3 %v6196_v62  ;;  %v11919_v62 = vld [vmem:[#allocation61_spill] sm:$0xff] }
 0x666   :  { %6208 = vmatpush.msra.mxu0 %v6177_v3  ;;  %8961 = vmatpush.msra.mxu2 %v6177_v3 }
 0x667   :  { %6229 = vmatpush.msra.mxu1 %v6195_v21  ;;  %8975 = vmatpush.msra.mxu3 %v6195_v21  ;;  %v6168_v21 = vld [vmem:[#allocation13 + $0x8] sm:$0xff] }
 0x668   :  { %6209 = vmatpush.msra.mxu0 %v6176_v32  ;;  %8962 = vmatpush.msra.mxu2 %v6176_v32 }
 0x669   :  { %6230 = vmatpush.msra.mxu1 %v6194_v27  ;;  %8976 = vmatpush.msra.mxu3 %v6194_v27  ;;  %v6186_v27 = vld [vmem:[#allocation13 + $0x98] sm:$0xff] }
 0x66a   :  { %6210 = vmatpush.msra.mxu0 %v6175_v38  ;;  %8963 = vmatpush.msra.mxu2 %v6175_v38  ;;  %v6167_v38 = vld [vmem:[#allocation13] sm:$0xff] }
 0x66b   :  { %6231 = vmatpush.msra.mxu1 %v6193_v42  ;;  %8977 = vmatpush.msra.mxu3 %v6193_v42  ;;  %v6185_v42 = vld [vmem:[#allocation13 + $0x90] sm:$0xff] }
 0x66c   :  { %6211 = vmatpush.msra.mxu0 %v6174_v34  ;;  %8964 = vmatpush.msra.mxu2 %v6174_v34 }
 0x696   :  { %v5853_v43 = vpop.f32.mrf.mxu0 }
 0x69c   :  { %v5867_v11 = vpop.f32.mrf.mxu1  ;;  %v5881_v13 = vpop.f32.mrf.mxu2 }
 0x69d   :  { %v5868_v19 = vadd.f32 %v5867_v11, %v5853_v43  ;;  %v11915_v11 = vld [vmem:[#allocation53_spill] sm:$0xff] }
 0x69e   :  { %v5855_v41 = vpop.f32.mrf.mxu0 }
 0x69f   :  { %v6068_v45 = vadd.f32 %v5868_v19, %v11910_v23  ;;  %v6172_v19 = vld [vmem:[#allocation13 + $0x28] sm:$0xff]  ;;  %v6171_v23 = vld [vmem:[#allocation13 + $0x20] sm:$0xff] }
 0x6a1   :  { %v6084_v55 = vmul.f32 0.5, %v6068_v45  ;;  %v6190_v45 = vld [vmem:[#allocation13 + $0xb8] sm:$0xff] }
 0x6a2   :  { %v5895_v25 = vpop.f32.mrf.mxu3 }
 0x6a3   :  { %v5896_v35 = vadd.f32 %v5895_v25, %v5881_v13  ;;  %v11916_v25 = vld [vmem:[#allocation37_spill] sm:$0xff] }
 0x6a4   :  { %v5869_v56 = vpop.f32.mrf.mxu1  ;;  %v5883_v49 = vpop.f32.mrf.mxu2 }
 0x6a5   :  { %v5870_v54 = vadd.f32 %v5869_v56, %v5855_v41  ;;  %v6069_v36 = vadd.f32 %v5896_v35, %v11912_v59 }
 0x6a6   :  { %v5909_v57 = vpop.f32.mrf.mxu0 }
 0x6a7   :  { %v6076_v28 = vadd.f32 %v5870_v54, %v11914_v2  ;;  %v6085_v61 = vmul.f32 0.5, %v6069_v36  ;;  %v6189_v54 = vld [vmem:[#allocation13 + $0xb0] sm:$0xff] }
 0x6a8   :  { %v6169_v36 = vld [vmem:[#allocation13 + $0x10] sm:$0xff] }
 0x6a9   :  { %v6086_v52 = vmul.f32 0.5, %v6076_v28 }
 0x6aa   :  { %v5897_v50 = vpop.f32.mrf.mxu3 }
 0x6ab   :  { %v5898_v31 = vadd.f32 %v5897_v50, %v5883_v49  ;;  %v6173_v49 = vld [vmem:[#allocation13 + $0x30] sm:$0xff] }
 0x6ac   :  { %v5923_v24 = vpop.f32.mrf.mxu1  ;;  %v5937_v30 = vpop.f32.mrf.mxu2  ;;  %6212 = vmatpush.msra.mxu0 %v6173_v49  ;;  %8965 = vmatpush.msra.mxu2 %v6173_v49 }
 0x6ad   :  { %v5924_v5 = vadd.f32 %v5923_v24, %v5909_v57  ;;  %v6077_v56 = vadd.f32 %v5898_v31, %v11916_v25  ;;  %v6192_v57 = vld [vmem:[#allocation13 + $0xc8] sm:$0xff] }
 0x6ae   :  { %v5911_v33 = vpop.f32.mrf.mxu0  ;;  %v11917_v24 = vld [vmem:[#allocation60_spill] sm:$0xff]  ;;  %6232 = vmatpush.msra.mxu1 %v6192_v57  ;;  %8978 = vmatpush.msra.mxu3 %v6192_v57 }
 0x6af   :  { %v6070_v12 = vadd.f32 %v5924_v5, %v11909_v20  ;;  %6213 = vmatpush.msra.mxu0 %v6172_v19  ;;  %8966 = vmatpush.msra.mxu2 %v6172_v19  ;;  %v6184_v57 = vld [vmem:[#allocation13 + $0x88] sm:$0xff]  ;;  %v6183_v19 = vld [vmem:[#allocation13 + $0x80] sm:$0xff] }
 0x6b0   :  { %6233 = vmatpush.msra.mxu1 %v6191_v0  ;;  %8979 = vmatpush.msra.mxu3 %v6191_v0  ;;  %v11921_v0 = vld [vmem:[#allocation89_spill] sm:$0xff] }
 0x6b1   :  { %v6100_v1 = vmul.f32 0.5, %v6070_v12  ;;  %6214 = vmatpush.msra.mxu0 %v6171_v23  ;;  %8967 = vmatpush.msra.mxu2 %v6171_v23 }
 0x6b2   :  { %v5951_v46 = vpop.f32.mrf.mxu3  ;;  %6234 = vmatpush.msra.mxu1 %v6190_v45  ;;  %8980 = vmatpush.msra.mxu3 %v6190_v45  ;;  %v11923_v45 = vld [vmem:[#allocation139_spill] sm:$0xff] }
 0x6b3   :  { %v5952_v14 = vadd.f32 %v5951_v46, %v5937_v30  ;;  %9123 = vtanh.f32 %v6100_v1 }
 0x6b4   :  { %v5925_v9 = vpop.f32.mrf.mxu1  ;;  %v5939_v10 = vpop.f32.mrf.mxu2  ;;  %9125 = vtanh.f32 %v6084_v55  ;;  %6235 = vmatpush.msra.mxu1 %v6189_v54  ;;  %8981 = vmatpush.msra.mxu3 %v6189_v54 }
 0x6b5   :  { %v5926_v16 = vadd.f32 %v5925_v9, %v5911_v33  ;;  %v6071_v44 = vadd.f32 %v5952_v14, %v11911_v63  ;;  %v6087_v33 = vmul.f32 0.5, %v6077_v56  ;;  %v6170_v9 = vld [vmem:[#allocation13 + $0x18] sm:$0xff] }
 0x6b6   :  { %v5965_v39 = vpop.f32.mrf.mxu0  ;;  %6215 = vmatpush.msra.mxu0 %v6170_v9  ;;  %8968 = vmatpush.msra.mxu2 %v6170_v9 }
 0x6b7   :  { %v6078_v29 = vadd.f32 %v5926_v16, %v11913_v7  ;;  %v6101_v26 = vmul.f32 0.5, %v6071_v44 }
 0x6b8   :  { %6216 = vmatpush.msra.mxu0 %v6169_v36  ;;  %8969 = vmatpush.msra.mxu2 %v6169_v36 }
 0x6b9   :  { %v6102_v4 = vmul.f32 0.5, %v6078_v29  ;;  %v9124_v43 = vpop.eup %9123  ;;  %9127 = vtanh.f32 %v6101_v26  ;;  %v6187_v26 = vld [vmem:[#allocation13 + $0xa0] sm:$0xff] }
 0x6ba   :  { %v5953_v17 = vpop.f32.mrf.mxu3  ;;  %9129 = vtanh.f32 %v6085_v61  ;;  %v9126_v50 = vpop.eup %9125  ;;  %v6108_v30 = vmul.f32 0.5, %v9124_v43  ;;  %6217 = vmatpush.msra.mxu0 %v6168_v21  ;;  %8970 = vmatpush.msra.mxu2 %v6168_v21  ;;  %v11931_v21 = vld [vmem:[#allocation218_spill] sm:$0xff] }
 0x6bb   :  { %v5954_v8 = vadd.f32 %v5953_v17, %v5939_v10  ;;  %9131 = vtanh.f32 %v6102_v4  ;;  %v6092_v12 = vmul.f32 0.5, %v9126_v50  ;;  %v6188_v10 = vld [vmem:[#allocation13 + $0xa8] sm:$0xff] }
 0x6bc   :  { %v5979_v15 = vpop.f32.mrf.mxu1  ;;  %9133 = vtanh.f32 %v6086_v52  ;;  %v5993_v37 = vpop.f32.mrf.mxu2  ;;  %v6112_v47 = vadd.f32 0.5, %v6108_v30  ;;  %6236 = vmatpush.msra.mxu1 %v6188_v10  ;;  %8982 = vmatpush.msra.mxu3 %v6188_v10 }
 0x6bd   :  { %v6079_v13 = vadd.f32 %v5954_v8, %v11915_v11  ;;  %v5980_v41 = vadd.f32 %v5979_v15, %v5965_v39  ;;  %v6096_v44 = vadd.f32 0.5, %v6092_v12  ;;  %6218 = vmatpush.msra.mxu0 %v6167_v38  ;;  %8971 = vmatpush.msra.mxu2 %v6167_v38  ;;  %v11920_v11 = vld [vmem:[#allocation95_spill] sm:$0xff] }
 0x6be   :  { %v5967_v51 = vpop.f32.mrf.mxu0  ;;  %v6136_v2 = vmul.f32 %v6112_v47, %v10951_v60  ;;  %6237 = vmatpush.msra.mxu1 %v6187_v26  ;;  %8983 = vmatpush.msra.mxu3 %v6187_v26 }
 0x6bf   :  { %v6072_v5 = vadd.f32 %v5980_v41, %v11917_v24  ;;  %v6103_v20 = vmul.f32 0.5, %v6079_v13  ;;  %v9128_v46 = vpop.eup %9127 }
 0x6c0   :  { %v9130_v14 = vpop.eup %9129  ;;  %v6109_v59 = vmul.f32 0.5, %v9128_v46  ;;  %6238 = vmatpush.msra.mxu1 %v6186_v27  ;;  %8984 = vmatpush.msra.mxu3 %v6186_v27  ;;  %v11934_v27 = vld [vmem:[#allocation239_spill] sm:$0xff] }
 0x6c1   :  { %9135 = vtanh.f32 %v6072_v5  ;;  %v9132_v16 = vpop.eup %9131  ;;  %v6093_v29 = vmul.f32 0.5, %v9130_v14 }
 0x6c2   :  { %v6007_v18 = vpop.f32.mrf.mxu3  ;;  %9137 = vtanh.f32 %v6103_v20  ;;  %v9134_v63 = vpop.eup %9133  ;;  %v6110_v28 = vmul.f32 0.5, %v9132_v16  ;;  %v6113_v61 = vadd.f32 0.5, %v6109_v59  ;;  %6239 = vmatpush.msra.mxu1 %v6185_v42  ;;  %8985 = vmatpush.msra.mxu3 %v6185_v42  ;;  %v11922_v20 = vld [vmem:[#allocation138_spill] sm:$0xff]  ;;  %v11928_v59 = vld [vmem:[#allocation209_spill] sm:$0xff] }
 0x6c3   :  { %v6008_v35 = vadd.f32 %v6007_v18, %v5993_v37  ;;  %9139 = vtanh.f32 %v6087_v33  ;;  %v6094_v17 = vmul.f32 0.5, %v9134_v63  ;;  %v6097_v15 = vadd.f32 0.5, %v6093_v29  ;;  %v11927_v63 = vld [vmem:[#allocation225_spill] sm:$0xff] }
 0x6c4   :  { %v5981_v1 = vpop.f32.mrf.mxu1  ;;  %v5995_v39 = vpop.f32.mrf.mxu2  ;;  %v6114_v34 = vadd.f32 0.5, %v6110_v28  ;;  %v6137_v25 = vmul.f32 %v6113_v61, %v10956_v40  ;;  %6240 = vmatpush.msra.mxu1 %v6184_v57  ;;  %8986 = vmatpush.msra.mxu3 %v6184_v57  ;;  %v3663_v12 = vadd.f32 %v11922_v20, %v11921_v0 }
 0x6c5   :  { %v6073_v48 = vadd.f32 %v6008_v35, %v11918_v53  ;;  %v5982_v55 = vadd.f32 %v5981_v1, %v5967_v51  ;;  %v6098_v41 = vadd.f32 0.5, %v6094_v17  ;;  %v11925_v1 = vld [vmem:[#allocation224_spill] sm:$0xff]  ;;  %v11932_v17 = vld [vmem:[#allocation237_spill] sm:$0xff] }
 0x6c6   :  { %v6138_v5 = vmul.f32 %v6114_v34, %v10958_v58  ;;  %6241 = vmatpush.msra.mxu1 %v6183_v19  ;;  %8987 = vmatpush.msra.mxu3 %v6183_v19  ;;  %v3692_v46 = vadd.f32 %v11923_v45, %v3663_v12  ;;  %v11924_v58 = vld [vmem:[#allocation140_spill] sm:$0xff]  ;;  %v3837_v9 = vadd.f32 %v11925_v1, %v10207_v6 }
 0x6c7   :  { %v9136_v3 = vpop.eup %9135  ;;  %9141 = vtanh.f32 %v6073_v48  ;;  %v6080_v7 = vadd.f32 %v5982_v55, %v11919_v62  ;;  %v11926_v48 = vld [vmem:[#allocation141_spill] sm:$0xff] }
 0x6c8   :  { %v6140_v32 = vmul.f32 %v9136_v3, %v6096_v44  ;;  %v9138_v60 = vpop.eup %9137  ;;  %v3721_v51 = vadd.f32 %v11924_v58, %v3692_v46  ;;  %v3866_v44 = vadd.f32 %v11927_v63, %v3837_v9  ;;  %v11929_v3 = vld [vmem:[#allocation215_spill] sm:$0xff] }
 0x6c9   :  { %9143 = vtanh.f32 %v6080_v7  ;;  %v9140_v52 = vpop.eup %9139  ;;  %v6111_v56 = vmul.f32 0.5, %v9138_v60 }
 0x6ca   :  { %v11075_v31 = vadd.f32 %v6140_v32, %v6136_v2  ;;  %v6009_v8 = vpop.f32.mrf.mxu3  ;;  %v6095_v24 = vmul.f32 0.5, %v9140_v52  ;;  %v3750_v55 = vadd.f32 %v11926_v48, %v3721_v51 }
 0x6cb   :  { %v6010_v4 = vadd.f32 %v6009_v8, %v5995_v39  ;;  %v6115_v33 = vadd.f32 0.5, %v6111_v56  ;;  %v11933_v39 = vld [vmem:[#allocation238_spill] sm:$0xff] }
 0x6cc   :  { %v6099_v18 = vadd.f32 0.5, %v6095_v24  ;;  %v3779_v62 = vadd.f32 %v11929_v3, %v3750_v55 }
 0x6cd   :  { %v9142_v43 = vpop.eup %9141  ;;  %v6081_v13 = vadd.f32 %v6010_v4, %v11920_v11  ;;  %v6139_v35 = vmul.f32 %v6115_v33, %v10963_v22  ;;  %v11930_v22 = vld [vmem:[#allocation236_spill] sm:$0xff] }
 0x6ce   :  { %v6141_v49 = vmul.f32 %v9142_v43, %v6097_v15  ;;  %v3895_v7 = vadd.f32 %v11930_v22, %v3866_v44  ;;  %v3808_v26 = vadd.f32 %v11931_v21, %v3779_v62 }
 0x6cf   :  { %v9144_v50 = vpop.eup %9143  ;;  %9145 = vtanh.f32 %v6081_v13  ;;  %v11935_v13 = vld [vmem:[#allocation240_spill] sm:$0xff] }
 0x6d0   :  { %v6145_v30 = vadd.f32 %v6141_v49, %v6137_v25  ;;  %v6142_v37 = vmul.f32 %v9144_v50, %v6098_v41  ;;  %v3924_v61 = vadd.f32 %v11932_v17, %v3895_v7 }
 0x6d2   :  { %v6146_v40 = vadd.f32 %v6142_v37, %v6138_v5  ;;  %v3953_v60 = vadd.f32 %v11934_v27, %v3924_v61 }
 0x6d4   :  { %v3982_v41 = vadd.f32 %v11935_v13, %v3953_v60 }
 0x6d5   :  { %v9146_v23 = vpop.eup %9145 }
 0x6d6   :  { %v6143_v14 = vmul.f32 %v9146_v23, %v6099_v18  ;;  %v6021_v47 = vpop.f32.mrf.mxu0 }
 0x6d8   :  { %v6147_v54 = vadd.f32 %v6143_v14, %v6139_v35  ;;  %v9002_v14 = vld [vmem:[#allocation14] ss:$0 sm:$0xff] }
 0x6dc   :  { %v6035_v16 = vpop.f32.mrf.mxu1  ;;  %v6049_v10 = vpop.f32.mrf.mxu2 }
 0x6dd   :  { %v6036_v53 = vadd.f32 %v6035_v16, %v6021_v47 }
 0x6de   :  { %v6023_v32 = vpop.f32.mrf.mxu0 }
 0x6df   :  { %v6074_v36 = vadd.f32 %v6036_v53, %v11928_v59 }
 0x6e1   :  { %v6120_v29 = vmul.f32 0.5, %v6074_v36 }
 0x6e2   :  { %v6063_v2 = vpop.f32.mrf.mxu3 }
 0x6e3   :  { %9147 = vtanh.f32 %v6120_v29  ;;  %v6064_v28 = vadd.f32 %v6063_v2, %v6049_v10 }
 0x6e4   :  { %v6037_v6 = vpop.f32.mrf.mxu1  ;;  %9149 = vtanh.f32 %v11075_v31  ;;  %v6051_v43 = vpop.f32.mrf.mxu2 }
 0x6e5   :  { %v6075_v8 = vadd.f32 %v6064_v28, %v11933_v39  ;;  %v6038_v38 = vadd.f32 %v6037_v6, %v6023_v32 }
 0x6e7   :  { %v6121_v4 = vmul.f32 0.5, %v6075_v8  ;;  %v6082_v52 = vadd.f32 %v6038_v38, %v3808_v26 }
 0x6e9   :  { %v9148_v15 = vpop.eup %9147  ;;  %9151 = vtanh.f32 %v6121_v4  ;;  %v6122_v34 = vmul.f32 0.5, %v6082_v52 }
 0x6ea   :  { %v6128_v42 = vmul.f32 0.5, %v9148_v15  ;;  %v6065_v11 = vpop.f32.mrf.mxu3  ;;  %v9150_v49 = vpop.eup %9149 }
 0x6eb   :  { %9153 = vtanh.f32 %v6122_v34  ;;  %v6066_v25 = vadd.f32 %v6065_v11, %v6051_v43 }
 0x6ec   :  { %v6132_v56 = vadd.f32 0.5, %v6128_v42  ;;  %9155 = vtanh.f32 %v6145_v30 }
 0x6ed   :  { %v6083_v57 = vadd.f32 %v6066_v25, %v3982_v41  ;;  %9157 = vtanh.f32 %v6146_v40 }
 0x6ee   :  { %v6152_v50 = vmul.f32 %v9150_v49, %v6132_v56 }
 0x6ef   :  { %v9152_v24 = vpop.eup %9151  ;;  %v6123_v31 = vmul.f32 0.5, %v6083_v57 }
 0x6f0   :  { %v6129_v5 = vmul.f32 0.5, %v9152_v24  ;;  %6219 = vmatmul.f32.vlgmr.msra.gmra.mxu0 %v6152_v50 }
 0x6f1   :  { %v9154_v37 = vpop.eup %9153  ;;  %9159 = vtanh.f32 %v6123_v31 }
 0x6f2   :  { %v6133_v19 = vadd.f32 0.5, %v6129_v5  ;;  %v6130_v0 = vmul.f32 0.5, %v9154_v37  ;;  %v9156_v20 = vpop.eup %9155  ;;  %9161 = vtanh.f32 %v6147_v54 }
 0x6f3   :  { %v9158_v18 = vpop.eup %9157 }
 0x6f4   :  { %v6153_v12 = vmul.f32 %v9156_v20, %v6133_v19  ;;  %v6134_v33 = vadd.f32 0.5, %v6130_v0 }
 0x6f6   :  { %v6154_v23 = vmul.f32 %v9158_v18, %v6134_v33  ;;  %6242 = vmatmul.f32.vlgmr.msra.gmra.mxu1 %v6153_v12 }
 0x6f7   :  { %v9160_v45 = vpop.eup %9159 }
 0x6f8   :  { %v6131_v30 = vmul.f32 0.5, %v9160_v45  ;;  %6222 = vmatmul.f32.vlgmr.msra.gmra.mxu2 %v6154_v23  ;;  %v9162_v35 = vpop.eup %9161 }
 0x6fa   :  { %v6135_v46 = vadd.f32 0.5, %v6131_v30 }
 0x6fc   :  { %v6155_v40 = vmul.f32 %v9162_v35, %v6135_v46 }
 0x6fe   :  { %6245 = vmatmul.f32.vlgmr.msra.gmra.mxu3 %v6155_v40 }
 0x76d   :  { %v6220_v47 = vpop.f32.mrf.mxu0 }
 0x76e   :  { %v6221_v58 = vadd.f32 %v9002_v14, %v6220_v47 }
 0x773   :  { %v6243_v51 = vpop.f32.mrf.mxu1 }
 0x774   :  { %v6244_v1 = vadd.f32 %v6243_v51, %v6221_v58 }
 0x776   :  { %6249 = vst [vmem:[#allocation16] sm:$0xff] %v6244_v1 }
 0x77b   :  { %v6223_v9 = vpop.f32.mrf.mxu2 }
 0x77c   :  { %v6224_v54 = vadd.f32 %v9002_v14, %v6223_v9 }
 0x781   :  { %v6246_v16 = vpop.f32.mrf.mxu3 }
 0x782   :  { %v6247_v53 = vadd.f32 %v6246_v16, %v6224_v54 }
 0x784   :  { %6250 = vst [vmem:[#allocation16 + $0x8] sm:$0xff] %v6247_v53 }
 0x785   :  { %6263 = dma.vmem_to_hbm [thread:$0]  %s6256_s5, 256, %s6258_s7, [#allocation7], %s9353_s25, %s9353_s25, %s9354_s26  }
 0x786   :  { %9342 = dma.done.wait [#allocation7], 256  }
 0x787   :  { %9343 = vsyncadd [#allocation7], 4294967040 }
 0x788   :  { %6268 = vsyncpa [#allocation6], 1 }
 0x789   :  { %6269 = vsyncpa [#allocation9], 1 }
 0x78a   :  { %6270 = vsyncpa [#allocation12], 1 }
 0x78b   :  { %6271 = vsyncpa [#allocation15], 1 }
 0x78c   :  { %6272 = vsyncpa [#allocation7], 1 }

</bundles_post_ra>
